<compile_context>
chip_gen: v6e
topology: v6e:2x2x1
jax: 0.10.0
libtpu: 0.0.40
codegen_flags: <defaults>
</compile_context>

<pallas_src>
import functools

import jax
import jax.numpy as jnp
from jax import lax
from jax.experimental import pallas as pl
from jax.experimental.pallas import tpu as pltpu

CP = 128                         # conv output-channel padding (lane width)
VMEM_LIMIT = 32 * 1024 * 1024    # conservative scoped-VMEM cap (safe v5e/v6e/v7x)


def _round_up(x, m):
    return ((x + m - 1) // m) * m


# ----------------------------------------------------------------------------
# Pallas kernel: K-tiled (X @ W + b) with fp32 accumulator and optional ReLU.
# X is already bf16 at the padded K width (no per-call XLA pad/cast).
# ----------------------------------------------------------------------------
def _linear_kernel(x_ref, w_ref, b_ref, o_ref, acc_ref, *, apply_relu):
    k = pl.program_id(1)

    @pl.when(k == 0)
    def _():
        acc_ref[...] = jnp.zeros_like(acc_ref)

    acc_ref[...] += jnp.dot(x_ref[...], w_ref[...],
                            preferred_element_type=jnp.float32)

    @pl.when(k == pl.num_programs(1) - 1)
    def _():
        y = acc_ref[...] + b_ref[...]                      # (m, tn) + (1, tn)
        if apply_relu:
            y = jnp.maximum(y, 0.0)
        o_ref[...] = y.astype(o_ref.dtype)


def pallas_linear(x, layer, *, apply_relu, out_dtype):
    """y = relu?(x @ w + b).  x: (M, Kp) bf16, w: (Kp, Np) bf16, b: (1, Np) f32."""
    m, kp = x.shape
    w_pad, b_pad = layer["w"], layer["b"]
    assert x.dtype == jnp.bfloat16
    assert w_pad.shape[0] == kp and kp % 128 == 0
    np_ = w_pad.shape[1]
    tk = 512 if kp % 512 == 0 else (256 if kp % 256 == 0 else 128)
    tk = min(tk, kp)
    tn = min(128, np_)            # tn=128 -> >=2 parallel N blocks at real sizes

    kernel = functools.partial(_linear_kernel, apply_relu=apply_relu)
    flops = 2 * m * np_ * kp
    bytes_accessed = (x.size * 2 + w_pad.size * 2 + b_pad.size * 4
                      + m * np_ * jnp.dtype(out_dtype).itemsize)

    return pl.pallas_call(
        kernel,
        out_shape=jax.ShapeDtypeStruct((m, np_), out_dtype),
        grid_spec=pltpu.PrefetchScalarGridSpec(
            num_scalar_prefetch=0,
            grid=(np_ // tn, kp // tk),
            in_specs=[
                pl.BlockSpec((m, tk), lambda j, k: (0, k)),
                pl.BlockSpec((tk, tn), lambda j, k: (k, j)),
                pl.BlockSpec((1, tn), lambda j, k: (0, j)),
            ],
            out_specs=pl.BlockSpec((m, tn), lambda j, k: (0, j)),
            scratch_shapes=[pltpu.VMEM((m, tn), jnp.float32)],
        ),
        compiler_params=pltpu.CompilerParams(
            dimension_semantics=("parallel", "arbitrary"),
            vmem_limit_bytes=VMEM_LIMIT),
        cost_estimate=pl.CostEstimate(flops=flops, transcendentals=0,
                                      bytes_accessed=bytes_accessed),
    )(x, w_pad, b_pad)


# ----------------------------------------------------------------------------
# Pallas kernel: fused 3x3 conv (ONE tap-packed matmul) + bias + ReLU + 2x2
# maxpool.  One image per grid step.
# ----------------------------------------------------------------------------
def _conv3x3_relu_pool_kernel(x_ref, w_ref, b_ref, s_ref, o_ref, pk_ref, *,
                              H, W, cin_pack, emit_halo):
    # x_ref : (1, H+2, W+2, Cs)  bf16   halo-padded NHWC input, Cs >= cin_pack
    # w_ref : (KP, CP)           bf16   tap-packed weight (row = t*cin_pack + ci)
    # b_ref : (1, CP)            f32
    # s_ref : (2*P, ph*W)        bf16   stacked even/odd 0/1 W-pool selector
    # o_ref : emit_halo -> (1, ph+2, pw+2, CP) bf16 (zero 1px border)
    #         else      -> (1, ph*pw, CP)      bf16 (lane-dense rows)
    # pk_ref: (H, W, KP)         bf16   scratch: tap-packed matmul operand
    KP = w_ref.shape[0]
    ph, pw = H // 2, W // 2
    P = ph * pw

    # Build the tap-packed operand: 9 static lane-offset stores, no HBM im2col.
    if KP > 9 * cin_pack:   # keep the zero-weight K tail free of scratch garbage
        pk_ref[:, :, 9 * cin_pack:] = jnp.zeros(
            (H, W, KP - 9 * cin_pack), jnp.bfloat16)
    for t in range(9):
        dh, dw = divmod(t, 3)
        pk_ref[:, :, t * cin_pack:(t + 1) * cin_pack] = \
            x_ref[0, dh:dh + H, dw:dw + W, :cin_pack]

    # One MXU pass: (H*W, KP) @ (KP, CP) with fp32 accumulation.
    acc = jnp.dot(pk_ref[...].reshape(H * W, KP), w_ref[...],
                  preferred_element_type=jnp.float32)
    y = jnp.maximum(acc + b_ref[...], 0.0)                 # bias + ReLU (fp32)

    # --- fused 2x2 max-pool -------------------------------------------------
    # H direction: pair rows h = 2m, 2m+1 via a layout-preserving reshape
    # (requires W % 8 == 0, asserted in the wrapper).
    y4 = y.reshape(ph, 2, W, CP)
    yh = jnp.maximum(y4[:, 0, :, :], y4[:, 1, :, :]).reshape(ph * W, CP)
    # W direction: one bf16 selection matmul against the precomputed stacked
    # even/odd matrix, then max of the two halves.  No per-step iota/where,
    # no fp32 matmuls, no sublane-strided loads.
    z = jnp.dot(s_ref[...], yh.astype(jnp.bfloat16),
                preferred_element_type=jnp.float32)        # (2P, CP)
    pooled = jnp.maximum(z[:P, :], z[P:, :]).astype(jnp.bfloat16)

    if emit_halo:
        # Write directly into the next conv layer's halo-padded input layout.
        o_ref[...] = jnp.zeros(o_ref.shape, o_ref.dtype)   # zero 1px border
        for m in range(ph):
            o_ref[0, 1 + m, 1:1 + pw, :] = pooled[m * pw:(m + 1) * pw, :]
    else:
        o_ref[0] = pooled                                   # (P, CP) flat rows


def conv3x3_relu_pool(x_halo, layer, *, emit_halo):
    """x_halo: (B, H+2, W+2, Cs) bf16 -> pooled conv output (bf16)."""
    B, hp2, wp2, cs = x_halo.shape
    H, W = hp2 - 2, wp2 - 2
    assert H % 2 == 0 and W % 2 == 0
    assert W % 8 == 0, "layout-preserving H-pool reshape needs W % 8 == 0"
    ph, pw = H // 2, W // 2
    P = ph * pw
    w_pk, b2, sel = layer["w"], layer["b"], layer["sel"]
    cin_pack = layer["cin_pack"]
    assert cs >= cin_pack
    KP = w_pk.shape[0]

    kernel = functools.partial(_conv3x3_relu_pool_kernel, H=H, W=W,
                               cin_pack=cin_pack, emit_halo=emit_halo)
    if emit_halo:
        out_shape = jax.ShapeDtypeStruct((B, ph + 2, pw + 2, CP), jnp.bfloat16)
        out_spec = pl.BlockSpec((1, ph + 2, pw + 2, CP), lambda b: (b, 0, 0, 0))
    else:
        out_shape = jax.ShapeDtypeStruct((B, P, CP), jnp.bfloat16)
        out_spec = pl.BlockSpec((1, P, CP), lambda b: (b, 0, 0))

    flops = 2 * B * (H * W) * KP * CP + 2 * B * (2 * P) * (ph * W) * CP
    bytes_accessed = (x_halo.size * 2 + w_pk.size * 2 + b2.size * 4
                      + sel.size * 2 + B * P * CP * 2)

    # TODO(synk): for real VGG spatial sizes (224x224) add a row-strip grid
    # axis (+1-row halo) so the per-block footprint stays under v7x's 64 MiB.
    return pl.pallas_call(
        kernel,
        out_shape=out_shape,
        grid_spec=pltpu.PrefetchScalarGridSpec(
            num_scalar_prefetch=0,
            grid=(B,),
            in_specs=[
                pl.BlockSpec((1, H + 2, W + 2, cs), lambda b: (b, 0, 0, 0)),
                pl.BlockSpec((KP, CP), lambda b: (0, 0)),
                pl.BlockSpec((1, CP), lambda b: (0, 0)),
                pl.BlockSpec((2 * P, ph * W), lambda b: (0, 0)),
            ],
            out_specs=out_spec,
            scratch_shapes=[pltpu.VMEM((H, W, KP), jnp.bfloat16)],
        ),
        compiler_params=pltpu.CompilerParams(
            dimension_semantics=("parallel",),       # batch across v7x cores
            vmem_limit_bytes=VMEM_LIMIT),
        cost_estimate=pl.CostEstimate(flops=flops, transcendentals=0,
                                      bytes_accessed=bytes_accessed),
    )(x_halo, w_pk, b2, sel)


# ----------------------------------------------------------------------------
# Parameter preparation (pad + cast + pack ONCE, outside the per-forward path).
# ----------------------------------------------------------------------------
def prepare_params(params, *, spatial):
    feats = []
    H = W = spatial
    for (w, b) in params["features"]:
        cout, cin = int(w.shape[0]), int(w.shape[1])
        cin_pack = _round_up(cin, 8)
        kp = _round_up(9 * cin_pack, 128)
        # Tap-packed weight: row t*cin_pack + ci  <-  w[co, ci, dh, dw], t=3*dh+dw
        wt = jnp.transpose(w, (2, 3, 1, 0))                     # (dh, dw, ci, co)
        wt = jnp.pad(wt, ((0, 0), (0, 0), (0, cin_pack - cin), (0, CP - cout)))
        w_pk = wt.reshape(9 * cin_pack, CP)
        w_pk = jnp.pad(w_pk, ((0, kp - 9 * cin_pack), (0, 0))).astype(jnp.bfloat16)
        b2 = jnp.pad(b, (0, CP - cout)).astype(jnp.float32).reshape(1, CP)
        # Precomputed stacked even/odd 0/1 W-pool selection matrix (bf16).
        ph, pw = H // 2, W // 2
        P = ph * pw
        u = jnp.arange(P)
        ce = (u // pw) * W + 2 * (u % pw)
        sel = jnp.zeros((2 * P, ph * W), jnp.float32)
        sel = sel.at[u, ce].set(1.0).at[P + u, ce + 1].set(1.0)
        feats.append({"w": w_pk, "b": b2, "sel": sel.astype(jnp.bfloat16),
                      "cin_pack": cin_pack})
        H, W = ph, pw

    cout_last = int(params["features"][-1][0].shape[0])
    p_last = H * W          # spatial positions after all pools

    cls = []
    for li, (w, b) in enumerate(params["classifier"]):
        k, n = int(w.shape[0]), int(w.shape[1])
        np_ = _round_up(n, 128)
        if li == 0:
            # Fold torch's NCHW view(B,-1) flatten + channel padding into the
            # weight rows so the conv kernel's lane-dense (B, P, CP) bf16 output
            # is consumed as-is: activation index p*CP + c <- weight row c*P + p.
            assert k == cout_last * p_last
            wr = w.reshape(cout_last, p_last, n)                # (c, p, n)
            wr = jnp.transpose(wr, (1, 0, 2))                   # (p, c, n)
            wr = jnp.pad(wr, ((0, 0), (0, CP - cout_last), (0, np_ - n)))
            wp = wr.reshape(p_last * CP, np_).astype(jnp.bfloat16)
        else:
            kp = _round_up(k, 128)                              # no 512 rounding
            wp = jnp.pad(w, ((0, kp - k), (0, np_ - n))).astype(jnp.bfloat16)
        bp = jnp.pad(b, (0, np_ - n)).astype(jnp.float32).reshape(1, np_)
        cls.append({"w": wp, "b": bp, "n": n})
    return {"features": feats, "classifier": cls}


# ----------------------------------------------------------------------------
# Full VGG forward.
# ----------------------------------------------------------------------------
def vgg_forward(prepped, x_nchw):
    feats = prepped["features"]
    # One-time input prep (the only XLA layout op in the forward): NCHW->NHWC,
    # channel-pad to the first layer's packed width, 1px halo, cast bf16.
    x = jnp.transpose(x_nchw, (0, 2, 3, 1)).astype(jnp.float32)
    c0 = x.shape[-1]
    x = jnp.pad(x, ((0, 0), (1, 1), (1, 1), (0, feats[0]["cin_pack"] - c0)))
    x = x.astype(jnp.bfloat16)

    for i, layer in enumerate(feats):
        last = (i == len(feats) - 1)
        # conv+bias+ReLU+pool fused; emits the next conv's halo-padded bf16
        # input directly, or flat lane-dense rows for the classifier.
        x = conv3x3_relu_pool(x, layer, emit_halo=not last)

    B = x.shape[0]
    x = x.reshape(B, -1)            # (B, P*CP) bf16; row-major merge, no relayout

    l1, l2, l3 = prepped["classifier"]
    x = pallas_linear(x, l1, apply_relu=True, out_dtype=jnp.bfloat16)   # Linear+ReLU
    # Dropout(): identity (eval mode)
    # TODO(synk): train-mode Dropout would need pltpu.prng_seed/prng_random_bits.
    x = pallas_linear(x, l2, apply_relu=True, out_dtype=jnp.bfloat16)   # Linear+ReLU
    # Dropout(): identity (eval mode)
    x = pallas_linear(x, l3, apply_relu=False, out_dtype=jnp.float32)   # final Linear
    return x[:, :l3["n"]]


# ----------------------------------------------------------------------------
# Plain-JAX fp32 reference (loose numerical sanity check).
# ----------------------------------------------------------------------------
def _reference_forward(params, x_nchw):
    x = jnp.transpose(x_nchw, (0, 2, 3, 1))
    for (w, b) in params["features"]:
        y = lax.conv_general_dilated(
            x, jnp.transpose(w, (2, 3, 1, 0)), window_strides=(1, 1),
            padding="SAME", dimension_numbers=("NHWC", "HWIO", "NHWC"))
        x = jax.nn.relu(y + b)
        B, H, W, C = x.shape
        x = x.reshape(B, H // 2, 2, W // 2, 2, C).max(axis=(2, 4))
    B = x.shape[0]
    x = jnp.transpose(x, (0, 3, 1, 2)).reshape(B, -1)
    for i, (w, b) in enumerate(params["classifier"]):
        x = x @ w + b
        if i < 2:
            x = jax.nn.relu(x)
    return x


def init_params(key, in_ch=3, feat_cfg=(8, 16), hidden=128, num_classes=16,
                spatial=16):
    keys = jax.random.split(key, 16)
    ki = iter(range(16))
    features = []
    c_prev = in_ch
    for c in feat_cfg:
        w = 0.05 * jax.random.normal(keys[next(ki)], (c, c_prev, 3, 3), jnp.float32)
        b = 0.01 * jax.random.normal(keys[next(ki)], (c,), jnp.float32)
        features.append((w, b))
        c_prev = c
    out_spatial = spatial // (2 ** len(feat_cfg))
    flat = c_prev * out_spatial * out_spatial
    dims = [flat, hidden, hidden, num_classes]
    classifier = []
    for din, dout in zip(dims[:-1], dims[1:]):
        w = 0.05 * jax.random.normal(keys[next(ki)], (din, dout), jnp.float32)
        b = 0.01 * jax.random.normal(keys[next(ki)], (dout,), jnp.float32)
        classifier.append((w, b))
    return {"features": features, "classifier": classifier}


if __name__ == "__main__":
    key = jax.random.PRNGKey(0)
    kparam, kx = jax.random.split(key)
    params = init_params(kparam)
    prepped = prepare_params(params, spatial=16)             # pack/pad weights once
    x = jax.random.normal(kx, (2, 3, 16, 16), jnp.float32)   # NCHW, PyTorch style

    fwd = jax.jit(lambda inp: vgg_forward(prepped, inp))     # static metadata via closure
    out = fwd(x)
    jax.block_until_ready(out)
    assert out.shape == (2, 16), out.shape
    assert out.dtype == jnp.float32

    # bf16 operands/activations vs fp32 reference: loose relative-L2 check.
    ref = _reference_forward(params, x)
    rel_err = float(jnp.linalg.norm(out - ref) / (jnp.linalg.norm(ref) + 1e-12))
    assert rel_err < 0.1, rel_err

    print("KERNEL_OK")
</pallas_src>

<mosaic_0001>
module attributes {stable_mosaic.version = 11 : i64} {
  func.func @_conv3x3_relu_pool_kernel(%arg0: i32, %arg1: memref<1x18x18x8xbf16, #tpu.memory_space<vmem>>, %arg2: memref<128x128xbf16, #tpu.memory_space<vmem>>, %arg3: memref<1x128xf32, #tpu.memory_space<vmem>>, %arg4: memref<128x128xbf16, #tpu.memory_space<vmem>>, %arg5: memref<1x10x10x128xbf16, #tpu.memory_space<vmem>>, %arg6: memref<16x16x128xbf16, #tpu.memory_space<vmem>>) attributes {dimension_semantics = [#tpu.dimension_semantics<parallel>], iteration_bounds = array<i64: 2>, scalar_prefetch = 0 : i64, scratch_operands = 1 : i64, tpu.core_type = #tpu.core_type<tc>, window_params = [{transform_indices = @transform_0, window_bounds = array<i64: 1, 18, 18, 8>}, {pipeline_mode = #tpu.pipeline_mode<synchronous>, transform_indices = @transform_1, window_bounds = array<i64: 128, 128>}, {pipeline_mode = #tpu.pipeline_mode<synchronous>, transform_indices = @transform_2, window_bounds = array<i64: 1, 128>}, {pipeline_mode = #tpu.pipeline_mode<synchronous>, transform_indices = @transform_3, window_bounds = array<i64: 128, 128>}, {transform_indices = @transform_4, window_bounds = array<i64: 1, 10, 10, 128>}]} {
    %cst = arith.constant 0.000000e+00 : bf16
    %0 = vector.broadcast %cst : bf16 to vector<16x16x56xbf16>
    %c0 = arith.constant 0 : index
    %c0_0 = arith.constant 0 : index
    %c72 = arith.constant 72 : index
    %1 = vector.load %arg6[%c0, %c0_0, %c72] : memref<16x16x128xbf16, #tpu.memory_space<vmem>>, vector<16x16x56xbf16>
    tpu.vector_store %arg6[%c0, %c0_0, %c72], %0 {strides = array<i32>} : memref<16x16x128xbf16, #tpu.memory_space<vmem>>, vector<16x16x56xbf16>,
    %c0_1 = arith.constant 0 : index
    %c0_2 = arith.constant 0 : index
    %c0_3 = arith.constant 0 : index
    %c0_4 = arith.constant 0 : index
    %2 = vector.load %arg1[%c0_1, %c0_2, %c0_3, %c0_4] : memref<1x18x18x8xbf16, #tpu.memory_space<vmem>>, vector<1x16x16x8xbf16>
    %3 = vector.shape_cast %2 : vector<1x16x16x8xbf16> to vector<16x16x8xbf16>
    %c0_5 = arith.constant 0 : index
    %c0_6 = arith.constant 0 : index
    %c0_7 = arith.constant 0 : index
    %4 = vector.load %arg6[%c0_5, %c0_6, %c0_7] : memref<16x16x128xbf16, #tpu.memory_space<vmem>>, vector<16x16x8xbf16>
    tpu.vector_store %arg6[%c0_5, %c0_6, %c0_7], %3 {strides = array<i32>} : memref<16x16x128xbf16, #tpu.memory_space<vmem>>, vector<16x16x8xbf16>,
    %c0_8 = arith.constant 0 : index
    %c0_9 = arith.constant 0 : index
    %c1 = arith.constant 1 : index
    %c0_10 = arith.constant 0 : index
    %5 = vector.load %arg1[%c0_8, %c0_9, %c1, %c0_10] : memref<1x18x18x8xbf16, #tpu.memory_space<vmem>>, vector<1x16x16x8xbf16>
    %6 = vector.shape_cast %5 : vector<1x16x16x8xbf16> to vector<16x16x8xbf16>
    %c0_11 = arith.constant 0 : index
    %c0_12 = arith.constant 0 : index
    %c8 = arith.constant 8 : index
    %7 = vector.load %arg6[%c0_11, %c0_12, %c8] : memref<16x16x128xbf16, #tpu.memory_space<vmem>>, vector<16x16x8xbf16>
    tpu.vector_store %arg6[%c0_11, %c0_12, %c8], %6 {strides = array<i32>} : memref<16x16x128xbf16, #tpu.memory_space<vmem>>, vector<16x16x8xbf16>,
    %c0_13 = arith.constant 0 : index
    %c0_14 = arith.constant 0 : index
    %c2 = arith.constant 2 : index
    %c0_15 = arith.constant 0 : index
    %8 = vector.load %arg1[%c0_13, %c0_14, %c2, %c0_15] : memref<1x18x18x8xbf16, #tpu.memory_space<vmem>>, vector<1x16x16x8xbf16>
    %9 = vector.shape_cast %8 : vector<1x16x16x8xbf16> to vector<16x16x8xbf16>
    %c0_16 = arith.constant 0 : index
    %c0_17 = arith.constant 0 : index
    %c16 = arith.constant 16 : index
    %10 = vector.load %arg6[%c0_16, %c0_17, %c16] : memref<16x16x128xbf16, #tpu.memory_space<vmem>>, vector<16x16x8xbf16>
    tpu.vector_store %arg6[%c0_16, %c0_17, %c16], %9 {strides = array<i32>} : memref<16x16x128xbf16, #tpu.memory_space<vmem>>, vector<16x16x8xbf16>,
    %c0_18 = arith.constant 0 : index
    %c1_19 = arith.constant 1 : index
    %c0_20 = arith.constant 0 : index
    %c0_21 = arith.constant 0 : index
    %11 = vector.load %arg1[%c0_18, %c1_19, %c0_20, %c0_21] : memref<1x18x18x8xbf16, #tpu.memory_space<vmem>>, vector<1x16x16x8xbf16>
    %12 = vector.shape_cast %11 : vector<1x16x16x8xbf16> to vector<16x16x8xbf16>
    %c0_22 = arith.constant 0 : index
    %c0_23 = arith.constant 0 : index
    %c24 = arith.constant 24 : index
    %13 = vector.load %arg6[%c0_22, %c0_23, %c24] : memref<16x16x128xbf16, #tpu.memory_space<vmem>>, vector<16x16x8xbf16>
    tpu.vector_store %arg6[%c0_22, %c0_23, %c24], %12 {strides = array<i32>} : memref<16x16x128xbf16, #tpu.memory_space<vmem>>, vector<16x16x8xbf16>,
    %c0_24 = arith.constant 0 : index
    %c1_25 = arith.constant 1 : index
    %c1_26 = arith.constant 1 : index
    %c0_27 = arith.constant 0 : index
    %14 = vector.load %arg1[%c0_24, %c1_25, %c1_26, %c0_27] : memref<1x18x18x8xbf16, #tpu.memory_space<vmem>>, vector<1x16x16x8xbf16>
    %15 = vector.shape_cast %14 : vector<1x16x16x8xbf16> to vector<16x16x8xbf16>
    %c0_28 = arith.constant 0 : index
    %c0_29 = arith.constant 0 : index
    %c32 = arith.constant 32 : index
    %16 = vector.load %arg6[%c0_28, %c0_29, %c32] : memref<16x16x128xbf16, #tpu.memory_space<vmem>>, vector<16x16x8xbf16>
    tpu.vector_store %arg6[%c0_28, %c0_29, %c32], %15 {strides = array<i32>} : memref<16x16x128xbf16, #tpu.memory_space<vmem>>, vector<16x16x8xbf16>,
    %c0_30 = arith.constant 0 : index
    %c1_31 = arith.constant 1 : index
    %c2_32 = arith.constant 2 : index
    %c0_33 = arith.constant 0 : index
    %17 = vector.load %arg1[%c0_30, %c1_31, %c2_32, %c0_33] : memref<1x18x18x8xbf16, #tpu.memory_space<vmem>>, vector<1x16x16x8xbf16>
    %18 = vector.shape_cast %17 : vector<1x16x16x8xbf16> to vector<16x16x8xbf16>
    %c0_34 = arith.constant 0 : index
    %c0_35 = arith.constant 0 : index
    %c40 = arith.constant 40 : index
    %19 = vector.load %arg6[%c0_34, %c0_35, %c40] : memref<16x16x128xbf16, #tpu.memory_space<vmem>>, vector<16x16x8xbf16>
    tpu.vector_store %arg6[%c0_34, %c0_35, %c40], %18 {strides = array<i32>} : memref<16x16x128xbf16, #tpu.memory_space<vmem>>, vector<16x16x8xbf16>,
    %c0_36 = arith.constant 0 : index
    %c2_37 = arith.constant 2 : index
    %c0_38 = arith.constant 0 : index
    %c0_39 = arith.constant 0 : index
    %20 = vector.load %arg1[%c0_36, %c2_37, %c0_38, %c0_39] : memref<1x18x18x8xbf16, #tpu.memory_space<vmem>>, vector<1x16x16x8xbf16>
    %21 = vector.shape_cast %20 : vector<1x16x16x8xbf16> to vector<16x16x8xbf16>
    %c0_40 = arith.constant 0 : index
    %c0_41 = arith.constant 0 : index
    %c48 = arith.constant 48 : index
    %22 = vector.load %arg6[%c0_40, %c0_41, %c48] : memref<16x16x128xbf16, #tpu.memory_space<vmem>>, vector<16x16x8xbf16>
    tpu.vector_store %arg6[%c0_40, %c0_41, %c48], %21 {strides = array<i32>} : memref<16x16x128xbf16, #tpu.memory_space<vmem>>, vector<16x16x8xbf16>,
    %c0_42 = arith.constant 0 : index
    %c2_43 = arith.constant 2 : index
    %c1_44 = arith.constant 1 : index
    %c0_45 = arith.constant 0 : index
    %23 = vector.load %arg1[%c0_42, %c2_43, %c1_44, %c0_45] : memref<1x18x18x8xbf16, #tpu.memory_space<vmem>>, vector<1x16x16x8xbf16>
    %24 = vector.shape_cast %23 : vector<1x16x16x8xbf16> to vector<16x16x8xbf16>
    %c0_46 = arith.constant 0 : index
    %c0_47 = arith.constant 0 : index
    %c56 = arith.constant 56 : index
    %25 = vector.load %arg6[%c0_46, %c0_47, %c56] : memref<16x16x128xbf16, #tpu.memory_space<vmem>>, vector<16x16x8xbf16>
    tpu.vector_store %arg6[%c0_46, %c0_47, %c56], %24 {strides = array<i32>} : memref<16x16x128xbf16, #tpu.memory_space<vmem>>, vector<16x16x8xbf16>,
    %c0_48 = arith.constant 0 : index
    %c2_49 = arith.constant 2 : index
    %c2_50 = arith.constant 2 : index
    %c0_51 = arith.constant 0 : index
    %26 = vector.load %arg1[%c0_48, %c2_49, %c2_50, %c0_51] : memref<1x18x18x8xbf16, #tpu.memory_space<vmem>>, vector<1x16x16x8xbf16>
    %27 = vector.shape_cast %26 : vector<1x16x16x8xbf16> to vector<16x16x8xbf16>
    %c0_52 = arith.constant 0 : index
    %c0_53 = arith.constant 0 : index
    %c64 = arith.constant 64 : index
    %28 = vector.load %arg6[%c0_52, %c0_53, %c64] : memref<16x16x128xbf16, #tpu.memory_space<vmem>>, vector<16x16x8xbf16>
    tpu.vector_store %arg6[%c0_52, %c0_53, %c64], %27 {strides = array<i32>} : memref<16x16x128xbf16, #tpu.memory_space<vmem>>, vector<16x16x8xbf16>,
    %c0_54 = arith.constant 0 : index
    %c0_55 = arith.constant 0 : index
    %c0_56 = arith.constant 0 : index
    %29 = vector.load %arg6[%c0_54, %c0_55, %c0_56] : memref<16x16x128xbf16, #tpu.memory_space<vmem>>, vector<16x16x128xbf16>
    %30 = vector.shape_cast %29 : vector<16x16x128xbf16> to vector<256x128xbf16>
    %c0_57 = arith.constant 0 : index
    %c0_58 = arith.constant 0 : index
    %31 = vector.load %arg2[%c0_57, %c0_58] : memref<128x128xbf16, #tpu.memory_space<vmem>>, vector<128x128xbf16>
    %cst_59 = arith.constant dense<0.000000e+00> : vector<256x128xf32>
    %32 = tpu.matmul %30, %31, %cst_59 {dimension_numbers = #tpu.dot_dimension_numbers<[1], [0], [0], [1], [0, 0, 1, 1], [], []>} : vector<256x128xbf16>, vector<128x128xbf16>, vector<256x128xf32> -> vector<256x128xf32>
    %c0_60 = arith.constant 0 : index
    %c0_61 = arith.constant 0 : index
    %33 = vector.load %arg3[%c0_60, %c0_61] : memref<1x128xf32, #tpu.memory_space<vmem>>, vector<1x128xf32>
    %34 = vector.broadcast %33 : vector<1x128xf32> to vector<256x128xf32>
    %35 = arith.addf %32, %34 : vector<256x128xf32>
    %cst_62 = arith.constant 0.000000e+00 : f32
    %36 = vector.broadcast %cst_62 : f32 to vector<256x128xf32>
    %37 = arith.maximumf %35, %36 : vector<256x128xf32>
    %38 = vector.shape_cast %37 : vector<256x128xf32> to vector<8x2x16x128xf32>
    %39 = vector.extract_strided_slice %38 {offsets = [0, 0, 0, 0], sizes = [8, 1, 16, 128], strides = [1, 1, 1, 1]} : vector<8x2x16x128xf32> to vector<8x1x16x128xf32>
    %40 = vector.shape_cast %39 : vector<8x1x16x128xf32> to vector<8x16x128xf32>
    %41 = vector.extract_strided_slice %38 {offsets = [0, 1, 0, 0], sizes = [8, 1, 16, 128], strides = [1, 1, 1, 1]} : vector<8x2x16x128xf32> to vector<8x1x16x128xf32>
    %42 = vector.shape_cast %41 : vector<8x1x16x128xf32> to vector<8x16x128xf32>
    %43 = arith.maximumf %40, %42 : vector<8x16x128xf32>
    %44 = vector.shape_cast %43 : vector<8x16x128xf32> to vector<128x128xf32>
    %c0_63 = arith.constant 0 : index
    %c0_64 = arith.constant 0 : index
    %45 = vector.load %arg4[%c0_63, %c0_64] : memref<128x128xbf16, #tpu.memory_space<vmem>>, vector<128x128xbf16>
    %46 = arith.truncf %44 : vector<128x128xf32> to vector<128x128xbf16>
    %cst_65 = arith.constant dense<0.000000e+00> : vector<128x128xf32>
    %47 = tpu.matmul %45, %46, %cst_65 {dimension_numbers = #tpu.dot_dimension_numbers<[1], [0], [0], [1], [0, 0, 1, 1], [], []>} : vector<128x128xbf16>, vector<128x128xbf16>, vector<128x128xf32> -> vector<128x128xf32>
    %48 = vector.extract_strided_slice %47 {offsets = [0, 0], sizes = [64, 128], strides = [1, 1]} : vector<128x128xf32> to vector<64x128xf32>
    %49 = vector.extract_strided_slice %47 {offsets = [64, 0], sizes = [64, 128], strides = [1, 1]} : vector<128x128xf32> to vector<64x128xf32>
    %50 = arith.maximumf %48, %49 : vector<64x128xf32>
    %51 = arith.truncf %50 : vector<64x128xf32> to vector<64x128xbf16>
    %cst_66 = arith.constant 0.000000e+00 : bf16
    %52 = vector.broadcast %cst_66 : bf16 to vector<1x10x10x128xbf16>
    %c0_67 = arith.constant 0 : index
    %c0_68 = arith.constant 0 : index
    %c0_69 = arith.constant 0 : index
    %c0_70 = arith.constant 0 : index
    %53 = vector.load %arg5[%c0_67, %c0_68, %c0_69, %c0_70] : memref<1x10x10x128xbf16, #tpu.memory_space<vmem>>, vector<1x10x10x128xbf16>
    tpu.vector_store %arg5[%c0_67, %c0_68, %c0_69, %c0_70], %52 {strides = array<i32>} : memref<1x10x10x128xbf16, #tpu.memory_space<vmem>>, vector<1x10x10x128xbf16>,
    %54 = vector.extract_strided_slice %51 {offsets = [0, 0], sizes = [8, 128], strides = [1, 1]} : vector<64x128xbf16> to vector<8x128xbf16>
    %c0_71 = arith.constant 0 : index
    %c1_72 = arith.constant 1 : index
    %c1_73 = arith.constant 1 : index
    %c0_74 = arith.constant 0 : index
    %55 = vector.load %arg5[%c0_71, %c1_72, %c1_73, %c0_74] : memref<1x10x10x128xbf16, #tpu.memory_space<vmem>>, vector<1x1x8x128xbf16>
    %56 = vector.shape_cast %55 : vector<1x1x8x128xbf16> to vector<8x128xbf16>
    %57 = vector.shape_cast %54 : vector<8x128xbf16> to vector<1x1x8x128xbf16>
    tpu.vector_store %arg5[%c0_71, %c1_72, %c1_73, %c0_74], %57 {strides = array<i32>} : memref<1x10x10x128xbf16, #tpu.memory_space<vmem>>, vector<1x1x8x128xbf16>,
    %58 = vector.extract_strided_slice %51 {offsets = [8, 0], sizes = [8, 128], strides = [1, 1]} : vector<64x128xbf16> to vector<8x128xbf16>
    %c0_75 = arith.constant 0 : index
    %c2_76 = arith.constant 2 : index
    %c1_77 = arith.constant 1 : index
    %c0_78 = arith.constant 0 : index
    %59 = vector.load %arg5[%c0_75, %c2_76, %c1_77, %c0_78] : memref<1x10x10x128xbf16, #tpu.memory_space<vmem>>, vector<1x1x8x128xbf16>
    %60 = vector.shape_cast %59 : vector<1x1x8x128xbf16> to vector<8x128xbf16>
    %61 = vector.shape_cast %58 : vector<8x128xbf16> to vector<1x1x8x128xbf16>
    tpu.vector_store %arg5[%c0_75, %c2_76, %c1_77, %c0_78], %61 {strides = array<i32>} : memref<1x10x10x128xbf16, #tpu.memory_space<vmem>>, vector<1x1x8x128xbf16>,
    %62 = vector.extract_strided_slice %51 {offsets = [16, 0], sizes = [8, 128], strides = [1, 1]} : vector<64x128xbf16> to vector<8x128xbf16>
    %c0_79 = arith.constant 0 : index
    %c3 = arith.constant 3 : index
    %c1_80 = arith.constant 1 : index
    %c0_81 = arith.constant 0 : index
    %63 = vector.load %arg5[%c0_79, %c3, %c1_80, %c0_81] : memref<1x10x10x128xbf16, #tpu.memory_space<vmem>>, vector<1x1x8x128xbf16>
    %64 = vector.shape_cast %63 : vector<1x1x8x128xbf16> to vector<8x128xbf16>
    %65 = vector.shape_cast %62 : vector<8x128xbf16> to vector<1x1x8x128xbf16>
    tpu.vector_store %arg5[%c0_79, %c3, %c1_80, %c0_81], %65 {strides = array<i32>} : memref<1x10x10x128xbf16, #tpu.memory_space<vmem>>, vector<1x1x8x128xbf16>,
    %66 = vector.extract_strided_slice %51 {offsets = [24, 0], sizes = [8, 128], strides = [1, 1]} : vector<64x128xbf16> to vector<8x128xbf16>
    %c0_82 = arith.constant 0 : index
    %c4 = arith.constant 4 : index
    %c1_83 = arith.constant 1 : index
    %c0_84 = arith.constant 0 : index
    %67 = vector.load %arg5[%c0_82, %c4, %c1_83, %c0_84] : memref<1x10x10x128xbf16, #tpu.memory_space<vmem>>, vector<1x1x8x128xbf16>
    %68 = vector.shape_cast %67 : vector<1x1x8x128xbf16> to vector<8x128xbf16>
    %69 = vector.shape_cast %66 : vector<8x128xbf16> to vector<1x1x8x128xbf16>
    tpu.vector_store %arg5[%c0_82, %c4, %c1_83, %c0_84], %69 {strides = array<i32>} : memref<1x10x10x128xbf16, #tpu.memory_space<vmem>>, vector<1x1x8x128xbf16>,
    %70 = vector.extract_strided_slice %51 {offsets = [32, 0], sizes = [8, 128], strides = [1, 1]} : vector<64x128xbf16> to vector<8x128xbf16>
    %c0_85 = arith.constant 0 : index
    %c5 = arith.constant 5 : index
    %c1_86 = arith.constant 1 : index
    %c0_87 = arith.constant 0 : index
    %71 = vector.load %arg5[%c0_85, %c5, %c1_86, %c0_87] : memref<1x10x10x128xbf16, #tpu.memory_space<vmem>>, vector<1x1x8x128xbf16>
    %72 = vector.shape_cast %71 : vector<1x1x8x128xbf16> to vector<8x128xbf16>
    %73 = vector.shape_cast %70 : vector<8x128xbf16> to vector<1x1x8x128xbf16>
    tpu.vector_store %arg5[%c0_85, %c5, %c1_86, %c0_87], %73 {strides = array<i32>} : memref<1x10x10x128xbf16, #tpu.memory_space<vmem>>, vector<1x1x8x128xbf16>,
    %74 = vector.extract_strided_slice %51 {offsets = [40, 0], sizes = [8, 128], strides = [1, 1]} : vector<64x128xbf16> to vector<8x128xbf16>
    %c0_88 = arith.constant 0 : index
    %c6 = arith.constant 6 : index
    %c1_89 = arith.constant 1 : index
    %c0_90 = arith.constant 0 : index
    %75 = vector.load %arg5[%c0_88, %c6, %c1_89, %c0_90] : memref<1x10x10x128xbf16, #tpu.memory_space<vmem>>, vector<1x1x8x128xbf16>
    %76 = vector.shape_cast %75 : vector<1x1x8x128xbf16> to vector<8x128xbf16>
    %77 = vector.shape_cast %74 : vector<8x128xbf16> to vector<1x1x8x128xbf16>
    tpu.vector_store %arg5[%c0_88, %c6, %c1_89, %c0_90], %77 {strides = array<i32>} : memref<1x10x10x128xbf16, #tpu.memory_space<vmem>>, vector<1x1x8x128xbf16>,
    %78 = vector.extract_strided_slice %51 {offsets = [48, 0], sizes = [8, 128], strides = [1, 1]} : vector<64x128xbf16> to vector<8x128xbf16>
    %c0_91 = arith.constant 0 : index
    %c7 = arith.constant 7 : index
    %c1_92 = arith.constant 1 : index
    %c0_93 = arith.constant 0 : index
    %79 = vector.load %arg5[%c0_91, %c7, %c1_92, %c0_93] : memref<1x10x10x128xbf16, #tpu.memory_space<vmem>>, vector<1x1x8x128xbf16>
    %80 = vector.shape_cast %79 : vector<1x1x8x128xbf16> to vector<8x128xbf16>
    %81 = vector.shape_cast %78 : vector<8x128xbf16> to vector<1x1x8x128xbf16>
    tpu.vector_store %arg5[%c0_91, %c7, %c1_92, %c0_93], %81 {strides = array<i32>} : memref<1x10x10x128xbf16, #tpu.memory_space<vmem>>, vector<1x1x8x128xbf16>,
    %82 = vector.extract_strided_slice %51 {offsets = [56, 0], sizes = [8, 128], strides = [1, 1]} : vector<64x128xbf16> to vector<8x128xbf16>
    %c0_94 = arith.constant 0 : index
    %c8_95 = arith.constant 8 : index
    %c1_96 = arith.constant 1 : index
    %c0_97 = arith.constant 0 : index
    %83 = vector.load %arg5[%c0_94, %c8_95, %c1_96, %c0_97] : memref<1x10x10x128xbf16, #tpu.memory_space<vmem>>, vector<1x1x8x128xbf16>
    %84 = vector.shape_cast %83 : vector<1x1x8x128xbf16> to vector<8x128xbf16>
    %85 = vector.shape_cast %82 : vector<8x128xbf16> to vector<1x1x8x128xbf16>
    tpu.vector_store %arg5[%c0_94, %c8_95, %c1_96, %c0_97], %85 {strides = array<i32>} : memref<1x10x10x128xbf16, #tpu.memory_space<vmem>>, vector<1x1x8x128xbf16>,
    return
  }
  func.func @transform_0(%arg0: i32) -> (i32, i32, i32, i32) {
    %c0_i32 = arith.constant 0 : i32
    %c0_i32_0 = arith.constant 0 : i32
    %c0_i32_1 = arith.constant 0 : i32
    %c0_i32_2 = arith.constant 0 : i32
    return %arg0, %c0_i32, %c0_i32_0, %c0_i32_1 : i32, i32, i32, i32
  }
  func.func @transform_1(%arg0: i32) -> (i32, i32) {
    %c0_i32 = arith.constant 0 : i32
    %c0_i32_0 = arith.constant 0 : i32
    %c0_i32_1 = arith.constant 0 : i32
    return %c0_i32, %c0_i32_0 : i32, i32
  }
  func.func @transform_2(%arg0: i32) -> (i32, i32) {
    %c0_i32 = arith.constant 0 : i32
    %c0_i32_0 = arith.constant 0 : i32
    %c0_i32_1 = arith.constant 0 : i32
    return %c0_i32, %c0_i32_0 : i32, i32
  }
  func.func @transform_3(%arg0: i32) -> (i32, i32) {
    %c0_i32 = arith.constant 0 : i32
    %c0_i32_0 = arith.constant 0 : i32
    %c0_i32_1 = arith.constant 0 : i32
    return %c0_i32, %c0_i32_0 : i32, i32
  }
  func.func @transform_4(%arg0: i32) -> (i32, i32, i32, i32) {
    %c0_i32 = arith.constant 0 : i32
    %c0_i32_0 = arith.constant 0 : i32
    %c0_i32_1 = arith.constant 0 : i32
    %c0_i32_2 = arith.constant 0 : i32
    return %arg0, %c0_i32, %c0_i32_0, %c0_i32_1 : i32, i32, i32, i32
  }
}

module attributes {stable_mosaic.version = 11 : i64} {
  func.func @_conv3x3_relu_pool_kernel(%arg0: i32, %arg1: memref<1x10x10x128xbf16, #tpu.memory_space<vmem>>, %arg2: memref<128x128xbf16, #tpu.memory_space<vmem>>, %arg3: memref<1x128xf32, #tpu.memory_space<vmem>>, %arg4: memref<32x32xbf16, #tpu.memory_space<vmem>>, %arg5: memref<1x16x128xbf16, #tpu.memory_space<vmem>>, %arg6: memref<8x8x128xbf16, #tpu.memory_space<vmem>>) attributes {dimension_semantics = [#tpu.dimension_semantics<parallel>], iteration_bounds = array<i64: 2>, scalar_prefetch = 0 : i64, scratch_operands = 1 : i64, tpu.core_type = #tpu.core_type<tc>, window_params = [{transform_indices = @transform_0, window_bounds = array<i64: 1, 10, 10, 128>}, {pipeline_mode = #tpu.pipeline_mode<synchronous>, transform_indices = @transform_1, window_bounds = array<i64: 128, 128>}, {pipeline_mode = #tpu.pipeline_mode<synchronous>, transform_indices = @transform_2, window_bounds = array<i64: 1, 128>}, {pipeline_mode = #tpu.pipeline_mode<synchronous>, transform_indices = @transform_3, window_bounds = array<i64: 32, 32>}, {transform_indices = @transform_4, window_bounds = array<i64: 1, 16, 128>}]} {
    %cst = arith.constant 0.000000e+00 : bf16
    %0 = vector.broadcast %cst : bf16 to vector<8x8x56xbf16>
    %c0 = arith.constant 0 : index
    %c0_0 = arith.constant 0 : index
    %c72 = arith.constant 72 : index
    %1 = vector.load %arg6[%c0, %c0_0, %c72] : memref<8x8x128xbf16, #tpu.memory_space<vmem>>, vector<8x8x56xbf16>
    tpu.vector_store %arg6[%c0, %c0_0, %c72], %0 {strides = array<i32>} : memref<8x8x128xbf16, #tpu.memory_space<vmem>>, vector<8x8x56xbf16>,
    %c0_1 = arith.constant 0 : index
    %c0_2 = arith.constant 0 : index
    %c0_3 = arith.constant 0 : index
    %c0_4 = arith.constant 0 : index
    %2 = vector.load %arg1[%c0_1, %c0_2, %c0_3, %c0_4] : memref<1x10x10x128xbf16, #tpu.memory_space<vmem>>, vector<1x8x8x8xbf16>
    %3 = vector.shape_cast %2 : vector<1x8x8x8xbf16> to vector<8x8x8xbf16>
    %c0_5 = arith.constant 0 : index
    %c0_6 = arith.constant 0 : index
    %c0_7 = arith.constant 0 : index
    %4 = vector.load %arg6[%c0_5, %c0_6, %c0_7] : memref<8x8x128xbf16, #tpu.memory_space<vmem>>, vector<8x8x8xbf16>
    tpu.vector_store %arg6[%c0_5, %c0_6, %c0_7], %3 {strides = array<i32>} : memref<8x8x128xbf16, #tpu.memory_space<vmem>>, vector<8x8x8xbf16>,
    %c0_8 = arith.constant 0 : index
    %c0_9 = arith.constant 0 : index
    %c1 = arith.constant 1 : index
    %c0_10 = arith.constant 0 : index
    %5 = vector.load %arg1[%c0_8, %c0_9, %c1, %c0_10] : memref<1x10x10x128xbf16, #tpu.memory_space<vmem>>, vector<1x8x8x8xbf16>
    %6 = vector.shape_cast %5 : vector<1x8x8x8xbf16> to vector<8x8x8xbf16>
    %c0_11 = arith.constant 0 : index
    %c0_12 = arith.constant 0 : index
    %c8 = arith.constant 8 : index
    %7 = vector.load %arg6[%c0_11, %c0_12, %c8] : memref<8x8x128xbf16, #tpu.memory_space<vmem>>, vector<8x8x8xbf16>
    tpu.vector_store %arg6[%c0_11, %c0_12, %c8], %6 {strides = array<i32>} : memref<8x8x128xbf16, #tpu.memory_space<vmem>>, vector<8x8x8xbf16>,
    %c0_13 = arith.constant 0 : index
    %c0_14 = arith.constant 0 : index
    %c2 = arith.constant 2 : index
    %c0_15 = arith.constant 0 : index
    %8 = vector.load %arg1[%c0_13, %c0_14, %c2, %c0_15] : memref<1x10x10x128xbf16, #tpu.memory_space<vmem>>, vector<1x8x8x8xbf16>
    %9 = vector.shape_cast %8 : vector<1x8x8x8xbf16> to vector<8x8x8xbf16>
    %c0_16 = arith.constant 0 : index
    %c0_17 = arith.constant 0 : index
    %c16 = arith.constant 16 : index
    %10 = vector.load %arg6[%c0_16, %c0_17, %c16] : memref<8x8x128xbf16, #tpu.memory_space<vmem>>, vector<8x8x8xbf16>
    tpu.vector_store %arg6[%c0_16, %c0_17, %c16], %9 {strides = array<i32>} : memref<8x8x128xbf16, #tpu.memory_space<vmem>>, vector<8x8x8xbf16>,
    %c0_18 = arith.constant 0 : index
    %c1_19 = arith.constant 1 : index
    %c0_20 = arith.constant 0 : index
    %c0_21 = arith.constant 0 : index
    %11 = vector.load %arg1[%c0_18, %c1_19, %c0_20, %c0_21] : memref<1x10x10x128xbf16, #tpu.memory_space<vmem>>, vector<1x8x8x8xbf16>
    %12 = vector.shape_cast %11 : vector<1x8x8x8xbf16> to vector<8x8x8xbf16>
    %c0_22 = arith.constant 0 : index
    %c0_23 = arith.constant 0 : index
    %c24 = arith.constant 24 : index
    %13 = vector.load %arg6[%c0_22, %c0_23, %c24] : memref<8x8x128xbf16, #tpu.memory_space<vmem>>, vector<8x8x8xbf16>
    tpu.vector_store %arg6[%c0_22, %c0_23, %c24], %12 {strides = array<i32>} : memref<8x8x128xbf16, #tpu.memory_space<vmem>>, vector<8x8x8xbf16>,
    %c0_24 = arith.constant 0 : index
    %c1_25 = arith.constant 1 : index
    %c1_26 = arith.constant 1 : index
    %c0_27 = arith.constant 0 : index
    %14 = vector.load %arg1[%c0_24, %c1_25, %c1_26, %c0_27] : memref<1x10x10x128xbf16, #tpu.memory_space<vmem>>, vector<1x8x8x8xbf16>
    %15 = vector.shape_cast %14 : vector<1x8x8x8xbf16> to vector<8x8x8xbf16>
    %c0_28 = arith.constant 0 : index
    %c0_29 = arith.constant 0 : index
    %c32 = arith.constant 32 : index
    %16 = vector.load %arg6[%c0_28, %c0_29, %c32] : memref<8x8x128xbf16, #tpu.memory_space<vmem>>, vector<8x8x8xbf16>
    tpu.vector_store %arg6[%c0_28, %c0_29, %c32], %15 {strides = array<i32>} : memref<8x8x128xbf16, #tpu.memory_space<vmem>>, vector<8x8x8xbf16>,
    %c0_30 = arith.constant 0 : index
    %c1_31 = arith.constant 1 : index
    %c2_32 = arith.constant 2 : index
    %c0_33 = arith.constant 0 : index
    %17 = vector.load %arg1[%c0_30, %c1_31, %c2_32, %c0_33] : memref<1x10x10x128xbf16, #tpu.memory_space<vmem>>, vector<1x8x8x8xbf16>
    %18 = vector.shape_cast %17 : vector<1x8x8x8xbf16> to vector<8x8x8xbf16>
    %c0_34 = arith.constant 0 : index
    %c0_35 = arith.constant 0 : index
    %c40 = arith.constant 40 : index
    %19 = vector.load %arg6[%c0_34, %c0_35, %c40] : memref<8x8x128xbf16, #tpu.memory_space<vmem>>, vector<8x8x8xbf16>
    tpu.vector_store %arg6[%c0_34, %c0_35, %c40], %18 {strides = array<i32>} : memref<8x8x128xbf16, #tpu.memory_space<vmem>>, vector<8x8x8xbf16>,
    %c0_36 = arith.constant 0 : index
    %c2_37 = arith.constant 2 : index
    %c0_38 = arith.constant 0 : index
    %c0_39 = arith.constant 0 : index
    %20 = vector.load %arg1[%c0_36, %c2_37, %c0_38, %c0_39] : memref<1x10x10x128xbf16, #tpu.memory_space<vmem>>, vector<1x8x8x8xbf16>
    %21 = vector.shape_cast %20 : vector<1x8x8x8xbf16> to vector<8x8x8xbf16>
    %c0_40 = arith.constant 0 : index
    %c0_41 = arith.constant 0 : index
    %c48 = arith.constant 48 : index
    %22 = vector.load %arg6[%c0_40, %c0_41, %c48] : memref<8x8x128xbf16, #tpu.memory_space<vmem>>, vector<8x8x8xbf16>
    tpu.vector_store %arg6[%c0_40, %c0_41, %c48], %21 {strides = array<i32>} : memref<8x8x128xbf16, #tpu.memory_space<vmem>>, vector<8x8x8xbf16>,
    %c0_42 = arith.constant 0 : index
    %c2_43 = arith.constant 2 : index
    %c1_44 = arith.constant 1 : index
    %c0_45 = arith.constant 0 : index
    %23 = vector.load %arg1[%c0_42, %c2_43, %c1_44, %c0_45] : memref<1x10x10x128xbf16, #tpu.memory_space<vmem>>, vector<1x8x8x8xbf16>
    %24 = vector.shape_cast %23 : vector<1x8x8x8xbf16> to vector<8x8x8xbf16>
    %c0_46 = arith.constant 0 : index
    %c0_47 = arith.constant 0 : index
    %c56 = arith.constant 56 : index
    %25 = vector.load %arg6[%c0_46, %c0_47, %c56] : memref<8x8x128xbf16, #tpu.memory_space<vmem>>, vector<8x8x8xbf16>
    tpu.vector_store %arg6[%c0_46, %c0_47, %c56], %24 {strides = array<i32>} : memref<8x8x128xbf16, #tpu.memory_space<vmem>>, vector<8x8x8xbf16>,
    %c0_48 = arith.constant 0 : index
    %c2_49 = arith.constant 2 : index
    %c2_50 = arith.constant 2 : index
    %c0_51 = arith.constant 0 : index
    %26 = vector.load %arg1[%c0_48, %c2_49, %c2_50, %c0_51] : memref<1x10x10x128xbf16, #tpu.memory_space<vmem>>, vector<1x8x8x8xbf16>
    %27 = vector.shape_cast %26 : vector<1x8x8x8xbf16> to vector<8x8x8xbf16>
    %c0_52 = arith.constant 0 : index
    %c0_53 = arith.constant 0 : index
    %c64 = arith.constant 64 : index
    %28 = vector.load %arg6[%c0_52, %c0_53, %c64] : memref<8x8x128xbf16, #tpu.memory_space<vmem>>, vector<8x8x8xbf16>
    tpu.vector_store %arg6[%c0_52, %c0_53, %c64], %27 {strides = array<i32>} : memref<8x8x128xbf16, #tpu.memory_space<vmem>>, vector<8x8x8xbf16>,
    %c0_54 = arith.constant 0 : index
    %c0_55 = arith.constant 0 : index
    %c0_56 = arith.constant 0 : index
    %29 = vector.load %arg6[%c0_54, %c0_55, %c0_56] : memref<8x8x128xbf16, #tpu.memory_space<vmem>>, vector<8x8x128xbf16>
    %30 = vector.shape_cast %29 : vector<8x8x128xbf16> to vector<64x128xbf16>
    %c0_57 = arith.constant 0 : index
    %c0_58 = arith.constant 0 : index
    %31 = vector.load %arg2[%c0_57, %c0_58] : memref<128x128xbf16, #tpu.memory_space<vmem>>, vector<128x128xbf16>
    %cst_59 = arith.constant dense<0.000000e+00> : vector<64x128xf32>
    %32 = tpu.matmul %30, %31, %cst_59 {dimension_numbers = #tpu.dot_dimension_numbers<[1], [0], [0], [1], [0, 0, 1, 1], [], []>} : vector<64x128xbf16>, vector<128x128xbf16>, vector<64x128xf32> -> vector<64x128xf32>
    %c0_60 = arith.constant 0 : index
    %c0_61 = arith.constant 0 : index
    %33 = vector.load %arg3[%c0_60, %c0_61] : memref<1x128xf32, #tpu.memory_space<vmem>>, vector<1x128xf32>
    %34 = vector.broadcast %33 : vector<1x128xf32> to vector<64x128xf32>
    %35 = arith.addf %32, %34 : vector<64x128xf32>
    %cst_62 = arith.constant 0.000000e+00 : f32
    %36 = vector.broadcast %cst_62 : f32 to vector<64x128xf32>
    %37 = arith.maximumf %35, %36 : vector<64x128xf32>
    %38 = vector.shape_cast %37 : vector<64x128xf32> to vector<4x2x8x128xf32>
    %39 = vector.extract_strided_slice %38 {offsets = [0, 0, 0, 0], sizes = [4, 1, 8, 128], strides = [1, 1, 1, 1]} : vector<4x2x8x128xf32> to vector<4x1x8x128xf32>
    %40 = vector.shape_cast %39 : vector<4x1x8x128xf32> to vector<4x8x128xf32>
    %41 = vector.extract_strided_slice %38 {offsets = [0, 1, 0, 0], sizes = [4, 1, 8, 128], strides = [1, 1, 1, 1]} : vector<4x2x8x128xf32> to vector<4x1x8x128xf32>
    %42 = vector.shape_cast %41 : vector<4x1x8x128xf32> to vector<4x8x128xf32>
    %43 = arith.maximumf %40, %42 : vector<4x8x128xf32>
    %44 = vector.shape_cast %43 : vector<4x8x128xf32> to vector<32x128xf32>
    %c0_63 = arith.constant 0 : index
    %c0_64 = arith.constant 0 : index
    %45 = vector.load %arg4[%c0_63, %c0_64] : memref<32x32xbf16, #tpu.memory_space<vmem>>, vector<32x32xbf16>
    %46 = arith.truncf %44 : vector<32x128xf32> to vector<32x128xbf16>
    %cst_65 = arith.constant dense<0.000000e+00> : vector<32x128xf32>
    %47 = tpu.matmul %45, %46, %cst_65 {dimension_numbers = #tpu.dot_dimension_numbers<[1], [0], [0], [1], [0, 0, 1, 1], [], []>} : vector<32x32xbf16>, vector<32x128xbf16>, vector<32x128xf32> -> vector<32x128xf32>
    %48 = vector.extract_strided_slice %47 {offsets = [0, 0], sizes = [16, 128], strides = [1, 1]} : vector<32x128xf32> to vector<16x128xf32>
    %49 = vector.extract_strided_slice %47 {offsets = [16, 0], sizes = [16, 128], strides = [1, 1]} : vector<32x128xf32> to vector<16x128xf32>
    %50 = arith.maximumf %48, %49 : vector<16x128xf32>
    %51 = arith.truncf %50 : vector<16x128xf32> to vector<16x128xbf16>
    %c0_66 = arith.constant 0 : index
    %c0_67 = arith.constant 0 : index
    %c0_68 = arith.constant 0 : index
    %52 = vector.load %arg5[%c0_66, %c0_67, %c0_68] : memref<1x16x128xbf16, #tpu.memory_space<vmem>>, vector<1x16x128xbf16>
    %53 = vector.shape_cast %52 : vector<1x16x128xbf16> to vector<16x128xbf16>
    %54 = vector.shape_cast %51 : vector<16x128xbf16> to vector<1x16x128xbf16>
    tpu.vector_store %arg5[%c0_66, %c0_67, %c0_68], %54 {strides = array<i32>} : memref<1x16x128xbf16, #tpu.memory_space<vmem>>, vector<1x16x128xbf16>,
    return
  }
  func.func @transform_0(%arg0: i32) -> (i32, i32, i32, i32) {
    %c0_i32 = arith.constant 0 : i32
    %c0_i32_0 = arith.constant 0 : i32
    %c0_i32_1 = arith.constant 0 : i32
    %c0_i32_2 = arith.constant 0 : i32
    return %arg0, %c0_i32, %c0_i32_0, %c0_i32_1 : i32, i32, i32, i32
  }
  func.func @transform_1(%arg0: i32) -> (i32, i32) {
    %c0_i32 = arith.constant 0 : i32
    %c0_i32_0 = arith.constant 0 : i32
    %c0_i32_1 = arith.constant 0 : i32
    return %c0_i32, %c0_i32_0 : i32, i32
  }
  func.func @transform_2(%arg0: i32) -> (i32, i32) {
    %c0_i32 = arith.constant 0 : i32
    %c0_i32_0 = arith.constant 0 : i32
    %c0_i32_1 = arith.constant 0 : i32
    return %c0_i32, %c0_i32_0 : i32, i32
  }
  func.func @transform_3(%arg0: i32) -> (i32, i32) {
    %c0_i32 = arith.constant 0 : i32
    %c0_i32_0 = arith.constant 0 : i32
    %c0_i32_1 = arith.constant 0 : i32
    return %c0_i32, %c0_i32_0 : i32, i32
  }
  func.func @transform_4(%arg0: i32) -> (i32, i32, i32) {
    %c0_i32 = arith.constant 0 : i32
    %c0_i32_0 = arith.constant 0 : i32
    %c0_i32_1 = arith.constant 0 : i32
    return %arg0, %c0_i32, %c0_i32_0 : i32, i32, i32
  }
}

module attributes {stable_mosaic.version = 11 : i64} {
  func.func @_linear_kernel(%arg0: i32, %arg1: i32, %arg2: memref<2x512xbf16, #tpu.memory_space<vmem>>, %arg3: memref<512x128xbf16, #tpu.memory_space<vmem>>, %arg4: memref<1x128xf32, #tpu.memory_space<vmem>>, %arg5: memref<2x128xbf16, #tpu.memory_space<vmem>>, %arg6: memref<2x128xf32, #tpu.memory_space<vmem>>) attributes {dimension_semantics = [#tpu.dimension_semantics<parallel>, #tpu.dimension_semantics<arbitrary>], iteration_bounds = array<i64: 1, 4>, scalar_prefetch = 0 : i64, scratch_operands = 1 : i64, tpu.core_type = #tpu.core_type<tc>, window_params = [{transform_indices = @transform_0, window_bounds = array<i64: 2, 512>}, {transform_indices = @transform_1, window_bounds = array<i64: 512, 128>}, {transform_indices = @transform_2, window_bounds = array<i64: 1, 128>}, {transform_indices = @transform_3, window_bounds = array<i64: 2, 128>}]} {
    %c0_i32 = arith.constant 0 : i32
    %0 = arith.cmpi eq, %arg1, %c0_i32 : i32
    %1 = arith.extui %0 : i1 to i32
    %c0_i32_0 = arith.constant 0 : i32
    %2 = arith.cmpi ne, %1, %c0_i32_0 : i32
    scf.if %2 {
      %cst_9 = arith.constant 0.000000e+00 : f32
      %12 = vector.broadcast %cst_9 : f32 to vector<2x128xf32>
      %c0_10 = arith.constant 0 : index
      %c0_11 = arith.constant 0 : index
      %13 = vector.load %arg6[%c0_10, %c0_11] : memref<2x128xf32, #tpu.memory_space<vmem>>, vector<2x128xf32>
      tpu.vector_store %arg6[%c0_10, %c0_11], %12 {strides = array<i32>} : memref<2x128xf32, #tpu.memory_space<vmem>>, vector<2x128xf32>,
    } else {
    }
    %c0 = arith.constant 0 : index
    %c0_1 = arith.constant 0 : index
    %3 = vector.load %arg6[%c0, %c0_1] : memref<2x128xf32, #tpu.memory_space<vmem>>, vector<2x128xf32>
    %c0_2 = arith.constant 0 : index
    %c0_3 = arith.constant 0 : index
    %4 = vector.load %arg2[%c0_2, %c0_3] : memref<2x512xbf16, #tpu.memory_space<vmem>>, vector<2x512xbf16>
    %c0_4 = arith.constant 0 : index
    %c0_5 = arith.constant 0 : index
    %5 = vector.load %arg3[%c0_4, %c0_5] : memref<512x128xbf16, #tpu.memory_space<vmem>>, vector<512x128xbf16>
    %cst = arith.constant dense<0.000000e+00> : vector<2x128xf32>
    %6 = tpu.matmul %4, %5, %cst {dimension_numbers = #tpu.dot_dimension_numbers<[1], [0], [0], [1], [0, 0, 1, 1], [], []>} : vector<2x512xbf16>, vector<512x128xbf16>, vector<2x128xf32> -> vector<2x128xf32>
    %7 = arith.addf %3, %6 : vector<2x128xf32>
    %c0_6 = arith.constant 0 : index
    %c0_7 = arith.constant 0 : index
    %8 = vector.load %arg6[%c0_6, %c0_7] : memref<2x128xf32, #tpu.memory_space<vmem>>, vector<2x128xf32>
    tpu.vector_store %arg6[%c0_6, %c0_7], %7 {strides = array<i32>} : memref<2x128xf32, #tpu.memory_space<vmem>>, vector<2x128xf32>,
    %c3_i32 = arith.constant 3 : i32
    %9 = arith.cmpi eq, %arg1, %c3_i32 : i32
    %10 = arith.extui %9 : i1 to i32
    %c0_i32_8 = arith.constant 0 : i32
    %11 = arith.cmpi ne, %10, %c0_i32_8 : i32
    scf.if %11 {
      %c0_9 = arith.constant 0 : index
      %c0_10 = arith.constant 0 : index
      %12 = vector.load %arg6[%c0_9, %c0_10] : memref<2x128xf32, #tpu.memory_space<vmem>>, vector<2x128xf32>
      %c0_11 = arith.constant 0 : index
      %c0_12 = arith.constant 0 : index
      %13 = vector.load %arg4[%c0_11, %c0_12] : memref<1x128xf32, #tpu.memory_space<vmem>>, vector<1x128xf32>
      %14 = vector.broadcast %13 : vector<1x128xf32> to vector<2x128xf32>
      %15 = arith.addf %12, %14 : vector<2x128xf32>
      %cst_13 = arith.constant 0.000000e+00 : f32
      %16 = vector.broadcast %cst_13 : f32 to vector<2x128xf32>
      %17 = arith.maximumf %15, %16 : vector<2x128xf32>
      %18 = arith.truncf %17 : vector<2x128xf32> to vector<2x128xbf16>
      %c0_14 = arith.constant 0 : index
      %c0_15 = arith.constant 0 : index
      %19 = vector.load %arg5[%c0_14, %c0_15] : memref<2x128xbf16, #tpu.memory_space<vmem>>, vector<2x128xbf16>
      tpu.vector_store %arg5[%c0_14, %c0_15], %18 {strides = array<i32>} : memref<2x128xbf16, #tpu.memory_space<vmem>>, vector<2x128xbf16>,
    } else {
    }
    return
  }
  func.func @transform_0(%arg0: i32, %arg1: i32) -> (i32, i32) {
    %c0_i32 = arith.constant 0 : i32
    %c0_i32_0 = arith.constant 0 : i32
    return %c0_i32, %arg1 : i32, i32
  }
  func.func @transform_1(%arg0: i32, %arg1: i32) -> (i32, i32) {
    %c0_i32 = arith.constant 0 : i32
    return %arg1, %arg0 : i32, i32
  }
  func.func @transform_2(%arg0: i32, %arg1: i32) -> (i32, i32) {
    %c0_i32 = arith.constant 0 : i32
    %c0_i32_0 = arith.constant 0 : i32
    return %c0_i32, %arg0 : i32, i32
  }
  func.func @transform_3(%arg0: i32, %arg1: i32) -> (i32, i32) {
    %c0_i32 = arith.constant 0 : i32
    %c0_i32_0 = arith.constant 0 : i32
    return %c0_i32, %arg0 : i32, i32
  }
}

module attributes {stable_mosaic.version = 11 : i64} {
  func.func @_linear_kernel(%arg0: i32, %arg1: i32, %arg2: memref<2x128xbf16, #tpu.memory_space<vmem>>, %arg3: memref<128x128xbf16, #tpu.memory_space<vmem>>, %arg4: memref<1x128xf32, #tpu.memory_space<vmem>>, %arg5: memref<2x128xbf16, #tpu.memory_space<vmem>>, %arg6: memref<2x128xf32, #tpu.memory_space<vmem>>) attributes {dimension_semantics = [#tpu.dimension_semantics<parallel>, #tpu.dimension_semantics<arbitrary>], iteration_bounds = array<i64: 1, 1>, scalar_prefetch = 0 : i64, scratch_operands = 1 : i64, tpu.core_type = #tpu.core_type<tc>, window_params = [{transform_indices = @transform_0, window_bounds = array<i64: 2, 128>}, {transform_indices = @transform_1, window_bounds = array<i64: 128, 128>}, {transform_indices = @transform_2, window_bounds = array<i64: 1, 128>}, {transform_indices = @transform_3, window_bounds = array<i64: 2, 128>}]} {
    %c0_i32 = arith.constant 0 : i32
    %0 = arith.cmpi eq, %arg1, %c0_i32 : i32
    %1 = arith.extui %0 : i1 to i32
    %c0_i32_0 = arith.constant 0 : i32
    %2 = arith.cmpi ne, %1, %c0_i32_0 : i32
    scf.if %2 {
      %cst_10 = arith.constant 0.000000e+00 : f32
      %12 = vector.broadcast %cst_10 : f32 to vector<2x128xf32>
      %c0_11 = arith.constant 0 : index
      %c0_12 = arith.constant 0 : index
      %13 = vector.load %arg6[%c0_11, %c0_12] : memref<2x128xf32, #tpu.memory_space<vmem>>, vector<2x128xf32>
      tpu.vector_store %arg6[%c0_11, %c0_12], %12 {strides = array<i32>} : memref<2x128xf32, #tpu.memory_space<vmem>>, vector<2x128xf32>,
    } else {
    }
    %c0 = arith.constant 0 : index
    %c0_1 = arith.constant 0 : index
    %3 = vector.load %arg6[%c0, %c0_1] : memref<2x128xf32, #tpu.memory_space<vmem>>, vector<2x128xf32>
    %c0_2 = arith.constant 0 : index
    %c0_3 = arith.constant 0 : index
    %4 = vector.load %arg2[%c0_2, %c0_3] : memref<2x128xbf16, #tpu.memory_space<vmem>>, vector<2x128xbf16>
    %c0_4 = arith.constant 0 : index
    %c0_5 = arith.constant 0 : index
    %5 = vector.load %arg3[%c0_4, %c0_5] : memref<128x128xbf16, #tpu.memory_space<vmem>>, vector<128x128xbf16>
    %cst = arith.constant dense<0.000000e+00> : vector<2x128xf32>
    %6 = tpu.matmul %4, %5, %cst {dimension_numbers = #tpu.dot_dimension_numbers<[1], [0], [0], [1], [0, 0, 1, 1], [], []>} : vector<2x128xbf16>, vector<128x128xbf16>, vector<2x128xf32> -> vector<2x128xf32>
    %7 = arith.addf %3, %6 : vector<2x128xf32>
    %c0_6 = arith.constant 0 : index
    %c0_7 = arith.constant 0 : index
    %8 = vector.load %arg6[%c0_6, %c0_7] : memref<2x128xf32, #tpu.memory_space<vmem>>, vector<2x128xf32>
    tpu.vector_store %arg6[%c0_6, %c0_7], %7 {strides = array<i32>} : memref<2x128xf32, #tpu.memory_space<vmem>>, vector<2x128xf32>,
    %c0_i32_8 = arith.constant 0 : i32
    %9 = arith.cmpi eq, %arg1, %c0_i32_8 : i32
    %10 = arith.extui %9 : i1 to i32
    %c0_i32_9 = arith.constant 0 : i32
    %11 = arith.cmpi ne, %10, %c0_i32_9 : i32
    scf.if %11 {
      %c0_10 = arith.constant 0 : index
      %c0_11 = arith.constant 0 : index
      %12 = vector.load %arg6[%c0_10, %c0_11] : memref<2x128xf32, #tpu.memory_space<vmem>>, vector<2x128xf32>
      %c0_12 = arith.constant 0 : index
      %c0_13 = arith.constant 0 : index
      %13 = vector.load %arg4[%c0_12, %c0_13] : memref<1x128xf32, #tpu.memory_space<vmem>>, vector<1x128xf32>
      %14 = vector.broadcast %13 : vector<1x128xf32> to vector<2x128xf32>
      %15 = arith.addf %12, %14 : vector<2x128xf32>
      %cst_14 = arith.constant 0.000000e+00 : f32
      %16 = vector.broadcast %cst_14 : f32 to vector<2x128xf32>
      %17 = arith.maximumf %15, %16 : vector<2x128xf32>
      %18 = arith.truncf %17 : vector<2x128xf32> to vector<2x128xbf16>
      %c0_15 = arith.constant 0 : index
      %c0_16 = arith.constant 0 : index
      %19 = vector.load %arg5[%c0_15, %c0_16] : memref<2x128xbf16, #tpu.memory_space<vmem>>, vector<2x128xbf16>
      tpu.vector_store %arg5[%c0_15, %c0_16], %18 {strides = array<i32>} : memref<2x128xbf16, #tpu.memory_space<vmem>>, vector<2x128xbf16>,
    } else {
    }
    return
  }
  func.func @transform_0(%arg0: i32, %arg1: i32) -> (i32, i32) {
    %c0_i32 = arith.constant 0 : i32
    %c0_i32_0 = arith.constant 0 : i32
    return %c0_i32, %arg1 : i32, i32
  }
  func.func @transform_1(%arg0: i32, %arg1: i32) -> (i32, i32) {
    %c0_i32 = arith.constant 0 : i32
    return %arg1, %arg0 : i32, i32
  }
  func.func @transform_2(%arg0: i32, %arg1: i32) -> (i32, i32) {
    %c0_i32 = arith.constant 0 : i32
    %c0_i32_0 = arith.constant 0 : i32
    return %c0_i32, %arg0 : i32, i32
  }
  func.func @transform_3(%arg0: i32, %arg1: i32) -> (i32, i32) {
    %c0_i32 = arith.constant 0 : i32
    %c0_i32_0 = arith.constant 0 : i32
    return %c0_i32, %arg0 : i32, i32
  }
}

module attributes {stable_mosaic.version = 11 : i64} {
  func.func @_linear_kernel(%arg0: i32, %arg1: i32, %arg2: memref<2x128xbf16, #tpu.memory_space<vmem>>, %arg3: memref<128x128xbf16, #tpu.memory_space<vmem>>, %arg4: memref<1x128xf32, #tpu.memory_space<vmem>>, %arg5: memref<2x128xf32, #tpu.memory_space<vmem>>, %arg6: memref<2x128xf32, #tpu.memory_space<vmem>>) attributes {dimension_semantics = [#tpu.dimension_semantics<parallel>, #tpu.dimension_semantics<arbitrary>], iteration_bounds = array<i64: 1, 1>, scalar_prefetch = 0 : i64, scratch_operands = 1 : i64, tpu.core_type = #tpu.core_type<tc>, window_params = [{transform_indices = @transform_0, window_bounds = array<i64: 2, 128>}, {transform_indices = @transform_1, window_bounds = array<i64: 128, 128>}, {transform_indices = @transform_2, window_bounds = array<i64: 1, 128>}, {transform_indices = @transform_3, window_bounds = array<i64: 2, 128>}]} {
    %c0_i32 = arith.constant 0 : i32
    %0 = arith.cmpi eq, %arg1, %c0_i32 : i32
    %1 = arith.extui %0 : i1 to i32
    %c0_i32_0 = arith.constant 0 : i32
    %2 = arith.cmpi ne, %1, %c0_i32_0 : i32
    scf.if %2 {
      %cst_10 = arith.constant 0.000000e+00 : f32
      %12 = vector.broadcast %cst_10 : f32 to vector<2x128xf32>
      %c0_11 = arith.constant 0 : index
      %c0_12 = arith.constant 0 : index
      %13 = vector.load %arg6[%c0_11, %c0_12] : memref<2x128xf32, #tpu.memory_space<vmem>>, vector<2x128xf32>
      tpu.vector_store %arg6[%c0_11, %c0_12], %12 {strides = array<i32>} : memref<2x128xf32, #tpu.memory_space<vmem>>, vector<2x128xf32>,
    } else {
    }
    %c0 = arith.constant 0 : index
    %c0_1 = arith.constant 0 : index
    %3 = vector.load %arg6[%c0, %c0_1] : memref<2x128xf32, #tpu.memory_space<vmem>>, vector<2x128xf32>
    %c0_2 = arith.constant 0 : index
    %c0_3 = arith.constant 0 : index
    %4 = vector.load %arg2[%c0_2, %c0_3] : memref<2x128xbf16, #tpu.memory_space<vmem>>, vector<2x128xbf16>
    %c0_4 = arith.constant 0 : index
    %c0_5 = arith.constant 0 : index
    %5 = vector.load %arg3[%c0_4, %c0_5] : memref<128x128xbf16, #tpu.memory_space<vmem>>, vector<128x128xbf16>
    %cst = arith.constant dense<0.000000e+00> : vector<2x128xf32>
    %6 = tpu.matmul %4, %5, %cst {dimension_numbers = #tpu.dot_dimension_numbers<[1], [0], [0], [1], [0, 0, 1, 1], [], []>} : vector<2x128xbf16>, vector<128x128xbf16>, vector<2x128xf32> -> vector<2x128xf32>
    %7 = arith.addf %3, %6 : vector<2x128xf32>
    %c0_6 = arith.constant 0 : index
    %c0_7 = arith.constant 0 : index
    %8 = vector.load %arg6[%c0_6, %c0_7] : memref<2x128xf32, #tpu.memory_space<vmem>>, vector<2x128xf32>
    tpu.vector_store %arg6[%c0_6, %c0_7], %7 {strides = array<i32>} : memref<2x128xf32, #tpu.memory_space<vmem>>, vector<2x128xf32>,
    %c0_i32_8 = arith.constant 0 : i32
    %9 = arith.cmpi eq, %arg1, %c0_i32_8 : i32
    %10 = arith.extui %9 : i1 to i32
    %c0_i32_9 = arith.constant 0 : i32
    %11 = arith.cmpi ne, %10, %c0_i32_9 : i32
    scf.if %11 {
      %c0_10 = arith.constant 0 : index
      %c0_11 = arith.constant 0 : index
      %12 = vector.load %arg6[%c0_10, %c0_11] : memref<2x128xf32, #tpu.memory_space<vmem>>, vector<2x128xf32>
      %c0_12 = arith.constant 0 : index
      %c0_13 = arith.constant 0 : index
      %13 = vector.load %arg4[%c0_12, %c0_13] : memref<1x128xf32, #tpu.memory_space<vmem>>, vector<1x128xf32>
      %14 = vector.broadcast %13 : vector<1x128xf32> to vector<2x128xf32>
      %15 = arith.addf %12, %14 : vector<2x128xf32>
      %c0_14 = arith.constant 0 : index
      %c0_15 = arith.constant 0 : index
      %16 = vector.load %arg5[%c0_14, %c0_15] : memref<2x128xf32, #tpu.memory_space<vmem>>, vector<2x128xf32>
      tpu.vector_store %arg5[%c0_14, %c0_15], %15 {strides = array<i32>} : memref<2x128xf32, #tpu.memory_space<vmem>>, vector<2x128xf32>,
    } else {
    }
    return
  }
  func.func @transform_0(%arg0: i32, %arg1: i32) -> (i32, i32) {
    %c0_i32 = arith.constant 0 : i32
    %c0_i32_0 = arith.constant 0 : i32
    return %c0_i32, %arg1 : i32, i32
  }
  func.func @transform_1(%arg0: i32, %arg1: i32) -> (i32, i32) {
    %c0_i32 = arith.constant 0 : i32
    return %arg1, %arg0 : i32, i32
  }
  func.func @transform_2(%arg0: i32, %arg1: i32) -> (i32, i32) {
    %c0_i32 = arith.constant 0 : i32
    %c0_i32_0 = arith.constant 0 : i32
    return %c0_i32, %arg0 : i32, i32
  }
  func.func @transform_3(%arg0: i32, %arg1: i32) -> (i32, i32) {
    %c0_i32 = arith.constant 0 : i32
    %c0_i32_0 = arith.constant 0 : i32
    return %c0_i32, %arg0 : i32, i32
  }
}

</mosaic_0001>

<bundles_post_ra>
// kernel: _lambda_.8
= control target key start
LH: loop header
LB: loop body
LE: loop exit
PB: predicated region body
PF: predicated region fallthrough
CT: control target
= control target key end

     0   :  { %v195_v0 = vmov 0.0   ;;  %vm196_vm0 = vmmov 0   ;;  %s250_s1 = inlined_call_operand.vmem [shape: bf16[128,128], index: 1, kind: input, shape index: {}]   ;;  %s251_s0 = inlined_call_operand.vmem [shape: bf16[2,128], index: 0, kind: input, shape index: {}]   ;;  %s252_s2 = inlined_call_operand.vmem [shape: f32[1,128], index: 2, kind: input, shape index: {}]   ;;  %s253_s3 = inlined_call_operand.vmem [shape: bf16[2,128], index: 3, kind: output, shape index: {}]  }
   0x1   :  { %165 = vmatprep.subr.bf16.mxu0 %v195_v0  ;;  %19 = vst [vmem:[#allocation2] sm:$0x3] %v195_v0  ;;  %v187_v1 = vld [vmem:[%s250_s1 + $0x38] sm:$0xff]   ;;  %181 = vmatprep.mubr.msk.bf16.mxu0 %vm196_vm0, %v195_v0  ;;  %v188_v2 = vld [vmem:[%s250_s1 + $0x30] sm:$0xff]   ;;  %v189_v3 = vld [vmem:[%s250_s1 + $0x28] sm:$0xff]  }
   0x2   :  { %166 = vmatpush3.bf16.msra.mxu0 %v187_v1  ;;  %v190_v4 = vld [vmem:[%s250_s1 + $0x20] sm:$0xff]   ;;  %v191_v5 = vld [vmem:[%s250_s1 + $0x18] sm:$0xff]   ;;  %v192_v6 = vld [vmem:[%s250_s1 + $0x10] sm:$0xff]  }
   0x3   :  { %167 = vmatprep.subr.bf16.mxu0 %v195_v0  ;;  %v193_v7 = vld [vmem:[%s250_s1 + $0x8] sm:$0xff]   ;;  %v194_v8 = vld [vmem:[%s250_s1] sm:$0xff]  }
   0x4   :  { %v21_v9 = vld [vmem:[%s251_s0] sm:$0x1] }
   0x5   :  { %v155_v16 = vld [vmem:[%s252_s2] ss:$0 sm:$0xff] }
   0x6   :  { %168 = vmatpush3.bf16.msra.mxu0 %v188_v2 }
   0x7   :  { %169 = vmatprep.subr.bf16.mxu0 %v195_v0 }
   0x8   :  { %v20_v10 = vld [vmem:[#allocation2] sm:$0x3] }
   0xa   :  { %170 = vmatpush3.bf16.msra.mxu0 %v189_v3 }
   0xb   :  { %171 = vmatprep.subr.bf16.mxu0 %v195_v0 }
   0xe   :  { %172 = vmatpush3.bf16.msra.mxu0 %v190_v4 }
   0xf   :  { %173 = vmatprep.subr.bf16.mxu0 %v195_v0 }
  0x12   :  { %174 = vmatpush3.bf16.msra.mxu0 %v191_v5 }
  0x13   :  { %175 = vmatprep.subr.bf16.mxu0 %v195_v0 }
  0x16   :  { %176 = vmatpush3.bf16.msra.mxu0 %v192_v6 }
  0x17   :  { %177 = vmatprep.subr.bf16.mxu0 %v195_v0 }
  0x1a   :  { %178 = vmatpush3.bf16.msra.mxu0 %v193_v7 }
  0x1b   :  { %179 = vmatprep.subr.bf16.mxu0 %v195_v0 }
  0x1e   :  { %180 = vmatpush3.bf16.msra.mxu0 %v194_v8 }
  0x21   :  { %182 = vmatmul.mubr.bf16.vlgmr.msra.gmra.mxu0 %v21_v9 }
  0xe1   :  { %v120_v11 = vpop.f32.mrf.mxu0 }
  0xe2   :  { %v126_v12 = vadd.f32 %v120_v11, %v20_v10 }
  0xe3   :  { %v183_v13 = vpop.f32.mrf.mxu0 }
  0xe4   :  { %127 = vst [vmem:[#allocation2] sm:$0x3] %v126_v12 }
  0xe5   :  { %v123_v14 = vpop.f32.mrf.mxu0 }
  0xe7   :  { %v184_v15 = vpop.f32.mrf.mxu0 }
  0xeb   :  { %v131_v17 = vld [vmem:[#allocation2] sm:$0x3] }
  0xec   :  { %v139_v18 = vadd.f32 %v155_v16, %v131_v17 }
  0xee   :  { %v140_v19 = vmax.f32 %v139_v18, 0.0 }
  0xf0   :  { %v141_v20 = vpack.c.bf16 %v140_v19, %v140_v19 }
  0xf2   :  { %142 = vst [vmem:[%s253_s3] sm:$0x1] %v141_v20 }

// kernel: _lambda_.7
= control target key start
LH: loop header
LB: loop body
LE: loop exit
PB: predicated region body
PF: predicated region fallthrough
CT: control target
= control target key end

     0   :  { %s888_s12 = smov 0   ;;  %s890_s13 = smov 0   ;;  %s975_s0 = inlined_call_operand.vmem [shape: bf16[2,2048], index: 0, kind: input, shape index: {}]   ;;  %s976_s1 = inlined_call_operand.vmem [shape: bf16[2048,128], index: 1, kind: input, shape index: {}]   ;;  %s977_s2 = inlined_call_operand.vmem [shape: f32[1,128], index: 2, kind: input, shape index: {}]   ;;  %s978_s3 = inlined_call_operand.vmem [shape: bf16[2,128], index: 3, kind: output, shape index: {}]  }
   0x1   :  { %s892_s14 = smov 0  }
   0x2 LB: > { %s22_s15 = sadd.s32 1, %s860_s13  ;;  %p697_p0 = scmp.ge.s32.totalorder %s864_s14, 1  ;;  %s864_s14 = sphi %s892_s14, %s13_s14   ;;  %s860_s13 = sphi %s890_s13, %s980_s13   ;;  %s856_s12 = sphi %s888_s12, %s979_s12  }
   0x3   : > { %p23_p1 = scmp.ge.s32.totalorder %s22_s15, 4  ;;  %p173_p2 = scmp.lt.s32.totalorder %s864_s14, 5 }
   0x5   : > { %s982_s15 = smov (%p23_p1, %s22_s15), 0  ;;  %p174_p3 = pnand %p697_p0, %p173_p2 }
   0x6   : > { %s698_s16 = sshll.u32 (!%p174_p3), %s856_s12, 2  ;;  %s699_s17 = sshll.u32 (!%p174_p3), %s856_s12, 6 }
   0x7   : > { %177 = sbr.rel (%p174_p3) target bundleno = 272 (0x110), region = 32  ;;  %p206_p4 = scmp.lt.s32.totalorder (!%p174_p3), %s698_s16, 15 }
   0x8   : > { %p211_p5 = scmp.lt.s32.totalorder (!%p174_p3), %s699_s17, 255  ;;  %p701_p6 = scmp.ne.s32.totalorder (!%p174_p3), %s856_s12, 0 }
   0xc   : > { %s984_s16 = smov (!%p206_p4, %s698_s16), 15  ;;  %s986_s17 = smov (!%p211_p5, %s699_s17), 255 }
   0xd   : > { %s208_s20 = scalar_lea.vmem %s975_s0, %s984_s16  ;;  %s700_s21 = sshll.u32 %s986_s17, 2 }
   0xe   : > { %s919_s24 = scalar_lea.vmem %s976_s1, %s700_s21  ;;  %229 = sbr.rel (%p701_p6) target bundleno = 21 (0x15), region = 36 }
  0x13   : > { %v866_v0 = vmov 0.0  }
  0x14   : > { %230 = vst [vmem:[#allocation2] sm:$0x3] %v866_v0 }
  0x15 PF: > { %v810_v1 = vld [vmem:[%s919_s24 + $0x78] sm:$0xff]   ;;  %v814_v5 = vld [vmem:[%s919_s24 + $0x70] sm:$0xff]   ;;  %v818_v9 = vld [vmem:[%s919_s24 + $0x68] sm:$0xff]   ;;  %v309_v31 = vlaneseq  ;;  %v867_v35 = vmov 1966171168   ;;  %p735_p7 = scmp.ne.s32.totalorder %s856_s12, 3 }
  0x16   : > { %v811_v2 = vld [vmem:[%s919_s24 + $0xf8] sm:$0xff]   ;;  %740 = vmatprep.subr.bf16.mxu0 %v810_v1  ;;  %v815_v6 = vld [vmem:[%s919_s24 + $0xf0] sm:$0xff]   ;;  %v819_v10 = vld [vmem:[%s919_s24 + $0xe8] sm:$0xff]   ;;  %v307_v36 = vunpack.c.l.s4 %v867_v35 }
  0x17   : > { %v812_v3 = vld [vmem:[%s919_s24 + $0x38] sm:$0xff]   ;;  %762 = vmatprep.subr.bf16.mxu1 %v811_v2  ;;  %v816_v7 = vld [vmem:[%s919_s24 + $0x30] sm:$0xff]   ;;  %v820_v11 = vld [vmem:[%s919_s24 + $0x28] sm:$0xff]   ;;  %v310_v37 = vshrl.u32 %v309_v31, 7 }
  0x18   : > { %v813_v4 = vld [vmem:[%s919_s24 + $0xb8] sm:$0xff]   ;;  %741 = vmatpush3.bf16.msra.mxu0 %v812_v3  ;;  %v817_v8 = vld [vmem:[%s919_s24 + $0xb0] sm:$0xff]   ;;  %v821_v12 = vld [vmem:[%s919_s24 + $0xa8] sm:$0xff]   ;;  %v308_v39 = vunpack.c.0.s8 %v307_v36 }
  0x19   : > { %763 = vmatpush3.bf16.msra.mxu1 %v813_v4  ;;  %742 = vmatprep.subr.bf16.mxu0 %v814_v5  ;;  %v822_v13 = vld [vmem:[%s919_s24 + $0x60] sm:$0xff]   ;;  %v826_v17 = vld [vmem:[%s919_s24 + $0x58] sm:$0xff]   ;;  %v830_v21 = vld [vmem:[%s919_s24 + $0x50] sm:$0xff]  }
  0x1a   : > { %764 = vmatprep.subr.bf16.mxu1 %v815_v6  ;;  %v823_v14 = vld [vmem:[%s919_s24 + $0xe0] sm:$0xff]   ;;  %v827_v18 = vld [vmem:[%s919_s24 + $0xd8] sm:$0xff]   ;;  %v831_v22 = vld [vmem:[%s919_s24 + $0xd0] sm:$0xff]   ;;  %v311_v40 = vsub.s32 %v308_v39, %v310_v37 }
  0x1b   : > { %v824_v15 = vld [vmem:[%s919_s24 + $0x20] sm:$0xff]   ;;  %v828_v19 = vld [vmem:[%s919_s24 + $0x18] sm:$0xff]   ;;  %v832_v23 = vld [vmem:[%s919_s24 + $0x10] sm:$0xff]  }
  0x1c   : > { %743 = vmatpush3.bf16.msra.mxu0 %v816_v7  ;;  %v825_v16 = vld [vmem:[%s919_s24 + $0xa0] sm:$0xff]   ;;  %v829_v20 = vld [vmem:[%s919_s24 + $0x98] sm:$0xff]   ;;  %v833_v24 = vld [vmem:[%s919_s24 + $0x90] sm:$0xff]  }
  0x1d   : > { %765 = vmatpush3.bf16.msra.mxu1 %v817_v8  ;;  %744 = vmatprep.subr.bf16.mxu0 %v818_v9  ;;  %v834_v25 = vld [vmem:[%s919_s24 + $0x48] sm:$0xff]   ;;  %v838_v29 = vld [vmem:[%s919_s24 + $0x40] sm:$0xff]  }
  0x1e   : > { %766 = vmatprep.subr.bf16.mxu1 %v819_v10  ;;  %v835_v26 = vld [vmem:[%s919_s24 + $0xc8] sm:$0xff]   ;;  %v839_v30 = vld [vmem:[%s919_s24 + $0xc0] sm:$0xff]  }
  0x1f   : > { %v836_v27 = vld [vmem:[%s919_s24 + $0x8] sm:$0xff]   ;;  %v840_v32 = vld [vmem:[%s919_s24] sm:$0xff]  }
  0x20   : > { %745 = vmatpush3.bf16.msra.mxu0 %v820_v11  ;;  %v837_v28 = vld [vmem:[%s919_s24 + $0x88] sm:$0xff]   ;;  %v841_v33 = vld [vmem:[%s919_s24 + $0x80] sm:$0xff]  }
  0x21   : > { %767 = vmatpush3.bf16.msra.mxu1 %v821_v12  ;;  %746 = vmatprep.subr.bf16.mxu0 %v822_v13  ;;  %v702_v34 = vld.sshfl [vmem:[%s208_s20] sm:$0x33 pattern:$0x75316420] }
  0x22   : > { %768 = vmatprep.subr.bf16.mxu1 %v823_v14  ;;  %v305_v38 = vcombine.high %v702_v34, %v702_v34  ;;  %v312_v42 = vrot.slane %v702_v34, %v311_v40  ;;  %v231_v52 = vld [vmem:[#allocation2] sm:$0x3] }
  0x24   : > { %747 = vmatpush3.bf16.msra.mxu0 %v824_v15  ;;  %v319_v41 = vrot.slane %v305_v38, %v311_v40  ;;  %v320_v44 = vcombine.high %v312_v42, %v312_v42 }
  0x25   : > { %769 = vmatpush3.bf16.msra.mxu1 %v825_v16  ;;  %748 = vmatprep.subr.bf16.mxu0 %v826_v17 }
  0x26   : > { %770 = vmatprep.subr.bf16.mxu1 %v827_v18  ;;  %550 = vmatprep.mubr.bf16.mxu0 %v319_v41  ;;  %v321_v43 = vcombine.high %v319_v41, %v319_v41 }
  0x28   : > { %749 = vmatpush3.bf16.msra.mxu0 %v828_v19  ;;  %590 = vmatprep.mubr.bf16.mxu1 %v321_v43 }
  0x29   : > { %771 = vmatpush3.bf16.msra.mxu1 %v829_v20  ;;  %750 = vmatprep.subr.bf16.mxu0 %v830_v21 }
  0x2a   : > { %772 = vmatprep.subr.bf16.mxu1 %v831_v22 }
  0x2c   : > { %751 = vmatpush3.bf16.msra.mxu0 %v832_v23 }
  0x2d   : > { %773 = vmatpush3.bf16.msra.mxu1 %v833_v24  ;;  %752 = vmatprep.subr.bf16.mxu0 %v834_v25 }
  0x2e   : > { %774 = vmatprep.subr.bf16.mxu1 %v835_v26 }
  0x30   : > { %753 = vmatpush3.bf16.msra.mxu0 %v836_v27 }
  0x31   : > { %775 = vmatpush3.bf16.msra.mxu1 %v837_v28  ;;  %754 = vmatprep.subr.bf16.mxu0 %v838_v29 }
  0x32   : > { %776 = vmatprep.subr.bf16.mxu1 %v839_v30 }
  0x34   : > { %755 = vmatpush3.bf16.msra.mxu0 %v840_v32 }
  0x35   : > { %777 = vmatpush3.bf16.msra.mxu1 %v841_v33 }
  0x37   : > { %551 = vmatmul.mubr.bf16.vlgmr.msra.gmra.mxu0 %v312_v42 }
  0x38   : > { %591 = vmatmul.mubr.bf16.vlgmr.msra.gmra.mxu1 %v320_v44 }
  0xf7   : > { %v756_v45 = vpop.f32.mrf.mxu0 }
  0xf8   : > { %v778_v46 = vpop.f32.mrf.mxu1 }
  0xf9   : > { %v757_v47 = vpop.f32.mrf.mxu0 }
  0xfa   : > { %v758_v48 = vadd.f32 %v757_v47, %v756_v45  ;;  %v779_v49 = vpop.f32.mrf.mxu1 }
  0xfb   : > { %v759_v50 = vpop.f32.mrf.mxu0  ;;  %v780_v51 = vadd.f32 %v779_v49, %v778_v46 }
  0xfc   : > { %v781_v53 = vpop.f32.mrf.mxu1 }
  0xfd   : > { %v760_v54 = vpop.f32.mrf.mxu0  ;;  %v593_v55 = vadd.f32 %v780_v51, %v758_v48  ;;  %603 = sbr.rel (%p735_p7) target bundleno = 272 (0x110), region = 40 }
  0xfe   : > { %v782_v56 = vpop.f32.mrf.mxu1 }
  0xff   : > { %v598_v57 = vadd.f32 %v593_v55, %v231_v52 }
 0x101   : > { %599 = vst [vmem:[#allocation2] sm:$0x3] %v598_v57 }
 0x102   : > { %v736_v59 = vld [vmem:[%s977_s2] ss:$0 sm:$0xff] }
 0x108   : > { %v604_v58 = vld [vmem:[#allocation2] sm:$0x3] }
 0x109   : > { %v612_v60 = vadd.f32 %v736_v59, %v604_v58 }
 0x10b   : > { %v613_v61 = vmax.f32 %v612_v60, 0.0 }
 0x10d   : > { %v614_v62 = vpack.c.bf16 %v613_v61, %v613_v61 }
 0x10f   : > { %615 = vst [vmem:[%s978_s3] sm:$0x1] %v614_v62 }
 0x110 PF: > { %s13_s14 = sadd.s32 1, %s864_s14   ;;  %s979_s12 = smov %s860_s13 }
 0x111   : > { %p10_p8 = scmp.ge.s32.totalorder %s13_s14, 6   ;;  %s980_s13 = smov %s982_s15 }
 0x113   :  { %12 = sbr.rel (!%p10_p8) target bundleno = 2 (0x2), region = 76 }

// kernel: _lambda_.6
= control target key start
LH: loop header
LB: loop body
LE: loop exit
PB: predicated region body
PF: predicated region fallthrough
CT: control target
= control target key end

     0   :  { %s1687_s15 = smov 0   ;;  %s2115_s0 = inlined_call_operand.vmem [shape: bf16[2,10,10,128], index: 0, kind: input, shape index: {}]   ;;  %s2116_s1 = inlined_call_operand.vmem [shape: bf16[128,128], index: 1, kind: input, shape index: {}]   ;;  %s2117_s2 = inlined_call_operand.vmem [shape: f32[1,128], index: 2, kind: input, shape index: {}]   ;;  %s2118_s3 = inlined_call_operand.vmem [shape: bf16[32,32], index: 3, kind: input, shape index: {}]   ;;  %s2119_s4 = inlined_call_operand.vmem [shape: bf16[2,16,128], index: 4, kind: output, shape index: {}]  }
   0x1 LB: > { %s1424_s16 = sadd.s32 4294967295, %s1651_s15   ;;  %p1428_p0 = scmp.ge.s32.totalorder %s1651_s15, 1  ;;  %s1651_s15 = sphi %s1687_s15, %s14_s15  }
   0x2   : > { %p162_p1 = scmp.lt.s32.totalorder %s1651_s15, 3 }
   0x4   : > { %p163_p2 = pnand %p1428_p0, %p162_p1 }
   0x5   : > { %p188_p3 = scmp.lt.s32.totalorder (!%p163_p2), %s1424_s16, 1  ;;  %s1654_s21 = smov (!%p163_p2), 16  }
   0x6   : > { %166 = sbr.rel (%p163_p2) target bundleno = 686 (0x2ae), region = 36  ;;  %s1655_s22 = smov (!%p163_p2), 24  }
   0x7   : > { %s1656_s23 = smov (!%p163_p2), 8   ;;  %s1657_s24 = smov (!%p163_p2), 32  }
   0x8   : > { %s1658_s27 = smov (!%p163_p2), 40   ;;  %s1659_s8 = smov (!%p163_p2), 48  }
   0x9   : > { %s1660_s11 = smov (!%p163_p2), 56   ;;  %s1661_s14 = smov (!%p163_p2), 64  }
   0xb   : > { %vm421_vm0 = vcmask 1042432   ;;  %s2125_s16 = smov (!%p188_p3, %s1424_s16), 1  ;;  %vm422_vm1 = vcmask 1046532   ;;  %vm241_vm3 = vsmask.f32 3328  ;;  %vm199_vm4 = vcmask 1044032  }
   0xc   : > { %s1613_s17 = smul.u32 80, %s2125_s16  ;;  %vm1698_vm2 = vmor %vm421_vm0, %vm422_vm1  ;;  %v1653_v16 = vmov 0   ;;  %vm242_vm5 = vsmask.f32 7440  ;;  %vm216_vm7 = vcmask 60416   ;;  %vm380_vm8 = vcmask 126016  }
   0xd   : > { %202 = vst.msk [vmem:[#allocation2 + $0x8] sm:$0xf] %vm199_vm4, %v1653_v16  ;;  %200 = vst.msk [vmem:[#allocation2] sm:$0xf] %vm199_vm4, %v1653_v16  ;;  %vm480_vm9 = vcmask 191616   ;;  %vm530_vm10 = vcmask 257216  }
   0xe   : > { %s1705_s20 = scalar_lea.vmem %s2115_s0, %s1613_s17  ;;  %201 = vst.msk [vmem:[#allocation2 + $0x4] sm:$0xf] %vm199_vm4, %v1653_v16  ;;  %203 = vst.msk [vmem:[#allocation2 + $0xc] sm:$0xf] %vm199_vm4, %v1653_v16  ;;  %vm691_vm11 = vcmask 322816   ;;  %vm788_vm12 = vcmask 388416  }
   0xf   : > { %v391_v1 = vld [vmem:[%s1705_s20 + $0x8] sm:$0xe]  ;;  %v392_v2 = vld [vmem:[%s1705_s20 + $0xc] sm:$0x1]  ;;  %v389_v3 = vld [vmem:[%s1705_s20] sm:$0xe] }
  0x10   : > { %v1433_v4 = vrot.slane %v391_v1, 9  ;;  %v430_v5 = vrot.slane %v392_v2, 5  ;;  %v390_v6 = vld [vmem:[%s1705_s20 + $0x4] sm:$0x1]  ;;  %v1432_v7 = vrot.slane %v389_v3, 9  ;;  %vm1747_vm6 = vmor %vm241_vm3, %vm242_vm5  ;;  %vm838_vm13 = vcmask 454016  }
  0x11   : > { %v426_v8 = vrot.slane %v390_v6, 5  ;;  %v395_v9 = vld [vmem:[%s1705_s20 + $0x18] sm:$0xe]  ;;  %v396_v10 = vld [vmem:[%s1705_s20 + $0x1c] sm:$0x1]  ;;  %vm999_vm14 = vcmask 519616  }
  0x12   : > { %v431_v11 = vsel %vm1698_vm2, %v1433_v4, %v430_v5  ;;  %v1435_v12 = vrot.slane %v395_v9, 9  ;;  %v438_v13 = vrot.slane %v396_v10, 5  ;;  %v393_v14 = vld [vmem:[%s1705_s20 + $0x10] sm:$0xe]  ;;  %v394_v15 = vld [vmem:[%s1705_s20 + $0x14] sm:$0x1] }
  0x13   : > { %204 = vst.msk [vmem:[#allocation2 + $0x10] sm:$0xf] %vm199_vm4, %v1653_v16  ;;  %205 = vst.msk [vmem:[#allocation2 + $0x14] sm:$0xf] %vm199_vm4, %v1653_v16  ;;  %458 = vrot.lane.b32.xlu1 %v431_v11, %s1654_s21  ;;  %v427_v17 = vsel %vm1698_vm2, %v1432_v7, %v426_v8  ;;  %v1434_v18 = vrot.slane %v393_v14, 9  ;;  %v434_v19 = vrot.slane %v394_v15, 5 }
  0x14   : > { %206 = vst.msk [vmem:[#allocation2 + $0x18] sm:$0xf] %vm199_vm4, %v1653_v16  ;;  %207 = vst.msk [vmem:[#allocation2 + $0x1c] sm:$0xf] %vm199_vm4, %v1653_v16  ;;  %456 = vrot.lane.b32.xlu0 %v427_v17, %s1654_s21  ;;  %v439_v20 = vsel %vm1698_vm2, %v1435_v12, %v438_v13  ;;  %v229_v21 = vld [vmem:[%s1705_s20 + $0x10] sm:$0xf] }
  0x15   : > { %v230_v22 = vld [vmem:[%s1705_s20 + $0x14] sm:$0x1]  ;;  %v225_v23 = vld [vmem:[%s1705_s20] sm:$0xf]  ;;  %v435_v24 = vsel %vm1698_vm2, %v1434_v18, %v434_v19  ;;  %v273_v25 = vshrl.u32 %v229_v21, 16  ;;  %v276_v26 = vshll.u32 %v229_v21, 16 }
  0x16   : > { %v282_v27 = vshll.u32 %v230_v22, 16  ;;  %v226_v28 = vld [vmem:[%s1705_s20 + $0x4] sm:$0x1]  ;;  %v1441_v29 = vld [vmem:[%s1705_s20 + $0x10] sm:$0xf]  ;;  %v245_v30 = vshrl.u32 %v225_v23, 16 }
  0x17   : > { %v248_v31 = vshll.u32 %v225_v23, 16  ;;  %v254_v32 = vshll.u32 %v226_v28, 16  ;;  %v231_v33 = vld [vmem:[%s1705_s20 + $0x18] sm:$0xf]  ;;  %462 = vrot.lane.b32.xlu1 %v439_v20, %s1654_s21  ;;  %v1440_v34 = vld [vmem:[%s1705_s20 + $0x8] sm:$0xf] }
  0x18   : > { %v275_v35 = vrot.slane %v273_v25, 4  ;;  %v278_v36 = vrot.slane %v276_v26, 5  ;;  %v284_v37 = vrot.slane %v282_v27, 5  ;;  %v232_v38 = vld [vmem:[%s1705_s20 + $0x1c] sm:$0x1]  ;;  %v287_v39 = vshrl.u32 %v231_v33, 16  ;;  %460 = vrot.lane.b32.xlu0 %v435_v24, %s1654_s21 }
  0x19   : > { %v247_v40 = vrot.slane %v245_v30, 4  ;;  %v250_v41 = vrot.slane %v248_v31, 5  ;;  %v256_v42 = vrot.slane %v254_v32, 5  ;;  %v290_v43 = vshll.u32 %v231_v33, 16  ;;  %v227_v44 = vld [vmem:[%s1705_s20 + $0x8] sm:$0xf] }
  0x1a   : > { %v279_v45 = vor.u32 %v278_v36, %v275_v35  ;;  %v289_v46 = vrot.slane %v287_v39, 4  ;;  %v296_v47 = vshll.u32 %v232_v38, 16  ;;  %v228_v48 = vld [vmem:[%s1705_s20 + $0xc] sm:$0x1]  ;;  %v259_v49 = vshrl.u32 %v227_v44, 16 }
  0x1b   : > { %v251_v51 = vor.u32 %v250_v41, %v247_v40  ;;  %v292_v52 = vrot.slane %v290_v43, 5  ;;  %v262_v53 = vshll.u32 %v227_v44, 16  ;;  %v268_v54 = vshll.u32 %v228_v48, 16  ;;  %508 = vrot.lane.b32.xlu1 %v1441_v29, %s1655_s22  ;;  %v1450_v62 = vld [vmem:[%s1705_s20 + $0x10] sm:$0xf] }
  0x1c   : > { %v280_v55 = vrot.slane %v279_v45, 4  ;;  %v298_v56 = vrot.slane %v296_v47, 5  ;;  %v261_v57 = vrot.slane %v259_v49, 4  ;;  %506 = vrot.lane.b32.xlu0 %v1440_v34, %s1655_s22  ;;  %v1451_v1 = vld [vmem:[%s1705_s20 + $0x14] sm:$0x1]  ;;  %v570_v2 = vshrl.u32 %v1450_v62, 16 }
  0x1d   : > { %v252_v58 = vrot.slane %v251_v51, 4  ;;  %v293_v59 = vor.u32 %v292_v52, %v289_v46  ;;  %v264_v60 = vrot.slane %v262_v53, 5  ;;  %v270_v61 = vrot.slane %v268_v54, 5  ;;  %v1448_v4 = vld [vmem:[%s1705_s20 + $0x8] sm:$0xf] }
  0x1e   : > { %v285_v63 = vsel %vm1747_vm6, %v280_v55, %v284_v37  ;;  %v573_v3 = vshll.u32 %v1450_v62, 16  ;;  %v579_v8 = vshll.u32 %v1451_v1, 16  ;;  %v1449_v9 = vld [vmem:[%s1705_s20 + $0xc] sm:$0x1]  ;;  %v1454_v10 = vld [vmem:[%s1705_s20 + $0x20] sm:$0xf] }
  0x1f   : > { %v257_v5 = vsel %vm1747_vm6, %v252_v58, %v256_v42  ;;  %v294_v6 = vrot.slane %v293_v59, 4  ;;  %v265_v7 = vor.u32 %v264_v60, %v261_v57  ;;  %360 = vrot.lane.b32.xlu1 %v285_v63, %s1656_s23  ;;  %v572_v11 = vrot.slane %v570_v2, 4  ;;  %v1452_v18 = vld [vmem:[%s1705_s20 + $0x18] sm:$0xf]  ;;  %v1455_v22 = vld [vmem:[%s1705_s20 + $0x24] sm:$0x1] }
  0x20   : > { %v575_v12 = vrot.slane %v573_v3, 5  ;;  %v556_v13 = vshrl.u32 %v1448_v4, 16  ;;  %v559_v14 = vshll.u32 %v1448_v4, 16  ;;  %356 = vrot.lane.b32.xlu0 %v257_v5, %s1656_s23  ;;  %v565_v17 = vshll.u32 %v1449_v9, 16  ;;  %v1453_v26 = vld [vmem:[%s1705_s20 + $0x1c] sm:$0x1] }
  0x21   : > { %v299_v15 = vsel %vm1747_vm6, %v294_v6, %v298_v56  ;;  %v266_v16 = vrot.slane %v265_v7, 4  ;;  %v598_v23 = vshrl.u32 %v1454_v10, 16  ;;  %v601_v25 = vshll.u32 %v1454_v10, 16  ;;  %v1443_v31 = vld [vmem:[%s1705_s20 + $0x20] sm:$0xf] }
  0x22   : > { %v576_v19 = vor.u32 %v575_v12, %v572_v11  ;;  %v558_v20 = vrot.slane %v556_v13, 4  ;;  %v561_v21 = vrot.slane %v559_v14, 5  ;;  %v581_v27 = vrot.slane %v579_v8, 5  ;;  %v1442_v36 = vld [vmem:[%s1705_s20 + $0x18] sm:$0xf] }
  0x23   : > { %v271_v24 = vsel %vm1747_vm6, %v266_v16, %v270_v61  ;;  %362 = vrot.lane.b32.xlu1 %v299_v15, %s1656_s23  ;;  %v600_v29 = vrot.slane %v598_v23, 4  ;;  %v584_v30 = vshrl.u32 %v1452_v18, 16  ;;  %v603_v33 = vrot.slane %v601_v25, 5  ;;  %v1466_v47 = vld [vmem:[%s1705_s20 + $0x10] sm:$0xe]  ;;  %v1631_v11 = vld [vmem:[%s2116_s1 + $0x38] sm:$0xff]  }
  0x24   : > { %v562_v28 = vor.u32 %v561_v21, %v558_v20  ;;  %358 = vrot.lane.b32.xlu0 %v271_v24, %s1656_s23  ;;  %v577_v32 = vrot.slane %v576_v19, 4  ;;  %v607_v34 = vshll.u32 %v1455_v22, 16  ;;  %v587_v35 = vshll.u32 %v1452_v18, 16  ;;  %v1467_v48 = vld [vmem:[%s1705_s20 + $0x14] sm:$0x1]  ;;  %1581 = vmatprep.subr.bf16.mxu0 %v1631_v11 }
  0x25   : > { %v567_v38 = vrot.slane %v565_v17, 5  ;;  %v586_v39 = vrot.slane %v584_v30, 4  ;;  %v593_v40 = vshll.u32 %v1453_v26, 16  ;;  %v604_v41 = vor.u32 %v603_v33, %v600_v29  ;;  %v1464_v52 = vld [vmem:[%s1705_s20 + $0x8] sm:$0xe]  ;;  %1582 = vmatpush3.bf16.msra.mxu0 %v1631_v11  ;;  %v1632_v20 = vld [vmem:[%s2116_s1 + $0x30] sm:$0xff]  }
  0x26   : > { %v563_v37 = vrot.slane %v562_v28, 4  ;;  %v589_v42 = vrot.slane %v587_v35, 5  ;;  %v582_v43 = vsel %vm1747_vm6, %v577_v32, %v581_v27  ;;  %v609_v45 = vrot.slane %v607_v34, 5  ;;  %v1465_v53 = vld [vmem:[%s1705_s20 + $0xc] sm:$0x1]  ;;  %1583 = vmatprep.subr.bf16.mxu0 %v1632_v20 }
  0x27   : > { %512 = vrot.lane.b32.xlu1 %v1443_v31, %s1655_s22  ;;  %v605_v44 = vrot.slane %v604_v41, 4  ;;  %v595_v51 = vrot.slane %v593_v40, 5  ;;  %v1481_v55 = vrot.slane %v1466_v47, 9  ;;  %v738_v56 = vrot.slane %v1467_v48, 5  ;;  %v1470_v60 = vld [vmem:[%s1705_s20 + $0x20] sm:$0xe] }
  0x28   : > { %510 = vrot.lane.b32.xlu0 %v1442_v36, %s1655_s22  ;;  %v590_v46 = vor.u32 %v589_v42, %v586_v39  ;;  %v568_v49 = vsel %vm1747_vm6, %v563_v37, %v567_v38  ;;  %v1480_v58 = vrot.slane %v1464_v52, 9  ;;  %v734_v59 = vrot.slane %v1465_v53, 5  ;;  %v1471_v61 = vld [vmem:[%s1705_s20 + $0x24] sm:$0x1]  ;;  %v1498_v63 = vld [vmem:[%s1705_s20 + $0x18] sm:$0xf] }
  0x29   : > { %v610_v57 = vsel %vm1747_vm6, %v605_v44, %v609_v45  ;;  %v1468_v1 = vld [vmem:[%s1705_s20 + $0x18] sm:$0xe]  ;;  %v1469_v2 = vld [vmem:[%s1705_s20 + $0x1c] sm:$0x1]  ;;  %v1496_v3 = vld [vmem:[%s1705_s20 + $0x10] sm:$0xf]  ;;  %v739_v6 = vsel %vm1698_vm2, %v1481_v55, %v738_v56  ;;  %1584 = vmatpush3.bf16.msra.mxu0 %v1632_v20 }
  0x2a   : > { %v591_v54 = vrot.slane %v590_v46, 4  ;;  %v1483_v4 = vrot.slane %v1470_v60, 9  ;;  %v746_v5 = vrot.slane %v1471_v61, 5  ;;  %v735_v7 = vsel %vm1698_vm2, %v1480_v58, %v734_v59  ;;  %v1502_v10 = vld [vmem:[%s1705_s20 + $0x28] sm:$0xf]  ;;  %v1634_v46 = vld [vmem:[%s2116_s1 + $0x20] sm:$0xff]  }
  0x2b   : > { %669 = vrot.lane.b32.xlu1 %v582_v43, %s1657_s24  ;;  %v878_v8 = vshrl.u32 %v1498_v63, 16  ;;  %v881_v9 = vshll.u32 %v1498_v63, 16  ;;  %v1482_v12 = vrot.slane %v1468_v1, 9  ;;  %v742_v13 = vrot.slane %v1469_v2, 5  ;;  %v1500_v16 = vld [vmem:[%s1705_s20 + $0x20] sm:$0xf] }
  0x2c   : > { %667 = vrot.lane.b32.xlu0 %v568_v49, %s1657_s24  ;;  %v596_v62 = vsel %vm1747_vm6, %v591_v54, %v595_v51  ;;  %v864_v14 = vshrl.u32 %v1496_v3, 16  ;;  %v867_v15 = vshll.u32 %v1496_v3, 16  ;;  %v747_v17 = vsel %vm1698_vm2, %v1483_v4, %v746_v5  ;;  %v1499_v21 = vld [vmem:[%s1705_s20 + $0x1c] sm:$0x1]  ;;  %v1497_v29 = vld [vmem:[%s1705_s20 + $0x14] sm:$0x1] }
  0x2d   : > { %v906_v18 = vshrl.u32 %v1502_v10, 16  ;;  %v909_v19 = vshll.u32 %v1502_v10, 16  ;;  %v880_v22 = vrot.slane %v878_v8, 4  ;;  %v883_v23 = vrot.slane %v881_v9, 5  ;;  %v1633_v30 = vld [vmem:[%s2116_s1 + $0x28] sm:$0xff]   ;;  %v1635_v1 = vld [vmem:[%s2116_s1 + $0x18] sm:$0xff]  }
  0x2e   : > { %v892_v24 = vshrl.u32 %v1500_v16, 16  ;;  %v895_v25 = vshll.u32 %v1500_v16, 16  ;;  %v743_v26 = vsel %vm1698_vm2, %v1482_v12, %v742_v13  ;;  %v866_v27 = vrot.slane %v864_v14, 4  ;;  %v1503_v32 = vld [vmem:[%s1705_s20 + $0x2c] sm:$0x1]  ;;  %1585 = vmatprep.subr.bf16.mxu0 %v1633_v30 }
  0x2f   : > { %673 = vrot.lane.b32.xlu1 %v610_v57, %s1657_s24  ;;  %v869_v28 = vrot.slane %v867_v15, 5  ;;  %v887_v31 = vshll.u32 %v1499_v21, 16  ;;  %v908_v33 = vrot.slane %v906_v18, 4  ;;  %v911_v34 = vrot.slane %v909_v19, 5  ;;  %v1489_v35 = vld [vmem:[%s1705_s20 + $0x18] sm:$0xf]  ;;  %1586 = vmatpush3.bf16.msra.mxu0 %v1633_v30 }
  0x30   : > { %671 = vrot.lane.b32.xlu0 %v596_v62, %s1657_s24  ;;  %v884_v36 = vor.u32 %v883_v23, %v880_v22  ;;  %v1501_v37 = vld [vmem:[%s1705_s20 + $0x24] sm:$0x1]  ;;  %v894_v38 = vrot.slane %v892_v24, 4  ;;  %v897_v39 = vrot.slane %v895_v25, 5  ;;  %v1488_v40 = vld [vmem:[%s1705_s20 + $0x10] sm:$0xf]  ;;  %1587 = vmatprep.subr.bf16.mxu0 %v1634_v46 }
  0x31   : > { %v870_v41 = vor.u32 %v869_v28, %v866_v27  ;;  %v873_v42 = vshll.u32 %v1497_v29, 16  ;;  %v235_v43 = vld [vmem:[%s1705_s20 + $0x28] sm:$0xf]  ;;  %v915_v44 = vshll.u32 %v1503_v32, 16  ;;  %v233_v45 = vld [vmem:[%s1705_s20 + $0x20] sm:$0xf]  ;;  %v912_v48 = vor.u32 %v911_v34, %v908_v33 }
  0x32   : > { %v889_v47 = vrot.slane %v887_v31, 5  ;;  %v901_v49 = vshll.u32 %v1501_v37, 16  ;;  %v1491_v51 = vld [vmem:[%s1705_s20 + $0x28] sm:$0xf]  ;;  %v885_v52 = vrot.slane %v884_v36, 4  ;;  %v898_v53 = vor.u32 %v897_v39, %v894_v38 }
  0x33   : > { %766 = vrot.lane.b32.xlu1 %v739_v6, %s1658_s27  ;;  %v315_v54 = vshrl.u32 %v235_v43, 16  ;;  %v318_v55 = vshll.u32 %v235_v43, 16  ;;  %v1490_v56 = vld [vmem:[%s1705_s20 + $0x20] sm:$0xf]  ;;  %v871_v57 = vrot.slane %v870_v41, 4  ;;  %v875_v58 = vrot.slane %v873_v42, 5  ;;  %1588 = vmatpush3.bf16.msra.mxu0 %v1634_v46 }
  0x34   : > { %764 = vrot.lane.b32.xlu0 %v735_v7, %s1658_s27  ;;  %v301_v59 = vshrl.u32 %v233_v45, 16  ;;  %v304_v60 = vshll.u32 %v233_v45, 16  ;;  %v917_v61 = vrot.slane %v915_v44, 5  ;;  %v1514_v62 = vld [vmem:[%s1705_s20 + $0x18] sm:$0xe]  ;;  %v913_v2 = vrot.slane %v912_v48, 4  ;;  %1589 = vmatprep.subr.bf16.mxu0 %v1635_v1 }
  0x35   : > { %v1515_v63 = vld [vmem:[%s1705_s20 + $0x1c] sm:$0x1]  ;;  %v903_v3 = vrot.slane %v901_v49, 5  ;;  %v1512_v4 = vld [vmem:[%s1705_s20 + $0x10] sm:$0xe]  ;;  %v890_v6 = vsel %vm1747_vm6, %v885_v52, %v889_v47  ;;  %v899_v7 = vrot.slane %v898_v53, 4  ;;  %v876_v11 = vsel %vm1747_vm6, %v871_v57, %v875_v58 }
  0x36   : > { %v1513_v5 = vld [vmem:[%s1705_s20 + $0x14] sm:$0x1]  ;;  %v236_v8 = vld [vmem:[%s1705_s20 + $0x2c] sm:$0x1]  ;;  %v317_v9 = vrot.slane %v315_v54, 4  ;;  %v320_v10 = vrot.slane %v318_v55, 5  ;;  %v918_v19 = vsel %vm1747_vm6, %v913_v2, %v917_v61 }
  0x37   : > { %770 = vrot.lane.b32.xlu1 %v747_v17, %s1658_s27  ;;  %v303_v12 = vrot.slane %v301_v59, 4  ;;  %v306_v13 = vrot.slane %v304_v60, 5  ;;  %v239_v14 = vld [vmem:[%s1705_s20 + $0x38] sm:$0xf]  ;;  %v1529_v15 = vrot.slane %v1514_v62, 9  ;;  %v1046_v16 = vrot.slane %v1515_v63, 5  ;;  %1590 = vmatpush3.bf16.msra.mxu0 %v1635_v1 }
  0x38   : > { %768 = vrot.lane.b32.xlu0 %v743_v26, %s1658_s27  ;;  %v234_v17 = vld [vmem:[%s1705_s20 + $0x24] sm:$0x1]  ;;  %v237_v18 = vld [vmem:[%s1705_s20 + $0x30] sm:$0xf]  ;;  %v1528_v20 = vrot.slane %v1512_v4, 9  ;;  %v1042_v21 = vrot.slane %v1513_v5, 5  ;;  %v904_v23 = vsel %vm1747_vm6, %v899_v7, %v903_v3  ;;  %v321_v24 = vor.u32 %v320_v10, %v317_v9 }
  0x39   : > { %v324_v22 = vshll.u32 %v236_v8, 16  ;;  %v343_v25 = vshrl.u32 %v239_v14, 16  ;;  %v346_v26 = vshll.u32 %v239_v14, 16  ;;  %v307_v27 = vor.u32 %v306_v13, %v303_v12  ;;  %v1518_v33 = vld [vmem:[%s1705_s20 + $0x28] sm:$0xe]  ;;  %v1636_v47 = vld [vmem:[%s2116_s1 + $0x10] sm:$0xff]  }
  0x3a   : > { %v310_v28 = vshll.u32 %v234_v17, 16  ;;  %v329_v29 = vshrl.u32 %v237_v18, 16  ;;  %v332_v30 = vshll.u32 %v237_v18, 16  ;;  %v1047_v31 = vsel %vm1698_vm2, %v1529_v15, %v1046_v16  ;;  %v1519_v34 = vld [vmem:[%s1705_s20 + $0x2c] sm:$0x1]  ;;  %1591 = vmatprep.subr.bf16.mxu0 %v1636_v47  ;;  %v1639_v60 = vld [vmem:[%s2116_s1] sm:$0xff]  }
  0x3b   : > { %816 = vrot.lane.b32.xlu1 %v1489_v35, %s1659_s8  ;;  %v1043_v32 = vsel %vm1698_vm2, %v1528_v20, %v1042_v21  ;;  %v322_v35 = vrot.slane %v321_v24, 4  ;;  %v326_v36 = vrot.slane %v324_v22, 5  ;;  %v1516_v37 = vld [vmem:[%s1705_s20 + $0x20] sm:$0xe]  ;;  %v345_v38 = vrot.slane %v343_v25, 4  ;;  %1592 = vmatpush3.bf16.msra.mxu0 %v1636_v47 }
  0x3c   : > { %814 = vrot.lane.b32.xlu0 %v1488_v40, %s1659_s8  ;;  %v348_v39 = vrot.slane %v346_v26, 5  ;;  %v308_v40 = vrot.slane %v307_v27, 4  ;;  %v312_v41 = vrot.slane %v310_v28, 5  ;;  %v240_v42 = vld [vmem:[%s1705_s20 + $0x3c] sm:$0x1]  ;;  %v331_v43 = vrot.slane %v329_v29, 4 }
  0x3d   : > { %v334_v44 = vrot.slane %v332_v30, 5  ;;  %v1517_v45 = vld [vmem:[%s1705_s20 + $0x24] sm:$0x1]  ;;  %v238_v46 = vld [vmem:[%s1705_s20 + $0x34] sm:$0x1]  ;;  %v1531_v48 = vrot.slane %v1518_v33, 9  ;;  %v327_v52 = vsel %vm1747_vm6, %v322_v35, %v326_v36 }
  0x3e   : > { %v1054_v49 = vrot.slane %v1519_v34, 5  ;;  %v1530_v53 = vrot.slane %v1516_v37, 9  ;;  %v349_v54 = vor.u32 %v348_v39, %v345_v38  ;;  %v352_v55 = vshll.u32 %v240_v42, 16  ;;  %v399_v61 = vld [vmem:[%s1705_s20 + $0x28] sm:$0xe] }
  0x3f   : > { %820 = vrot.lane.b32.xlu1 %v1491_v51, %s1659_s8  ;;  %v1637_v51 = vld [vmem:[%s2116_s1 + $0x8] sm:$0xff]   ;;  %v1050_v57 = vrot.slane %v1517_v45, 5  ;;  %v335_v58 = vor.u32 %v334_v44, %v331_v43  ;;  %v338_v59 = vshll.u32 %v238_v46, 16  ;;  %v1458_v3 = vld [vmem:[%s1705_s20 + $0x30] sm:$0xf]  ;;  %v1437_v9 = vrot.slane %v399_v61, 9 }
  0x40   : > { %818 = vrot.lane.b32.xlu0 %v1490_v56, %s1659_s8  ;;  %v313_v56 = vsel %vm1747_vm6, %v308_v40, %v312_v41  ;;  %1593 = vmatprep.subr.bf16.mxu0 %v1637_v51  ;;  %v1055_v62 = vsel %vm1698_vm2, %v1531_v48, %v1054_v49  ;;  %v350_v63 = vrot.slane %v349_v54, 4  ;;  %v354_v1 = vrot.slane %v352_v55, 5  ;;  %v400_v2 = vld [vmem:[%s1705_s20 + $0x2c] sm:$0x1]  ;;  %v397_v7 = vld [vmem:[%s1705_s20 + $0x20] sm:$0xe] }
  0x41   : > { %v1051_v4 = vsel %vm1698_vm2, %v1530_v53, %v1050_v57  ;;  %v336_v5 = vrot.slane %v335_v58, 4  ;;  %v398_v8 = vld [vmem:[%s1705_s20 + $0x24] sm:$0x1]  ;;  %1594 = vmatpush3.bf16.msra.mxu0 %v1637_v51  ;;  %v626_v10 = vshrl.u32 %v1458_v3, 16  ;;  %v446_v13 = vrot.slane %v400_v2, 5 }
  0x42   : > { %1595 = vmatprep.subr.bf16.mxu0 %v1639_v60  ;;  %v355_v12 = vsel %vm1747_vm6, %v350_v63, %v354_v1  ;;  %v1436_v14 = vrot.slane %v397_v7, 9  ;;  %v442_v15 = vrot.slane %v398_v8, 5  ;;  %v403_v17 = vld [vmem:[%s1705_s20 + $0x38] sm:$0xe]  ;;  %v404_v18 = vld [vmem:[%s1705_s20 + $0x3c] sm:$0x1] }
  0x43   : > { %977 = vrot.lane.b32.xlu1 %v890_v6, %s1660_s11  ;;  %v340_v6 = vrot.slane %v338_v59, 5  ;;  %v402_v20 = vld [vmem:[%s1705_s20 + $0x34] sm:$0x1]  ;;  %v1456_v21 = vld [vmem:[%s1705_s20 + $0x28] sm:$0xf]  ;;  %v447_v26 = vsel %vm1698_vm2, %v1437_v9, %v446_v13  ;;  %v1439_v28 = vrot.slane %v403_v17, 9 }
  0x44   : > { %975 = vrot.lane.b32.xlu0 %v876_v11, %s1660_s11  ;;  %v629_v11 = vshll.u32 %v1458_v3, 16  ;;  %v1459_v22 = vld [vmem:[%s1705_s20 + $0x34] sm:$0x1]  ;;  %v1462_v25 = vld [vmem:[%s1705_s20 + $0x40] sm:$0xf]  ;;  %v443_v27 = vsel %vm1698_vm2, %v1436_v14, %v442_v15  ;;  %v454_v29 = vrot.slane %v404_v18, 5 }
  0x45   : > { %v341_v16 = vsel %vm1747_vm6, %v336_v5, %v340_v6  ;;  %1596 = vmatpush3.bf16.msra.mxu0 %v1639_v60  ;;  %v615_v33 = vshll.u32 %v1456_v21, 16  ;;  %v1460_v34 = vld [vmem:[%s1705_s20 + $0x38] sm:$0xf]  ;;  %v635_v35 = vshll.u32 %v1459_v22, 16  ;;  %v654_v36 = vshrl.u32 %v1462_v25, 16 }
  0x46   : > { %v631_v24 = vrot.slane %v629_v11, 5  ;;  %v657_v37 = vshll.u32 %v1462_v25, 16  ;;  %v1457_v39 = vld [vmem:[%s1705_s20 + $0x2c] sm:$0x1]  ;;  %v455_v40 = vsel %vm1698_vm2, %v1439_v28, %v454_v29  ;;  %v1463_v41 = vld [vmem:[%s1705_s20 + $0x44] sm:$0x1] }
  0x47   : > { %981 = vrot.lane.b32.xlu1 %v918_v19, %s1660_s11  ;;  %v401_v19 = vld [vmem:[%s1705_s20 + $0x30] sm:$0xe]  ;;  %v640_v42 = vshrl.u32 %v1460_v34, 16  ;;  %v643_v43 = vshll.u32 %v1460_v34, 16  ;;  %v617_v46 = vrot.slane %v615_v33, 5  ;;  %v637_v48 = vrot.slane %v635_v35, 5 }
  0x48   : > { %979 = vrot.lane.b32.xlu0 %v904_v23, %s1660_s11  ;;  %v628_v23 = vrot.slane %v626_v10, 4  ;;  %v1438_v30 = vrot.slane %v401_v19, 9  ;;  %v1445_v47 = vld [vmem:[%s1705_s20 + $0x30] sm:$0xf]  ;;  %v621_v49 = vshll.u32 %v1457_v39, 16  ;;  %v656_v51 = vrot.slane %v654_v36, 4 }
  0x49   : > { %v1444_v53 = vld [vmem:[%s1705_s20 + $0x28] sm:$0xf]  ;;  %v663_v55 = vshll.u32 %v1463_v41, 16  ;;  %v208_v57 = vld [vmem:[%s1705_s20] sm:$0xf]  ;;  %v642_v59 = vrot.slane %v640_v42, 4 }
  0x4a   : > { %v632_v38 = vor.u32 %v631_v24, %v628_v23  ;;  %v1461_v58 = vld [vmem:[%s1705_s20 + $0x3c] sm:$0x1]  ;;  %v645_v60 = vrot.slane %v643_v43, 5  ;;  %217 = vst.msk [vmem:[#allocation2] sm:$0xf] %vm216_vm7, %v208_v57  ;;  %v623_v9 = vrot.slane %v621_v49, 5 }
  0x4b   : > { %1074 = vrot.lane.b32.xlu1 %v1047_v31, %s1661_s14  ;;  %v450_v31 = vrot.slane %v402_v20, 5  ;;  %v211_v61 = vld [vmem:[%s1705_s20 + $0x18] sm:$0xf]  ;;  %v213_v1 = vld [vmem:[%s1705_s20 + $0x28] sm:$0xf]  ;;  %v649_v11 = vshll.u32 %v1461_v58, 16 }
  0x4c   : > { %1072 = vrot.lane.b32.xlu0 %v1043_v32, %s1661_s14  ;;  %v612_v32 = vshrl.u32 %v1456_v21, 16  ;;  %v633_v54 = vrot.slane %v632_v38, 4  ;;  %220 = vst.msk [vmem:[#allocation2 + $0xc] sm:$0xf] %vm216_vm7, %v211_v61  ;;  %v212_v2 = vld [vmem:[%s1705_s20 + $0x20] sm:$0xf]  ;;  %v646_v10 = vor.u32 %v645_v60, %v642_v59 }
  0x4d   : > { %v451_v44 = vsel %vm1698_vm2, %v1438_v30, %v450_v31  ;;  %v1447_v3 = vld [vmem:[%s1705_s20 + $0x40] sm:$0xf]  ;;  %222 = vst.msk [vmem:[#allocation2 + $0x14] sm:$0xf] %vm216_vm7, %v213_v1  ;;  %221 = vst.msk [vmem:[#allocation2 + $0x10] sm:$0xf] %vm216_vm7, %v212_v2 }
  0x4e   : > { %v614_v45 = vrot.slane %v612_v32, 4  ;;  %v214_v5 = vld [vmem:[%s1705_s20 + $0x30] sm:$0xf]  ;;  %v1446_v7 = vld [vmem:[%s1705_s20 + $0x38] sm:$0xf]  ;;  %v665_v14 = vrot.slane %v663_v55, 5 }
  0x4f   : > { %366 = vrot.lane.b32.xlu1 %v327_v52, %s1656_s23  ;;  %v659_v52 = vrot.slane %v657_v37, 5  ;;  %223 = vst.msk [vmem:[#allocation2 + $0x18] sm:$0xf] %vm216_vm7, %v214_v5  ;;  %v1474_v15 = vld [vmem:[%s1705_s20 + $0x30] sm:$0xe]  ;;  %v647_v18 = vrot.slane %v646_v10, 4 }
  0x50   : > { %364 = vrot.lane.b32.xlu0 %v313_v56, %s1656_s23  ;;  %v210_v56 = vld [vmem:[%s1705_s20 + $0x10] sm:$0xf]  ;;  %v618_v63 = vor.u32 %v617_v46, %v614_v45  ;;  %v651_v19 = vrot.slane %v649_v11, 5  ;;  %v1472_v20 = vld [vmem:[%s1705_s20 + $0x28] sm:$0xe]  ;;  %v1485_v22 = vrot.slane %v1474_v15, 9 }
  0x51   : > { %219 = vst.msk [vmem:[#allocation2 + $0x8] sm:$0xf] %vm216_vm7, %v210_v56  ;;  %v660_v6 = vor.u32 %v659_v52, %v656_v51  ;;  %v1473_v21 = vld [vmem:[%s1705_s20 + $0x2c] sm:$0x1]  ;;  %v1478_v24 = vld [vmem:[%s1705_s20 + $0x40] sm:$0xe] }
  0x52   : > { %v619_v8 = vrot.slane %v618_v63, 4  ;;  %v1477_v28 = vld [vmem:[%s1705_s20 + $0x3c] sm:$0x1]  ;;  %v652_v29 = vsel %vm1747_vm6, %v647_v18, %v651_v19  ;;  %v1484_v30 = vrot.slane %v1472_v20, 9  ;;  %v750_v31 = vrot.slane %v1473_v21, 5 }
  0x53   : > { %1078 = vrot.lane.b32.xlu1 %v1055_v62, %s1661_s14  ;;  %v209_v62 = vld [vmem:[%s1705_s20 + $0x8] sm:$0xf]  ;;  %v661_v13 = vrot.slane %v660_v6, 4  ;;  %v1506_v32 = vld [vmem:[%s1705_s20 + $0x38] sm:$0xf]  ;;  %v1487_v34 = vrot.slane %v1478_v24, 9 }
  0x54   : > { %1076 = vrot.lane.b32.xlu0 %v1051_v4, %s1661_s14  ;;  %218 = vst.msk [vmem:[#allocation2 + $0x4] sm:$0xf] %vm216_vm7, %v209_v62  ;;  %v215_v4 = vld [vmem:[%s1705_s20 + $0x38] sm:$0xf]  ;;  %v624_v17 = vsel %vm1747_vm6, %v619_v8, %v623_v9  ;;  %v1504_v33 = vld [vmem:[%s1705_s20 + $0x30] sm:$0xf]  ;;  %v751_v41 = vsel %vm1698_vm2, %v1484_v30, %v750_v31 }
  0x55   : > { %224 = vst.msk [vmem:[#allocation2 + $0x1c] sm:$0xf] %vm216_vm7, %v215_v4  ;;  %v666_v25 = vsel %vm1747_vm6, %v661_v13, %v665_v14  ;;  %v758_v37 = vrot.slane %v1477_v28, 5  ;;  %v934_v39 = vshrl.u32 %v1506_v32, 16  ;;  %v920_v42 = vshrl.u32 %v1504_v33, 16 }
  0x56   : > { %v923_v43 = vshll.u32 %v1504_v33, 16  ;;  %v1508_v45 = vld [vmem:[%s1705_s20 + $0x40] sm:$0xf]  ;;  %v1505_v58 = vld [vmem:[%s1705_s20 + $0x34] sm:$0x1]  ;;  %vm1096_vm15 = vcmask 585216  }
  0x57   : > { %370 = vrot.lane.b32.xlu1 %v355_v12, %s1656_s23  ;;  %v638_v12 = vsel %vm1747_vm6, %v633_v54, %v637_v48  ;;  %v936_v48 = vrot.slane %v934_v39, 4  ;;  %v922_v54 = vrot.slane %v920_v42, 4  ;;  %v948_v56 = vshrl.u32 %v1508_v45, 16  ;;  %v1493_v59 = vld [vmem:[%s1705_s20 + $0x38] sm:$0xf] }
  0x58   : > { %368 = vrot.lane.b32.xlu0 %v341_v16, %s1656_s23  ;;  %v1475_v16 = vld [vmem:[%s1705_s20 + $0x34] sm:$0x1]  ;;  %v925_v55 = vrot.slane %v923_v43, 5  ;;  %v951_v57 = vshll.u32 %v1508_v45, 16  ;;  %v1492_v60 = vld [vmem:[%s1705_s20 + $0x30] sm:$0xf] }
  0x59   : > { %v754_v23 = vrot.slane %v1475_v16, 5  ;;  %v1511_v4 = vld [vmem:[%s1705_s20 + $0x4c] sm:$0x1]  ;;  %v950_v5 = vrot.slane %v948_v56, 4  ;;  %v1495_v8 = vld [vmem:[%s1705_s20 + $0x48] sm:$0xf] }
  0x5a   : > { %v926_v2 = vor.u32 %v925_v55, %v922_v54  ;;  %v953_v6 = vrot.slane %v951_v57, 5  ;;  %v1494_v13 = vld [vmem:[%s1705_s20 + $0x40] sm:$0xf]  ;;  %v1522_v24 = vld [vmem:[%s1705_s20 + $0x38] sm:$0xe]  ;;  %vm1301_vm0 = vcmask 261120  }
  0x5b   : > { %466 = vrot.lane.b32.xlu1 %v447_v26, %s1654_s21  ;;  %v1479_v26 = vld [vmem:[%s1705_s20 + $0x44] sm:$0x1]  ;;  %v755_v38 = vsel %vm1698_vm2, %v1485_v22, %v754_v23 }
  0x5c   : > { %464 = vrot.lane.b32.xlu0 %v443_v27, %s1654_s21  ;;  %v1476_v27 = vld [vmem:[%s1705_s20 + $0x38] sm:$0xe]  ;;  %v762_v35 = vrot.slane %v1479_v26, 5  ;;  %v927_v14 = vrot.slane %v926_v2, 4  ;;  %v954_v16 = vor.u32 %v953_v6, %v950_v5  ;;  %v1520_v26 = vld [vmem:[%s1705_s20 + $0x30] sm:$0xe] }
  0x5d   : > { %v1486_v36 = vrot.slane %v1476_v27, 9  ;;  %v1521_v27 = vld [vmem:[%s1705_s20 + $0x34] sm:$0x1]  ;;  %v1532_v33 = vrot.slane %v1520_v26, 9  ;;  %v1525_v39 = vld [vmem:[%s1705_s20 + $0x44] sm:$0x1] }
  0x5e   : > { %v763_v46 = vsel %vm1698_vm2, %v1487_v34, %v762_v35  ;;  %v955_v22 = vrot.slane %v954_v16, 4  ;;  %v1058_v34 = vrot.slane %v1521_v27, 5  ;;  %v1526_v35 = vld [vmem:[%s1705_s20 + $0x48] sm:$0xe]  ;;  %v1066_v45 = vrot.slane %v1525_v39, 5 }
  0x5f   : > { %470 = vrot.lane.b32.xlu1 %v455_v40, %s1654_s21  ;;  %v937_v40 = vshll.u32 %v1506_v32, 16 }
  0x60   : > { %468 = vrot.lane.b32.xlu0 %v451_v44, %s1654_s21  ;;  %v1510_v44 = vld [vmem:[%s1705_s20 + $0x48] sm:$0xf]  ;;  %v1059_v50 = vsel %vm1698_vm2, %v1532_v33, %v1058_v34 }
  0x61   : > { %v939_v49 = vrot.slane %v937_v40, 5  ;;  %v962_v51 = vshrl.u32 %v1510_v44, 16  ;;  %v965_v52 = vshll.u32 %v1510_v44, 16 }
  0x63   : > { %516 = vrot.lane.b32.xlu1 %v1445_v47, %s1655_s22  ;;  %v759_v47 = vsel %vm1698_vm2, %v1486_v36, %v758_v37  ;;  %v940_v61 = vor.u32 %v939_v49, %v936_v48  ;;  %v964_v63 = vrot.slane %v962_v51, 4  ;;  %v967_v1 = vrot.slane %v965_v52, 5  ;;  %v1527_v36 = vld [vmem:[%s1705_s20 + $0x4c] sm:$0x1] }
  0x64   : > { %514 = vrot.lane.b32.xlu0 %v1444_v53, %s1655_s22  ;;  %v1507_v53 = vld [vmem:[%s1705_s20 + $0x3c] sm:$0x1]  ;;  %v1070_v42 = vrot.slane %v1527_v36, 5 }
  0x65   : > { %v943_v62 = vshll.u32 %v1507_v53, 16  ;;  %v941_v9 = vrot.slane %v940_v61, 4  ;;  %v968_v11 = vor.u32 %v967_v1, %v964_v63 }
  0x67   : > { %520 = vrot.lane.b32.xlu1 %v1447_v3, %s1655_s22  ;;  %v929_v3 = vshll.u32 %v1505_v58, 16  ;;  %v945_v10 = vrot.slane %v943_v62, 5  ;;  %v969_v19 = vrot.slane %v968_v11, 4 }
  0x68   : > { %518 = vrot.lane.b32.xlu0 %v1446_v7, %s1655_s22  ;;  %v1509_v7 = vld [vmem:[%s1705_s20 + $0x44] sm:$0x1] }
  0x69   : > { %v931_v15 = vrot.slane %v929_v3, 5  ;;  %v946_v18 = vsel %vm1747_vm6, %v941_v9, %v945_v10 }
  0x6b   : > { %677 = vrot.lane.b32.xlu1 %v638_v12, %s1657_s24  ;;  %v971_v12 = vshll.u32 %v1511_v4, 16  ;;  %v932_v21 = vsel %vm1747_vm6, %v927_v14, %v931_v15 }
  0x6c   : > { %675 = vrot.lane.b32.xlu0 %v624_v17, %s1657_s24  ;;  %v957_v17 = vshll.u32 %v1509_v7, 16 }
  0x6d   : > { %v973_v20 = vrot.slane %v971_v12, 5 }
  0x6e   : > { %v959_v23 = vrot.slane %v957_v17, 5 }
  0x6f   : > { %681 = vrot.lane.b32.xlu1 %v666_v25, %s1657_s24  ;;  %v1523_v25 = vld [vmem:[%s1705_s20 + $0x3c] sm:$0x1]  ;;  %v974_v28 = vsel %vm1747_vm6, %v969_v19, %v973_v20 }
  0x70   : > { %679 = vrot.lane.b32.xlu0 %v652_v29, %s1657_s24  ;;  %v1533_v29 = vrot.slane %v1522_v24, 9  ;;  %v1062_v30 = vrot.slane %v1523_v25, 5  ;;  %v960_v32 = vsel %vm1747_vm6, %v955_v22, %v959_v23 }
  0x72   : > { %v1063_v40 = vsel %vm1698_vm2, %v1533_v29, %v1062_v30 }
  0x73   : > { %774 = vrot.lane.b32.xlu1 %v755_v38, %s1658_s27  ;;  %v1524_v38 = vld [vmem:[%s1705_s20 + $0x40] sm:$0xe] }
  0x74   : > { %772 = vrot.lane.b32.xlu0 %v751_v41, %s1658_s27  ;;  %v1535_v41 = vrot.slane %v1526_v35, 9  ;;  %v1534_v44 = vrot.slane %v1524_v38, 9 }
  0x76   : > { %v1067_v49 = vsel %vm1698_vm2, %v1534_v44, %v1066_v45 }
  0x77   : > { %778 = vrot.lane.b32.xlu1 %v763_v46, %s1658_s27 }
  0x78   : > { %776 = vrot.lane.b32.xlu0 %v759_v47, %s1658_s27  ;;  %v1071_v47 = vsel %vm1698_vm2, %v1535_v41, %v1070_v42  ;;  %s1557_s27 = sshll.u32 %s2125_s16, 3 }
  0x79   : > { %s197_s30 = scalar_lea.vmem %s2119_s4, %s1557_s27 }
  0x7b   : > { %824 = vrot.lane.b32.xlu1 %v1493_v59, %s1659_s8 }
  0x7c   : > { %822 = vrot.lane.b32.xlu0 %v1492_v60, %s1659_s8 }
  0x7f   : > { %828 = vrot.lane.b32.xlu1 %v1495_v8, %s1659_s8 }
  0x80   : > { %826 = vrot.lane.b32.xlu0 %v1494_v13, %s1659_s8 }
  0x83   : > { %985 = vrot.lane.b32.xlu1 %v946_v18, %s1660_s11 }
  0x84   : > { %983 = vrot.lane.b32.xlu0 %v932_v21, %s1660_s11 }
  0x85   : > { %v459_v31 = vpop.permute.xlu1 %458 }
  0x86   : > { %v457_v37 = vpop.permute.xlu0 %456 }
  0x87   : > { %989 = vrot.lane.b32.xlu1 %v974_v28, %s1660_s11 }
  0x88   : > { %987 = vrot.lane.b32.xlu0 %v960_v32, %s1660_s11 }
  0x89   : > { %v463_v43 = vpop.permute.xlu1 %462 }
  0x8a   : > { %v461_v46 = vpop.permute.xlu0 %460 }
  0x8b   : > { %1082 = vrot.lane.b32.xlu1 %v1063_v40, %s1661_s14 }
  0x8c   : > { %1080 = vrot.lane.b32.xlu0 %v1059_v50, %s1661_s14 }
  0x8d   : > { %v509_v48 = vpop.permute.xlu1 %508 }
  0x8e   : > { %v507_v51 = vpop.permute.xlu0 %506 }
  0x8f   : > { %1086 = vrot.lane.b32.xlu1 %v1071_v47, %s1661_s14 }
  0x90   : > { %1084 = vrot.lane.b32.xlu0 %v1067_v49, %s1661_s14  ;;  %v1643_v49 = vld [vmem:[%s2118_s3] sm:$0xff]  }
  0x91   : > { %v361_v52 = vpop.permute.xlu1 %360  ;;  %1609 = vmatprep.mubr.msk.bf16.mxu1 %vm1301_vm0, %v1643_v49 }
  0x92   : > { %383 = vst.msk [vmem:[#allocation2 + $0x8] sm:$0xf] %vm380_vm8, %v361_v52  ;;  %v357_v53 = vpop.permute.xlu0 %356 }
  0x93   : > { %381 = vst.msk [vmem:[#allocation2] sm:$0xf] %vm380_vm8, %v357_v53 }
  0x94   : > { %483 = vst.msk [vmem:[#allocation2 + $0x8] sm:$0xf] %vm480_vm9, %v461_v46  ;;  %481 = vst.msk [vmem:[#allocation2] sm:$0xf] %vm480_vm9, %v457_v37 }
  0x95   : > { %v363_v0 = vpop.permute.xlu1 %362  ;;  %531 = vst.msk [vmem:[#allocation2] sm:$0xf] %vm530_vm10, %v507_v51 }
  0x96   : > { %384 = vst.msk [vmem:[#allocation2 + $0xc] sm:$0xf] %vm380_vm8, %v363_v0  ;;  %v359_v54 = vpop.permute.xlu0 %358 }
  0x97   : > { %484 = vst.msk [vmem:[#allocation2 + $0xc] sm:$0xf] %vm480_vm9, %v463_v43 }
  0x98   : > { %382 = vst.msk [vmem:[#allocation2 + $0x4] sm:$0xf] %vm380_vm8, %v359_v54 }
  0x99   : > { %482 = vst.msk [vmem:[#allocation2 + $0x4] sm:$0xf] %vm480_vm9, %v459_v31  ;;  %v513_v55 = vpop.permute.xlu1 %512 }
  0x9a   : > { %532 = vst.msk [vmem:[#allocation2 + $0x4] sm:$0xf] %vm530_vm10, %v509_v48  ;;  %534 = vst.msk [vmem:[#allocation2 + $0xc] sm:$0xf] %vm530_vm10, %v513_v55  ;;  %v511_v56 = vpop.permute.xlu0 %510  ;;  %v1536_v55 = vld [vmem:[%s2117_s2] ss:$0 sm:$0xff] }
  0x9b   : > { %533 = vst.msk [vmem:[#allocation2 + $0x8] sm:$0xf] %vm530_vm10, %v511_v56 }
  0x9d   : > { %v670_v57 = vpop.permute.xlu1 %669 }
  0x9e   : > { %693 = vst.msk [vmem:[#allocation2 + $0x4] sm:$0xf] %vm691_vm11, %v670_v57  ;;  %v668_v58 = vpop.permute.xlu0 %667 }
  0x9f   : > { %692 = vst.msk [vmem:[#allocation2] sm:$0xf] %vm691_vm11, %v668_v58 }
  0xa1   : > { %v674_v59 = vpop.permute.xlu1 %673 }
  0xa2   : > { %695 = vst.msk [vmem:[#allocation2 + $0xc] sm:$0xf] %vm691_vm11, %v674_v59  ;;  %v672_v60 = vpop.permute.xlu0 %671 }
  0xa3   : > { %694 = vst.msk [vmem:[#allocation2 + $0x8] sm:$0xf] %vm691_vm11, %v672_v60 }
  0xa5   : > { %v767_v61 = vpop.permute.xlu1 %766 }
  0xa6   : > { %790 = vst.msk [vmem:[#allocation2 + $0x4] sm:$0xf] %vm788_vm12, %v767_v61  ;;  %v765_v62 = vpop.permute.xlu0 %764 }
  0xa7   : > { %789 = vst.msk [vmem:[#allocation2] sm:$0xf] %vm788_vm12, %v765_v62 }
  0xa9   : > { %v771_v63 = vpop.permute.xlu1 %770 }
  0xaa   : > { %792 = vst.msk [vmem:[#allocation2 + $0xc] sm:$0xf] %vm788_vm12, %v771_v63  ;;  %v769_v1 = vpop.permute.xlu0 %768 }
  0xab   : > { %791 = vst.msk [vmem:[#allocation2 + $0x8] sm:$0xf] %vm788_vm12, %v769_v1 }
  0xad   : > { %v817_v2 = vpop.permute.xlu1 %816 }
  0xae   : > { %840 = vst.msk [vmem:[#allocation2 + $0x4] sm:$0xf] %vm838_vm13, %v817_v2  ;;  %v815_v3 = vpop.permute.xlu0 %814 }
  0xaf   : > { %839 = vst.msk [vmem:[#allocation2] sm:$0xf] %vm838_vm13, %v815_v3 }
  0xb1   : > { %v821_v4 = vpop.permute.xlu1 %820 }
  0xb2   : > { %842 = vst.msk [vmem:[#allocation2 + $0xc] sm:$0xf] %vm838_vm13, %v821_v4  ;;  %v819_v5 = vpop.permute.xlu0 %818 }
  0xb3   : > { %841 = vst.msk [vmem:[#allocation2 + $0x8] sm:$0xf] %vm838_vm13, %v819_v5 }
  0xb5   : > { %v978_v6 = vpop.permute.xlu1 %977 }
  0xb6   : > { %1001 = vst.msk [vmem:[#allocation2 + $0x4] sm:$0xf] %vm999_vm14, %v978_v6  ;;  %v976_v7 = vpop.permute.xlu0 %975 }
  0xb7   : > { %1000 = vst.msk [vmem:[#allocation2] sm:$0xf] %vm999_vm14, %v976_v7 }
  0xb9   : > { %v982_v8 = vpop.permute.xlu1 %981 }
  0xba   : > { %1003 = vst.msk [vmem:[#allocation2 + $0xc] sm:$0xf] %vm999_vm14, %v982_v8  ;;  %v980_v9 = vpop.permute.xlu0 %979 }
  0xbb   : > { %1002 = vst.msk [vmem:[#allocation2 + $0x8] sm:$0xf] %vm999_vm14, %v980_v9 }
  0xbd   : > { %v1075_v10 = vpop.permute.xlu1 %1074 }
  0xbe   : > { %1098 = vst.msk [vmem:[#allocation2 + $0x4] sm:$0xf] %vm1096_vm15, %v1075_v10  ;;  %v1073_v11 = vpop.permute.xlu0 %1072 }
  0xbf   : > { %1097 = vst.msk [vmem:[#allocation2] sm:$0xf] %vm1096_vm15, %v1073_v11 }
  0xc1   : > { %v367_v12 = vpop.permute.xlu1 %366 }
  0xc2   : > { %386 = vst.msk [vmem:[#allocation2 + $0x14] sm:$0xf] %vm380_vm8, %v367_v12  ;;  %v365_v13 = vpop.permute.xlu0 %364 }
  0xc3   : > { %385 = vst.msk [vmem:[#allocation2 + $0x10] sm:$0xf] %vm380_vm8, %v365_v13 }
  0xc5   : > { %v1079_v14 = vpop.permute.xlu1 %1078 }
  0xc6   : > { %1100 = vst.msk [vmem:[#allocation2 + $0xc] sm:$0xf] %vm1096_vm15, %v1079_v14  ;;  %v1077_v15 = vpop.permute.xlu0 %1076  ;;  %v1638_v16 = vld [vmem:[#allocation2] sm:$0xff]  }
  0xc7   : > { %1099 = vst.msk [vmem:[#allocation2 + $0x8] sm:$0xf] %vm1096_vm15, %v1077_v15  ;;  %1597 = vmatprep.mubr.bf16.mxu0 %v1638_v16 }
  0xc9   : > { %v371_v17 = vpop.permute.xlu1 %370 }
  0xca   : > { %388 = vst.msk [vmem:[#allocation2 + $0x1c] sm:$0xf] %vm380_vm8, %v371_v17  ;;  %v369_v18 = vpop.permute.xlu0 %368 }
  0xcb   : > { %387 = vst.msk [vmem:[#allocation2 + $0x18] sm:$0xf] %vm380_vm8, %v369_v18  ;;  %v1644_v18 = vld [vmem:[%s2118_s3 + $0x8] sm:$0xff]  }
  0xcd   : > { %v467_v19 = vpop.permute.xlu1 %466 }
  0xce   : > { %486 = vst.msk [vmem:[#allocation2 + $0x14] sm:$0xf] %vm480_vm9, %v467_v19  ;;  %v465_v20 = vpop.permute.xlu0 %464  ;;  %v1640_v21 = vld [vmem:[#allocation2 + $0x8] sm:$0xff]  }
  0xcf   : > { %485 = vst.msk [vmem:[#allocation2 + $0x10] sm:$0xf] %vm480_vm9, %v465_v20  ;;  %1598 = vmatmul.mubr.bf16.vlgmr.msra.gmra.mxu0 %v1640_v21 }
  0xd1   : > { %v471_v22 = vpop.permute.xlu1 %470 }
  0xd2   : > { %488 = vst.msk [vmem:[#allocation2 + $0x1c] sm:$0xf] %vm480_vm9, %v471_v22  ;;  %v469_v23 = vpop.permute.xlu0 %468 }
  0xd3   : > { %487 = vst.msk [vmem:[#allocation2 + $0x18] sm:$0xf] %vm480_vm9, %v469_v23 }
  0xd5   : > { %v517_v24 = vpop.permute.xlu1 %516 }
  0xd6   : > { %536 = vst.msk [vmem:[#allocation2 + $0x14] sm:$0xf] %vm530_vm10, %v517_v24  ;;  %v515_v25 = vpop.permute.xlu0 %514 }
  0xd7   : > { %535 = vst.msk [vmem:[#allocation2 + $0x10] sm:$0xf] %vm530_vm10, %v515_v25 }
  0xd9   : > { %v521_v26 = vpop.permute.xlu1 %520 }
  0xda   : > { %538 = vst.msk [vmem:[#allocation2 + $0x1c] sm:$0xf] %vm530_vm10, %v521_v26  ;;  %v519_v27 = vpop.permute.xlu0 %518 }
  0xdb   : > { %537 = vst.msk [vmem:[#allocation2 + $0x18] sm:$0xf] %vm530_vm10, %v519_v27 }
  0xdd   : > { %v678_v28 = vpop.permute.xlu1 %677 }
  0xde   : > { %697 = vst.msk [vmem:[#allocation2 + $0x14] sm:$0xf] %vm691_vm11, %v678_v28  ;;  %v676_v29 = vpop.permute.xlu0 %675 }
  0xdf   : > { %696 = vst.msk [vmem:[#allocation2 + $0x10] sm:$0xf] %vm691_vm11, %v676_v29 }
  0xe1   : > { %v682_v30 = vpop.permute.xlu1 %681 }
  0xe2   : > { %699 = vst.msk [vmem:[#allocation2 + $0x1c] sm:$0xf] %vm691_vm11, %v682_v30  ;;  %v680_v31 = vpop.permute.xlu0 %679 }
  0xe3   : > { %698 = vst.msk [vmem:[#allocation2 + $0x18] sm:$0xf] %vm691_vm11, %v680_v31 }
  0xe5   : > { %v775_v32 = vpop.permute.xlu1 %774 }
  0xe6   : > { %794 = vst.msk [vmem:[#allocation2 + $0x14] sm:$0xf] %vm788_vm12, %v775_v32  ;;  %v773_v33 = vpop.permute.xlu0 %772 }
  0xe7   : > { %793 = vst.msk [vmem:[#allocation2 + $0x10] sm:$0xf] %vm788_vm12, %v773_v33 }
  0xe9   : > { %v779_v34 = vpop.permute.xlu1 %778 }
  0xea   : > { %796 = vst.msk [vmem:[#allocation2 + $0x1c] sm:$0xf] %vm788_vm12, %v779_v34  ;;  %v777_v35 = vpop.permute.xlu0 %776 }
  0xeb   : > { %795 = vst.msk [vmem:[#allocation2 + $0x18] sm:$0xf] %vm788_vm12, %v777_v35 }
  0xed   : > { %v825_v36 = vpop.permute.xlu1 %824 }
  0xee   : > { %844 = vst.msk [vmem:[#allocation2 + $0x14] sm:$0xf] %vm838_vm13, %v825_v36  ;;  %v823_v37 = vpop.permute.xlu0 %822 }
  0xef   : > { %843 = vst.msk [vmem:[#allocation2 + $0x10] sm:$0xf] %vm838_vm13, %v823_v37 }
  0xf1   : > { %v829_v38 = vpop.permute.xlu1 %828 }
  0xf2   : > { %846 = vst.msk [vmem:[#allocation2 + $0x1c] sm:$0xf] %vm838_vm13, %v829_v38  ;;  %v827_v39 = vpop.permute.xlu0 %826 }
  0xf3   : > { %845 = vst.msk [vmem:[#allocation2 + $0x18] sm:$0xf] %vm838_vm13, %v827_v39 }
  0xf5   : > { %v986_v40 = vpop.permute.xlu1 %985 }
  0xf6   : > { %1005 = vst.msk [vmem:[#allocation2 + $0x14] sm:$0xf] %vm999_vm14, %v986_v40  ;;  %v984_v41 = vpop.permute.xlu0 %983 }
  0xf7   : > { %1004 = vst.msk [vmem:[#allocation2 + $0x10] sm:$0xf] %vm999_vm14, %v984_v41 }
  0xf9   : > { %v990_v42 = vpop.permute.xlu1 %989 }
  0xfa   : > { %1007 = vst.msk [vmem:[#allocation2 + $0x1c] sm:$0xf] %vm999_vm14, %v990_v42  ;;  %v988_v43 = vpop.permute.xlu0 %987 }
  0xfb   : > { %1006 = vst.msk [vmem:[#allocation2 + $0x18] sm:$0xf] %vm999_vm14, %v988_v43 }
  0xfd   : > { %v1083_v50 = vpop.permute.xlu1 %1082 }
  0xfe   : > { %1102 = vst.msk [vmem:[#allocation2 + $0x14] sm:$0xf] %vm1096_vm15, %v1083_v50  ;;  %v1081_v44 = vpop.permute.xlu0 %1080 }
  0xff   : > { %1101 = vst.msk [vmem:[#allocation2 + $0x10] sm:$0xf] %vm1096_vm15, %v1081_v44 }
 0x101   : > { %v1087_v45 = vpop.permute.xlu1 %1086 }
 0x102   : > { %1104 = vst.msk [vmem:[#allocation2 + $0x1c] sm:$0xf] %vm1096_vm15, %v1087_v45  ;;  %v1085_v46 = vpop.permute.xlu0 %1084 }
 0x103   : > { %1103 = vst.msk [vmem:[#allocation2 + $0x18] sm:$0xf] %vm1096_vm15, %v1085_v46 }
 0x106   : > { %v1641_v47 = vld [vmem:[#allocation2 + $0x10] sm:$0xff]  }
 0x107   : > { %1601 = vmatprep.mubr.bf16.mxu0 %v1641_v47 }
 0x10a   : > { %v1642_v48 = vld [vmem:[#allocation2 + $0x18] sm:$0xff]  }
 0x10b   : > { %1602 = vmatmul.mubr.bf16.gmra.mxu0 %v1642_v48 }
 0x18f   : > { %v1599_v51 = vpop.f32.mrf.mxu0 }
 0x190   : > { %v1251_v2 = vadd.f32 %v1599_v51, %v1536_v55 }
 0x191   : > { %v1242_v52 = vpop.f32.mrf.mxu0 }
 0x192   : > { %v1243_v58 = vadd.f32 %v1536_v55, %v1242_v52  ;;  %v1275_v11 = vmax.f32 %v1251_v2, 0.0 }
 0x193   : > { %v1600_v53 = vpop.f32.mrf.mxu0 }
 0x194   : > { %v1254_v60 = vadd.f32 %v1600_v53, %v1536_v55  ;;  %v1273_v6 = vmax.f32 %v1243_v58, 0.0 }
 0x195   : > { %v1245_v0 = vpop.f32.mrf.mxu0 }
 0x196   : > { %v1246_v57 = vadd.f32 %v1536_v55, %v1245_v0  ;;  %v1276_v7 = vmax.f32 %v1254_v60, 0.0 }
 0x198   : > { %v1274_v3 = vmax.f32 %v1246_v57, 0.0  ;;  %v1282_v15 = vmax.f32 %v1275_v11, %v1276_v7 }
 0x19a   : > { %v1281_v12 = vmax.f32 %v1273_v6, %v1274_v3 }
 0x19c   : > { %v1289_v17 = vpack.c.bf16 %v1282_v15, %v1281_v12 }
 0x1cb   : > { %v1603_v54 = vpop.f32.mrf.mxu0 }
 0x1cc   : > { %v1267_v61 = vadd.f32 %v1603_v54, %v1536_v55 }
 0x1cd   : > { %v1258_v56 = vpop.f32.mrf.mxu0 }
 0x1ce   : > { %v1259_v62 = vadd.f32 %v1536_v55, %v1258_v56  ;;  %v1279_v8 = vmax.f32 %v1267_v61, 0.0 }
 0x1cf   : > { %v1604_v59 = vpop.f32.mrf.mxu0 }
 0x1d0   : > { %v1270_v63 = vadd.f32 %v1604_v59, %v1536_v55  ;;  %v1277_v9 = vmax.f32 %v1259_v62, 0.0 }
 0x1d1   : > { %v1261_v1 = vpop.f32.mrf.mxu0 }
 0x1d2   : > { %v1280_v4 = vmax.f32 %v1270_v63, 0.0  ;;  %v1262_v5 = vadd.f32 %v1536_v55, %v1261_v1 }
 0x1d4   : > { %v1278_v10 = vmax.f32 %v1262_v5, 0.0  ;;  %v1284_v13 = vmax.f32 %v1279_v8, %v1280_v4 }
 0x1d6   : > { %v1283_v14 = vmax.f32 %v1277_v9, %v1278_v10 }
 0x1d8   : > { %v1290_v16 = vpack.c.bf16 %v1284_v13, %v1283_v14 }
 0x1da   : > { %1605 = vmatprep.subr.bf16.mxu1 %v1290_v16 }
 0x1db   : > { %1606 = vmatpush3.bf16.msra.mxu1 %v1290_v16 }
 0x1dc   : > { %1607 = vmatprep.subr.bf16.mxu1 %v1289_v17 }
 0x1df   : > { %1608 = vmatpush3.bf16.msra.mxu1 %v1289_v17 }
 0x1e2   : > { %1610 = vmatmul.mubr.msk.bf16.vlgmr.msra.gmra.mxu1 %vm1301_vm0, %v1644_v18 }
 0x2a2   : > { %v1611_v19 = vpop.f32.mrf.mxu1 }
 0x2a4   : > { %v1342_v20 = vpop.f32.mrf.mxu1 }
 0x2a5   : > { %v1357_v23 = vmax.f32 %v1342_v20, %v1611_v19 }
 0x2a6   : > { %v1612_v21 = vpop.f32.mrf.mxu1 }
 0x2a8   : > { %v1345_v22 = vpop.f32.mrf.mxu1 }
 0x2a9   : > { %v1358_v24 = vmax.f32 %v1345_v22, %v1612_v21 }
 0x2ab   : > { %v1563_v25 = vpack.c.bf16 %v1358_v24, %v1357_v23 }
 0x2ad   : > { %1564 = vst [vmem:[%s197_s30] sm:$0xff] %v1563_v25  }
 0x2ae PF: > { %s14_s15 = sadd.s32 1, %s1651_s15  }
 0x2af   : > { %p11_p4 = scmp.ge.s32.totalorder %s14_s15, 4  }
 0x2b1   :  { %13 = sbr.rel (!%p11_p4) target bundleno = 1 (0x1), region = 68 }

// kernel: _lambda_.9
= control target key start
LH: loop header
LB: loop body
LE: loop exit
PB: predicated region body
PF: predicated region fallthrough
CT: control target
= control target key end

     0   :  { %v227_v1 = vmov 0.0   ;;  %vm228_vm0 = vmmov 0   ;;  %s283_s0 = inlined_call_operand.vmem [shape: bf16[2,128], index: 0, kind: input, shape index: {}]   ;;  %s284_s1 = inlined_call_operand.vmem [shape: bf16[128,128], index: 1, kind: input, shape index: {}]   ;;  %s285_s2 = inlined_call_operand.vmem [shape: f32[1,128], index: 2, kind: input, shape index: {}]   ;;  %s286_s3 = inlined_call_operand.hbm [shape: f32[2,128], index: 3, kind: output, shape index: {}]  }
   0x1   :  { %v197_v0 = vld [vmem:[%s284_s1 + $0x38] sm:$0xff]   ;;  %174 = vmatprep.subr.bf16.mxu0 %v227_v1  ;;  %20 = vst [vmem:[#allocation2] sm:$0x3] %v227_v1  ;;  %v198_v2 = vld [vmem:[%s284_s1 + $0x30] sm:$0xff]   ;;  %190 = vmatprep.mubr.msk.bf16.mxu0 %vm228_vm0, %v227_v1  ;;  %v199_v3 = vld [vmem:[%s284_s1 + $0x28] sm:$0xff]  }
   0x2   :  { %175 = vmatpush3.bf16.msra.mxu0 %v197_v0 }
   0x3   :  { %176 = vmatprep.subr.bf16.mxu0 %v227_v1 }
   0x6   :  { %177 = vmatpush3.bf16.msra.mxu0 %v198_v2 }
   0x7   :  { %178 = vmatprep.subr.bf16.mxu0 %v227_v1 }
   0x8   :  { %8 = vsyncpa [#allocation4], 0  ;;  %v200_v4 = vld [vmem:[%s284_s1 + $0x20] sm:$0xff]   ;;  %v201_v5 = vld [vmem:[%s284_s1 + $0x18] sm:$0xff]   ;;  %s229_s5 = smov [#allocation3]  }
   0x9   :  { %v202_v6 = vld [vmem:[%s284_s1 + $0x10] sm:$0xff]   ;;  %v203_v7 = vld [vmem:[%s284_s1 + $0x8] sm:$0xff]   ;;  %v204_v8 = vld [vmem:[%s284_s1] sm:$0xff]   ;;  %s148_s1 = sshll.u32 %s229_s5, 4  ;;  %s149_s1 = int_to_ptr.vmem [resolvable:$true] %s148_s1 }
   0xa   :  { %179 = vmatpush3.bf16.msra.mxu0 %v199_v3  ;;  %v22_v9 = vld [vmem:[%s283_s0] sm:$0x1]  ;;  %s205_s6 = scalar_lea.vmem %s149_s1, 32  ;;  %p210_p1 = scmp.lt.s32.totalorder %s149_s1, %s149_s1 }
   0xb   :  { %180 = vmatprep.subr.bf16.mxu0 %v227_v1  ;;  %v21_v10 = vld [vmem:[#allocation2] sm:$0x3]  ;;  %p206_p0 = scmp.ne.s32.totalorder %s149_s1, %s205_s6  ;;  %p211_p2 = scmp.lt.s32.totalorder %s205_s6, %s205_s6 }
   0xc   :  { %v164_v16 = vld [vmem:[%s285_s2] ss:$0 sm:$0xff] }
   0xd   :  { %p212_p3 = por %p211_p2, %p210_p1 }
   0xe   :  { %181 = vmatpush3.bf16.msra.mxu0 %v200_v4 }
   0xf   :  { %182 = vmatprep.subr.bf16.mxu0 %v227_v1  ;;  %p213_p4 = pnand %p212_p3, %p206_p0 }
  0x12   :  { %183 = vmatpush3.bf16.msra.mxu0 %v201_v5 }
  0x13   :  { %184 = vmatprep.subr.bf16.mxu0 %v227_v1 }
  0x16   :  { %185 = vmatpush3.bf16.msra.mxu0 %v202_v6 }
  0x17   :  { %186 = vmatprep.subr.bf16.mxu0 %v227_v1 }
  0x1a   :  { %187 = vmatpush3.bf16.msra.mxu0 %v203_v7 }
  0x1b   :  { %188 = vmatprep.subr.bf16.mxu0 %v227_v1 }
  0x1e   :  { %189 = vmatpush3.bf16.msra.mxu0 %v204_v8 }
  0x21   :  { %191 = vmatmul.mubr.bf16.vlgmr.msra.gmra.mxu0 %v22_v9 }
  0xe1   :  { %v121_v11 = vpop.f32.mrf.mxu0 }
  0xe2   :  { %v127_v12 = vadd.f32 %v121_v11, %v21_v10 }
  0xe3   :  { %v192_v13 = vpop.f32.mrf.mxu0 }
  0xe4   :  { %128 = vst [vmem:[#allocation2] sm:$0x3] %v127_v12 }
  0xe5   :  { %v124_v14 = vpop.f32.mrf.mxu0 }
  0xe7   :  { %v193_v15 = vpop.f32.mrf.mxu0 }
  0xeb   :  { %v132_v17 = vld [vmem:[#allocation2] sm:$0x3] }
  0xec   :  { %v140_v18 = vadd.f32 %v164_v16, %v132_v17 }
  0xee   :  { %141 = vst [vmem:[#allocation3] sm:$0x3] %v140_v18 }
  0xef   :  { %216 = shalt.err (!%p213_p4)
}
  0xf0   :  { %151 = dma.vmem_to_hbm [thread:$0]  %s149_s1, 32, %s286_s3, [#allocation4]  }
  0xf1   :  { %225 = dma.done.wait [#allocation4], 32  }
  0xf2   :  { %226 = vsyncadd [#allocation4], 4294967264 }
  0xf3   :  { %155 = vsyncpa [#allocation4], 1 }

// kernel: _lambda_.5
= control target key start
LH: loop header
LB: loop body
LE: loop exit
PB: predicated region body
PF: predicated region fallthrough
CT: control target
= control target key end

     0   :  { %s4819_s15 = smov 0   ;;  %s6586_s0 = inlined_call_operand.vmem [shape: bf16[2,18,18,8], index: 0, kind: input, shape index: {}]   ;;  %s6587_s1 = inlined_call_operand.vmem [shape: bf16[128,128], index: 1, kind: input, shape index: {}]   ;;  %s6588_s2 = inlined_call_operand.vmem [shape: f32[1,128], index: 2, kind: input, shape index: {}]   ;;  %s6589_s3 = inlined_call_operand.vmem [shape: bf16[128,128], index: 3, kind: input, shape index: {}]   ;;  %s6590_s4 = inlined_call_operand.vmem [shape: bf16[2,10,10,128], index: 4, kind: output, shape index: {}]  }
   0x1 LB: > { %s4211_s16 = sadd.s32 4294967295, %s4783_s15   ;;  %p4215_p0 = scmp.ge.s32.totalorder %s4783_s15, 1  ;;  %s4783_s15 = sphi %s4819_s15, %s14_s15  }
   0x2   : > { %p162_p1 = scmp.lt.s32.totalorder %s4783_s15, 3 }
   0x4   : > { %p163_p2 = pnand %p4215_p0, %p162_p1 }
   0x5   : > { %p188_p3 = scmp.lt.s32.totalorder (!%p163_p2), %s4211_s16, 1  ;;  %s4786_s21 = smov (!%p163_p2), 24  }
   0x6   : > { %166 = sbr.rel (%p163_p2) target bundleno = 1133 (0x46d), region = 36  ;;  %s4787_s22 = smov (!%p163_p2), 16  }
   0x7   : > { %s4788_s23 = smov (!%p163_p2), 8   ;;  %s4789_s24 = smov (!%p163_p2), 32  }
   0x8   : > { %s4790_s27 = smov (!%p163_p2), 40   ;;  %s4791_s6 = smov (!%p163_p2), 48  }
   0x9   : > { %s4792_s11 = smov (!%p163_p2), 56   ;;  %s4793_s18 = smov (!%p163_p2), 64  }
   0xb   : > { %s6600_s16 = smov (!%p188_p3, %s4211_s16), 1  ;;  %vm957_vm0 = vcmask 1042432   ;;  %vm958_vm1 = vcmask 1046532   ;;  %vm199_vm3 = vcmask 1044032   ;;  %vm345_vm4 = vsmask.f32 3328 }
   0xc   : > { %s4725_s17 = smul.u32 216, %s6600_s16  ;;  %vm4835_vm2 = vmor %vm957_vm0, %vm958_vm1  ;;  %vm346_vm5 = vsmask.f32 7440  ;;  %v4785_v4 = vmov 0   ;;  %vm264_vm7 = vcmask 60416   ;;  %vm828_vm8 = vcmask 126016  }
   0xd   : > { %202 = vst.msk [vmem:[#allocation2 + $0x8] sm:$0xf] %vm199_vm3, %v4785_v4  ;;  %200 = vst.msk [vmem:[#allocation2] sm:$0xf] %vm199_vm3, %v4785_v4  ;;  %vm1168_vm9 = vcmask 191616   ;;  %vm1362_vm10 = vcmask 257216  }
   0xe   : > { %s4833_s20 = scalar_lea.vmem %s6586_s0, %s4725_s17  ;;  %201 = vst.msk [vmem:[#allocation2 + $0x4] sm:$0xf] %vm199_vm3, %v4785_v4  ;;  %203 = vst.msk [vmem:[#allocation2 + $0xc] sm:$0xf] %vm199_vm3, %v4785_v4  ;;  %vm1923_vm11 = vcmask 322816   ;;  %vm2260_vm12 = vcmask 388416  }
   0xf   : > { %v4235_v1 = vld [vmem:[%s4833_s20 + $0x10] sm:$0xf]  ;;  %v861_v2 = vld [vmem:[%s4833_s20] sm:$0xe]  ;;  %v862_v3 = vld [vmem:[%s4833_s20 + $0x4] sm:$0xf] }
  0x10   : > { %204 = vst.msk [vmem:[#allocation2 + $0x10] sm:$0xf] %vm199_vm3, %v4785_v4  ;;  %205 = vst.msk [vmem:[#allocation2 + $0x14] sm:$0xf] %vm199_vm3, %v4785_v4  ;;  %1268 = vrot.lane.b32.xlu1 %v4235_v1, %s4786_s21  ;;  %v4218_v5 = vrot.slane %v861_v2, 9  ;;  %v962_v6 = vrot.slane %v862_v3, 5 }
  0x11   : > { %206 = vst.msk [vmem:[#allocation2 + $0x18] sm:$0xf] %vm199_vm3, %v4785_v4  ;;  %207 = vst.msk [vmem:[#allocation2 + $0x1c] sm:$0xf] %vm199_vm3, %v4785_v4  ;;  %v863_v7 = vld [vmem:[%s4833_s20 + $0x8] sm:$0x1] }
  0x12   : > { %208 = vst.msk [vmem:[#allocation2 + $0x20] sm:$0xf] %vm199_vm3, %v4785_v4  ;;  %209 = vst.msk [vmem:[#allocation2 + $0x24] sm:$0xf] %vm199_vm3, %v4785_v4  ;;  %v864_v8 = vld [vmem:[%s4833_s20 + $0xc] sm:$0xe]  ;;  %v963_v13 = vsel %vm4835_vm2, %v4218_v5, %v962_v6 }
  0x13   : > { %210 = vst.msk [vmem:[#allocation2 + $0x28] sm:$0xf] %vm199_vm3, %v4785_v4  ;;  %211 = vst.msk [vmem:[#allocation2 + $0x2c] sm:$0xf] %vm199_vm3, %v4785_v4  ;;  %v965_v9 = vrot.slane %v863_v7, 5  ;;  %v4219_v11 = vrot.slane %v864_v8, 9  ;;  %1072 = vrot.lane.b32.xlu0 %v963_v13, %s4787_s22 }
  0x14   : > { %212 = vst.msk [vmem:[#allocation2 + $0x30] sm:$0xf] %vm199_vm3, %v4785_v4  ;;  %213 = vst.msk [vmem:[#allocation2 + $0x34] sm:$0xf] %vm199_vm3, %v4785_v4  ;;  %v865_v10 = vld [vmem:[%s4833_s20 + $0x10] sm:$0xf] }
  0x15   : > { %214 = vst.msk [vmem:[#allocation2 + $0x38] sm:$0xf] %vm199_vm3, %v4785_v4  ;;  %215 = vst.msk [vmem:[#allocation2 + $0x3c] sm:$0xf] %vm199_vm3, %v4785_v4  ;;  %v866_v12 = vld [vmem:[%s4833_s20 + $0x14] sm:$0x1] }
  0x16   : > { %216 = vst.msk [vmem:[#allocation2 + $0x40] sm:$0xf] %vm199_vm3, %v4785_v4  ;;  %217 = vst.msk [vmem:[#allocation2 + $0x44] sm:$0xf] %vm199_vm3, %v4785_v4  ;;  %v964_v14 = vrot.slane %v962_v6, 4  ;;  %v969_v15 = vrot.slane %v865_v10, 5 }
  0x17   : > { %218 = vst.msk [vmem:[#allocation2 + $0x48] sm:$0xf] %vm199_vm3, %v4785_v4  ;;  %219 = vst.msk [vmem:[#allocation2 + $0x4c] sm:$0xf] %vm199_vm3, %v4785_v4  ;;  %v972_v16 = vrot.slane %v866_v12, 5  ;;  %vm2454_vm13 = vcmask 454016  }
  0x18   : > { %220 = vst.msk [vmem:[#allocation2 + $0x50] sm:$0xf] %vm199_vm3, %v4785_v4  ;;  %221 = vst.msk [vmem:[#allocation2 + $0x54] sm:$0xf] %vm199_vm3, %v4785_v4  ;;  %v300_v17 = vld [vmem:[%s4833_s20 + $0xc] sm:$0xf]  ;;  %v966_v20 = vsel %vm4835_vm2, %v964_v14, %v965_v9  ;;  %v970_v21 = vsel %vm4835_vm2, %v4219_v11, %v969_v15 }
  0x19   : > { %222 = vst.msk [vmem:[#allocation2 + $0x58] sm:$0xf] %vm199_vm3, %v4785_v4  ;;  %223 = vst.msk [vmem:[#allocation2 + $0x5c] sm:$0xf] %vm199_vm3, %v4785_v4  ;;  %v301_v18 = vld [vmem:[%s4833_s20 + $0x10] sm:$0xf]  ;;  %1074 = vrot.lane.b32.xlu1 %v966_v20, %s4787_s22  ;;  %1076 = vrot.lane.b32.xlu0 %v970_v21, %s4787_s22 }
  0x1a   : > { %224 = vst.msk [vmem:[#allocation2 + $0x60] sm:$0xf] %vm199_vm3, %v4785_v4  ;;  %225 = vst.msk [vmem:[#allocation2 + $0x64] sm:$0xf] %vm199_vm3, %v4785_v4  ;;  %v297_v19 = vld [vmem:[%s4833_s20] sm:$0xf] }
  0x1b   : > { %226 = vst.msk [vmem:[#allocation2 + $0x68] sm:$0xf] %vm199_vm3, %v4785_v4  ;;  %227 = vst.msk [vmem:[#allocation2 + $0x6c] sm:$0xf] %vm199_vm3, %v4785_v4  ;;  %v971_v22 = vrot.slane %v969_v15, 4  ;;  %v373_v23 = vshrl.u32 %v300_v17, 16 }
  0x1c   : > { %228 = vst.msk [vmem:[#allocation2 + $0x70] sm:$0xf] %vm199_vm3, %v4785_v4  ;;  %229 = vst.msk [vmem:[#allocation2 + $0x74] sm:$0xf] %vm199_vm3, %v4785_v4  ;;  %v298_v24 = vld [vmem:[%s4833_s20 + $0x4] sm:$0xf] }
  0x1d   : > { %230 = vst.msk [vmem:[#allocation2 + $0x78] sm:$0xf] %vm199_vm3, %v4785_v4  ;;  %231 = vst.msk [vmem:[#allocation2 + $0x7c] sm:$0xf] %vm199_vm3, %v4785_v4  ;;  %v376_v25 = vshll.u32 %v300_v17, 16  ;;  %v382_v26 = vshll.u32 %v301_v18, 16  ;;  %v973_v30 = vsel %vm4835_vm2, %v971_v22, %v972_v16 }
  0x1e   : > { %v386_v27 = vshrl.u32 %v301_v18, 16  ;;  %v349_v28 = vshrl.u32 %v297_v19, 16  ;;  %v302_v29 = vld [vmem:[%s4833_s20 + $0x14] sm:$0x1]  ;;  %v375_v31 = vrot.slane %v373_v23, 4  ;;  %v352_v32 = vshll.u32 %v297_v19, 16  ;;  %1078 = vrot.lane.b32.xlu1 %v973_v30, %s4787_s22  ;;  %vm4933_vm6 = vmor %vm345_vm4, %vm346_vm5 }
  0x1f   : > { %v358_v33 = vshll.u32 %v298_v24, 16  ;;  %v299_v34 = vld [vmem:[%s4833_s20 + $0x8] sm:$0x1]  ;;  %v4234_v35 = vld [vmem:[%s4833_s20 + $0xc] sm:$0xf]  ;;  %v378_v36 = vrot.slane %v376_v25, 5 }
  0x20   : > { %v384_v37 = vrot.slane %v382_v26, 5  ;;  %v351_v38 = vrot.slane %v349_v28, 4  ;;  %v362_v39 = vshrl.u32 %v298_v24, 16  ;;  %v354_v40 = vrot.slane %v352_v32, 5  ;;  %v4267_v44 = vld [vmem:[%s4833_s20 + $0x10] sm:$0xf]  ;;  %1266 = vrot.lane.b32.xlu0 %v4234_v35, %s4786_s21 }
  0x21   : > { %v360_v41 = vrot.slane %v358_v33, 5  ;;  %v388_v42 = vrot.slane %v386_v27, 4  ;;  %v392_v43 = vshll.u32 %v302_v29, 16  ;;  %v379_v45 = vor.u32 %v378_v36, %v375_v31  ;;  %v4266_v54 = vld [vmem:[%s4833_s20 + $0xc] sm:$0xf]  ;;  %s4726_s17 = smul.u32 80, %s6600_s16 }
  0x22   : > { %v364_v46 = vrot.slane %v362_v39, 4  ;;  %v368_v47 = vshll.u32 %v299_v34, 16  ;;  %v1453_v48 = vshll.u32 %v4267_v44, 16  ;;  %v355_v50 = vor.u32 %v354_v40, %v351_v38  ;;  %v4268_v57 = vld [vmem:[%s4833_s20 + $0x14] sm:$0x1] }
  0x23   : > { %v389_v51 = vor.u32 %v388_v42, %v384_v37  ;;  %v394_v52 = vrot.slane %v392_v43, 5  ;;  %v1457_v53 = vshrl.u32 %v4267_v44, 16  ;;  %v380_v55 = vrot.slane %v379_v45, 4  ;;  %v4270_v63 = vld [vmem:[%s4833_s20 + $0x1c] sm:$0xf]  ;;  %s6466_s25 = scalar_lea.vmem %s6590_s4, %s4726_s17 }
  0x24   : > { %v365_v56 = vor.u32 %v364_v46, %v360_v41  ;;  %v1455_v58 = vrot.slane %v1453_v48, 5  ;;  %v356_v59 = vrot.slane %v355_v50, 4  ;;  %v370_v61 = vrot.slane %v368_v47, 5  ;;  %v4269_v6 = vld [vmem:[%s4833_s20 + $0x18] sm:$0xf]  ;;  %3974 = vst [vmem:[%s6466_s25] sm:$0xf] %v4785_v4 }
  0x25   : > { %v390_v60 = vrot.slane %v389_v51, 4  ;;  %v1459_v62 = vrot.slane %v1457_v53, 4  ;;  %v385_v1 = vsel %vm4933_vm6, %v380_v55, %v384_v37  ;;  %v1444_v3 = vshrl.u32 %v4266_v54, 16  ;;  %v4271_v15 = vld [vmem:[%s4833_s20 + $0x20] sm:$0x1] }
  0x26   : > { %v366_v2 = vrot.slane %v365_v56, 4  ;;  %v1447_v5 = vshll.u32 %v4266_v54, 16  ;;  %736 = vrot.lane.b32.xlu1 %v385_v1, %s4788_s23  ;;  %v361_v7 = vsel %vm4933_vm6, %v356_v59, %v360_v41  ;;  %v1463_v9 = vshll.u32 %v4268_v57, 16  ;;  %v4237_v23 = vld [vmem:[%s4833_s20 + $0x1c] sm:$0xf] }
  0x27   : > { %v395_v8 = vsel %vm4933_vm6, %v390_v60, %v394_v52  ;;  %732 = vrot.lane.b32.xlu0 %v361_v7, %s4788_s23  ;;  %v1460_v10 = vor.u32 %v1459_v62, %v1455_v58  ;;  %v1446_v11 = vrot.slane %v1444_v3, 4  ;;  %v1477_v13 = vshll.u32 %v4270_v63, 16  ;;  %v4236_v28 = vld [vmem:[%s4833_s20 + $0x18] sm:$0xf]  ;;  %v4315_v31 = vld [vmem:[%s4833_s20 + $0x10] sm:$0xf] }
  0x28   : > { %v1449_v12 = vrot.slane %v1447_v5, 5  ;;  %v371_v14 = vsel %vm4933_vm6, %v366_v2, %v370_v61  ;;  %v1481_v16 = vshrl.u32 %v4270_v63, 16  ;;  %v1468_v17 = vshrl.u32 %v4269_v6, 16  ;;  %v4318_v37 = vld [vmem:[%s4833_s20 + $0x1c] sm:$0xf]  ;;  %v4745_v5 = vld [vmem:[%s6587_s1 + $0x30] sm:$0xff]  }
  0x29   : > { %v1479_v19 = vrot.slane %v1477_v13, 5  ;;  %v1471_v20 = vshll.u32 %v4269_v6, 16  ;;  %v1461_v24 = vrot.slane %v1460_v10, 4  ;;  %v1465_v25 = vrot.slane %v1463_v9, 5  ;;  %v4316_v40 = vld [vmem:[%s4833_s20 + $0x14] sm:$0x1] }
  0x2a   : > { %v1450_v18 = vor.u32 %v1449_v12, %v1446_v11  ;;  %738 = vrot.lane.b32.xlu1 %v395_v8, %s4788_s23  ;;  %v1483_v21 = vrot.slane %v1481_v16, 4  ;;  %v1470_v22 = vrot.slane %v1468_v17, 4  ;;  %v1487_v26 = vshll.u32 %v4271_v15, 16  ;;  %v4314_v41 = vld [vmem:[%s4833_s20 + $0xc] sm:$0xe]  ;;  %v4744_v56 = vld [vmem:[%s6587_s1 + $0x38] sm:$0xff]  }
  0x2b   : > { %734 = vrot.lane.b32.xlu0 %v371_v14, %s4788_s23  ;;  %v1473_v27 = vrot.slane %v1471_v20, 5  ;;  %v1466_v33 = vsel %vm4933_vm6, %v1461_v24, %v1465_v25  ;;  %v2054_v36 = vrot.slane %v4315_v31, 5  ;;  %v2061_v42 = vrot.slane %v4318_v37, 5  ;;  %v4319_v46 = vld [vmem:[%s4833_s20 + $0x20] sm:$0x1]  ;;  %4645 = vmatprep.subr.bf16.mxu0 %v4744_v56 }
  0x2c   : > { %v1451_v29 = vrot.slane %v1450_v18, 4  ;;  %v1484_v30 = vor.u32 %v1483_v21, %v1479_v19  ;;  %v1489_v35 = vrot.slane %v1487_v26, 5  ;;  %v2057_v45 = vrot.slane %v4316_v40, 5  ;;  %v4317_v47 = vld [vmem:[%s4833_s20 + $0x18] sm:$0xe]  ;;  %4646 = vmatpush3.bf16.msra.mxu0 %v4744_v56  ;;  %v4746_v21 = vld [vmem:[%s6587_s1 + $0x28] sm:$0xff]  }
  0x2d   : > { %v1474_v32 = vor.u32 %v1473_v27, %v1470_v22  ;;  %v2056_v44 = vrot.slane %v2054_v36, 4  ;;  %v4362_v50 = vrot.slane %v4314_v41, 9  ;;  %v4411_v51 = vld [vmem:[%s4833_s20 + $0x1c] sm:$0xf]  ;;  %v4410_v52 = vld [vmem:[%s4833_s20 + $0x18] sm:$0xf]  ;;  %4647 = vmatprep.subr.bf16.mxu0 %v4745_v5 }
  0x2e   : > { %1272 = vrot.lane.b32.xlu1 %v4237_v23, %s4786_s21  ;;  %v1485_v34 = vrot.slane %v1484_v30, 4  ;;  %v1456_v38 = vsel %vm4933_vm6, %v1451_v29, %v1455_v58  ;;  %v2063_v53 = vrot.slane %v2061_v42, 4  ;;  %v2064_v54 = vrot.slane %v4319_v46, 5  ;;  %v4414_v63 = vld [vmem:[%s4833_s20 + $0x28] sm:$0xf]  ;;  %v4747_v31 = vld [vmem:[%s6587_s1 + $0x20] sm:$0xff]  }
  0x2f   : > { %1270 = vrot.lane.b32.xlu0 %v4236_v28, %s4786_s21  ;;  %v1475_v39 = vrot.slane %v1474_v32, 4  ;;  %v4363_v55 = vrot.slane %v4317_v47, 9  ;;  %v2058_v57 = vsel %vm4835_vm2, %v2056_v44, %v2057_v45  ;;  %v2545_v58 = vshll.u32 %v4411_v51, 16  ;;  %v4413_v1 = vld [vmem:[%s4833_s20 + $0x24] sm:$0xf]  ;;  %v4748_v46 = vld [vmem:[%s6587_s1 + $0x18] sm:$0xff]  }
  0x30   : > { %v1490_v43 = vsel %vm4933_vm6, %v1485_v34, %v1489_v35  ;;  %v2549_v59 = vshrl.u32 %v4411_v51, 16  ;;  %v2055_v60 = vsel %vm4835_vm2, %v4362_v50, %v2054_v36  ;;  %v2536_v61 = vshrl.u32 %v4410_v52, 16  ;;  %v4412_v6 = vld [vmem:[%s4833_s20 + $0x20] sm:$0x1]  ;;  %4648 = vmatpush3.bf16.msra.mxu0 %v4745_v5  ;;  %v4379_v15 = vld [vmem:[%s4833_s20 + $0x1c] sm:$0xf] }
  0x31   : > { %v1480_v48 = vsel %vm4933_vm6, %v1475_v39, %v1479_v19  ;;  %v2539_v62 = vshll.u32 %v4410_v52, 16  ;;  %v2065_v2 = vsel %vm4835_vm2, %v2063_v53, %v2064_v54  ;;  %v2062_v3 = vsel %vm4835_vm2, %v4363_v55, %v2061_v42  ;;  %v4415_v18 = vld [vmem:[%s4833_s20 + $0x2c] sm:$0x1]  ;;  %v4378_v22 = vld [vmem:[%s4833_s20 + $0x18] sm:$0xf]  ;;  %4649 = vmatprep.subr.bf16.mxu0 %v4746_v21 }
  0x32   : > { %1829 = vrot.lane.b32.xlu1 %v1466_v33, %s4789_s24  ;;  %v4998_v7 = vrot.slane %v2545_v58, 5  ;;  %v2551_v8 = vrot.slane %v2549_v59, 4  ;;  %v2569_v9 = vshll.u32 %v4414_v63, 16  ;;  %v2573_v10 = vshrl.u32 %v4414_v63, 16  ;;  %v304_v26 = vld [vmem:[%s4833_s20 + $0x1c] sm:$0xf] }
  0x33   : > { %1827 = vrot.lane.b32.xlu0 %v1456_v38, %s4789_s24  ;;  %v2538_v11 = vrot.slane %v2536_v61, 4  ;;  %v2541_v12 = vrot.slane %v2539_v62, 5  ;;  %v2560_v13 = vshrl.u32 %v4413_v1, 16  ;;  %v2563_v14 = vshll.u32 %v4413_v1, 16  ;;  %v303_v27 = vld [vmem:[%s4833_s20 + $0x18] sm:$0xf] }
  0x34   : > { %v2555_v16 = vshll.u32 %v4412_v6, 16  ;;  %v2552_v17 = vor.u32 %v2551_v8, %v4998_v7  ;;  %v5005_v19 = vrot.slane %v2569_v9, 5  ;;  %v2575_v20 = vrot.slane %v2573_v10, 4  ;;  %v4381_v28 = vld [vmem:[%s4833_s20 + $0x28] sm:$0xf]  ;;  %4650 = vmatpush3.bf16.msra.mxu0 %v4746_v21  ;;  %v4749_v63 = vld [vmem:[%s6587_s1 + $0x10] sm:$0xff]  }
  0x35   : > { %v2542_v23 = vor.u32 %v2541_v12, %v2538_v11  ;;  %v2562_v24 = vrot.slane %v2560_v13, 4  ;;  %v2565_v25 = vrot.slane %v2563_v14, 5  ;;  %v2579_v30 = vshll.u32 %v4415_v18, 16  ;;  %v4459_v34 = vld [vmem:[%s4833_s20 + $0x1c] sm:$0xf]  ;;  %4651 = vmatprep.subr.bf16.mxu0 %v4747_v31  ;;  %v4750_v18 = vld [vmem:[%s6587_s1 + $0x8] sm:$0xff]  }
  0x36   : > { %1833 = vrot.lane.b32.xlu1 %v1490_v43, %s4789_s24  ;;  %v2557_v29 = vrot.slane %v2555_v16, 5  ;;  %v2553_v32 = vrot.slane %v2552_v17, 4  ;;  %v2576_v33 = vor.u32 %v2575_v20, %v5005_v19  ;;  %v406_v35 = vshll.u32 %v304_v26, 16  ;;  %v4380_v37 = vld [vmem:[%s4833_s20 + $0x24] sm:$0xf] }
  0x37   : > { %1831 = vrot.lane.b32.xlu0 %v1480_v48, %s4789_s24  ;;  %v410_v36 = vshrl.u32 %v304_v26, 16  ;;  %v2543_v38 = vrot.slane %v2542_v23, 4  ;;  %v2566_v39 = vor.u32 %v2565_v25, %v2562_v24  ;;  %v397_v40 = vshrl.u32 %v303_v27, 16  ;;  %v4460_v42 = vld [vmem:[%s4833_s20 + $0x20] sm:$0x1] }
  0x38   : > { %v400_v41 = vshll.u32 %v303_v27, 16  ;;  %v2581_v43 = vrot.slane %v2579_v30, 5  ;;  %v3146_v44 = vrot.slane %v4459_v34, 5  ;;  %v4458_v45 = vld [vmem:[%s4833_s20 + $0x18] sm:$0xe]  ;;  %4652 = vmatpush3.bf16.msra.mxu0 %v4747_v31  ;;  %v2558_v47 = vsel %vm4933_vm6, %v2553_v32, %v2557_v29  ;;  %v4752_v34 = vld [vmem:[%s6587_s1] sm:$0xff]  }
  0x39   : > { %v2577_v48 = vrot.slane %v2576_v33, 4  ;;  %v305_v50 = vld [vmem:[%s4833_s20 + $0x20] sm:$0x1]  ;;  %v408_v51 = vrot.slane %v406_v35, 5  ;;  %v412_v52 = vrot.slane %v410_v36, 4  ;;  %v2548_v53 = vsel %vm4933_vm6, %v2543_v38, %v4998_v7  ;;  %4653 = vmatprep.subr.bf16.mxu0 %v4748_v46 }
  0x3a   : > { %2166 = vrot.lane.b32.xlu1 %v2058_v57, %s4790_s27  ;;  %v2567_v54 = vrot.slane %v2566_v39, 4  ;;  %v399_v55 = vrot.slane %v397_v40, 4  ;;  %v402_v56 = vrot.slane %v400_v41, 5  ;;  %v307_v57 = vld [vmem:[%s4833_s20 + $0x28] sm:$0xf]  ;;  %v3148_v59 = vrot.slane %v3146_v44, 4 }
  0x3b   : > { %2164 = vrot.lane.b32.xlu0 %v2055_v60, %s4790_s27  ;;  %v306_v58 = vld [vmem:[%s4833_s20 + $0x24] sm:$0xf]  ;;  %v3149_v60 = vrot.slane %v4460_v42, 5  ;;  %v4506_v61 = vrot.slane %v4458_v45, 9  ;;  %v416_v62 = vshll.u32 %v305_v50, 16  ;;  %v2582_v1 = vsel %vm4933_vm6, %v2577_v48, %v2581_v43 }
  0x3c   : > { %4654 = vmatpush3.bf16.msra.mxu0 %v4748_v46  ;;  %v434_v5 = vshrl.u32 %v307_v57, 16  ;;  %v2572_v6 = vsel %vm4933_vm6, %v2567_v54, %v5005_v19  ;;  %v403_v7 = vor.u32 %v402_v56, %v399_v55  ;;  %v4462_v8 = vld [vmem:[%s4833_s20 + $0x28] sm:$0xf]  ;;  %v421_v9 = vshrl.u32 %v306_v58, 16  ;;  %v4463_v13 = vld [vmem:[%s4833_s20 + $0x2c] sm:$0x1] }
  0x3d   : > { %v424_v10 = vshll.u32 %v306_v58, 16  ;;  %4655 = vmatprep.subr.bf16.mxu0 %v4749_v63  ;;  %v3150_v11 = vsel %vm4835_vm2, %v3148_v59, %v3149_v60  ;;  %v418_v12 = vrot.slane %v416_v62, 5  ;;  %v3147_v19 = vsel %vm4835_vm2, %v4506_v61, %v3146_v44  ;;  %v308_v21 = vld [vmem:[%s4833_s20 + $0x2c] sm:$0x1]  ;;  %v4461_v24 = vld [vmem:[%s4833_s20 + $0x24] sm:$0xe] }
  0x3e   : > { %2170 = vrot.lane.b32.xlu1 %v2065_v2, %s4790_s27  ;;  %v413_v2 = vor.u32 %v412_v52, %v408_v51  ;;  %v436_v17 = vrot.slane %v434_v5, 4  ;;  %v404_v20 = vrot.slane %v403_v7, 4  ;;  %v3156_v25 = vrot.slane %v4463_v13, 5  ;;  %v868_v33 = vld [vmem:[%s4833_s20 + $0x1c] sm:$0xf] }
  0x3f   : > { %2168 = vrot.lane.b32.xlu0 %v2062_v3, %s4790_s27  ;;  %v430_v3 = vshll.u32 %v307_v57, 16  ;;  %v426_v23 = vrot.slane %v424_v10, 5  ;;  %v440_v29 = vshll.u32 %v308_v21, 16  ;;  %v4507_v31 = vrot.slane %v4461_v24, 9  ;;  %v871_v39 = vld [vmem:[%s4833_s20 + $0x28] sm:$0xf] }
  0x40   : > { %4656 = vmatpush3.bf16.msra.mxu0 %v4749_v63  ;;  %v414_v14 = vrot.slane %v413_v2, 4  ;;  %v409_v30 = vsel %vm4933_vm6, %v404_v20, %v408_v51  ;;  %v976_v38 = vrot.slane %v868_v33, 5  ;;  %v869_v42 = vld [vmem:[%s4833_s20 + $0x20] sm:$0x1]  ;;  %v867_v43 = vld [vmem:[%s4833_s20 + $0x18] sm:$0xe] }
  0x41   : > { %v432_v16 = vrot.slane %v430_v3, 5  ;;  %4657 = vmatprep.subr.bf16.mxu0 %v4750_v18  ;;  %v234_v44 = vld [vmem:[%s4833_s20 + $0xc] sm:$0xf]  ;;  %v983_v45 = vrot.slane %v871_v39, 5  ;;  %v232_v46 = vld [vmem:[%s4833_s20] sm:$0xf] }
  0x42   : > { %2360 = vrot.lane.b32.xlu1 %v4379_v15, %s4791_s6  ;;  %v3153_v15 = vrot.slane %v4462_v8, 5  ;;  %v419_v26 = vsel %vm4933_vm6, %v414_v14, %v418_v12  ;;  %267 = vst.msk [vmem:[#allocation2 + $0x8] sm:$0xf] %vm264_vm7, %v234_v44  ;;  %v978_v48 = vrot.slane %v976_v38, 4  ;;  %v979_v50 = vrot.slane %v869_v42, 5 }
  0x43   : > { %2358 = vrot.lane.b32.xlu0 %v4378_v22, %s4791_s6  ;;  %v423_v22 = vrot.slane %v421_v9, 4  ;;  %v872_v51 = vld [vmem:[%s4833_s20 + $0x2c] sm:$0x1]  ;;  %v870_v52 = vld [vmem:[%s4833_s20 + $0x24] sm:$0xe]  ;;  %v4220_v54 = vrot.slane %v867_v43, 9 }
  0x44   : > { %4658 = vmatpush3.bf16.msra.mxu0 %v4750_v18  ;;  %v3155_v27 = vrot.slane %v3153_v15, 4  ;;  %v3154_v40 = vsel %vm4835_vm2, %v4507_v31, %v3153_v15  ;;  %265 = vst.msk [vmem:[#allocation2] sm:$0xf] %vm264_vm7, %v232_v46  ;;  %v4273_v55 = vld [vmem:[%s4833_s20 + $0x28] sm:$0xf]  ;;  %v985_v58 = vrot.slane %v983_v45, 4  ;;  %v980_v62 = vsel %vm4835_vm2, %v978_v48, %v979_v50 }
  0x45   : > { %v427_v32 = vor.u32 %v426_v23, %v423_v22  ;;  %4659 = vmatprep.subr.bf16.mxu0 %v4752_v34  ;;  %v4272_v56 = vld [vmem:[%s4833_s20 + $0x24] sm:$0xf]  ;;  %v235_v57 = vld [vmem:[%s4833_s20 + $0x10] sm:$0xf]  ;;  %v986_v59 = vrot.slane %v872_v51, 5  ;;  %v4221_v60 = vrot.slane %v870_v52, 9  ;;  %v977_v2 = vsel %vm4835_vm2, %v4220_v54, %v976_v38 }
  0x46   : > { %2364 = vrot.lane.b32.xlu1 %v4381_v28, %s4791_s6  ;;  %v437_v28 = vor.u32 %v436_v17, %v432_v16  ;;  %v3157_v35 = vsel %vm4835_vm2, %v3155_v27, %v3156_v25  ;;  %268 = vst.msk [vmem:[#allocation2 + $0xc] sm:$0xf] %vm264_vm7, %v235_v57  ;;  %v233_v61 = vld [vmem:[%s4833_s20 + $0x4] sm:$0xf]  ;;  %v1501_v63 = vshll.u32 %v4273_v55, 16  ;;  %v1492_v3 = vshrl.u32 %v4272_v56, 16 }
  0x47   : > { %2362 = vrot.lane.b32.xlu0 %v4380_v37, %s4791_s6  ;;  %v442_v37 = vrot.slane %v440_v29, 5  ;;  %v428_v41 = vrot.slane %v427_v32, 4  ;;  %266 = vst.msk [vmem:[#allocation2 + $0x4] sm:$0xf] %vm264_vm7, %v233_v61  ;;  %v1495_v5 = vshll.u32 %v4272_v56, 16  ;;  %v987_v8 = vsel %vm4835_vm2, %v985_v58, %v986_v59 }
  0x48   : > { %v438_v36 = vrot.slane %v437_v28, 4  ;;  %4660 = vmatpush3.bf16.msra.mxu0 %v4752_v34  ;;  %v4275_v7 = vld [vmem:[%s4833_s20 + $0x30] sm:$0xf]  ;;  %v984_v9 = vsel %vm4835_vm2, %v4221_v60, %v983_v45  ;;  %v1503_v10 = vrot.slane %v1501_v63, 5  ;;  %v4274_v14 = vld [vmem:[%s4833_s20 + $0x2c] sm:$0x1] }
  0x49   : > { %v1494_v15 = vrot.slane %v1492_v3, 4  ;;  %v1516_v17 = vshrl.u32 %v4275_v7, 16  ;;  %v1519_v18 = vshll.u32 %v4275_v7, 16  ;;  %v1511_v21 = vshll.u32 %v4274_v14, 16  ;;  %v4238_v24 = vld [vmem:[%s4833_s20 + $0x24] sm:$0xf] }
  0x4a   : > { %2921 = vrot.lane.b32.xlu1 %v2558_v47, %s4792_s11  ;;  %v443_v47 = vsel %vm4933_vm6, %v438_v36, %v442_v37  ;;  %v4241_v29 = vld [vmem:[%s4833_s20 + $0x34] sm:$0xf]  ;;  %v4240_v34 = vld [vmem:[%s4833_s20 + $0x30] sm:$0xf]  ;;  %v4321_v37 = vld [vmem:[%s4833_s20 + $0x28] sm:$0xf] }
  0x4b   : > { %2919 = vrot.lane.b32.xlu0 %v2548_v53, %s4792_s11  ;;  %v433_v53 = vsel %vm4933_vm6, %v428_v41, %v432_v16  ;;  %v1497_v16 = vrot.slane %v1495_v5, 5  ;;  %v1518_v27 = vrot.slane %v1516_v17, 4  ;;  %v1521_v28 = vrot.slane %v1519_v18, 5  ;;  %v4324_v42 = vld [vmem:[%s4833_s20 + $0x34] sm:$0xf] }
  0x4c   : > { %v1513_v31 = vrot.slane %v1511_v21, 5  ;;  %v2068_v41 = vrot.slane %v4321_v37, 5  ;;  %v4322_v45 = vld [vmem:[%s4833_s20 + $0x2c] sm:$0x1]  ;;  %v4320_v46 = vld [vmem:[%s4833_s20 + $0x24] sm:$0xe] }
  0x4d   : > { %v1498_v25 = vor.u32 %v1497_v16, %v1494_v15  ;;  %v1522_v36 = vor.u32 %v1521_v28, %v1518_v27  ;;  %v2071_v51 = vrot.slane %v4322_v45, 5  ;;  %v4325_v52 = vld [vmem:[%s4833_s20 + $0x38] sm:$0x1]  ;;  %v4417_v56 = vld [vmem:[%s4833_s20 + $0x34] sm:$0xf]  ;;  %vm3015_vm14 = vcmask 519616  }
  0x4e   : > { %2925 = vrot.lane.b32.xlu1 %v2582_v1, %s4792_s11  ;;  %v1505_v1 = vshrl.u32 %v4273_v55, 16  ;;  %v2070_v50 = vrot.slane %v2068_v41, 4  ;;  %v4364_v55 = vrot.slane %v4320_v46, 9  ;;  %v237_v57 = vld [vmem:[%s4833_s20 + $0x1c] sm:$0xf]  ;;  %v2078_v61 = vrot.slane %v4325_v52, 5 }
  0x4f   : > { %2923 = vrot.lane.b32.xlu0 %v2572_v6, %s4792_s11  ;;  %v4276_v6 = vld [vmem:[%s4833_s20 + $0x34] sm:$0xf]  ;;  %v1523_v44 = vrot.slane %v1522_v36, 4  ;;  %v4416_v58 = vld [vmem:[%s4833_s20 + $0x30] sm:$0xf]  ;;  %vm3352_vm15 = vcmask 585216  }
  0x50   : > { %v1525_v12 = vshll.u32 %v4276_v6, 16  ;;  %v1529_v13 = vshrl.u32 %v4276_v6, 16  ;;  %270 = vst.msk [vmem:[#allocation2 + $0x14] sm:$0xf] %vm264_vm7, %v237_v57  ;;  %v236_v59 = vld [vmem:[%s4833_s20 + $0x18] sm:$0xf]  ;;  %v2072_v63 = vsel %vm4835_vm2, %v2070_v50, %v2071_v51  ;;  %v2069_v3 = vsel %vm4835_vm2, %v4364_v55, %v2068_v41 }
  0x51   : > { %269 = vst.msk [vmem:[#allocation2 + $0x10] sm:$0xf] %vm264_vm7, %v236_v59  ;;  %v2584_v5 = vshrl.u32 %v4416_v58, 16  ;;  %v2587_v6 = vshll.u32 %v4416_v58, 16  ;;  %v4420_v7 = vld [vmem:[%s4833_s20 + $0x40] sm:$0xf] }
  0x52   : > { %3258 = vrot.lane.b32.xlu1 %v3150_v11, %s4793_s18  ;;  %v1507_v11 = vrot.slane %v1505_v1, 4  ;;  %v1527_v22 = vrot.slane %v1525_v12, 5  ;;  %v1531_v23 = vrot.slane %v1529_v13, 4  ;;  %v2593_v1 = vshll.u32 %v4417_v56, 16  ;;  %v238_v21 = vld [vmem:[%s4833_s20 + $0x24] sm:$0xf] }
  0x53   : > { %3256 = vrot.lane.b32.xlu0 %v3147_v19, %s4793_s18  ;;  %v4239_v19 = vld [vmem:[%s4833_s20 + $0x28] sm:$0xf]  ;;  %v2617_v14 = vshll.u32 %v4420_v7, 16  ;;  %v2621_v15 = vshrl.u32 %v4420_v7, 16  ;;  %v2586_v16 = vrot.slane %v2584_v5, 4  ;;  %v2589_v17 = vrot.slane %v2587_v6, 5 }
  0x54   : > { %v1508_v20 = vor.u32 %v1507_v11, %v1503_v10  ;;  %v1532_v32 = vor.u32 %v1531_v23, %v1527_v22  ;;  %v1528_v54 = vsel %vm4933_vm6, %v1523_v44, %v1527_v22  ;;  %v4418_v11 = vld [vmem:[%s4833_s20 + $0x38] sm:$0x1]  ;;  %v5160_v12 = vrot.slane %v2593_v1, 5  ;;  %v4383_v22 = vld [vmem:[%s4833_s20 + $0x34] sm:$0xf] }
  0x55   : > { %v4382_v23 = vld [vmem:[%s4833_s20 + $0x30] sm:$0xf]  ;;  %271 = vst.msk [vmem:[#allocation2 + $0x18] sm:$0xf] %vm264_vm7, %v238_v21  ;;  %v2619_v27 = vrot.slane %v2617_v14, 5  ;;  %v2623_v28 = vrot.slane %v2621_v15, 4 }
  0x56   : > { %742 = vrot.lane.b32.xlu1 %v419_v26, %s4788_s23  ;;  %v4277_v26 = vld [vmem:[%s4833_s20 + $0x38] sm:$0x1]  ;;  %v1533_v39 = vrot.slane %v1532_v32, 4  ;;  %v310_v32 = vld [vmem:[%s4833_s20 + $0x34] sm:$0xf]  ;;  %vm4008_vm0 = vcmask 1043456  }
  0x57   : > { %740 = vrot.lane.b32.xlu0 %v409_v30, %s4788_s23  ;;  %v1509_v30 = vrot.slane %v1508_v20, 4  ;;  %v1535_v33 = vshll.u32 %v4277_v26, 16  ;;  %v239_v20 = vld [vmem:[%s4833_s20 + $0x28] sm:$0xf]  ;;  %v4421_v26 = vld [vmem:[%s4833_s20 + $0x44] sm:$0x1] }
  0x58   : > { %272 = vst.msk [vmem:[#allocation2 + $0x1c] sm:$0xf] %vm264_vm7, %v239_v20  ;;  %v2627_v36 = vshll.u32 %v4421_v26, 16  ;;  %v458_v41 = vshrl.u32 %v310_v32, 16  ;;  %v4464_v51 = vld [vmem:[%s4833_s20 + $0x30] sm:$0xe] }
  0x59   : > { %v1514_v38 = vsel %vm4933_vm6, %v1509_v30, %v1513_v31  ;;  %v4469_v20 = vld [vmem:[%s4833_s20 + $0x44] sm:$0x1]  ;;  %3980 = vst [vmem:[%s6466_s25 + $0x18] sm:$0xf] %v4785_v4  ;;  %3981 = vst [vmem:[%s6466_s25 + $0x1c] sm:$0x1] %v4785_v4 }
  0x5a   : > { %3262 = vrot.lane.b32.xlu1 %v3157_v35, %s4793_s18  ;;  %v1499_v35 = vrot.slane %v1498_v25, 4  ;;  %v314_v26 = vld [vmem:[%s4833_s20 + $0x44] sm:$0x1]  ;;  %3975 = vst [vmem:[%s6466_s25 + $0x4] sm:$0x1] %v4785_v4 }
  0x5b   : > { %3260 = vrot.lane.b32.xlu0 %v3154_v40, %s4793_s18  ;;  %v1537_v40 = vrot.slane %v1535_v33, 5  ;;  %v309_v33 = vld [vmem:[%s4833_s20 + $0x30] sm:$0xf]  ;;  %3976 = vst [vmem:[%s6466_s25 + $0x8] sm:$0xf] %v4785_v4 }
  0x5c   : > { %v1504_v43 = vsel %vm4933_vm6, %v1499_v35, %v1503_v10  ;;  %v445_v45 = vshrl.u32 %v309_v33, 16  ;;  %v448_v46 = vshll.u32 %v309_v33, 16  ;;  %3977 = vst [vmem:[%s6466_s25 + $0xc] sm:$0x1] %v4785_v4  ;;  %3978 = vst [vmem:[%s6466_s25 + $0x10] sm:$0xf] %v4785_v4 }
  0x5d   : > { %v1538_v48 = vsel %vm4933_vm6, %v1533_v39, %v1537_v40  ;;  %v4465_v39 = vld [vmem:[%s4833_s20 + $0x34] sm:$0xf]  ;;  %v454_v40 = vshll.u32 %v310_v32, 16  ;;  %3979 = vst [vmem:[%s6466_s25 + $0x14] sm:$0x1] %v4785_v4 }
  0x5e   : > { %746 = vrot.lane.b32.xlu1 %v443_v47, %s4788_s23  ;;  %v2075_v47 = vrot.slane %v4324_v42, 5  ;;  %v4384_v42 = vld [vmem:[%s4833_s20 + $0x3c] sm:$0xf]  ;;  %v3160_v50 = vrot.slane %v4465_v39, 5  ;;  %v447_v59 = vrot.slane %v445_v45, 4 }
  0x5f   : > { %744 = vrot.lane.b32.xlu0 %v433_v53, %s4788_s23  ;;  %v4323_v53 = vld [vmem:[%s4833_s20 + $0x30] sm:$0xe]  ;;  %v456_v55 = vrot.slane %v454_v40, 5  ;;  %v874_v40 = vld [vmem:[%s4833_s20 + $0x34] sm:$0xf] }
  0x60   : > { %v2077_v60 = vrot.slane %v2075_v47, 4  ;;  %v3162_v1 = vrot.slane %v3160_v50, 4  ;;  %v990_v45 = vrot.slane %v874_v40, 5  ;;  %v4242_v40 = vld [vmem:[%s4833_s20 + $0x3c] sm:$0xf] }
  0x61   : > { %3982 = vst [vmem:[%s6466_s25 + $0x20] sm:$0xf] %v4785_v4  ;;  %3983 = vst [vmem:[%s6466_s25 + $0x24] sm:$0x1] %v4785_v4  ;;  %vm4009_vm1 = vsmask.f32 7938 }
  0x62   : > { %1082 = vrot.lane.b32.xlu1 %v980_v62, %s4787_s22  ;;  %v4365_v62 = vrot.slane %v4323_v53, 9  ;;  %3984 = vst [vmem:[%s6466_s25 + $0x28] sm:$0xf] %v4785_v4  ;;  %3985 = vst [vmem:[%s6466_s25 + $0x2c] sm:$0x1] %v4785_v4 }
  0x63   : > { %1080 = vrot.lane.b32.xlu0 %v977_v2, %s4787_s22  ;;  %v2597_v2 = vshrl.u32 %v4417_v56, 16  ;;  %v460_v56 = vrot.slane %v458_v41, 4  ;;  %3986 = vst [vmem:[%s6466_s25 + $0x30] sm:$0xf] %v4785_v4  ;;  %3987 = vst [vmem:[%s6466_s25 + $0x34] sm:$0x1] %v4785_v4 }
  0x64   : > { %v2076_v10 = vsel %vm4835_vm2, %v4365_v62, %v2075_v47  ;;  %v2629_v47 = vrot.slane %v2627_v36, 5  ;;  %v312_v62 = vld [vmem:[%s4833_s20 + $0x3c] sm:$0xf]  ;;  %v488_v36 = vshll.u32 %v314_v26, 16  ;;  %3988 = vst [vmem:[%s6466_s25 + $0x38] sm:$0xf] %v4785_v4  ;;  %vm6510_vm4 = vmand %vm4008_vm0, %vm4009_vm1 }
  0x65   : > { %v2599_v13 = vrot.slane %v2597_v2, 4  ;;  %v461_v7 = vor.u32 %v460_v56, %v456_v55  ;;  %v472_v14 = vshll.u32 %v312_v62, 16  ;;  %v240_v56 = vld [vmem:[%s4833_s20 + $0x30] sm:$0xf]  ;;  %3989 = vst [vmem:[%s6466_s25 + $0x3c] sm:$0x1] %v4785_v4 }
  0x66   : > { %1086 = vrot.lane.b32.xlu1 %v987_v8, %s4787_s22  ;;  %v4419_v8 = vld [vmem:[%s4833_s20 + $0x3c] sm:$0xf]  ;;  %273 = vst.msk [vmem:[#allocation2 + $0x20] sm:$0xf] %vm264_vm7, %v240_v56  ;;  %v4327_v56 = vld [vmem:[%s4833_s20 + $0x40] sm:$0xf] }
  0x67   : > { %1084 = vrot.lane.b32.xlu0 %v984_v9, %s4787_s22  ;;  %v2079_v9 = vsel %vm4835_vm2, %v2077_v60, %v2078_v61  ;;  %v2608_v18 = vshrl.u32 %v4419_v8, 16  ;;  %v2600_v25 = vor.u32 %v2599_v13, %v5160_v12  ;;  %v450_v60 = vrot.slane %v448_v46, 5  ;;  %v313_v61 = vld [vmem:[%s4833_s20 + $0x40] sm:$0xf]  ;;  %3990 = vst [vmem:[%s6466_s25 + $0x40] sm:$0xf] %v4785_v4 }
  0x68   : > { %v469_v13 = vshrl.u32 %v312_v62, 16  ;;  %v877_v46 = vld [vmem:[%s4833_s20 + $0x40] sm:$0xf]  ;;  %3991 = vst [vmem:[%s6466_s25 + $0x44] sm:$0x1] %v4785_v4 }
  0x69   : > { %v2610_v30 = vrot.slane %v2608_v18, 4  ;;  %v2601_v37 = vrot.slane %v2600_v25, 4  ;;  %3992 = vst [vmem:[%s6466_s25 + $0x48] sm:$0xf] %v4785_v4  ;;  %3993 = vst [vmem:[%s6466_s25 + $0x4c] sm:$0x1] %v4785_v4 }
  0x6a   : > { %1276 = vrot.lane.b32.xlu1 %v4239_v19, %s4786_s21  ;;  %v2611_v19 = vshll.u32 %v4419_v8, 16  ;;  %v478_v8 = vshll.u32 %v313_v61, 16  ;;  %vm4015_vm3 = vsmask.f32 256 }
  0x6b   : > { %1274 = vrot.lane.b32.xlu0 %v4238_v24, %s4786_s21  ;;  %v2603_v24 = vshll.u32 %v4418_v11, 16  ;;  %v451_v11 = vor.u32 %v450_v60, %v447_v59  ;;  %v878_v60 = vld [vmem:[%s4833_s20 + $0x44] sm:$0x1] }
  0x6c   : > { %v2613_v31 = vrot.slane %v2611_v19, 5  ;;  %v462_v19 = vrot.slane %v461_v7, 4 }
  0x6d   : > { %v2605_v35 = vrot.slane %v2603_v24, 5  ;;  %v452_v25 = vrot.slane %v451_v11, 4 }
  0x6e   : > { %1280 = vrot.lane.b32.xlu1 %v4241_v29, %s4786_s21  ;;  %v2590_v29 = vor.u32 %v2589_v17, %v2586_v16  ;;  %v2614_v44 = vor.u32 %v2613_v31, %v2610_v30  ;;  %v4467_v30 = vld [vmem:[%s4833_s20 + $0x3c] sm:$0xe]  ;;  %v3170_v31 = vrot.slane %v4469_v20, 5 }
  0x6f   : > { %1278 = vrot.lane.b32.xlu0 %v4240_v34, %s4786_s21  ;;  %v4385_v34 = vld [vmem:[%s4833_s20 + $0x40] sm:$0xf]  ;;  %v2606_v52 = vsel %vm4933_vm6, %v2601_v37, %v2605_v35  ;;  %v457_v37 = vsel %vm4933_vm6, %v452_v25, %v456_v55  ;;  %v241_v55 = vld [vmem:[%s4833_s20 + $0x34] sm:$0xf] }
  0x70   : > { %v2615_v58 = vrot.slane %v2614_v44, 4  ;;  %v490_v44 = vrot.slane %v488_v36, 5  ;;  %274 = vst.msk [vmem:[#allocation2 + $0x24] sm:$0xf] %vm264_vm7, %v241_v55 }
  0x72   : > { %1837 = vrot.lane.b32.xlu1 %v1514_v38, %s4789_s24  ;;  %v2624_v38 = vor.u32 %v2623_v28, %v2619_v27  ;;  %v474_v28 = vrot.slane %v472_v14, 5 }
  0x73   : > { %1835 = vrot.lane.b32.xlu0 %v1504_v43, %s4789_s24  ;;  %v2591_v43 = vrot.slane %v2590_v29, 4 }
  0x74   : > { %v2625_v53 = vrot.slane %v2624_v38, 4  ;;  %v4509_v38 = vrot.slane %v4467_v30, 9 }
  0x75   : > { %v2596_v57 = vsel %vm4933_vm6, %v2591_v43, %v5160_v12  ;;  %v4468_v12 = vld [vmem:[%s4833_s20 + $0x40] sm:$0xf] }
  0x76   : > { %1841 = vrot.lane.b32.xlu1 %v1538_v48, %s4789_s24  ;;  %v4466_v48 = vld [vmem:[%s4833_s20 + $0x38] sm:$0x1]  ;;  %v2630_v6 = vsel %vm4933_vm6, %v2625_v53, %v2629_v47  ;;  %v3167_v21 = vrot.slane %v4468_v12, 5  ;;  %v873_v53 = vld [vmem:[%s4833_s20 + $0x30] sm:$0xe] }
  0x77   : > { %1839 = vrot.lane.b32.xlu0 %v1528_v54, %s4789_s24  ;;  %v311_v54 = vld [vmem:[%s4833_s20 + $0x38] sm:$0x1]  ;;  %v3163_v2 = vrot.slane %v4466_v48, 5 }
  0x78   : > { %v464_v5 = vshll.u32 %v311_v54, 16  ;;  %v3168_v48 = vsel %vm4835_vm2, %v4509_v38, %v3167_v21  ;;  %v997_v54 = vrot.slane %v877_v46, 5  ;;  %v4245_v46 = vld [vmem:[%s4833_s20 + $0x4c] sm:$0xf] }
  0x79   : > { %v3164_v16 = vsel %vm4835_vm2, %v3162_v1, %v3163_v2  ;;  %v4222_v2 = vrot.slane %v873_v53, 9  ;;  %v4244_v53 = vld [vmem:[%s4833_s20 + $0x48] sm:$0xf] }
  0x7a   : > { %2174 = vrot.lane.b32.xlu1 %v2072_v63, %s4790_s27  ;;  %v466_v17 = vrot.slane %v464_v5, 5  ;;  %v999_v7 = vrot.slane %v997_v54, 4 }
  0x7b   : > { %2172 = vrot.lane.b32.xlu0 %v2069_v3, %s4790_s27  ;;  %v4508_v3 = vrot.slane %v4464_v51, 9  ;;  %v875_v51 = vld [vmem:[%s4833_s20 + $0x38] sm:$0x1] }
  0x7c   : > { %v467_v33 = vsel %vm4933_vm6, %v462_v19, %v466_v17  ;;  %v993_v59 = vrot.slane %v875_v51, 5  ;;  %v4282_v19 = vld [vmem:[%s4833_s20 + $0x4c] sm:$0xf] }
  0x7d   : > { %v3161_v24 = vsel %vm4835_vm2, %v4508_v3, %v3160_v50  ;;  %v4279_v3 = vld [vmem:[%s4833_s20 + $0x40] sm:$0xf]  ;;  %v1573_v25 = vshll.u32 %v4282_v19, 16  ;;  %v1577_v26 = vshrl.u32 %v4282_v19, 16 }
  0x7e   : > { %2178 = vrot.lane.b32.xlu1 %v2079_v9, %s4790_s27  ;;  %v482_v9 = vshrl.u32 %v313_v61, 16  ;;  %v876_v61 = vld [vmem:[%s4833_s20 + $0x3c] sm:$0xe]  ;;  %v1549_v11 = vshll.u32 %v4279_v3, 16  ;;  %v1553_v12 = vshrl.u32 %v4279_v3, 16 }
  0x7f   : > { %2176 = vrot.lane.b32.xlu0 %v2076_v10, %s4790_s27  ;;  %v2620_v10 = vsel %vm4933_vm6, %v2615_v58, %v2619_v27  ;;  %v471_v27 = vrot.slane %v469_v13, 4  ;;  %v992_v58 = vrot.slane %v990_v45, 4  ;;  %v243_v13 = vld [vmem:[%s4833_s20 + $0x40] sm:$0xf]  ;;  %v1579_v38 = vrot.slane %v1577_v26, 4 }
  0x80   : > { %276 = vst.msk [vmem:[#allocation2 + $0x2c] sm:$0xf] %vm264_vm7, %v243_v13 }
  0x81   : > { %v475_v39 = vor.u32 %v474_v28, %v471_v27  ;;  %v4280_v28 = vld [vmem:[%s4833_s20 + $0x44] sm:$0x1] }
  0x82   : > { %2368 = vrot.lane.b32.xlu1 %v4383_v22, %s4791_s6  ;;  %v5191_v63 = vpop.permute.xlu1 %1268  ;;  %v5207_v22 = vrot.slane %v478_v8, 5  ;;  %v1000_v8 = vrot.slane %v878_v60, 5  ;;  %v1559_v36 = vshll.u32 %v4280_v28, 16 }
  0x83   : > { %2366 = vrot.lane.b32.xlu0 %v4382_v23, %s4791_s6  ;;  %v484_v23 = vrot.slane %v482_v9, 4  ;;  %v476_v50 = vrot.slane %v475_v39, 4  ;;  %v4223_v9 = vrot.slane %v876_v61, 9 }
  0x85   : > { %v1073_v15 = vpop.permute.xlu0 %1072  ;;  %v485_v35 = vor.u32 %v484_v23, %v5207_v22  ;;  %v481_v1 = vsel %vm4933_vm6, %v476_v50, %v5207_v22  ;;  %v998_v22 = vsel %vm4835_vm2, %v4223_v9, %v997_v54  ;;  %v5277_v23 = vrot.slane %v1549_v11, 5  ;;  %v4331_v9 = vld [vmem:[%s4833_s20 + $0x50] sm:$0x1] }
  0x86   : > { %2372 = vrot.lane.b32.xlu1 %v4385_v34, %s4791_s6  ;;  %v3169_v34 = vrot.slane %v3167_v21, 4  ;;  %v4281_v21 = vld [vmem:[%s4833_s20 + $0x48] sm:$0xf] }
  0x87   : > { %2370 = vrot.lane.b32.xlu0 %v4384_v42, %s4791_s6  ;;  %v486_v43 = vrot.slane %v485_v35, 4 }
  0x88   : > { %v3171_v42 = vsel %vm4835_vm2, %v3169_v34, %v3170_v31  ;;  %v1564_v31 = vshrl.u32 %v4281_v21, 16  ;;  %v4243_v34 = vld [vmem:[%s4833_s20 + $0x40] sm:$0xf] }
  0x8a   : > { %2929 = vrot.lane.b32.xlu1 %v2606_v52, %s4792_s11 }
  0x8b   : > { %2927 = vrot.lane.b32.xlu0 %v2596_v57, %s4792_s11  ;;  %v5203_v18 = vpop.permute.xlu1 %1074  ;;  %v1077_v29 = vpop.permute.xlu0 %1076  ;;  %v491_v57 = vsel %vm4933_vm6, %v486_v43, %v490_v44  ;;  %v1566_v43 = vrot.slane %v1564_v31, 4 }
  0x8e   : > { %2933 = vrot.lane.b32.xlu1 %v2630_v6, %s4792_s11  ;;  %v4278_v6 = vld [vmem:[%s4833_s20 + $0x3c] sm:$0xf] }
  0x8f   : > { %2931 = vrot.lane.b32.xlu0 %v2620_v10, %s4792_s11  ;;  %v994_v10 = vsel %vm4835_vm2, %v992_v58, %v993_v59  ;;  %v1543_v17 = vshll.u32 %v4278_v6, 16  ;;  %v5302_v58 = vld [vmem:[%s4833_s20 + $0x4c] sm:$0xf] }
  0x90   : > { %v1079_v32 = vpop.permute.xlu1 %1078 }
  0x91   : > { %v1545_v30 = vrot.slane %v1543_v17, 5  ;;  %v4423_v17 = vld [vmem:[%s4833_s20 + $0x4c] sm:$0xf] }
  0x92   : > { %3266 = vrot.lane.b32.xlu1 %v3164_v16, %s4793_s18  ;;  %v1267_v41 = vpop.permute.xlu0 %1266  ;;  %v1540_v16 = vshrl.u32 %v4278_v6, 16  ;;  %v2645_v26 = vshrl.u32 %v4423_v17, 16 }
  0x93   : > { %3264 = vrot.lane.b32.xlu0 %v3161_v24, %s4793_s18  ;;  %v1555_v24 = vrot.slane %v1553_v12, 4 }
  0x95   : > { %v1556_v35 = vor.u32 %v1555_v24, %v5277_v23 }
  0x96   : > { %750 = vrot.lane.b32.xlu1 %v467_v33, %s4788_s23 }
  0x97   : > { %748 = vrot.lane.b32.xlu0 %v457_v37, %s4788_s23  ;;  %v5286_v37 = vrot.slane %v1573_v25, 5  ;;  %v2641_v25 = vshll.u32 %v4423_v17, 16 }
  0x98   : > { %v737_v47 = vpop.permute.xlu1 %736 }
  0x99   : > { %831 = vst.msk [vmem:[#allocation2 + $0x8] sm:$0xf] %vm828_vm8, %v737_v47  ;;  %v733_v52 = vpop.permute.xlu0 %732  ;;  %v1557_v47 = vrot.slane %v1556_v35, 4  ;;  %v1580_v50 = vor.u32 %v1579_v38, %v5286_v37 }
  0x9a   : > { %829 = vst.msk [vmem:[#allocation2] sm:$0xf] %vm828_vm8, %v733_v52  ;;  %3270 = vrot.lane.b32.xlu1 %v3171_v42, %s4793_s18  ;;  %v4283_v42 = vld [vmem:[%s4833_s20 + $0x50] sm:$0x1] }
  0x9b   : > { %1171 = vst.msk [vmem:[#allocation2 + $0x8] sm:$0xf] %vm1168_vm9, %v1077_v29  ;;  %1169 = vst.msk [vmem:[#allocation2] sm:$0xf] %vm1168_vm9, %v1073_v15  ;;  %3268 = vrot.lane.b32.xlu0 %v3168_v48, %s4793_s18  ;;  %v991_v15 = vsel %vm4835_vm2, %v4222_v2, %v990_v45  ;;  %v1542_v29 = vrot.slane %v1540_v16, 4  ;;  %v1561_v48 = vrot.slane %v1559_v36, 5 }
  0x9c   : > { %v739_v62 = vpop.permute.xlu1 %738  ;;  %1363 = vst.msk [vmem:[#allocation2] sm:$0xf] %vm1362_vm10, %v1267_v41  ;;  %v1583_v51 = vshll.u32 %v4283_v42, 16  ;;  %v1581_v60 = vrot.slane %v1580_v50, 4  ;;  %v4329_v16 = vld [vmem:[%s4833_s20 + $0x48] sm:$0xe] }
  0x9d   : > { %832 = vst.msk [vmem:[#allocation2 + $0xc] sm:$0xf] %vm828_vm8, %v739_v62  ;;  %v735_v5 = vpop.permute.xlu0 %734  ;;  %v1546_v41 = vor.u32 %v1545_v30, %v1542_v29  ;;  %v1562_v59 = vsel %vm4933_vm6, %v1557_v47, %v1561_v48  ;;  %v2082_v62 = vrot.slane %v4327_v56, 5  ;;  %v4367_v29 = vrot.slane %v4329_v16, 9  ;;  %v4387_v47 = vld [vmem:[%s4833_s20 + $0x4c] sm:$0xf] }
  0x9e   : > { %1172 = vst.msk [vmem:[#allocation2 + $0xc] sm:$0xf] %vm1168_vm9, %v1079_v32  ;;  %754 = vrot.lane.b32.xlu1 %v491_v57, %s4788_s23  ;;  %v1567_v32 = vshll.u32 %v4281_v21, 16  ;;  %v1585_v61 = vrot.slane %v1583_v51, 5  ;;  %v4422_v21 = vld [vmem:[%s4833_s20 + $0x48] sm:$0xf] }
  0x9f   : > { %830 = vst.msk [vmem:[#allocation2 + $0x4] sm:$0xf] %vm828_vm8, %v735_v5  ;;  %752 = vrot.lane.b32.xlu0 %v481_v1, %s4788_s23  ;;  %v1547_v54 = vrot.slane %v1546_v41, 4  ;;  %v4328_v5 = vld [vmem:[%s4833_s20 + $0x44] sm:$0x1]  ;;  %v2084_v11 = vrot.slane %v2082_v62, 4 }
  0xa0   : > { %1170 = vst.msk [vmem:[#allocation2 + $0x4] sm:$0xf] %vm1168_vm9, %v5203_v18  ;;  %v1273_v14 = vpop.permute.xlu1 %1272  ;;  %v242_v18 = vld [vmem:[%s4833_s20 + $0x3c] sm:$0xf]  ;;  %v1569_v44 = vrot.slane %v1567_v32, 5  ;;  %v2085_v12 = vrot.slane %v4328_v5, 5 }
  0xa1   : > { %1364 = vst.msk [vmem:[#allocation2 + $0x4] sm:$0xf] %vm1362_vm10, %v5191_v63  ;;  %1366 = vst.msk [vmem:[#allocation2 + $0xc] sm:$0xf] %vm1362_vm10, %v1273_v14  ;;  %v1271_v20 = vpop.permute.xlu0 %1270  ;;  %v1001_v63 = vsel %vm4835_vm2, %v999_v7, %v1000_v8  ;;  %v1552_v2 = vsel %vm4933_vm6, %v1547_v54, %v5277_v23  ;;  %v4326_v7 = vld [vmem:[%s4833_s20 + $0x3c] sm:$0xe] }
  0xa2   : > { %275 = vst.msk [vmem:[#allocation2 + $0x28] sm:$0xf] %vm264_vm7, %v242_v18  ;;  %1090 = vrot.lane.b32.xlu1 %v994_v10, %s4787_s22  ;;  %v1570_v55 = vor.u32 %v1569_v44, %v1566_v43  ;;  %v2089_v8 = vrot.slane %v5302_v58, 5  ;;  %v1586_v10 = vsel %vm4933_vm6, %v1581_v60, %v1585_v61  ;;  %v4425_v23 = vld [vmem:[%s4833_s20 + $0x54] sm:$0xf]  ;;  %v2086_v24 = vsel %vm4835_vm2, %v2084_v11, %v2085_v12 }
  0xa3   : > { %1365 = vst.msk [vmem:[#allocation2 + $0x8] sm:$0xf] %vm1362_vm10, %v1271_v20  ;;  %1088 = vrot.lane.b32.xlu0 %v991_v15, %s4787_s22  ;;  %v4366_v15 = vrot.slane %v4326_v7, 9  ;;  %v2092_v20 = vrot.slane %v4331_v9, 5  ;;  %v2632_v30 = vshrl.u32 %v4422_v21, 16  ;;  %v2635_v31 = vshll.u32 %v4422_v21, 16 }
  0xa4   : > { %v1830_v27 = vpop.permute.xlu1 %1829  ;;  %v1571_v3 = vrot.slane %v1570_v55, 4  ;;  %v2091_v18 = vrot.slane %v2089_v8, 4  ;;  %v2656_v35 = vshrl.u32 %v4425_v23, 16  ;;  %v2659_v36 = vshll.u32 %v4425_v23, 16  ;;  %v315_v60 = vld [vmem:[%s4833_s20 + $0x48] sm:$0xf] }
  0xa5   : > { %1925 = vst.msk [vmem:[#allocation2 + $0x4] sm:$0xf] %vm1923_vm11, %v1830_v27  ;;  %v1828_v33 = vpop.permute.xlu0 %1827  ;;  %v2083_v28 = vsel %vm4835_vm2, %v4366_v15, %v2082_v62  ;;  %v2090_v42 = vsel %vm4835_vm2, %v4367_v29, %v2089_v8  ;;  %v2634_v43 = vrot.slane %v2632_v30, 4  ;;  %v2637_v44 = vrot.slane %v2635_v31, 5  ;;  %v4389_v61 = vld [vmem:[%s4833_s20 + $0x58] sm:$0xf] }
  0xa6   : > { %1924 = vst.msk [vmem:[#allocation2] sm:$0xf] %vm1923_vm11, %v1828_v33  ;;  %1094 = vrot.lane.b32.xlu1 %v1001_v63, %s4787_s22  ;;  %v1576_v14 = vsel %vm4933_vm6, %v1571_v3, %v5286_v37  ;;  %v4424_v63 = vld [vmem:[%s4833_s20 + $0x50] sm:$0x1]  ;;  %v2093_v38 = vsel %vm4835_vm2, %v2091_v18, %v2092_v20  ;;  %v2658_v51 = vrot.slane %v2656_v35, 4  ;;  %v493_v11 = vshrl.u32 %v315_v60, 16 }
  0xa7   : > { %1092 = vrot.lane.b32.xlu0 %v998_v22, %s4787_s22  ;;  %v4426_v22 = vld [vmem:[%s4833_s20 + $0x58] sm:$0xf]  ;;  %v2651_v37 = vshll.u32 %v4424_v63, 16  ;;  %v2638_v56 = vor.u32 %v2637_v44, %v2634_v43  ;;  %v5366_v5 = vld [vmem:[%s4833_s20 + $0x4c] sm:$0xf]  ;;  %v496_v12 = vshll.u32 %v315_v60, 16 }
  0xa8   : > { %v1834_v39 = vpop.permute.xlu1 %1833  ;;  %v2665_v33 = vshll.u32 %v4426_v22, 16  ;;  %v4388_v9 = vld [vmem:[%s4833_s20 + $0x54] sm:$0xf]  ;;  %v4472_v16 = vld [vmem:[%s4833_s20 + $0x50] sm:$0x1]  ;;  %v3174_v17 = vrot.slane %v5366_v5, 5 }
  0xa9   : > { %1927 = vst.msk [vmem:[#allocation2 + $0xc] sm:$0xf] %vm1923_vm11, %v1834_v39  ;;  %v1832_v45 = vpop.permute.xlu0 %1831  ;;  %v5343_v39 = vrot.slane %v2641_v25, 5  ;;  %v2653_v62 = vrot.slane %v2651_v37, 5  ;;  %v317_v21 = vld [vmem:[%s4833_s20 + $0x50] sm:$0x1] }
  0xaa   : > { %1926 = vst.msk [vmem:[#allocation2 + $0x8] sm:$0xf] %vm1923_vm11, %v1832_v45  ;;  %1284 = vrot.lane.b32.xlu1 %v4243_v34, %s4786_s21  ;;  %v2669_v34 = vshrl.u32 %v4426_v22, 16  ;;  %v4427_v45 = vld [vmem:[%s4833_s20 + $0x5c] sm:$0x1]  ;;  %v5350_v48 = vrot.slane %v2665_v33, 5 }
  0xab   : > { %1282 = vrot.lane.b32.xlu0 %v4242_v40, %s4786_s21  ;;  %v2647_v40 = vrot.slane %v2645_v26, 4  ;;  %v495_v25 = vrot.slane %v493_v11, 4  ;;  %v498_v26 = vrot.slane %v496_v12, 5  ;;  %v318_v30 = vld [vmem:[%s4833_s20 + $0x54] sm:$0xf]  ;;  %v3176_v33 = vrot.slane %v3174_v17, 4 }
  0xac   : > { %v2167_v52 = vpop.permute.xlu1 %2166  ;;  %v2671_v50 = vrot.slane %v2669_v34, 4  ;;  %v244_v31 = vld [vmem:[%s4833_s20 + $0x48] sm:$0xf]  ;;  %v3177_v34 = vrot.slane %v4472_v16, 5  ;;  %v512_v37 = vshll.u32 %v317_v21, 16  ;;  %v517_v44 = vshrl.u32 %v318_v30, 16 }
  0xad   : > { %2262 = vst.msk [vmem:[#allocation2 + $0x4] sm:$0xf] %vm2260_vm12, %v2167_v52  ;;  %v2165_v57 = vpop.permute.xlu0 %2164  ;;  %v2661_v52 = vrot.slane %v2659_v36, 5  ;;  %v2648_v54 = vor.u32 %v2647_v40, %v5343_v39  ;;  %v499_v43 = vor.u32 %v498_v26, %v495_v25  ;;  %v883_v21 = vld [vmem:[%s4833_s20 + $0x58] sm:$0xf] }
  0xae   : > { %2261 = vst.msk [vmem:[#allocation2] sm:$0xf] %vm2260_vm12, %v2165_v57  ;;  %1288 = vrot.lane.b32.xlu1 %v4245_v46, %s4786_s21  ;;  %v316_v57 = vld [vmem:[%s4833_s20 + $0x4c] sm:$0xf]  ;;  %v519_v60 = vrot.slane %v517_v44, 4 }
  0xaf   : > { %1286 = vrot.lane.b32.xlu0 %v4244_v53, %s4786_s21  ;;  %v4386_v53 = vld [vmem:[%s4833_s20 + $0x48] sm:$0xf]  ;;  %v2662_v3 = vor.u32 %v2661_v52, %v2658_v51  ;;  %v506_v7 = vshrl.u32 %v316_v57, 16  ;;  %277 = vst.msk [vmem:[#allocation2 + $0x30] sm:$0xf] %vm264_vm7, %v244_v31 }
  0xb0   : > { %v2171_v1 = vpop.permute.xlu1 %2170  ;;  %v4475_v51 = vld [vmem:[%s4833_s20 + $0x5c] sm:$0x1]  ;;  %v879_v26 = vld [vmem:[%s4833_s20 + $0x48] sm:$0xe] }
  0xb1   : > { %2264 = vst.msk [vmem:[#allocation2 + $0xc] sm:$0xf] %vm2260_vm12, %v2171_v1  ;;  %v2169_v6 = vpop.permute.xlu0 %2168  ;;  %v2672_v1 = vor.u32 %v2671_v50, %v5350_v48  ;;  %v2663_v20 = vrot.slane %v2662_v3, 4  ;;  %v508_v22 = vrot.slane %v506_v7, 4  ;;  %v3178_v50 = vsel %vm4835_vm2, %v3176_v33, %v3177_v34  ;;  %v246_v3 = vld [vmem:[%s4833_s20 + $0x54] sm:$0xf] }
  0xb2   : > { %2263 = vst.msk [vmem:[#allocation2 + $0x8] sm:$0xf] %vm2260_vm12, %v2169_v6  ;;  %1845 = vrot.lane.b32.xlu1 %v1562_v59, %s4789_s24  ;;  %v2675_v59 = vshll.u32 %v4427_v45, 16  ;;  %v502_v6 = vshll.u32 %v316_v57, 16  ;;  %v520_v45 = vshll.u32 %v318_v30, 16  ;;  %v3184_v5 = vrot.slane %v4475_v51, 5 }
  0xb3   : > { %1843 = vrot.lane.b32.xlu0 %v1552_v2, %s4789_s24  ;;  %v2649_v2 = vrot.slane %v2648_v54, 4  ;;  %v2673_v15 = vrot.slane %v2672_v1, 4  ;;  %v320_v54 = vld [vmem:[%s4833_s20 + $0x5c] sm:$0x1]  ;;  %279 = vst.msk [vmem:[#allocation2 + $0x38] sm:$0xf] %vm264_vm7, %v246_v3 }
  0xb4   : > { %v2361_v13 = vpop.permute.xlu1 %2360  ;;  %v5379_v63 = vrot.slane %v502_v6, 5  ;;  %v884_v31 = vld [vmem:[%s4833_s20 + $0x5c] sm:$0x1]  ;;  %v4288_v51 = vld [vmem:[%s4833_s20 + $0x64] sm:$0xf] }
  0xb5   : > { %2456 = vst.msk [vmem:[#allocation2 + $0x4] sm:$0xf] %vm2454_vm13, %v2361_v13  ;;  %v2359_v19 = vpop.permute.xlu0 %2358  ;;  %v2654_v18 = vsel %vm4933_vm6, %v2649_v2, %v2653_v62  ;;  %v247_v62 = vld [vmem:[%s4833_s20 + $0x58] sm:$0xf]  ;;  %v4473_v2 = vld [vmem:[%s4833_s20 + $0x54] sm:$0xe] }
  0xb6   : > { %2455 = vst.msk [vmem:[#allocation2] sm:$0xf] %vm2454_vm13, %v2359_v19  ;;  %1849 = vrot.lane.b32.xlu1 %v1586_v10, %s4789_s24  ;;  %v2639_v10 = vrot.slane %v2638_v56, 4  ;;  %v4470_v19 = vld [vmem:[%s4833_s20 + $0x48] sm:$0xe]  ;;  %v509_v36 = vor.u32 %v508_v22, %v5379_v63  ;;  %v4511_v12 = vrot.slane %v4473_v2, 9 }
  0xb7   : > { %1847 = vrot.lane.b32.xlu0 %v1576_v14, %s4789_s24  ;;  %v2677_v14 = vrot.slane %v2675_v59, 5  ;;  %v4510_v35 = vrot.slane %v4470_v19, 9  ;;  %v500_v59 = vrot.slane %v499_v43, 4  ;;  %280 = vst.msk [vmem:[#allocation2 + $0x3c] sm:$0xf] %vm264_vm7, %v247_v62 }
  0xb8   : > { %v2365_v27 = vpop.permute.xlu1 %2364 }
  0xb9   : > { %2458 = vst.msk [vmem:[#allocation2 + $0xc] sm:$0xf] %vm2454_vm13, %v2365_v27  ;;  %v2363_v32 = vpop.permute.xlu0 %2362  ;;  %v319_v27 = vld [vmem:[%s4833_s20 + $0x58] sm:$0xf]  ;;  %v505_v11 = vsel %vm4933_vm6, %v500_v59, %v5379_v63 }
  0xba   : > { %2457 = vst.msk [vmem:[#allocation2 + $0x8] sm:$0xf] %vm2454_vm13, %v2363_v32  ;;  %2182 = vrot.lane.b32.xlu1 %v2086_v24, %s4790_s27  ;;  %v2644_v24 = vsel %vm4933_vm6, %v2639_v10, %v5343_v39  ;;  %v2678_v32 = vsel %vm4933_vm6, %v2673_v15, %v2677_v14  ;;  %v526_v39 = vshll.u32 %v319_v27, 16  ;;  %v530_v40 = vshrl.u32 %v319_v27, 16  ;;  %v880_v14 = vld [vmem:[%s4833_s20 + $0x4c] sm:$0xf] }
  0xbb   : > { %2180 = vrot.lane.b32.xlu0 %v2083_v28, %s4790_s27  ;;  %v245_v28 = vld [vmem:[%s4833_s20 + $0x4c] sm:$0xf]  ;;  %v1011_v27 = vrot.slane %v883_v21, 5 }
  0xbc   : > { %v2922_v41 = vpop.permute.xlu1 %2921  ;;  %278 = vst.msk [vmem:[#allocation2 + $0x34] sm:$0xf] %vm264_vm7, %v245_v28  ;;  %v532_v56 = vrot.slane %v530_v40, 4  ;;  %v1014_v40 = vrot.slane %v884_v31, 5  ;;  %v4336_v31 = vld [vmem:[%s4833_s20 + $0x64] sm:$0xf] }
  0xbd   : > { %3017 = vst.msk [vmem:[#allocation2 + $0x4] sm:$0xf] %vm3015_vm14, %v2922_v41  ;;  %v2920_v46 = vpop.permute.xlu0 %2919 }
  0xbe   : > { %3016 = vst.msk [vmem:[#allocation2] sm:$0xf] %vm3015_vm14, %v2920_v46  ;;  %2186 = vrot.lane.b32.xlu1 %v2093_v38, %s4790_s27  ;;  %v5398_v38 = vld [vmem:[%s4833_s20 + $0x58] sm:$0xf] }
  0xbf   : > { %2184 = vrot.lane.b32.xlu0 %v2090_v42, %s4790_s27  ;;  %v2668_v42 = vsel %vm4933_vm6, %v2663_v20, %v5350_v48  ;;  %v3181_v52 = vrot.slane %v5398_v38, 5  ;;  %v510_v48 = vrot.slane %v509_v36, 4  ;;  %v1004_v20 = vrot.slane %v880_v14, 5  ;;  %v4285_v36 = vld [vmem:[%s4833_s20 + $0x58] sm:$0xf] }
  0xc0   : > { %v2926_v55 = vpop.permute.xlu1 %2925  ;;  %v4284_v38 = vld [vmem:[%s4833_s20 + $0x54] sm:$0xf]  ;;  %v1597_v43 = vshll.u32 %v4285_v36, 16  ;;  %v1601_v44 = vshrl.u32 %v4285_v36, 16 }
  0xc1   : > { %3019 = vst.msk [vmem:[#allocation2 + $0xc] sm:$0xf] %vm3015_vm14, %v2926_v55  ;;  %v2924_v58 = vpop.permute.xlu0 %2923  ;;  %v5412_v55 = vrot.slane %v526_v39, 5  ;;  %v3183_v7 = vrot.slane %v3181_v52, 4  ;;  %v3182_v22 = vsel %vm4835_vm2, %v4511_v12, %v3181_v52  ;;  %v1013_v39 = vrot.slane %v1011_v27, 4 }
  0xc2   : > { %3018 = vst.msk [vmem:[#allocation2 + $0x8] sm:$0xf] %vm3015_vm14, %v2924_v58  ;;  %2376 = vrot.lane.b32.xlu1 %v4387_v47, %s4791_s6  ;;  %v3175_v58 = vsel %vm4835_vm2, %v4510_v35, %v3174_v17  ;;  %v4224_v35 = vrot.slane %v879_v26, 9 }
  0xc3   : > { %2374 = vrot.lane.b32.xlu0 %v4386_v53, %s4791_s6  ;;  %v514_v53 = vrot.slane %v512_v37, 5  ;;  %v3185_v17 = vsel %vm4835_vm2, %v3183_v7, %v3184_v5  ;;  %v4247_v5 = vld [vmem:[%s4833_s20 + $0x58] sm:$0xf] }
  0xc4   : > { %v3259_v8 = vpop.permute.xlu1 %3258 }
  0xc5   : > { %3354 = vst.msk [vmem:[#allocation2 + $0x4] sm:$0xf] %vm3352_vm15, %v3259_v8  ;;  %v3257_v13 = vpop.permute.xlu0 %3256  ;;  %v515_v6 = vsel %vm4933_vm6, %v510_v48, %v514_v53  ;;  %v533_v8 = vor.u32 %v532_v56, %v5412_v55  ;;  %v4287_v48 = vld [vmem:[%s4833_s20 + $0x60] sm:$0xf]  ;;  %v1015_v53 = vsel %vm4835_vm2, %v1013_v39, %v1014_v40  ;;  %v1603_v56 = vrot.slane %v1601_v44, 4 }
  0xc6   : > { %3353 = vst.msk [vmem:[#allocation2] sm:$0xf] %vm3352_vm15, %v3257_v13  ;;  %2380 = vrot.lane.b32.xlu1 %v4389_v61, %s4791_s6  ;;  %v522_v61 = vrot.slane %v520_v45, 5  ;;  %v1615_v2 = vshll.u32 %v4287_v48, 16 }
  0xc7   : > { %2378 = vrot.lane.b32.xlu0 %v4388_v9, %s4791_s6  ;;  %v536_v9 = vshll.u32 %v320_v54, 16  ;;  %v534_v19 = vrot.slane %v533_v8, 4 }
  0xc8   : > { %v743_v23 = vpop.permute.xlu1 %742  ;;  %v523_v13 = vor.u32 %v522_v61, %v519_v60  ;;  %v4286_v60 = vld [vmem:[%s4833_s20 + $0x5c] sm:$0x1] }
  0xc9   : > { %834 = vst.msk [vmem:[#allocation2 + $0x14] sm:$0xf] %vm828_vm8, %v743_v23  ;;  %v741_v29 = vpop.permute.xlu0 %740  ;;  %v1607_v7 = vshll.u32 %v4286_v60, 16 }
  0xca   : > { %833 = vst.msk [vmem:[#allocation2 + $0x10] sm:$0xf] %vm828_vm8, %v741_v29  ;;  %2937 = vrot.lane.b32.xlu1 %v2654_v18, %s4792_s11  ;;  %v538_v18 = vrot.slane %v536_v9, 5  ;;  %v524_v23 = vrot.slane %v523_v13, 4  ;;  %v1006_v29 = vrot.slane %v1004_v20, 4 }
  0xcb   : > { %2935 = vrot.lane.b32.xlu0 %v2644_v24, %s4792_s11  ;;  %v881_v24 = vld [vmem:[%s4833_s20 + $0x50] sm:$0x1]  ;;  %v4289_v13 = vld [vmem:[%s4833_s20 + $0x68] sm:$0x1] }
  0xcc   : > { %v3263_v41 = vpop.permute.xlu1 %3262  ;;  %v539_v28 = vsel %vm4933_vm6, %v534_v19, %v538_v18  ;;  %v1007_v30 = vrot.slane %v881_v24, 5  ;;  %v529_v34 = vsel %vm4933_vm6, %v524_v23, %v5412_v55  ;;  %v1599_v55 = vrot.slane %v1597_v43, 5 }
  0xcd   : > { %3356 = vst.msk [vmem:[#allocation2 + $0xc] sm:$0xf] %vm3352_vm15, %v3263_v41  ;;  %v3261_v46 = vpop.permute.xlu0 %3260  ;;  %v4751_v47 = vld [vmem:[#allocation2] sm:$0xff]   ;;  %v1609_v18 = vrot.slane %v1607_v7, 5  ;;  %v1631_v21 = vshll.u32 %v4289_v13, 16 }
  0xce   : > { %3355 = vst.msk [vmem:[#allocation2 + $0x8] sm:$0xf] %vm3352_vm15, %v3261_v46  ;;  %2941 = vrot.lane.b32.xlu1 %v2678_v32, %s4792_s11  ;;  %4661 = vmatprep.mubr.bf16.mxu0 %v4751_v47  ;;  %v882_v32 = vld [vmem:[%s4833_s20 + $0x54] sm:$0xe]  ;;  %v1005_v46 = vsel %vm4835_vm2, %v4224_v35, %v1004_v20  ;;  %v1588_v47 = vshrl.u32 %v4284_v38, 16 }
  0xcf   : > { %2939 = vrot.lane.b32.xlu0 %v2668_v42, %s4792_s11  ;;  %v4225_v41 = vrot.slane %v882_v32, 9  ;;  %v1008_v42 = vsel %vm4835_vm2, %v1006_v29, %v1007_v30  ;;  %v1633_v29 = vrot.slane %v1631_v21, 5  ;;  %v4334_v35 = vld [vmem:[%s4833_s20 + $0x5c] sm:$0x1] }
  0xd0   : > { %v747_v57 = vpop.permute.xlu1 %746  ;;  %v1590_v61 = vrot.slane %v1588_v47, 4 }
  0xd1   : > { %836 = vst.msk [vmem:[#allocation2 + $0x1c] sm:$0xf] %vm828_vm8, %v747_v57  ;;  %v745_v1 = vpop.permute.xlu0 %744  ;;  %v1012_v54 = vsel %vm4835_vm2, %v4225_v41, %v1011_v27  ;;  %v1621_v57 = vshll.u32 %v4288_v51, 16  ;;  %v2099_v41 = vrot.slane %v4334_v35, 5  ;;  %v5552_v35 = vld [vmem:[%s4833_s20 + $0x64] sm:$0xf] }
  0xd2   : > { %835 = vst.msk [vmem:[#allocation2 + $0x18] sm:$0xf] %vm828_vm8, %v745_v1  ;;  %3274 = vrot.lane.b32.xlu1 %v3178_v50, %s4793_s18  ;;  %v1591_v50 = vshll.u32 %v4284_v38, 16  ;;  %v1612_v1 = vshrl.u32 %v4287_v48, 16  ;;  %v2103_v38 = vrot.slane %v4336_v31, 5 }
  0xd3   : > { %3272 = vrot.lane.b32.xlu0 %v3175_v58, %s4793_s18  ;;  %v1625_v58 = vshrl.u32 %v4288_v51, 16  ;;  %v1623_v8 = vrot.slane %v1621_v57, 5  ;;  %v4428_v51 = vld [vmem:[%s4833_s20 + $0x60] sm:$0xf] }
  0xd4   : > { %v1083_v10 = vpop.permute.xlu1 %1082  ;;  %v1593_v62 = vrot.slane %v1591_v50, 5  ;;  %v1614_v14 = vrot.slane %v1612_v1, 4  ;;  %v4335_v50 = vld [vmem:[%s4833_s20 + $0x60] sm:$0xe]  ;;  %v2680_v60 = vshrl.u32 %v4428_v51, 16 }
  0xd5   : > { %1174 = vst.msk [vmem:[#allocation2 + $0x14] sm:$0xf] %vm1168_vm9, %v1083_v10  ;;  %v1081_v15 = vpop.permute.xlu0 %1080  ;;  %v4753_v16 = vld [vmem:[#allocation2 + $0x8] sm:$0xff]   ;;  %v1627_v9 = vrot.slane %v1625_v58, 4 }
  0xd6   : > { %1173 = vst.msk [vmem:[#allocation2 + $0x10] sm:$0xf] %vm1168_vm9, %v1081_v15  ;;  %758 = vrot.lane.b32.xlu1 %v515_v6, %s4788_s23  ;;  %4662 = vmatmul.mubr.bf16.vlgmr.msra.gmra.mxu0 %v4753_v16  ;;  %v1604_v6 = vor.u32 %v1603_v56, %v1599_v55  ;;  %v1594_v12 = vor.u32 %v1593_v62, %v1590_v61  ;;  %v1617_v15 = vrot.slane %v1615_v2, 5  ;;  %v4432_v56 = vld [vmem:[%s4833_s20 + $0x70] sm:$0xf]  ;;  %v2683_v61 = vshll.u32 %v4428_v51, 16 }
  0xd7   : > { %756 = vrot.lane.b32.xlu0 %v505_v11, %s4788_s23  ;;  %v4246_v11 = vld [vmem:[%s4833_s20 + $0x54] sm:$0xf]  ;;  %v1628_v20 = vor.u32 %v1627_v9, %v1623_v8  ;;  %v4431_v62 = vld [vmem:[%s4833_s20 + $0x6c] sm:$0xf]  ;;  %v2682_v13 = vrot.slane %v2680_v60, 4 }
  0xd8   : > { %v1087_v63 = vpop.permute.xlu1 %1086  ;;  %v1605_v19 = vrot.slane %v1604_v6, 4  ;;  %v1595_v23 = vrot.slane %v1594_v12, 4  ;;  %v1618_v24 = vor.u32 %v1617_v15, %v1614_v14  ;;  %v4430_v6 = vld [vmem:[%s4833_s20 + $0x68] sm:$0x1]  ;;  %v2704_v9 = vshrl.u32 %v4431_v62, 16 }
  0xd9   : > { %1176 = vst.msk [vmem:[#allocation2 + $0x1c] sm:$0xf] %vm1168_vm9, %v1087_v63  ;;  %v1085_v25 = vpop.permute.xlu0 %1084  ;;  %v2685_v14 = vrot.slane %v2683_v61, 5  ;;  %v249_v60 = vld [vmem:[%s4833_s20 + $0x64] sm:$0xf] }
  0xda   : > { %1175 = vst.msk [vmem:[#allocation2 + $0x18] sm:$0xf] %vm1168_vm9, %v1085_v25  ;;  %3278 = vrot.lane.b32.xlu1 %v3185_v17, %s4793_s18  ;;  %v4249_v17 = vld [vmem:[%s4833_s20 + $0x64] sm:$0xf]  ;;  %v4333_v25 = vld [vmem:[%s4833_s20 + $0x58] sm:$0xf]  ;;  %v1610_v27 = vsel %vm4933_vm6, %v1605_v19, %v1609_v18 }
  0xdb   : > { %3276 = vrot.lane.b32.xlu0 %v3182_v22, %s4793_s18  ;;  %v4248_v22 = vld [vmem:[%s4833_s20 + $0x60] sm:$0xf]  ;;  %v2096_v30 = vrot.slane %v4333_v25, 5  ;;  %v2686_v25 = vor.u32 %v2685_v14, %v2682_v13  ;;  %282 = vst.msk [vmem:[#allocation2 + $0x44] sm:$0xf] %vm264_vm7, %v249_v60 }
  0xdc   : > { %v1277_v33 = vpop.permute.xlu1 %1276 }
  0xdd   : > { %1368 = vst.msk [vmem:[#allocation2 + $0x14] sm:$0xf] %vm1362_vm10, %v1277_v33  ;;  %v1275_v37 = vpop.permute.xlu0 %1274  ;;  %v1600_v33 = vsel %vm4933_vm6, %v1595_v23, %v1599_v55  ;;  %v2098_v40 = vrot.slane %v2096_v30, 4 }
  0xde   : > { %1367 = vst.msk [vmem:[#allocation2 + $0x10] sm:$0xf] %vm1362_vm10, %v1275_v37  ;;  %762 = vrot.lane.b32.xlu1 %v539_v28, %s4788_s23  ;;  %v1629_v28 = vrot.slane %v1628_v20, 4  ;;  %v4332_v37 = vld [vmem:[%s4833_s20 + $0x54] sm:$0xe] }
  0xdf   : > { %760 = vrot.lane.b32.xlu0 %v529_v34, %s4788_s23  ;;  %v1619_v34 = vrot.slane %v1618_v24, 4  ;;  %v4391_v20 = vld [vmem:[%s4833_s20 + $0x64] sm:$0xf]  ;;  %v4390_v24 = vld [vmem:[%s4833_s20 + $0x60] sm:$0xf] }
  0xe0   : > { %v1281_v45 = vpop.permute.xlu1 %1280  ;;  %v1634_v39 = vsel %vm4933_vm6, %v1629_v28, %v1633_v29  ;;  %v321_v29 = vld [vmem:[%s4833_s20 + $0x60] sm:$0xf] }
  0xe1   : > { %1370 = vst.msk [vmem:[#allocation2 + $0x1c] sm:$0xf] %vm1362_vm10, %v1281_v45  ;;  %v1279_v52 = vpop.permute.xlu0 %1278  ;;  %v1624_v44 = vsel %vm4933_vm6, %v1619_v34, %v1623_v8  ;;  %v4368_v45 = vrot.slane %v4332_v37, 9 }
  0xe2   : > { %1369 = vst.msk [vmem:[#allocation2 + $0x18] sm:$0xf] %vm1362_vm10, %v1279_v52  ;;  %1098 = vrot.lane.b32.xlu1 %v1008_v42, %s4787_s22  ;;  %v4337_v42 = vld [vmem:[%s4833_s20 + $0x68] sm:$0x1]  ;;  %v2105_v52 = vrot.slane %v2103_v38, 4 }
  0xe3   : > { %1096 = vrot.lane.b32.xlu0 %v1005_v46, %s4787_s22  ;;  %v4429_v46 = vld [vmem:[%s4833_s20 + $0x64] sm:$0xf]  ;;  %v2106_v48 = vrot.slane %v4337_v42, 5  ;;  %v2097_v58 = vsel %vm4835_vm2, %v4368_v45, %v2096_v30  ;;  %v4393_v30 = vld [vmem:[%s4833_s20 + $0x70] sm:$0xf]  ;;  %v544_v42 = vshll.u32 %v321_v29, 16 }
  0xe4   : > { %v1838_v59 = vpop.permute.xlu1 %1837  ;;  %v2693_v55 = vshrl.u32 %v4429_v46, 16 }
  0xe5   : > { %1929 = vst.msk [vmem:[#allocation2 + $0x14] sm:$0xf] %vm1923_vm11, %v1838_v59  ;;  %v1836_v3 = vpop.permute.xlu0 %1835  ;;  %v4369_v59 = vrot.slane %v4335_v50, 9  ;;  %v2107_v2 = vsel %vm4835_vm2, %v2105_v52, %v2106_v48  ;;  %v4476_v50 = vld [vmem:[%s4833_s20 + $0x60] sm:$0xe] }
  0xe6   : > { %1928 = vst.msk [vmem:[#allocation2 + $0x10] sm:$0xf] %vm1923_vm11, %v1836_v3  ;;  %1102 = vrot.lane.b32.xlu1 %v1015_v53, %s4787_s22  ;;  %v2100_v53 = vsel %vm4835_vm2, %v2098_v40, %v2099_v41  ;;  %v2713_v3 = vshll.u32 %v4432_v56, 16  ;;  %v2695_v8 = vrot.slane %v2693_v55, 4  ;;  %v2687_v40 = vrot.slane %v2686_v25, 4 }
  0xe7   : > { %1100 = vrot.lane.b32.xlu0 %v1012_v54, %s4787_s22  ;;  %v2689_v54 = vshll.u32 %v4429_v46, 16  ;;  %v2104_v12 = vsel %vm4835_vm2, %v4369_v59, %v2103_v38  ;;  %v541_v41 = vshrl.u32 %v321_v29, 16  ;;  %v4478_v46 = vld [vmem:[%s4833_s20 + $0x68] sm:$0x1]  ;;  %v325_v59 = vld [vmem:[%s4833_s20 + $0x70] sm:$0xf] }
  0xe8   : > { %v1842_v10 = vpop.permute.xlu1 %1841  ;;  %v5537_v19 = vrot.slane %v2713_v3, 5  ;;  %v323_v48 = vld [vmem:[%s4833_s20 + $0x68] sm:$0x1] }
  0xe9   : > { %1931 = vst.msk [vmem:[#allocation2 + $0x1c] sm:$0xf] %vm1923_vm11, %v1842_v10  ;;  %v1840_v16 = vpop.permute.xlu0 %1839  ;;  %v5529_v7 = vrot.slane %v2689_v54, 5  ;;  %v2707_v10 = vshll.u32 %v4431_v62, 16  ;;  %v324_v62 = vld [vmem:[%s4833_s20 + $0x6c] sm:$0xf] }
  0xea   : > { %1930 = vst.msk [vmem:[#allocation2 + $0x18] sm:$0xf] %vm1923_vm11, %v1840_v16  ;;  %1292 = vrot.lane.b32.xlu1 %v4247_v5, %s4786_s21  ;;  %v2717_v5 = vshrl.u32 %v4432_v56, 16  ;;  %v2699_v16 = vshll.u32 %v4430_v6, 16  ;;  %v4512_v6 = vrot.slane %v4476_v50, 9 }
  0xeb   : > { %1290 = vrot.lane.b32.xlu0 %v4246_v11, %s4786_s21  ;;  %v2696_v21 = vor.u32 %v2695_v8, %v5529_v7  ;;  %v2692_v56 = vsel %vm4933_vm6, %v2687_v40, %v5529_v7  ;;  %v560_v8 = vshll.u32 %v323_v48, 16  ;;  %v889_v48 = vld [vmem:[%s4833_s20 + $0x70] sm:$0xf] }
  0xec   : > { %v2175_v63 = vpop.permute.xlu1 %2174  ;;  %v2719_v18 = vrot.slane %v2717_v5, 4  ;;  %v2701_v31 = vrot.slane %v2699_v16, 5  ;;  %v3191_v5 = vrot.slane %v4478_v46, 5  ;;  %v568_v16 = vshll.u32 %v324_v62, 16 }
  0xed   : > { %2266 = vst.msk [vmem:[#allocation2 + $0x14] sm:$0xf] %vm2260_vm12, %v2175_v63  ;;  %v2173_v26 = vpop.permute.xlu0 %2172  ;;  %v2706_v63 = vrot.slane %v2704_v9, 4  ;;  %v5584_v9 = vld [vmem:[%s4833_s20 + $0x70] sm:$0xf] }
  0xee   : > { %2265 = vst.msk [vmem:[#allocation2 + $0x10] sm:$0xf] %vm2260_vm12, %v2173_v26  ;;  %1296 = vrot.lane.b32.xlu1 %v4249_v17, %s4786_s21  ;;  %v4433_v17 = vld [vmem:[%s4833_s20 + $0x74] sm:$0x1]  ;;  %v322_v26 = vld [vmem:[%s4833_s20 + $0x64] sm:$0xf] }
  0xef   : > { %1294 = vrot.lane.b32.xlu0 %v4248_v22, %s4786_s21  ;;  %v2709_v22 = vrot.slane %v2707_v10, 5  ;;  %v2723_v28 = vshll.u32 %v4433_v17, 16  ;;  %v554_v37 = vshrl.u32 %v322_v26, 16  ;;  %v574_v10 = vshll.u32 %v325_v59, 16 }
  0xf0   : > { %v2179_v32 = vpop.permute.xlu1 %2178 }
  0xf1   : > { %2268 = vst.msk [vmem:[#allocation2 + $0x1c] sm:$0xf] %vm2260_vm12, %v2179_v32  ;;  %v2177_v36 = vpop.permute.xlu0 %2176  ;;  %v2720_v32 = vor.u32 %v2719_v18, %v5537_v19  ;;  %v2710_v34 = vor.u32 %v2709_v22, %v2706_v63  ;;  %v556_v54 = vrot.slane %v554_v37, 4  ;;  %v3195_v63 = vrot.slane %v5584_v9, 5  ;;  %v4290_v9 = vld [vmem:[%s4833_s20 + $0x6c] sm:$0xf] }
  0xf2   : > { %2267 = vst.msk [vmem:[#allocation2 + $0x18] sm:$0xf] %vm2260_vm12, %v2177_v36  ;;  %1853 = vrot.lane.b32.xlu1 %v1610_v27, %s4789_s24  ;;  %v550_v36 = vshll.u32 %v322_v26, 16  ;;  %v562_v22 = vrot.slane %v560_v8, 5 }
  0xf3   : > { %1851 = vrot.lane.b32.xlu0 %v1600_v33, %s4789_s24  ;;  %v2697_v33 = vrot.slane %v2696_v21, 4  ;;  %v2721_v45 = vrot.slane %v2720_v32, 4  ;;  %v2711_v52 = vrot.slane %v2710_v34, 4  ;;  %v4481_v21 = vld [vmem:[%s4833_s20 + $0x74] sm:$0x1]  ;;  %v3197_v37 = vrot.slane %v3195_v63, 4 }
  0xf4   : > { %v2369_v43 = vpop.permute.xlu1 %2368  ;;  %v250_v34 = vld [vmem:[%s4833_s20 + $0x6c] sm:$0xf] }
  0xf5   : > { %2460 = vst.msk [vmem:[#allocation2 + $0x14] sm:$0xf] %vm2454_vm13, %v2369_v43  ;;  %v2367_v47 = vpop.permute.xlu0 %2366  ;;  %v2702_v51 = vsel %vm4933_vm6, %v2697_v33, %v2701_v31  ;;  %v2716_v13 = vsel %vm4933_vm6, %v2711_v52, %v5537_v19  ;;  %v251_v31 = vld [vmem:[%s4833_s20 + $0x70] sm:$0xf]  ;;  %v4479_v33 = vld [vmem:[%s4833_s20 + $0x6c] sm:$0xe] }
  0xf6   : > { %2459 = vst.msk [vmem:[#allocation2 + $0x10] sm:$0xf] %vm2454_vm13, %v2367_v47  ;;  %1857 = vrot.lane.b32.xlu1 %v1634_v39, %s4789_s24  ;;  %v4392_v39 = vld [vmem:[%s4833_s20 + $0x6c] sm:$0xf]  ;;  %v3188_v47 = vrot.slane %v5552_v35, 5  ;;  %v3198_v35 = vrot.slane %v4481_v21, 5 }
  0xf7   : > { %1855 = vrot.lane.b32.xlu0 %v1624_v44, %s4789_s24  ;;  %v2725_v44 = vrot.slane %v2723_v28, 5  ;;  %284 = vst.msk [vmem:[#allocation2 + $0x4c] sm:$0xf] %vm264_vm7, %v251_v31  ;;  %283 = vst.msk [vmem:[#allocation2 + $0x48] sm:$0xf] %vm264_vm7, %v250_v34 }
  0xf8   : > { %v2373_v57 = vpop.permute.xlu1 %2372  ;;  %v3190_v3 = vrot.slane %v3188_v47, 4  ;;  %v4294_v21 = vld [vmem:[%s4833_s20 + $0x7c] sm:$0xf] }
  0xf9   : > { %2462 = vst.msk [vmem:[#allocation2 + $0x1c] sm:$0xf] %vm2454_vm13, %v2373_v57  ;;  %v2371_v1 = vpop.permute.xlu0 %2370  ;;  %v543_v57 = vrot.slane %v541_v41, 4 }
  0xfa   : > { %2461 = vst.msk [vmem:[#allocation2 + $0x18] sm:$0xf] %vm2454_vm13, %v2371_v1  ;;  %2190 = vrot.lane.b32.xlu1 %v2100_v53, %s4790_s27  ;;  %v5565_v53 = vrot.slane %v550_v36, 5  ;;  %v248_v1 = vld [vmem:[%s4833_s20 + $0x60] sm:$0xf] }
  0xfb   : > { %2188 = vrot.lane.b32.xlu0 %v2097_v58, %s4790_s27  ;;  %v546_v58 = vrot.slane %v544_v42, 5  ;;  %281 = vst.msk [vmem:[#allocation2 + $0x40] sm:$0xf] %vm264_vm7, %v248_v1  ;;  %v4513_v42 = vrot.slane %v4479_v33, 9  ;;  %v890_v1 = vld [vmem:[%s4833_s20 + $0x74] sm:$0x1] }
  0xfc   : > { %v2930_v11 = vpop.permute.xlu1 %2929  ;;  %v557_v7 = vor.u32 %v556_v54, %v5565_v53 }
  0xfd   : > { %3021 = vst.msk [vmem:[#allocation2 + $0x14] sm:$0xf] %vm3015_vm14, %v2930_v11  ;;  %v2928_v15 = vpop.permute.xlu0 %2927  ;;  %v578_v11 = vshrl.u32 %v325_v59, 16  ;;  %v547_v14 = vor.u32 %v546_v58, %v543_v57  ;;  %v3196_v54 = vsel %vm4835_vm2, %v4513_v42, %v3195_v63  ;;  %v885_v58 = vld [vmem:[%s4833_s20 + $0x60] sm:$0xe]  ;;  %v1025_v59 = vrot.slane %v889_v48, 5 }
  0xfe   : > { %3020 = vst.msk [vmem:[#allocation2 + $0x10] sm:$0xf] %vm3015_vm14, %v2928_v15  ;;  %2194 = vrot.lane.b32.xlu1 %v2107_v2, %s4790_s27  ;;  %v2726_v2 = vsel %vm4933_vm6, %v2721_v45, %v2725_v44  ;;  %v565_v15 = vshrl.u32 %v324_v62, 16  ;;  %v558_v19 = vrot.slane %v557_v7, 4  ;;  %v886_v44 = vld [vmem:[%s4833_s20 + $0x64] sm:$0xf] }
  0xff   : > { %2192 = vrot.lane.b32.xlu0 %v2104_v12, %s4790_s27  ;;  %v580_v25 = vrot.slane %v578_v11, 4  ;;  %v548_v28 = vrot.slane %v547_v14, 4  ;;  %v1018_v52 = vrot.slane %v886_v44, 5  ;;  %v4291_v7 = vld [vmem:[%s4833_s20 + $0x70] sm:$0xf]  ;;  %v1028_v11 = vrot.slane %v890_v1, 5 }
 0x100   : > { %v2934_v23 = vpop.permute.xlu1 %2933  ;;  %v567_v29 = vrot.slane %v565_v15, 4  ;;  %v563_v36 = vsel %vm4933_vm6, %v558_v19, %v562_v22  ;;  %v1645_v14 = vshll.u32 %v4291_v7, 16  ;;  %v1649_v15 = vshrl.u32 %v4291_v7, 16  ;;  %v4293_v19 = vld [vmem:[%s4833_s20 + $0x78] sm:$0xf] }
 0x101   : > { %3023 = vst.msk [vmem:[#allocation2 + $0x1c] sm:$0xf] %vm3015_vm14, %v2934_v23  ;;  %v2932_v27 = vpop.permute.xlu0 %2931  ;;  %v326_v23 = vld [vmem:[%s4833_s20 + $0x74] sm:$0x1]  ;;  %v553_v41 = vsel %vm4933_vm6, %v548_v28, %v5565_v53  ;;  %v1663_v33 = vshll.u32 %v4293_v19, 16 }
 0x102   : > { %3022 = vst.msk [vmem:[#allocation2 + $0x18] sm:$0xf] %vm3015_vm14, %v2932_v27  ;;  %2384 = vrot.lane.b32.xlu1 %v4391_v20, %s4791_s6  ;;  %v3192_v20 = vsel %vm4835_vm2, %v3190_v3, %v3191_v5  ;;  %v3189_v27 = vsel %vm4835_vm2, %v4512_v6, %v3188_v47  ;;  %v3199_v47 = vsel %vm4835_vm2, %v3197_v37, %v3198_v35  ;;  %v4226_v6 = vrot.slane %v885_v58, 9  ;;  %v4251_v35 = vld [vmem:[%s4833_s20 + $0x70] sm:$0xf] }
 0x103   : > { %2382 = vrot.lane.b32.xlu0 %v4390_v24, %s4791_s6  ;;  %v5598_v24 = vrot.slane %v574_v10, 5  ;;  %v1027_v10 = vrot.slane %v1025_v59, 4  ;;  %v4340_v1 = vld [vmem:[%s4833_s20 + $0x74] sm:$0x1] }
 0x104   : > { %v3267_v38 = vpop.permute.xlu1 %3266 }
 0x105   : > { %3358 = vst.msk [vmem:[#allocation2 + $0x14] sm:$0xf] %vm3352_vm15, %v3267_v38  ;;  %v3265_v43 = vpop.permute.xlu0 %3264  ;;  %v581_v38 = vor.u32 %v580_v25, %v5598_v24  ;;  %v1029_v22 = vsel %vm4835_vm2, %v1027_v10, %v1028_v11  ;;  %v1651_v25 = vrot.slane %v1649_v15, 4  ;;  %v2113_v10 = vrot.slane %v4340_v1, 5  ;;  %v4397_v1 = vld [vmem:[%s4833_s20 + $0x88] sm:$0xf] }
 0x106   : > { %3357 = vst.msk [vmem:[#allocation2 + $0x10] sm:$0xf] %vm3352_vm15, %v3265_v43  ;;  %2388 = vrot.lane.b32.xlu1 %v4393_v30, %s4791_s6  ;;  %v570_v30 = vrot.slane %v568_v16, 5 }
 0x107   : > { %2386 = vrot.lane.b32.xlu0 %v4392_v39, %s4791_s6  ;;  %v584_v39 = vshll.u32 %v326_v23, 16  ;;  %v582_v50 = vrot.slane %v581_v38, 4 }
 0x108   : > { %v751_v55 = vpop.permute.xlu1 %750  ;;  %v571_v43 = vor.u32 %v570_v30, %v567_v29  ;;  %v4292_v29 = vld [vmem:[%s4833_s20 + $0x74] sm:$0x1] }
 0x109   : > { %838 = vst.msk [vmem:[#allocation2 + $0x24] sm:$0xf] %vm828_vm8, %v751_v55  ;;  %v749_v61 = vpop.permute.xlu0 %748  ;;  %v1655_v37 = vshll.u32 %v4292_v29, 16 }
 0x10a   : > { %837 = vst.msk [vmem:[#allocation2 + $0x20] sm:$0xf] %vm828_vm8, %v749_v61  ;;  %2945 = vrot.lane.b32.xlu1 %v2702_v51, %s4792_s11  ;;  %v586_v51 = vrot.slane %v584_v39, 5  ;;  %v572_v55 = vrot.slane %v571_v43, 4  ;;  %v1020_v61 = vrot.slane %v1018_v52, 4 }
 0x10b   : > { %2943 = vrot.lane.b32.xlu0 %v2692_v56, %s4792_s11  ;;  %v887_v56 = vld [vmem:[%s4833_s20 + $0x68] sm:$0x1]  ;;  %v4295_v43 = vld [vmem:[%s4833_s20 + $0x80] sm:$0x1] }
 0x10c   : > { %v3271_v12 = vpop.permute.xlu1 %3270  ;;  %v587_v60 = vsel %vm4933_vm6, %v582_v50, %v586_v51  ;;  %v1021_v62 = vrot.slane %v887_v56, 5  ;;  %v577_v5 = vsel %vm4933_vm6, %v572_v55, %v5598_v24  ;;  %v1647_v24 = vrot.slane %v1645_v14, 5  ;;  %v4252_v55 = vld [vmem:[%s4833_s20 + $0x78] sm:$0xf] }
 0x10d   : > { %3360 = vst.msk [vmem:[#allocation2 + $0x1c] sm:$0xf] %vm3352_vm15, %v3271_v12  ;;  %v3269_v17 = vpop.permute.xlu0 %3268  ;;  %v4754_v18 = vld [vmem:[#allocation2 + $0x10] sm:$0xff]   ;;  %v1657_v51 = vrot.slane %v1655_v37, 5  ;;  %v1679_v48 = vshll.u32 %v4295_v43, 16 }
 0x10e   : > { %3359 = vst.msk [vmem:[#allocation2 + $0x18] sm:$0xf] %vm3352_vm15, %v3269_v17  ;;  %2949 = vrot.lane.b32.xlu1 %v2726_v2, %s4792_s11  ;;  %4665 = vmatprep.mubr.bf16.mxu0 %v4754_v18  ;;  %v888_v2 = vld [vmem:[%s4833_s20 + $0x6c] sm:$0xe]  ;;  %v1019_v17 = vsel %vm4835_vm2, %v4226_v6, %v1018_v52  ;;  %v1636_v18 = vshrl.u32 %v4290_v9, 16 }
 0x10f   : > { %2947 = vrot.lane.b32.xlu0 %v2716_v13, %s4792_s11  ;;  %v4227_v12 = vrot.slane %v888_v2, 9  ;;  %v1022_v13 = vsel %vm4835_vm2, %v1020_v61, %v1021_v62  ;;  %v1681_v62 = vrot.slane %v1679_v48, 5  ;;  %v4342_v6 = vld [vmem:[%s4833_s20 + $0x7c] sm:$0xf] }
 0x110   : > { %v755_v26 = vpop.permute.xlu1 %754  ;;  %v1638_v30 = vrot.slane %v1636_v18, 4  ;;  %v4395_v48 = vld [vmem:[%s4833_s20 + $0x7c] sm:$0xf] }
 0x111   : > { %840 = vst.msk [vmem:[#allocation2 + $0x2c] sm:$0xf] %vm828_vm8, %v755_v26  ;;  %v753_v32 = vpop.permute.xlu0 %752  ;;  %v1026_v23 = vsel %vm4835_vm2, %v4227_v12, %v1025_v59  ;;  %v1669_v26 = vshll.u32 %v4294_v21, 16  ;;  %v2117_v12 = vrot.slane %v4342_v6, 5 }
 0x112   : > { %839 = vst.msk [vmem:[#allocation2 + $0x28] sm:$0xf] %vm828_vm8, %v753_v32  ;;  %3282 = vrot.lane.b32.xlu1 %v3192_v20, %s4793_s18  ;;  %v1639_v20 = vshll.u32 %v4290_v9, 16  ;;  %v1660_v32 = vshrl.u32 %v4293_v19, 16  ;;  %v4438_v19 = vld [vmem:[%s4833_s20 + $0x88] sm:$0xf] }
 0x113   : > { %3280 = vrot.lane.b32.xlu0 %v3189_v27, %s4793_s18  ;;  %v1673_v27 = vshrl.u32 %v4294_v21, 16  ;;  %v1671_v38 = vrot.slane %v1669_v26, 5  ;;  %v4434_v21 = vld [vmem:[%s4833_s20 + $0x78] sm:$0xf]  ;;  %v4437_v26 = vld [vmem:[%s4833_s20 + $0x84] sm:$0xf] }
 0x114   : > { %v1091_v40 = vpop.permute.xlu1 %1090  ;;  %v1641_v31 = vrot.slane %v1639_v20, 5  ;;  %v1662_v44 = vrot.slane %v1660_v32, 4  ;;  %v4341_v20 = vld [vmem:[%s4833_s20 + $0x78] sm:$0xe] }
 0x115   : > { %1178 = vst.msk [vmem:[#allocation2 + $0x24] sm:$0xf] %vm1168_vm9, %v1091_v40  ;;  %v1089_v45 = vpop.permute.xlu0 %1088  ;;  %v4755_v46 = vld [vmem:[#allocation2 + $0x18] sm:$0xff]   ;;  %v1675_v39 = vrot.slane %v1673_v27, 4  ;;  %v4371_v29 = vrot.slane %v4341_v20, 9 }
 0x116   : > { %1177 = vst.msk [vmem:[#allocation2 + $0x20] sm:$0xf] %vm1168_vm9, %v1089_v45  ;;  %766 = vrot.lane.b32.xlu1 %v563_v36, %s4788_s23  ;;  %4666 = vmatmul.mubr.bf16.gmra.mxu0 %v4755_v46  ;;  %v1652_v36 = vor.u32 %v1651_v25, %v1647_v24  ;;  %v1642_v42 = vor.u32 %v1641_v31, %v1638_v30  ;;  %v1665_v45 = vrot.slane %v1663_v33, 5  ;;  %v2728_v30 = vshrl.u32 %v4434_v21, 16 }
 0x117   : > { %764 = vrot.lane.b32.xlu0 %v553_v41, %s4788_s23  ;;  %v4250_v41 = vld [vmem:[%s4833_s20 + $0x6c] sm:$0xf]  ;;  %v1676_v52 = vor.u32 %v1675_v39, %v1671_v38  ;;  %v2731_v31 = vshll.u32 %v4434_v21, 16  ;;  %v2761_v33 = vshll.u32 %v4438_v19, 16 }
 0x118   : > { %v1095_v53 = vpop.permute.xlu1 %1094  ;;  %v1653_v50 = vrot.slane %v1652_v36, 4  ;;  %v1643_v56 = vrot.slane %v1642_v42, 4  ;;  %v2755_v36 = vshll.u32 %v4437_v26, 16  ;;  %v4436_v42 = vld [vmem:[%s4833_s20 + $0x80] sm:$0x1]  ;;  %v2730_v43 = vrot.slane %v2728_v30, 4 }
 0x119   : > { %1180 = vst.msk [vmem:[#allocation2 + $0x2c] sm:$0xf] %vm1168_vm9, %v1095_v53  ;;  %v1093_v57 = vpop.permute.xlu0 %1092  ;;  %v4339_v53 = vld [vmem:[%s4833_s20 + $0x70] sm:$0xf]  ;;  %v1677_v61 = vrot.slane %v1676_v52, 4 }
 0x11a   : > { %1179 = vst.msk [vmem:[#allocation2 + $0x28] sm:$0xf] %vm1168_vm9, %v1093_v57  ;;  %3286 = vrot.lane.b32.xlu1 %v3199_v47, %s4793_s18  ;;  %v4253_v47 = vld [vmem:[%s4833_s20 + $0x7c] sm:$0xf]  ;;  %v1666_v57 = vor.u32 %v1665_v45, %v1662_v44  ;;  %v2110_v59 = vrot.slane %v4339_v53, 5  ;;  %v2733_v44 = vrot.slane %v2731_v31, 5 }
 0x11b   : > { %3284 = vrot.lane.b32.xlu0 %v3196_v54, %s4793_s18  ;;  %v1682_v11 = vsel %vm4933_vm6, %v1677_v61, %v1681_v62  ;;  %v2757_v52 = vrot.slane %v2755_v36, 5 }
 0x11c   : > { %v1285_v3 = vpop.permute.xlu1 %1284  ;;  %v2112_v9 = vrot.slane %v2110_v59, 4 }
 0x11d   : > { %1372 = vst.msk [vmem:[#allocation2 + $0x24] sm:$0xf] %vm1362_vm10, %v1285_v3  ;;  %v1283_v8 = vpop.permute.xlu0 %1282  ;;  %v1648_v3 = vsel %vm4933_vm6, %v1643_v56, %v1647_v24 }
 0x11e   : > { %1371 = vst.msk [vmem:[#allocation2 + $0x20] sm:$0xf] %vm1362_vm10, %v1283_v8  ;;  %770 = vrot.lane.b32.xlu1 %v587_v60, %s4788_s23  ;;  %v1658_v60 = vsel %vm4933_vm6, %v1653_v50, %v1657_v51  ;;  %v4338_v8 = vld [vmem:[%s4833_s20 + $0x6c] sm:$0xe]  ;;  %v4439_v50 = vld [vmem:[%s4833_s20 + $0x8c] sm:$0x1] }
 0x11f   : > { %768 = vrot.lane.b32.xlu0 %v577_v5, %s4788_s23  ;;  %v1667_v5 = vrot.slane %v1666_v57, 4  ;;  %v4370_v15 = vrot.slane %v4338_v8, 9  ;;  %v4394_v57 = vld [vmem:[%s4833_s20 + $0x78] sm:$0xf]  ;;  %v2771_v62 = vshll.u32 %v4439_v50, 16 }
 0x120   : > { %v1289_v16 = vpop.permute.xlu1 %1288  ;;  %v5738_v8 = vld [vmem:[%s4833_s20 + $0x7c] sm:$0xf] }
 0x121   : > { %1374 = vst.msk [vmem:[#allocation2 + $0x2c] sm:$0xf] %vm1362_vm10, %v1289_v16  ;;  %v1287_v63 = vpop.permute.xlu0 %1286  ;;  %v1672_v14 = vsel %vm4933_vm6, %v1667_v5, %v1671_v38  ;;  %v4343_v16 = vld [vmem:[%s4833_s20 + $0x80] sm:$0x1] }
 0x122   : > { %1373 = vst.msk [vmem:[#allocation2 + $0x28] sm:$0xf] %vm1362_vm10, %v1287_v63  ;;  %1106 = vrot.lane.b32.xlu1 %v1022_v13, %s4787_s22  ;;  %v2114_v63 = vsel %vm4835_vm2, %v2112_v9, %v2113_v10 }
 0x123   : > { %1104 = vrot.lane.b32.xlu0 %v1019_v17, %s4787_s22  ;;  %v4435_v17 = vld [vmem:[%s4833_s20 + $0x7c] sm:$0xf] }
 0x124   : > { %v1846_v28 = vpop.permute.xlu1 %1845  ;;  %v2737_v24 = vshll.u32 %v4435_v17, 16  ;;  %v2741_v25 = vshrl.u32 %v4435_v17, 16 }
 0x125   : > { %1933 = vst.msk [vmem:[#allocation2 + $0x24] sm:$0xf] %vm1923_vm11, %v1846_v28  ;;  %v1844_v34 = vpop.permute.xlu0 %1843  ;;  %v2111_v28 = vsel %vm4835_vm2, %v4370_v15, %v2110_v59  ;;  %v327_v59 = vld [vmem:[%s4833_s20 + $0x78] sm:$0xf] }
 0x126   : > { %1932 = vst.msk [vmem:[#allocation2 + $0x20] sm:$0xf] %vm1923_vm11, %v1844_v34  ;;  %1110 = vrot.lane.b32.xlu1 %v1029_v22, %s4787_s22  ;;  %v2119_v22 = vrot.slane %v2117_v12, 4  ;;  %v2765_v34 = vshrl.u32 %v4438_v19, 16  ;;  %v5714_v38 = vrot.slane %v2737_v24, 5  ;;  %v2743_v39 = vrot.slane %v2741_v25, 4 }
 0x127   : > { %1108 = vrot.lane.b32.xlu0 %v1026_v23, %s4787_s22  ;;  %v2120_v23 = vrot.slane %v4343_v16, 5  ;;  %v589_v9 = vshrl.u32 %v327_v59, 16  ;;  %v592_v10 = vshll.u32 %v327_v59, 16  ;;  %v2773_v16 = vrot.slane %v2771_v62, 5  ;;  %v4484_v19 = vld [vmem:[%s4833_s20 + $0x80] sm:$0x1] }
 0x128   : > { %v1850_v40 = vpop.permute.xlu1 %1849  ;;  %v2744_v53 = vor.u32 %v2743_v39, %v5714_v38 }
 0x129   : > { %1935 = vst.msk [vmem:[#allocation2 + $0x2c] sm:$0xf] %vm1923_vm11, %v1850_v40  ;;  %v1848_v46 = vpop.permute.xlu0 %1847  ;;  %v2121_v37 = vsel %vm4835_vm2, %v2119_v22, %v2120_v23  ;;  %v329_v22 = vld [vmem:[%s4833_s20 + $0x80] sm:$0x1]  ;;  %v591_v23 = vrot.slane %v589_v9, 4  ;;  %v594_v24 = vrot.slane %v592_v10, 5 }
 0x12a   : > { %1934 = vst.msk [vmem:[#allocation2 + $0x28] sm:$0xf] %vm1923_vm11, %v1848_v46  ;;  %1300 = vrot.lane.b32.xlu1 %v4251_v35, %s4786_s21  ;;  %v2752_v35 = vshrl.u32 %v4437_v26, 16  ;;  %v5720_v46 = vrot.slane %v2761_v33, 5  ;;  %v2745_v6 = vrot.slane %v2744_v53, 4 }
 0x12b   : > { %1298 = vrot.lane.b32.xlu0 %v4250_v41, %s4786_s21  ;;  %v2118_v41 = vsel %vm4835_vm2, %v4371_v29, %v2117_v12  ;;  %v4396_v12 = vld [vmem:[%s4833_s20 + $0x84] sm:$0xf]  ;;  %v253_v29 = vld [vmem:[%s4833_s20 + $0x7c] sm:$0xf]  ;;  %v252_v33 = vld [vmem:[%s4833_s20 + $0x78] sm:$0xf]  ;;  %v595_v39 = vor.u32 %v594_v24, %v591_v23 }
 0x12c   : > { %v2183_v54 = vpop.permute.xlu1 %2182  ;;  %v2754_v51 = vrot.slane %v2752_v35, 4  ;;  %286 = vst.msk [vmem:[#allocation2 + $0x54] sm:$0xf] %vm264_vm7, %v253_v29  ;;  %v3205_v35 = vrot.slane %v4484_v19, 5  ;;  %285 = vst.msk [vmem:[#allocation2 + $0x50] sm:$0xf] %vm264_vm7, %v252_v33 }
 0x12d   : > { %2270 = vst.msk [vmem:[#allocation2 + $0x24] sm:$0xf] %vm2260_vm12, %v2183_v54  ;;  %v2181_v58 = vpop.permute.xlu0 %2180  ;;  %v2747_v54 = vshll.u32 %v4436_v42, 16  ;;  %v895_v19 = vld [vmem:[%s4833_s20 + $0x88] sm:$0xf] }
 0x12e   : > { %2269 = vst.msk [vmem:[#allocation2 + $0x20] sm:$0xf] %vm2260_vm12, %v2181_v58  ;;  %1304 = vrot.lane.b32.xlu1 %v4253_v47, %s4786_s21  ;;  %v2767_v47 = vrot.slane %v2765_v34, 4  ;;  %v2734_v58 = vor.u32 %v2733_v44, %v2730_v43  ;;  %v4486_v44 = vld [vmem:[%s4833_s20 + $0x88] sm:$0xf] }
 0x12f   : > { %1302 = vrot.lane.b32.xlu0 %v4252_v55, %s4786_s21  ;;  %v328_v55 = vld [vmem:[%s4833_s20 + $0x7c] sm:$0xf]  ;;  %v894_v33 = vld [vmem:[%s4833_s20 + $0x84] sm:$0xe] }
 0x130   : > { %v2187_v2 = vpop.permute.xlu1 %2186  ;;  %v2768_v61 = vor.u32 %v2767_v47, %v5720_v46  ;;  %v602_v5 = vshrl.u32 %v328_v55, 16 }
 0x131   : > { %2272 = vst.msk [vmem:[#allocation2 + $0x2c] sm:$0xf] %vm2260_vm12, %v2187_v2  ;;  %v2185_v7 = vpop.permute.xlu0 %2184  ;;  %v2758_v2 = vor.u32 %v2757_v52, %v2754_v51 }
 0x132   : > { %2271 = vst.msk [vmem:[#allocation2 + $0x28] sm:$0xf] %vm2260_vm12, %v2185_v7  ;;  %1861 = vrot.lane.b32.xlu1 %v1658_v60, %s4789_s24  ;;  %v2749_v7 = vrot.slane %v2747_v54, 5  ;;  %v2769_v15 = vrot.slane %v2768_v61, 4  ;;  %v604_v21 = vrot.slane %v602_v5, 4 }
 0x133   : > { %1859 = vrot.lane.b32.xlu0 %v1648_v3, %s4789_s24  ;;  %v598_v3 = vshll.u32 %v328_v55, 16  ;;  %v2759_v17 = vrot.slane %v2758_v2, 4  ;;  %v4487_v54 = vld [vmem:[%s4833_s20 + $0x8c] sm:$0x1]  ;;  %v3209_v55 = vrot.slane %v4486_v44, 5 }
 0x134   : > { %v2377_v13 = vpop.permute.xlu1 %2376  ;;  %v2774_v31 = vsel %vm4933_vm6, %v2769_v15, %v2773_v16  ;;  %v254_v5 = vld [vmem:[%s4833_s20 + $0x84] sm:$0xf]  ;;  %v892_v15 = vld [vmem:[%s4833_s20 + $0x7c] sm:$0xf] }
 0x135   : > { %2464 = vst.msk [vmem:[#allocation2 + $0x24] sm:$0xf] %vm2454_vm13, %v2377_v13  ;;  %v2375_v18 = vpop.permute.xlu0 %2374  ;;  %v2735_v13 = vrot.slane %v2734_v58, 4  ;;  %v5745_v20 = vrot.slane %v598_v3, 5  ;;  %v2764_v43 = vsel %vm4933_vm6, %v2759_v17, %v5720_v46  ;;  %v596_v46 = vrot.slane %v595_v39, 4 }
 0x136   : > { %2463 = vst.msk [vmem:[#allocation2 + $0x20] sm:$0xf] %vm2454_vm13, %v2375_v18  ;;  %1865 = vrot.lane.b32.xlu1 %v1682_v11, %s4789_s24  ;;  %v3202_v18 = vrot.slane %v5738_v8, 5  ;;  %v4485_v3 = vld [vmem:[%s4833_s20 + $0x84] sm:$0xe]  ;;  %v3212_v8 = vrot.slane %v4487_v54, 5 }
 0x137   : > { %1863 = vrot.lane.b32.xlu0 %v1672_v14, %s4789_s24  ;;  %v2740_v26 = vsel %vm4933_vm6, %v2735_v13, %v5714_v38  ;;  %v605_v36 = vor.u32 %v604_v21, %v5745_v20  ;;  %287 = vst.msk [vmem:[#allocation2 + $0x58] sm:$0xf] %vm264_vm7, %v254_v5  ;;  %v4515_v13 = vrot.slane %v4485_v3, 9  ;;  %v4296_v39 = vld [vmem:[%s4833_s20 + $0x84] sm:$0xf] }
 0x138   : > { %v2381_v27 = vpop.permute.xlu1 %2380  ;;  %v3204_v34 = vrot.slane %v3202_v18, 4 }
 0x139   : > { %2466 = vst.msk [vmem:[#allocation2 + $0x2c] sm:$0xf] %vm2454_vm13, %v2381_v27  ;;  %v2379_v32 = vpop.permute.xlu0 %2378  ;;  %v4482_v27 = vld [vmem:[%s4833_s20 + $0x78] sm:$0xe]  ;;  %v3210_v23 = vsel %vm4835_vm2, %v4515_v13, %v3209_v55 }
 0x13a   : > { %2465 = vst.msk [vmem:[#allocation2 + $0x28] sm:$0xf] %vm2454_vm13, %v2379_v32  ;;  %2198 = vrot.lane.b32.xlu1 %v2114_v63, %s4790_s27  ;;  %v2750_v63 = vsel %vm4933_vm6, %v2745_v6, %v2749_v7  ;;  %v330_v32 = vld [vmem:[%s4833_s20 + $0x84] sm:$0xf]  ;;  %v4514_v38 = vrot.slane %v4482_v27, 9  ;;  %v3206_v52 = vsel %vm4835_vm2, %v3204_v34, %v3205_v35  ;;  %v3211_v7 = vrot.slane %v3209_v55, 4 }
 0x13b   : > { %2196 = vrot.lane.b32.xlu0 %v2111_v28, %s4790_s27  ;;  %v331_v28 = vld [vmem:[%s4833_s20 + $0x88] sm:$0xf]  ;;  %v616_v47 = vshll.u32 %v330_v32, 16  ;;  %v891_v27 = vld [vmem:[%s4833_s20 + $0x78] sm:$0xe] }
 0x13c   : > { %v2938_v40 = vpop.permute.xlu1 %2937  ;;  %v3203_v59 = vsel %vm4835_vm2, %v4514_v38, %v3202_v18  ;;  %v3213_v18 = vsel %vm4835_vm2, %v3211_v7, %v3212_v8 }
 0x13d   : > { %3025 = vst.msk [vmem:[#allocation2 + $0x24] sm:$0xf] %vm3015_vm14, %v2938_v40  ;;  %v2936_v45 = vpop.permute.xlu0 %2935  ;;  %v622_v40 = vshll.u32 %v331_v28, 16  ;;  %v618_v62 = vrot.slane %v616_v47, 5 }
 0x13e   : > { %3024 = vst.msk [vmem:[#allocation2 + $0x20] sm:$0xf] %vm3015_vm14, %v2936_v45  ;;  %2202 = vrot.lane.b32.xlu1 %v2121_v37, %s4790_s27  ;;  %v608_v37 = vshll.u32 %v329_v22, 16  ;;  %v613_v45 = vshrl.u32 %v330_v32, 16  ;;  %v896_v32 = vld [vmem:[%s4833_s20 + $0x8c] sm:$0x1] }
 0x13f   : > { %2200 = vrot.lane.b32.xlu0 %v2118_v41, %s4790_s27  ;;  %v626_v41 = vshrl.u32 %v331_v28, 16  ;;  %v1039_v28 = vrot.slane %v895_v19, 5 }
 0x140   : > { %v2942_v56 = vpop.permute.xlu1 %2941  ;;  %v610_v53 = vrot.slane %v608_v37, 5  ;;  %v615_v61 = vrot.slane %v613_v45, 4  ;;  %v4297_v37 = vld [vmem:[%s4833_s20 + $0x88] sm:$0xf] }
 0x141   : > { %3027 = vst.msk [vmem:[#allocation2 + $0x2c] sm:$0xf] %vm3015_vm14, %v2942_v56  ;;  %v2940_v60 = vpop.permute.xlu0 %2939  ;;  %v5780_v56 = vrot.slane %v622_v40, 5  ;;  %v1041_v40 = vrot.slane %v1039_v28, 4  ;;  %v1693_v44 = vshll.u32 %v4297_v37, 16  ;;  %v1697_v45 = vshrl.u32 %v4297_v37, 16 }
 0x142   : > { %3026 = vst.msk [vmem:[#allocation2 + $0x28] sm:$0xf] %vm3015_vm14, %v2940_v60  ;;  %2392 = vrot.lane.b32.xlu1 %v4395_v48, %s4791_s6  ;;  %v606_v48 = vrot.slane %v605_v36, 4  ;;  %v332_v60 = vld [vmem:[%s4833_s20 + $0x8c] sm:$0x1]  ;;  %v4228_v36 = vrot.slane %v891_v27, 9 }
 0x143   : > { %2390 = vrot.lane.b32.xlu0 %v4394_v57, %s4791_s6  ;;  %v628_v57 = vrot.slane %v626_v41, 4  ;;  %v632_v10 = vshll.u32 %v332_v60, 16  ;;  %v1042_v41 = vrot.slane %v896_v32, 5  ;;  %v4346_v32 = vld [vmem:[%s4833_s20 + $0x8c] sm:$0x1] }
 0x144   : > { %v3275_v11 = vpop.permute.xlu1 %3274  ;;  %v611_v6 = vsel %vm4933_vm6, %v606_v48, %v610_v53  ;;  %v4300_v48 = vld [vmem:[%s4833_s20 + $0x94] sm:$0xf] }
 0x145   : > { %3362 = vst.msk [vmem:[#allocation2 + $0x24] sm:$0xf] %vm3352_vm15, %v3275_v11  ;;  %v3273_v14 = vpop.permute.xlu0 %3272  ;;  %v629_v9 = vor.u32 %v628_v57, %v5780_v56  ;;  %v634_v21 = vrot.slane %v632_v10, 5  ;;  %v1043_v54 = vsel %vm4835_vm2, %v1041_v40, %v1042_v41  ;;  %v1699_v57 = vrot.slane %v1697_v45, 4 }
 0x146   : > { %3361 = vst.msk [vmem:[#allocation2 + $0x20] sm:$0xf] %vm3352_vm15, %v3273_v14  ;;  %2396 = vrot.lane.b32.xlu1 %v4397_v1, %s4791_s6  ;;  %v255_v1 = vld [vmem:[%s4833_s20 + $0x88] sm:$0xf]  ;;  %v619_v14 = vor.u32 %v618_v62, %v615_v61  ;;  %v4298_v61 = vld [vmem:[%s4833_s20 + $0x8c] sm:$0x1] }
 0x147   : > { %2394 = vrot.lane.b32.xlu0 %v4396_v12, %s4791_s6  ;;  %288 = vst.msk [vmem:[#allocation2 + $0x5c] sm:$0xf] %vm264_vm7, %v255_v1  ;;  %v601_v12 = vsel %vm4933_vm6, %v596_v46, %v5745_v20  ;;  %v630_v20 = vrot.slane %v629_v9, 4  ;;  %v4299_v46 = vld [vmem:[%s4833_s20 + $0x90] sm:$0xf]  ;;  %v1703_v8 = vshll.u32 %v4298_v61, 16 }
 0x148   : > { %v759_v25 = vpop.permute.xlu1 %758  ;;  %v620_v24 = vrot.slane %v619_v14, 4  ;;  %v1711_v3 = vshll.u32 %v4299_v46, 16  ;;  %v4301_v14 = vld [vmem:[%s4833_s20 + $0x98] sm:$0x1]  ;;  %v2127_v40 = vrot.slane %v4346_v32, 5 }
 0x149   : > { %842 = vst.msk [vmem:[#allocation2 + $0x34] sm:$0xf] %vm828_vm8, %v759_v25  ;;  %v757_v30 = vpop.permute.xlu0 %756  ;;  %v893_v25 = vld [vmem:[%s4833_s20 + $0x80] sm:$0x1]  ;;  %v635_v29 = vsel %vm4933_vm6, %v630_v20, %v634_v21  ;;  %v1705_v21 = vrot.slane %v1703_v8, 5  ;;  %v1727_v19 = vshll.u32 %v4301_v14, 16 }
 0x14a   : > { %841 = vst.msk [vmem:[#allocation2 + $0x30] sm:$0xf] %vm828_vm8, %v757_v30  ;;  %2953 = vrot.lane.b32.xlu1 %v2750_v63, %s4792_s11  ;;  %v1032_v63 = vrot.slane %v892_v15, 5  ;;  %v625_v35 = vsel %vm4933_vm6, %v620_v24, %v5780_v56  ;;  %v1695_v56 = vrot.slane %v1693_v44, 5  ;;  %v4256_v24 = vld [vmem:[%s4833_s20 + $0x90] sm:$0xf] }
 0x14b   : > { %2951 = vrot.lane.b32.xlu0 %v2740_v26, %s4792_s11  ;;  %v4401_v32 = vld [vmem:[%s4833_s20 + $0xa0] sm:$0xf] }
 0x14c   : > { %v3279_v42 = vpop.permute.xlu1 %3278  ;;  %v1034_v30 = vrot.slane %v1032_v63, 4  ;;  %v1700_v7 = vor.u32 %v1699_v57, %v1695_v56 }
 0x14d   : > { %3364 = vst.msk [vmem:[#allocation2 + $0x2c] sm:$0xf] %vm3352_vm15, %v3279_v42  ;;  %v3277_v50 = vpop.permute.xlu0 %3276  ;;  %v4756_v51 = vld [vmem:[#allocation2 + $0x20] sm:$0xff]   ;;  %v4229_v42 = vrot.slane %v894_v33, 9 }
 0x14e   : > { %3363 = vst.msk [vmem:[#allocation2 + $0x28] sm:$0xf] %vm3352_vm15, %v3277_v50  ;;  %2957 = vrot.lane.b32.xlu1 %v2774_v31, %s4792_s11  ;;  %4669 = vmatprep.mubr.bf16.mxu0 %v4756_v51  ;;  %v1035_v31 = vrot.slane %v893_v25, 5  ;;  %v1033_v50 = vsel %vm4835_vm2, %v4228_v36, %v1032_v63  ;;  %v1684_v51 = vshrl.u32 %v4296_v39, 16  ;;  %v1701_v20 = vrot.slane %v1700_v7, 4 }
 0x14f   : > { %2955 = vrot.lane.b32.xlu0 %v2764_v43, %s4792_s11  ;;  %v1040_v55 = vsel %vm4835_vm2, %v4229_v42, %v1039_v28  ;;  %v4348_v36 = vld [vmem:[%s4833_s20 + $0x94] sm:$0xf] }
 0x150   : > { %v763_v58 = vpop.permute.xlu1 %762  ;;  %v1036_v43 = vsel %vm4835_vm2, %v1034_v30, %v1035_v31  ;;  %v1686_v62 = vrot.slane %v1684_v51, 4  ;;  %v1729_v31 = vrot.slane %v1727_v19, 5  ;;  %v2131_v42 = vrot.slane %v4348_v36, 5  ;;  %v4399_v19 = vld [vmem:[%s4833_s20 + $0x94] sm:$0xf] }
 0x151   : > { %844 = vst.msk [vmem:[#allocation2 + $0x3c] sm:$0xf] %vm828_vm8, %v763_v58  ;;  %v761_v2 = vpop.permute.xlu0 %760  ;;  %v1717_v58 = vshll.u32 %v4300_v48, 16 }
 0x152   : > { %843 = vst.msk [vmem:[#allocation2 + $0x38] sm:$0xf] %vm828_vm8, %v761_v2  ;;  %3290 = vrot.lane.b32.xlu1 %v3206_v52, %s4793_s18  ;;  %v1687_v52 = vshll.u32 %v4296_v39, 16  ;;  %v1708_v2 = vshrl.u32 %v4299_v46, 16  ;;  %v4444_v46 = vld [vmem:[%s4833_s20 + $0xa0] sm:$0xf] }
 0x153   : > { %3288 = vrot.lane.b32.xlu0 %v3203_v59, %s4793_s18  ;;  %v1721_v59 = vshrl.u32 %v4300_v48, 16  ;;  %v1719_v9 = vrot.slane %v1717_v58, 5  ;;  %v4440_v48 = vld [vmem:[%s4833_s20 + $0x90] sm:$0xf]  ;;  %v4443_v58 = vld [vmem:[%s4833_s20 + $0x9c] sm:$0xf] }
 0x154   : > { %v1099_v11 = vpop.permute.xlu1 %1098  ;;  %v1689_v1 = vrot.slane %v1687_v52, 5  ;;  %v1710_v15 = vrot.slane %v1708_v2, 4  ;;  %v4347_v52 = vld [vmem:[%s4833_s20 + $0x90] sm:$0xe]  ;;  %v2803_v7 = vshll.u32 %v4443_v58, 16 }
 0x155   : > { %1182 = vst.msk [vmem:[#allocation2 + $0x34] sm:$0xf] %vm1168_vm9, %v1099_v11  ;;  %v1097_v16 = vpop.permute.xlu0 %1096  ;;  %v4757_v17 = vld [vmem:[#allocation2 + $0x28] sm:$0xff]   ;;  %v1723_v10 = vrot.slane %v1721_v59, 4  ;;  %v4373_v61 = vrot.slane %v4347_v52, 9 }
 0x156   : > { %1181 = vst.msk [vmem:[#allocation2 + $0x30] sm:$0xf] %vm1168_vm9, %v1097_v16  ;;  %774 = vrot.lane.b32.xlu1 %v611_v6, %s4788_s23  ;;  %4670 = vmatmul.mubr.bf16.gmra.mxu0 %v4757_v17  ;;  %v4255_v6 = vld [vmem:[%s4833_s20 + $0x88] sm:$0xf]  ;;  %v1690_v13 = vor.u32 %v1689_v1, %v1686_v62  ;;  %v1713_v16 = vrot.slane %v1711_v3, 5  ;;  %v2776_v62 = vshrl.u32 %v4440_v48, 16 }
 0x157   : > { %772 = vrot.lane.b32.xlu0 %v601_v12, %s4788_s23  ;;  %v4254_v12 = vld [vmem:[%s4833_s20 + $0x84] sm:$0xf]  ;;  %v1724_v63 = vor.u32 %v1723_v10, %v1719_v9  ;;  %v2779_v1 = vshll.u32 %v4440_v48, 16  ;;  %v2809_v3 = vshll.u32 %v4444_v46, 16 }
 0x158   : > { %v1103_v22 = vpop.permute.xlu1 %1102  ;;  %v1691_v25 = vrot.slane %v1690_v13, 4  ;;  %v4442_v13 = vld [vmem:[%s4833_s20 + $0x98] sm:$0x1]  ;;  %v2778_v14 = vrot.slane %v2776_v62, 4 }
 0x159   : > { %1184 = vst.msk [vmem:[#allocation2 + $0x3c] sm:$0xf] %vm1168_vm9, %v1103_v22  ;;  %v1101_v26 = vpop.permute.xlu0 %1100  ;;  %v4345_v22 = vld [vmem:[%s4833_s20 + $0x88] sm:$0xf]  ;;  %v1725_v30 = vrot.slane %v1724_v63, 4  ;;  %v2805_v63 = vrot.slane %v2803_v7, 5 }
 0x15a   : > { %1183 = vst.msk [vmem:[#allocation2 + $0x38] sm:$0xf] %vm1168_vm9, %v1101_v26  ;;  %3294 = vrot.lane.b32.xlu1 %v3213_v18, %s4793_s18  ;;  %v4257_v18 = vld [vmem:[%s4833_s20 + $0x94] sm:$0xf]  ;;  %v1714_v26 = vor.u32 %v1713_v16, %v1710_v15  ;;  %v2124_v28 = vrot.slane %v4345_v22, 5  ;;  %v2781_v15 = vrot.slane %v2779_v1, 5 }
 0x15b   : > { %3292 = vrot.lane.b32.xlu0 %v3210_v23, %s4793_s18  ;;  %v1730_v41 = vsel %vm4933_vm6, %v1725_v30, %v1729_v31 }
 0x15c   : > { %v1293_v34 = vpop.permute.xlu1 %1292  ;;  %v2126_v39 = vrot.slane %v2124_v28, 4 }
 0x15d   : > { %1376 = vst.msk [vmem:[#allocation2 + $0x34] sm:$0xf] %vm1362_vm10, %v1293_v34  ;;  %v1291_v38 = vpop.permute.xlu0 %1290  ;;  %v1696_v34 = vsel %vm4933_vm6, %v1691_v25, %v1695_v56 }
 0x15e   : > { %1375 = vst.msk [vmem:[#allocation2 + $0x30] sm:$0xf] %vm1362_vm10, %v1291_v38  ;;  %778 = vrot.lane.b32.xlu1 %v635_v29, %s4788_s23  ;;  %v1706_v29 = vsel %vm4933_vm6, %v1701_v20, %v1705_v21  ;;  %v4344_v38 = vld [vmem:[%s4833_s20 + $0x84] sm:$0xe]  ;;  %v4445_v20 = vld [vmem:[%s4833_s20 + $0xa4] sm:$0x1] }
 0x15f   : > { %776 = vrot.lane.b32.xlu0 %v625_v35, %s4788_s23  ;;  %v1715_v35 = vrot.slane %v1714_v26, 4  ;;  %v4372_v45 = vrot.slane %v4344_v38, 9  ;;  %v4398_v26 = vld [vmem:[%s4833_s20 + $0x90] sm:$0xf]  ;;  %v2819_v31 = vshll.u32 %v4445_v20, 16 }
 0x160   : > { %v1297_v47 = vpop.permute.xlu1 %1296  ;;  %v5921_v38 = vld [vmem:[%s4833_s20 + $0x94] sm:$0xf] }
 0x161   : > { %1378 = vst.msk [vmem:[#allocation2 + $0x3c] sm:$0xf] %vm1362_vm10, %v1297_v47  ;;  %v1295_v53 = vpop.permute.xlu0 %1294  ;;  %v1720_v44 = vsel %vm4933_vm6, %v1715_v35, %v1719_v9  ;;  %v4349_v47 = vld [vmem:[%s4833_s20 + $0x98] sm:$0x1] }
 0x162   : > { %1377 = vst.msk [vmem:[#allocation2 + $0x38] sm:$0xf] %vm1362_vm10, %v1295_v53  ;;  %1114 = vrot.lane.b32.xlu1 %v1036_v43, %s4787_s22  ;;  %v2128_v53 = vsel %vm4835_vm2, %v2126_v39, %v2127_v40 }
 0x163   : > { %1112 = vrot.lane.b32.xlu0 %v1033_v50, %s4787_s22  ;;  %v4441_v50 = vld [vmem:[%s4833_s20 + $0x94] sm:$0xf] }
 0x164   : > { %v1854_v60 = vpop.permute.xlu1 %1853  ;;  %v2785_v56 = vshll.u32 %v4441_v50, 16  ;;  %v2789_v57 = vshrl.u32 %v4441_v50, 16 }
 0x165   : > { %1937 = vst.msk [vmem:[#allocation2 + $0x34] sm:$0xf] %vm1923_vm11, %v1854_v60  ;;  %v1852_v5 = vpop.permute.xlu0 %1851  ;;  %v2125_v60 = vsel %vm4835_vm2, %v4372_v45, %v2124_v28  ;;  %v333_v28 = vld [vmem:[%s4833_s20 + $0x90] sm:$0xf] }
 0x166   : > { %1936 = vst.msk [vmem:[#allocation2 + $0x30] sm:$0xf] %vm1923_vm11, %v1852_v5  ;;  %1118 = vrot.lane.b32.xlu1 %v1043_v54, %s4787_s22  ;;  %v2133_v54 = vrot.slane %v2131_v42, 4  ;;  %v2813_v5 = vshrl.u32 %v4444_v46, 16  ;;  %v5897_v9 = vrot.slane %v2785_v56, 5  ;;  %v2791_v10 = vrot.slane %v2789_v57, 4 }
 0x167   : > { %1116 = vrot.lane.b32.xlu0 %v1040_v55, %s4787_s22  ;;  %v2134_v55 = vrot.slane %v4349_v47, 5  ;;  %v637_v39 = vshrl.u32 %v333_v28, 16  ;;  %v640_v40 = vshll.u32 %v333_v28, 16  ;;  %v2821_v47 = vrot.slane %v2819_v31, 5  ;;  %v4490_v46 = vld [vmem:[%s4833_s20 + $0x98] sm:$0x1] }
 0x168   : > { %v1858_v11 = vpop.permute.xlu1 %1857  ;;  %v2792_v22 = vor.u32 %v2791_v10, %v5897_v9 }
 0x169   : > { %1939 = vst.msk [vmem:[#allocation2 + $0x3c] sm:$0xf] %vm1923_vm11, %v1858_v11  ;;  %v1856_v17 = vpop.permute.xlu0 %1855  ;;  %v2135_v8 = vsel %vm4835_vm2, %v2133_v54, %v2134_v55  ;;  %v335_v54 = vld [vmem:[%s4833_s20 + $0x98] sm:$0x1]  ;;  %v639_v55 = vrot.slane %v637_v39, 4  ;;  %v642_v56 = vrot.slane %v640_v40, 5 }
 0x16a   : > { %1938 = vst.msk [vmem:[#allocation2 + $0x38] sm:$0xf] %vm1923_vm11, %v1856_v17  ;;  %1308 = vrot.lane.b32.xlu1 %v4255_v6, %s4786_s21  ;;  %v2800_v6 = vshrl.u32 %v4443_v58, 16  ;;  %v5903_v17 = vrot.slane %v2809_v3, 5  ;;  %v2793_v36 = vrot.slane %v2792_v22, 4 }
 0x16b   : > { %1306 = vrot.lane.b32.xlu0 %v4254_v12, %s4786_s21  ;;  %v2132_v12 = vsel %vm4835_vm2, %v4373_v61, %v2131_v42  ;;  %v4400_v42 = vld [vmem:[%s4833_s20 + $0x9c] sm:$0xf]  ;;  %v257_v61 = vld [vmem:[%s4833_s20 + $0x94] sm:$0xf]  ;;  %v256_v3 = vld [vmem:[%s4833_s20 + $0x90] sm:$0xf]  ;;  %v643_v10 = vor.u32 %v642_v56, %v639_v55 }
 0x16c   : > { %v2191_v23 = vpop.permute.xlu1 %2190  ;;  %v2802_v21 = vrot.slane %v2800_v6, 4  ;;  %290 = vst.msk [vmem:[#allocation2 + $0x64] sm:$0xf] %vm264_vm7, %v257_v61  ;;  %v3219_v6 = vrot.slane %v4490_v46, 5  ;;  %289 = vst.msk [vmem:[#allocation2 + $0x60] sm:$0xf] %vm264_vm7, %v256_v3 }
 0x16d   : > { %2274 = vst.msk [vmem:[#allocation2 + $0x34] sm:$0xf] %vm2260_vm12, %v2191_v23  ;;  %v2189_v27 = vpop.permute.xlu0 %2188  ;;  %v2795_v23 = vshll.u32 %v4442_v13, 16  ;;  %v897_v61 = vld [vmem:[%s4833_s20 + $0x90] sm:$0xe] }
 0x16e   : > { %2273 = vst.msk [vmem:[#allocation2 + $0x30] sm:$0xf] %vm2260_vm12, %v2189_v27  ;;  %1312 = vrot.lane.b32.xlu1 %v4257_v18, %s4786_s21  ;;  %v2815_v18 = vrot.slane %v2813_v5, 4  ;;  %v2782_v27 = vor.u32 %v2781_v15, %v2778_v14  ;;  %v4492_v15 = vld [vmem:[%s4833_s20 + $0xa0] sm:$0xf] }
 0x16f   : > { %1310 = vrot.lane.b32.xlu0 %v4256_v24, %s4786_s21  ;;  %v334_v24 = vld [vmem:[%s4833_s20 + $0x94] sm:$0xf] }
 0x170   : > { %v2195_v33 = vpop.permute.xlu1 %2194  ;;  %v2816_v30 = vor.u32 %v2815_v18, %v5903_v17  ;;  %v650_v35 = vshrl.u32 %v334_v24, 16 }
 0x171   : > { %2276 = vst.msk [vmem:[#allocation2 + $0x3c] sm:$0xf] %vm2260_vm12, %v2195_v33  ;;  %v2193_v37 = vpop.permute.xlu0 %2192  ;;  %v2806_v33 = vor.u32 %v2805_v63, %v2802_v21 }
 0x172   : > { %2275 = vst.msk [vmem:[#allocation2 + $0x38] sm:$0xf] %vm2260_vm12, %v2193_v37  ;;  %1869 = vrot.lane.b32.xlu1 %v1706_v29, %s4789_s24  ;;  %v2797_v37 = vrot.slane %v2795_v23, 5  ;;  %v2817_v45 = vrot.slane %v2816_v30, 4  ;;  %v652_v48 = vrot.slane %v650_v35, 4 }
 0x173   : > { %1867 = vrot.lane.b32.xlu0 %v1696_v34, %s4789_s24  ;;  %v646_v34 = vshll.u32 %v334_v24, 16  ;;  %v2807_v50 = vrot.slane %v2806_v33, 4  ;;  %v4493_v23 = vld [vmem:[%s4833_s20 + $0xa4] sm:$0x1]  ;;  %v3223_v24 = vrot.slane %v4492_v15, 5 }
 0x174   : > { %v2385_v43 = vpop.permute.xlu1 %2384  ;;  %v2822_v1 = vsel %vm4933_vm6, %v2817_v45, %v2821_v47  ;;  %v258_v35 = vld [vmem:[%s4833_s20 + $0x9c] sm:$0xf] }
 0x175   : > { %2468 = vst.msk [vmem:[#allocation2 + $0x34] sm:$0xf] %vm2454_vm13, %v2385_v43  ;;  %v2383_v51 = vpop.permute.xlu0 %2382  ;;  %v2783_v43 = vrot.slane %v2782_v27, 4  ;;  %v5928_v52 = vrot.slane %v646_v34, 5  ;;  %v2812_v14 = vsel %vm4933_vm6, %v2807_v50, %v5903_v17  ;;  %v644_v17 = vrot.slane %v643_v10, 4 }
 0x176   : > { %2467 = vst.msk [vmem:[#allocation2 + $0x30] sm:$0xf] %vm2454_vm13, %v2383_v51  ;;  %1873 = vrot.lane.b32.xlu1 %v1730_v41, %s4789_s24  ;;  %v3216_v51 = vrot.slane %v5921_v38, 5  ;;  %v4491_v34 = vld [vmem:[%s4833_s20 + $0x9c] sm:$0xe]  ;;  %v3226_v38 = vrot.slane %v4493_v23, 5 }
 0x177   : > { %1871 = vrot.lane.b32.xlu0 %v1720_v44, %s4789_s24  ;;  %v2788_v58 = vsel %vm4933_vm6, %v2783_v43, %v5897_v9  ;;  %v653_v7 = vor.u32 %v652_v48, %v5928_v52  ;;  %291 = vst.msk [vmem:[#allocation2 + $0x68] sm:$0xf] %vm264_vm7, %v258_v35  ;;  %v649_v43 = vsel %vm4933_vm6, %v644_v17, %v5928_v52  ;;  %v5990_v50 = vld [vmem:[%s6588_s2] ss:$0 sm:$0xff]  ;;  %v4230_v10 = vrot.slane %v897_v61, 9 }
 0x178   : > { %v2389_v59 = vpop.permute.xlu1 %2388  ;;  %v3218_v5 = vrot.slane %v3216_v51, 4  ;;  %v5996_v52 = vld [vmem:[%s4833_s20 + $0xa0] sm:$0xf] }
 0x179   : > { %2470 = vst.msk [vmem:[#allocation2 + $0x3c] sm:$0xf] %vm2454_vm13, %v2389_v59  ;;  %v2387_v2 = vpop.permute.xlu0 %2386  ;;  %v4488_v59 = vld [vmem:[%s4833_s20 + $0x90] sm:$0xe] }
 0x17a   : > { %2469 = vst.msk [vmem:[#allocation2 + $0x38] sm:$0xf] %vm2454_vm13, %v2387_v2  ;;  %2206 = vrot.lane.b32.xlu1 %v2128_v53, %s4790_s27  ;;  %v2798_v53 = vsel %vm4933_vm6, %v2793_v36, %v2797_v37  ;;  %v336_v2 = vld [vmem:[%s4833_s20 + $0x9c] sm:$0xf]  ;;  %v4516_v9 = vrot.slane %v4488_v59, 9  ;;  %v3220_v63 = vsel %vm4835_vm2, %v3218_v5, %v3219_v6  ;;  %v3225_v37 = vrot.slane %v3223_v24, 4 }
 0x17b   : > { %2204 = vrot.lane.b32.xlu0 %v2125_v60, %s4790_s27  ;;  %v337_v60 = vld [vmem:[%s4833_s20 + $0xa0] sm:$0xf]  ;;  %v664_v18 = vshll.u32 %v336_v2, 16  ;;  %v902_v6 = vld [vmem:[%s4833_s20 + $0xa4] sm:$0x1] }
 0x17c   : > { %v2946_v11 = vpop.permute.xlu1 %2945  ;;  %v3217_v28 = vsel %vm4835_vm2, %v4516_v9, %v3216_v51  ;;  %v3227_v46 = vsel %vm4835_vm2, %v3225_v37, %v3226_v38 }
 0x17d   : > { %3029 = vst.msk [vmem:[#allocation2 + $0x34] sm:$0xf] %vm3015_vm14, %v2946_v11  ;;  %v2944_v16 = vpop.permute.xlu0 %2943  ;;  %v670_v11 = vshll.u32 %v337_v60, 16  ;;  %v666_v31 = vrot.slane %v664_v18, 5 }
 0x17e   : > { %3028 = vst.msk [vmem:[#allocation2 + $0x30] sm:$0xf] %vm3015_vm14, %v2944_v16  ;;  %2210 = vrot.lane.b32.xlu1 %v2135_v8, %s4790_s27  ;;  %v656_v8 = vshll.u32 %v335_v54, 16  ;;  %v661_v16 = vshrl.u32 %v336_v2, 16  ;;  %v1053_v2 = vrot.slane %v5996_v52, 5 }
 0x17f   : > { %2208 = vrot.lane.b32.xlu0 %v2132_v12, %s4790_s27  ;;  %v674_v12 = vshrl.u32 %v337_v60, 16  ;;  %v899_v60 = vld [vmem:[%s4833_s20 + $0x98] sm:$0x1] }
 0x180   : > { %v2950_v25 = vpop.permute.xlu1 %2949  ;;  %v658_v22 = vrot.slane %v656_v8, 5  ;;  %v663_v30 = vrot.slane %v661_v16, 4  ;;  %v1049_v9 = vrot.slane %v899_v60, 5  ;;  %v4258_v60 = vld [vmem:[%s4833_s20 + $0x9c] sm:$0xf] }
 0x181   : > { %3031 = vst.msk [vmem:[#allocation2 + $0x3c] sm:$0xf] %vm3015_vm14, %v2950_v25  ;;  %v2948_v29 = vpop.permute.xlu0 %2947  ;;  %v5963_v25 = vrot.slane %v670_v11, 5  ;;  %v900_v11 = vld [vmem:[%s4833_s20 + $0x9c] sm:$0xe] }
 0x182   : > { %3030 = vst.msk [vmem:[#allocation2 + $0x38] sm:$0xf] %vm3015_vm14, %v2948_v29  ;;  %2400 = vrot.lane.b32.xlu1 %v4399_v19, %s4791_s6  ;;  %v654_v19 = vrot.slane %v653_v7, 4  ;;  %v338_v29 = vld [vmem:[%s4833_s20 + $0xa4] sm:$0x1]  ;;  %v667_v45 = vor.u32 %v666_v31, %v663_v30 }
 0x183   : > { %2398 = vrot.lane.b32.xlu0 %v4398_v26, %s4791_s6  ;;  %v676_v26 = vrot.slane %v674_v12, 4  ;;  %v680_v40 = vshll.u32 %v338_v29, 16  ;;  %v4303_v12 = vld [vmem:[%s4833_s20 + $0xa0] sm:$0xf] }
 0x184   : > { %v3283_v41 = vpop.permute.xlu1 %3282  ;;  %v659_v36 = vsel %vm4933_vm6, %v654_v19, %v658_v22  ;;  %v668_v59 = vrot.slane %v667_v45, 4  ;;  %v1055_v19 = vrot.slane %v1053_v2, 4  ;;  %v1056_v22 = vrot.slane %v902_v6, 5 }
 0x185   : > { %3366 = vst.msk [vmem:[#allocation2 + $0x34] sm:$0xf] %vm3352_vm15, %v3283_v41  ;;  %v3281_v44 = vpop.permute.xlu0 %3280  ;;  %v677_v39 = vor.u32 %v676_v26, %v5963_v25  ;;  %v5981_v41 = vld [vmem:[%s4833_s20 + $0x94] sm:$0xf]  ;;  %v682_v55 = vrot.slane %v680_v40, 5  ;;  %v1741_v26 = vshll.u32 %v4303_v12, 16 }
 0x186   : > { %3365 = vst.msk [vmem:[#allocation2 + $0x30] sm:$0xf] %vm3352_vm15, %v3281_v44  ;;  %2404 = vrot.lane.b32.xlu1 %v4401_v32, %s4791_s6  ;;  %v259_v32 = vld [vmem:[%s4833_s20 + $0xa0] sm:$0xf]  ;;  %v4517_v44 = vrot.slane %v4491_v34, 9  ;;  %v1046_v48 = vrot.slane %v5981_v41, 5  ;;  %v673_v18 = vsel %vm4933_vm6, %v668_v59, %v5963_v25  ;;  %v1057_v38 = vsel %vm4835_vm2, %v1055_v19, %v1056_v22 }
 0x187   : > { %2402 = vrot.lane.b32.xlu0 %v4400_v42, %s4791_s6  ;;  %292 = vst.msk [vmem:[#allocation2 + $0x6c] sm:$0xf] %vm264_vm7, %v259_v32  ;;  %v678_v54 = vrot.slane %v677_v39, 4  ;;  %v4306_v34 = vld [vmem:[%s4833_s20 + $0xac] sm:$0xf]  ;;  %v6040_v40 = vrot.slane %v1741_v26, 5 }
 0x188   : > { %v767_v57 = vpop.permute.xlu1 %766  ;;  %v1048_v5 = vrot.slane %v1046_v48, 4  ;;  %v1047_v32 = vsel %vm4835_vm2, %v4230_v10, %v1046_v48  ;;  %v4351_v10 = vld [vmem:[%s4833_s20 + $0xa0] sm:$0xf]  ;;  %v4350_v26 = vld [vmem:[%s4833_s20 + $0x9c] sm:$0xe] }
 0x189   : > { %846 = vst.msk [vmem:[#allocation2 + $0x44] sm:$0xf] %vm828_vm8, %v767_v57  ;;  %v765_v62 = vpop.permute.xlu0 %764  ;;  %v683_v8 = vsel %vm4933_vm6, %v678_v54, %v682_v55  ;;  %v4259_v54 = vld [vmem:[%s4833_s20 + $0xa0] sm:$0xf] }
 0x18a   : > { %845 = vst.msk [vmem:[#allocation2 + $0x40] sm:$0xf] %vm828_vm8, %v765_v62  ;;  %2961 = vrot.lane.b32.xlu1 %v2798_v53, %s4792_s11  ;;  %v1050_v25 = vsel %vm4835_vm2, %v1048_v5, %v1049_v9  ;;  %v4261_v5 = vld [vmem:[%s4833_s20 + $0xac] sm:$0xf] }
 0x18b   : > { %2959 = vrot.lane.b32.xlu0 %v2788_v58, %s4792_s11  ;;  %v3224_v58 = vsel %vm4835_vm2, %v4517_v44, %v3223_v24  ;;  %v4231_v24 = vrot.slane %v900_v11, 9  ;;  %v1769_v44 = vshrl.u32 %v4306_v34, 16 }
 0x18c   : > { %v3287_v13 = vpop.permute.xlu1 %3286 }
 0x18d   : > { %3368 = vst.msk [vmem:[#allocation2 + $0x3c] sm:$0xf] %vm3352_vm15, %v3287_v13  ;;  %v3285_v20 = vpop.permute.xlu0 %3284  ;;  %v4758_v21 = vld [vmem:[#allocation2 + $0x30] sm:$0xff]   ;;  %v1054_v39 = vsel %vm4835_vm2, %v4231_v24, %v1053_v2 }
 0x18e   : > { %3367 = vst.msk [vmem:[#allocation2 + $0x38] sm:$0xf] %vm3352_vm15, %v3285_v20  ;;  %2965 = vrot.lane.b32.xlu1 %v2822_v1, %s4792_s11  ;;  %4673 = vmatprep.mubr.bf16.mxu0 %v4758_v21  ;;  %v4302_v20 = vld [vmem:[%s4833_s20 + $0x9c] sm:$0xf] }
 0x18f   : > { %2963 = vrot.lane.b32.xlu0 %v2812_v14, %s4792_s11 }
 0x190   : > { %v771_v27 = vpop.permute.xlu1 %770 }
 0x191   : > { %848 = vst.msk [vmem:[#allocation2 + $0x4c] sm:$0xf] %vm828_vm8, %v771_v27  ;;  %v769_v33 = vpop.permute.xlu0 %768  ;;  %v1745_v27 = vshrl.u32 %v4303_v12, 16  ;;  %v4260_v12 = vld [vmem:[%s4833_s20 + $0xa8] sm:$0xf] }
 0x192   : > { %847 = vst.msk [vmem:[#allocation2 + $0x48] sm:$0xf] %vm828_vm8, %v769_v33  ;;  %3298 = vrot.lane.b32.xlu1 %v3220_v63, %s4793_s18  ;;  %v1735_v33 = vshll.u32 %v4302_v20, 16 }
 0x193   : > { %3296 = vrot.lane.b32.xlu0 %v3217_v28, %s4793_s18  ;;  %v1732_v28 = vshrl.u32 %v4302_v20, 16  ;;  %v1747_v41 = vrot.slane %v1745_v27, 4 }
 0x194   : > { %v1107_v42 = vpop.permute.xlu1 %1106 }
 0x195   : > { %1186 = vst.msk [vmem:[#allocation2 + $0x44] sm:$0xf] %vm1168_vm9, %v1107_v42  ;;  %v1105_v47 = vpop.permute.xlu0 %1104  ;;  %v4759_v51 = vld [vmem:[#allocation2 + $0x38] sm:$0xff]   ;;  %v1734_v42 = vrot.slane %v1732_v28, 4  ;;  %v1748_v55 = vor.u32 %v1747_v41, %v6040_v40 }
 0x196   : > { %1185 = vst.msk [vmem:[#allocation2 + $0x40] sm:$0xf] %vm1168_vm9, %v1105_v47  ;;  %782 = vrot.lane.b32.xlu1 %v659_v36, %s4788_s23  ;;  %v4663_v53 = vpop.f32.mrf.mxu0  ;;  %4674 = vmatmul.mubr.bf16.gmra.mxu0 %v4759_v51  ;;  %v4305_v36 = vld [vmem:[%s4833_s20 + $0xa8] sm:$0xf]  ;;  %v4304_v47 = vld [vmem:[%s4833_s20 + $0xa4] sm:$0x1] }
 0x197   : > { %780 = vrot.lane.b32.xlu0 %v649_v43, %s4788_s23  ;;  %v3627_v56 = vadd.f32 %v4663_v53, %v5990_v50  ;;  %v1765_v43 = vshll.u32 %v4306_v34, 16  ;;  %v1737_v51 = vrot.slane %v1735_v33, 5  ;;  %v1756_v48 = vshrl.u32 %v4305_v36, 16  ;;  %v4355_v33 = vld [vmem:[%s4833_s20 + $0xb0] sm:$0x1] }
 0x198   : > { %v1111_v57 = vpop.permute.xlu1 %1110  ;;  %v3618_v1 = vpop.f32.mrf.mxu0  ;;  %v1759_v52 = vshll.u32 %v4305_v36, 16  ;;  %v1749_v6 = vrot.slane %v1748_v55, 4  ;;  %v4447_v34 = vld [vmem:[%s4833_s20 + $0xac] sm:$0xf]  ;;  %v4353_v36 = vld [vmem:[%s4833_s20 + $0xa8] sm:$0xe] }
 0x199   : > { %1188 = vst.msk [vmem:[#allocation2 + $0x4c] sm:$0xf] %vm1168_vm9, %v1111_v57  ;;  %v1109_v62 = vpop.permute.xlu0 %1108  ;;  %v3619_v3 = vadd.f32 %v5990_v50, %v3618_v1  ;;  %v3747_v13 = vmax.f32 %v3627_v56, 0.0  ;;  %v1751_v56 = vshll.u32 %v4304_v47, 16  ;;  %v1767_v57 = vrot.slane %v1765_v43, 5 }
 0x19a   : > { %1187 = vst.msk [vmem:[#allocation2 + $0x48] sm:$0xf] %vm1168_vm9, %v1109_v62  ;;  %3302 = vrot.lane.b32.xlu1 %v3227_v46, %s4793_s18  ;;  %v4664_v7 = vpop.f32.mrf.mxu0  ;;  %v1738_v61 = vor.u32 %v1737_v51, %v1734_v42  ;;  %v4307_v62 = vld [vmem:[%s4833_s20 + $0xb0] sm:$0x1]  ;;  %v1758_v1 = vrot.slane %v1756_v48, 4  ;;  %v1761_v2 = vrot.slane %v1759_v52, 5 }
 0x19b   : > { %3300 = vrot.lane.b32.xlu0 %v3224_v58, %s4793_s18  ;;  %v3745_v14 = vmax.f32 %v3619_v3, 0.0  ;;  %v3630_v15 = vadd.f32 %v4664_v7, %v5990_v50  ;;  %v1771_v58 = vrot.slane %v1769_v44, 4  ;;  %v1753_v7 = vrot.slane %v1751_v56, 5  ;;  %v4449_v44 = vld [vmem:[%s4833_s20 + $0xb4] sm:$0xf] }
 0x19c   : > { %v1301_v16 = vpop.permute.xlu1 %1300  ;;  %v3621_v63 = vpop.f32.mrf.mxu0  ;;  %v1775_v9 = vshll.u32 %v4307_v62, 16  ;;  %v2148_v41 = vrot.slane %v4355_v33, 5  ;;  %v2833_v42 = vshll.u32 %v4447_v34, 16  ;;  %v2837_v43 = vshrl.u32 %v4447_v34, 16 }
 0x19d   : > { %1380 = vst.msk [vmem:[#allocation2 + $0x44] sm:$0xf] %vm1362_vm10, %v1301_v16  ;;  %v1299_v21 = vpop.permute.xlu0 %1298  ;;  %v3777_v17 = vmax.f32 %v3745_v14, %v3747_v13  ;;  %v3622_v23 = vadd.f32 %v5990_v50, %v3621_v63  ;;  %v3748_v29 = vmax.f32 %v3630_v15, 0.0  ;;  %v1739_v13 = vrot.slane %v1738_v61, 4  ;;  %v4352_v63 = vld [vmem:[%s4833_s20 + $0xa4] sm:$0x1] }
 0x19e   : > { %1379 = vst.msk [vmem:[#allocation2 + $0x40] sm:$0xf] %vm1362_vm10, %v1299_v21  ;;  %786 = vrot.lane.b32.xlu1 %v683_v8, %s4788_s23  ;;  %v1772_v8 = vor.u32 %v1771_v58, %v1767_v57  ;;  %v1762_v14 = vor.u32 %v1761_v2, %v1758_v1  ;;  %v2138_v16 = vrot.slane %v4351_v10, 5  ;;  %v1777_v21 = vrot.slane %v1775_v9, 5  ;;  %v4448_v1 = vld [vmem:[%s4833_s20 + $0xb0] sm:$0x1] }
 0x19f   : > { %784 = vrot.lane.b32.xlu0 %v673_v18, %s4788_s23  ;;  %v3746_v30 = vmax.f32 %v3622_v23, 0.0  ;;  %v1754_v18 = vsel %vm4933_vm6, %v1749_v6, %v1753_v7  ;;  %v1744_v22 = vsel %vm4933_vm6, %v1739_v13, %v6040_v40  ;;  %v4354_v23 = vld [vmem:[%s4833_s20 + $0xac] sm:$0xf]  ;;  %v2141_v27 = vrot.slane %v4352_v63, 5 }
 0x1a0   : > { %v1305_v31 = vpop.permute.xlu1 %1304  ;;  %v1773_v20 = vrot.slane %v1772_v8, 4  ;;  %v4375_v51 = vrot.slane %v4353_v36, 9  ;;  %v2848_v56 = vshrl.u32 %v4449_v44, 16  ;;  %v4451_v8 = vld [vmem:[%s4833_s20 + $0xbc] sm:$0x1]  ;;  %v2843_v13 = vshll.u32 %v4448_v1, 16 }
 0x1a1   : > { %1382 = vst.msk [vmem:[#allocation2 + $0x4c] sm:$0xf] %vm1362_vm10, %v1305_v31  ;;  %v1303_v35 = vpop.permute.xlu0 %1302  ;;  %v3778_v37 = vmax.f32 %v3746_v30, %v3748_v29  ;;  %v2145_v29 = vrot.slane %v4354_v23, 5 }
 0x1a2   : > { %1381 = vst.msk [vmem:[#allocation2 + $0x48] sm:$0xf] %vm1362_vm10, %v1303_v35  ;;  %1122 = vrot.lane.b32.xlu1 %v1050_v25, %s4787_s22  ;;  %v2140_v25 = vrot.slane %v2138_v16, 4  ;;  %v1778_v28 = vsel %vm4933_vm6, %v1773_v20, %v1777_v21  ;;  %v2850_v9 = vrot.slane %v2848_v56, 4  ;;  %v339_v20 = vld [vmem:[%s4833_s20 + $0xa8] sm:$0xf] }
 0x1a3   : > { %1120 = vrot.lane.b32.xlu0 %v1047_v32, %s4787_s22  ;;  %v6044_v53 = vpack.c.bf16 %v3778_v37, %v3777_v17  ;;  %v1763_v17 = vrot.slane %v1762_v14, 4  ;;  %v4374_v32 = vrot.slane %v4350_v26, 9  ;;  %v4446_v37 = vld [vmem:[%s4833_s20 + $0xa8] sm:$0xf]  ;;  %v2147_v40 = vrot.slane %v2145_v29, 4 }
 0x1a4   : > { %v1862_v45 = vpop.permute.xlu1 %1861  ;;  %v2824_v48 = vshrl.u32 %v4446_v37, 16  ;;  %v2827_v52 = vshll.u32 %v4446_v37, 16  ;;  %v2146_v62 = vsel %vm4835_vm2, %v4375_v51, %v2145_v29  ;;  %v340_v14 = vld [vmem:[%s4833_s20 + $0xac] sm:$0xf]  ;;  %v688_v29 = vshll.u32 %v339_v20, 16 }
 0x1a5   : > { %1941 = vst.msk [vmem:[#allocation2 + $0x44] sm:$0xf] %vm1923_vm11, %v1862_v45  ;;  %v1860_v46 = vpop.permute.xlu0 %1859  ;;  %v1768_v31 = vsel %vm4933_vm6, %v1763_v17, %v1767_v57  ;;  %v2139_v47 = vsel %vm4835_vm2, %v4374_v32, %v2138_v16  ;;  %v2851_v57 = vshll.u32 %v4449_v44, 16  ;;  %v2149_v58 = vsel %vm4835_vm2, %v2147_v40, %v2148_v41  ;;  %v4402_v16 = vld [vmem:[%s4833_s20 + $0xa8] sm:$0xf] }
 0x1a6   : > { %1940 = vst.msk [vmem:[#allocation2 + $0x40] sm:$0xf] %vm1923_vm11, %v1860_v46  ;;  %1126 = vrot.lane.b32.xlu1 %v1057_v38, %s4787_s22  ;;  %v2142_v38 = vsel %vm4835_vm2, %v2140_v25, %v2141_v27  ;;  %v2826_v2 = vrot.slane %v2824_v48, 4  ;;  %v694_v23 = vshll.u32 %v340_v14, 16  ;;  %v2845_v25 = vrot.slane %v2843_v13, 5 }
 0x1a7   : > { %1124 = vrot.lane.b32.xlu0 %v1054_v39, %s4787_s22  ;;  %v4450_v39 = vld [vmem:[%s4833_s20 + $0xb8] sm:$0xf]  ;;  %v2853_v10 = vrot.slane %v2851_v57, 5  ;;  %v6125_v27 = vld [vmem:[%s4833_s20 + $0xac] sm:$0xf]  ;;  %v690_v44 = vrot.slane %v688_v29, 5 }
 0x1a8   : > { %v1866_v59 = vpop.permute.xlu1 %1865  ;;  %v2861_v55 = vshrl.u32 %v4450_v39, 16  ;;  %v3230_v37 = vrot.slane %v6125_v27, 5  ;;  %v4496_v41 = vld [vmem:[%s4833_s20 + $0xb0] sm:$0x1]  ;;  %v343_v51 = vld [vmem:[%s4833_s20 + $0xb8] sm:$0xf] }
 0x1a9   : > { %1943 = vst.msk [vmem:[#allocation2 + $0x4c] sm:$0xf] %vm1923_vm11, %v1866_v59  ;;  %v1864_v3 = vpop.permute.xlu0 %1863  ;;  %v6101_v59 = vrot.slane %v2833_v42, 5  ;;  %v2854_v17 = vor.u32 %v2853_v10, %v2850_v9  ;;  %v341_v42 = vld [vmem:[%s4833_s20 + $0xb0] sm:$0x1]  ;;  %v722_v1 = vshrl.u32 %v343_v51, 16 }
 0x1aa   : > { %1942 = vst.msk [vmem:[#allocation2 + $0x48] sm:$0xf] %vm1923_vm11, %v1864_v3  ;;  %1316 = vrot.lane.b32.xlu1 %v4259_v54, %s4786_s21  ;;  %v2857_v54 = vshll.u32 %v4450_v39, 16  ;;  %v2829_v3 = vrot.slane %v2827_v52, 5  ;;  %v2863_v7 = vrot.slane %v2861_v55, 4  ;;  %v3232_v57 = vrot.slane %v3230_v37, 4 }
 0x1ab   : > { %1314 = vrot.lane.b32.xlu0 %v4258_v60, %s4786_s21  ;;  %v2839_v60 = vrot.slane %v2837_v43, 4  ;;  %v2855_v36 = vrot.slane %v2854_v17, 4  ;;  %v342_v48 = vld [vmem:[%s4833_s20 + $0xb4] sm:$0xf]  ;;  %v261_v52 = vld [vmem:[%s4833_s20 + $0xac] sm:$0xf] }
 0x1ac   : > { %v2199_v11 = vpop.permute.xlu1 %2198  ;;  %v6107_v6 = vrot.slane %v2857_v54, 5  ;;  %v4494_v55 = vld [vmem:[%s4833_s20 + $0xa8] sm:$0xe]  ;;  %294 = vst.msk [vmem:[#allocation2 + $0x74] sm:$0xf] %vm264_vm7, %v261_v52 }
 0x1ad   : > { %2278 = vst.msk [vmem:[#allocation2 + $0x44] sm:$0xf] %vm2260_vm12, %v2199_v11  ;;  %v2197_v15 = vpop.permute.xlu0 %2196  ;;  %v4403_v11 = vld [vmem:[%s4833_s20 + $0xac] sm:$0xf]  ;;  %v260_v56 = vld [vmem:[%s4833_s20 + $0xa8] sm:$0xf] }
 0x1ae   : > { %2277 = vst.msk [vmem:[#allocation2 + $0x40] sm:$0xf] %vm2260_vm12, %v2197_v15  ;;  %1320 = vrot.lane.b32.xlu1 %v4261_v5, %s4786_s21  ;;  %v2864_v63 = vor.u32 %v2863_v7, %v6107_v6  ;;  %v2860_v7 = vsel %vm4933_vm6, %v2855_v36, %v6107_v6  ;;  %v344_v17 = vld [vmem:[%s4833_s20 + $0xbc] sm:$0x1]  ;;  %v904_v36 = vld [vmem:[%s4833_s20 + $0xac] sm:$0xf] }
 0x1af   : > { %1318 = vrot.lane.b32.xlu0 %v4260_v12, %s4786_s21  ;;  %v2840_v12 = vor.u32 %v2839_v60, %v6101_v59  ;;  %v704_v60 = vshll.u32 %v341_v42, 16  ;;  %293 = vst.msk [vmem:[#allocation2 + $0x70] sm:$0xf] %vm264_vm7, %v260_v56  ;;  %v905_v52 = vld [vmem:[%s4833_s20 + $0xb0] sm:$0x1] }
 0x1b0   : > { %v2203_v19 = vpop.permute.xlu1 %2202  ;;  %v2865_v34 = vrot.slane %v2864_v63, 4 }
 0x1b1   : > { %2280 = vst.msk [vmem:[#allocation2 + $0x4c] sm:$0xf] %vm2260_vm12, %v2203_v19  ;;  %v2201_v24 = vpop.permute.xlu0 %2200  ;;  %v2867_v19 = vshll.u32 %v4451_v8, 16  ;;  %v2841_v26 = vrot.slane %v2840_v12, 4  ;;  %v4518_v8 = vrot.slane %v4494_v55, 9 }
 0x1b2   : > { %2279 = vst.msk [vmem:[#allocation2 + $0x48] sm:$0xf] %vm2260_vm12, %v2201_v24  ;;  %1877 = vrot.lane.b32.xlu1 %v1754_v18, %s4789_s24  ;;  %v2830_v18 = vor.u32 %v2829_v3, %v2826_v2  ;;  %v698_v24 = vshrl.u32 %v340_v14, 16  ;;  %v709_v2 = vshrl.u32 %v342_v48, 16  ;;  %v712_v3 = vshll.u32 %v342_v48, 16 }
 0x1b3   : > { %1875 = vrot.lane.b32.xlu0 %v1744_v22, %s4789_s24  ;;  %v4405_v22 = vld [vmem:[%s4833_s20 + $0xb8] sm:$0xf]  ;;  %v2846_v40 = vsel %vm4933_vm6, %v2841_v26, %v2845_v25  ;;  %v706_v14 = vrot.slane %v704_v60, 5  ;;  %v4497_v26 = vld [vmem:[%s4833_s20 + $0xb4] sm:$0xe] }
 0x1b4   : > { %v2393_v30 = vpop.permute.xlu1 %2392  ;;  %v2831_v32 = vrot.slane %v2830_v18, 4  ;;  %v700_v39 = vrot.slane %v698_v24, 4  ;;  %v724_v18 = vrot.slane %v722_v1, 4  ;;  %v262_v25 = vld [vmem:[%s4833_s20 + $0xb4] sm:$0xf]  ;;  %v1063_v1 = vrot.slane %v905_v52, 5 }
 0x1b5   : > { %2472 = vst.msk [vmem:[#allocation2 + $0x44] sm:$0xf] %vm2454_vm13, %v2393_v30  ;;  %v2391_v35 = vpop.permute.xlu0 %2390  ;;  %v903_v55 = vld [vmem:[%s4833_s20 + $0xa8] sm:$0xe]  ;;  %v4262_v52 = vld [vmem:[%s4833_s20 + $0xb4] sm:$0xf] }
 0x1b6   : > { %2471 = vst.msk [vmem:[#allocation2 + $0x40] sm:$0xf] %vm2454_vm13, %v2391_v35  ;;  %1881 = vrot.lane.b32.xlu1 %v1778_v28, %s4789_s24  ;;  %v685_v28 = vshrl.u32 %v339_v20, 16  ;;  %v2869_v35 = vrot.slane %v2867_v19, 5  ;;  %v711_v20 = vrot.slane %v709_v2, 4  ;;  %v3231_v19 = vsel %vm4835_vm2, %v4518_v8, %v3230_v37 }
 0x1b7   : > { %1879 = vrot.lane.b32.xlu0 %v1768_v31, %s4789_s24  ;;  %v4404_v31 = vld [vmem:[%s4833_s20 + $0xb4] sm:$0xf]  ;;  %295 = vst.msk [vmem:[#allocation2 + $0x78] sm:$0xf] %vm264_vm7, %v262_v25 }
 0x1b8   : > { %v2397_v45 = vpop.permute.xlu1 %2396  ;;  %v687_v43 = vrot.slane %v685_v28, 4  ;;  %v2870_v54 = vsel %vm4933_vm6, %v2865_v34, %v2869_v35  ;;  %v4519_v35 = vrot.slane %v4497_v26, 9  ;;  %v906_v2 = vld [vmem:[%s4833_s20 + $0xb4] sm:$0xe] }
 0x1b9   : > { %2474 = vst.msk [vmem:[#allocation2 + $0x4c] sm:$0xf] %vm2454_vm13, %v2397_v45  ;;  %v2395_v46 = vpop.permute.xlu0 %2394 }
 0x1ba   : > { %2473 = vst.msk [vmem:[#allocation2 + $0x48] sm:$0xf] %vm2454_vm13, %v2395_v46  ;;  %2214 = vrot.lane.b32.xlu1 %v2142_v38, %s4790_s27  ;;  %v6132_v38 = vrot.slane %v694_v23, 5  ;;  %v691_v9 = vor.u32 %v690_v44, %v687_v43  ;;  %v263_v23 = vld [vmem:[%s4833_s20 + $0xb8] sm:$0xf] }
 0x1bb   : > { %2212 = vrot.lane.b32.xlu0 %v2139_v47, %s4790_s27  ;;  %v2836_v47 = vsel %vm4933_vm6, %v2831_v32, %v6101_v59  ;;  %296 = vst.msk [vmem:[#allocation2 + $0x7c] sm:$0xf] %vm264_vm7, %v263_v23 }
 0x1bc   : > { %v2954_v61 = vpop.permute.xlu1 %2953  ;;  %v701_v59 = vor.u32 %v700_v39, %v6132_v38 }
 0x1bd   : > { %3033 = vst.msk [vmem:[#allocation2 + $0x44] sm:$0xf] %vm3015_vm14, %v2954_v61  ;;  %v2952_v5 = vpop.permute.xlu0 %2951  ;;  %v6157_v61 = vld [vmem:[%s4833_s20 + $0xb8] sm:$0xf] }
 0x1be   : > { %3032 = vst.msk [vmem:[#allocation2 + $0x40] sm:$0xf] %vm3015_vm14, %v2952_v5  ;;  %2218 = vrot.lane.b32.xlu1 %v2149_v58, %s4790_s27  ;;  %v3233_v58 = vrot.slane %v4496_v41, 5  ;;  %v702_v13 = vrot.slane %v701_v59, 4  ;;  %v3237_v6 = vrot.slane %v6157_v61, 5 }
 0x1bf   : > { %2216 = vrot.lane.b32.xlu0 %v2146_v62, %s4790_s27  ;;  %v718_v62 = vshll.u32 %v343_v51, 16  ;;  %v6197_v41 = vld [vmem:[%s4833_s20 + $0xb8] sm:$0xf] }
 0x1c0   : > { %v2958_v15 = vpop.permute.xlu1 %2957  ;;  %v3234_v12 = vsel %vm4835_vm2, %v3232_v57, %v3233_v58  ;;  %v3239_v27 = vrot.slane %v3237_v6, 4  ;;  %v707_v29 = vsel %vm4933_vm6, %v702_v13, %v706_v14  ;;  %v3238_v48 = vsel %vm4835_vm2, %v4519_v35, %v3237_v6  ;;  %v908_v58 = vld [vmem:[%s4833_s20 + $0xbc] sm:$0x1] }
 0x1c1   : > { %3035 = vst.msk [vmem:[#allocation2 + $0x4c] sm:$0xf] %vm3015_vm14, %v2958_v15  ;;  %v2956_v21 = vpop.permute.xlu0 %2955  ;;  %v4499_v15 = vld [vmem:[%s4833_s20 + $0xbc] sm:$0x1]  ;;  %v1067_v56 = vrot.slane %v6197_v41, 5  ;;  %v1070_v6 = vrot.slane %v908_v58, 5 }
 0x1c2   : > { %3034 = vst.msk [vmem:[#allocation2 + $0x48] sm:$0xf] %vm3015_vm14, %v2956_v21  ;;  %2408 = vrot.lane.b32.xlu1 %v4403_v11, %s4791_s6  ;;  %v714_v21 = vrot.slane %v712_v3, 5  ;;  %v3240_v28 = vrot.slane %v4499_v15, 5  ;;  %v4309_v3 = vld [vmem:[%s4833_s20 + $0xb8] sm:$0xf] }
 0x1c3   : > { %2406 = vrot.lane.b32.xlu0 %v4402_v16, %s4791_s6  ;;  %v6170_v16 = vrot.slane %v718_v62, 5  ;;  %v1069_v14 = vrot.slane %v1067_v56, 4  ;;  %v4265_v58 = vld [vmem:[%s4833_s20 + $0xc4] sm:$0xf] }
 0x1c4   : > { %v3291_v30 = vpop.permute.xlu1 %3290  ;;  %v715_v32 = vor.u32 %v714_v21, %v711_v20  ;;  %v1789_v20 = vshll.u32 %v4309_v3, 16 }
 0x1c5   : > { %3370 = vst.msk [vmem:[#allocation2 + $0x44] sm:$0xf] %vm3352_vm15, %v3291_v30  ;;  %v3289_v33 = vpop.permute.xlu0 %3288  ;;  %v725_v30 = vor.u32 %v724_v18, %v6170_v16  ;;  %v4233_v18 = vrot.slane %v906_v2, 9  ;;  %v4264_v2 = vld [vmem:[%s4833_s20 + $0xc0] sm:$0xf] }
 0x1c6   : > { %3369 = vst.msk [vmem:[#allocation2 + $0x40] sm:$0xf] %vm3352_vm15, %v3289_v33  ;;  %2412 = vrot.lane.b32.xlu1 %v4405_v22, %s4791_s6  ;;  %v692_v22 = vrot.slane %v691_v9, 4  ;;  %v716_v44 = vrot.slane %v715_v32, 4 }
 0x1c7   : > { %2410 = vrot.lane.b32.xlu0 %v4404_v31, %s4791_s6  ;;  %v728_v31 = vshll.u32 %v344_v17, 16  ;;  %v726_v42 = vrot.slane %v725_v30, 4  ;;  %v1068_v30 = vsel %vm4835_vm2, %v4233_v18, %v1067_v56 }
 0x1c8   : > { %v775_v45 = vpop.permute.xlu1 %774  ;;  %v697_v34 = vsel %vm4933_vm6, %v692_v22, %v6132_v38  ;;  %v721_v61 = vsel %vm4933_vm6, %v716_v44, %v6170_v16 }
 0x1c9   : > { %850 = vst.msk [vmem:[#allocation2 + $0x54] sm:$0xf] %vm828_vm8, %v775_v45  ;;  %v773_v46 = vpop.permute.xlu0 %772  ;;  %v730_v43 = vrot.slane %v728_v31, 5  ;;  %v1060_v45 = vrot.slane %v904_v36, 5  ;;  %v6239_v31 = vrot.slane %v1789_v20, 5 }
 0x1ca   : > { %849 = vst.msk [vmem:[#allocation2 + $0x50] sm:$0xf] %vm828_vm8, %v773_v46  ;;  %2969 = vrot.lane.b32.xlu1 %v2846_v40, %s4792_s11  ;;  %v3241_v40 = vsel %vm4835_vm2, %v3239_v27, %v3240_v28  ;;  %v4311_v27 = vld [vmem:[%s4833_s20 + $0xc0] sm:$0xf]  ;;  %v4356_v20 = vld [vmem:[%s4833_s20 + $0xb4] sm:$0xe] }
 0x1cb   : > { %2967 = vrot.lane.b32.xlu0 %v2836_v47, %s4792_s11  ;;  %v731_v60 = vsel %vm4933_vm6, %v726_v42, %v730_v43  ;;  %v1062_v62 = vrot.slane %v1060_v45, 4  ;;  %v1807_v41 = vshll.u32 %v4311_v27, 16  ;;  %v4263_v43 = vld [vmem:[%s4833_s20 + $0xb8] sm:$0xf] }
 0x1cc   : > { %v3295_v5 = vpop.permute.xlu1 %3294 }
 0x1cd   : > { %3372 = vst.msk [vmem:[#allocation2 + $0x4c] sm:$0xf] %vm3352_vm15, %v3295_v5  ;;  %v3293_v10 = vpop.permute.xlu0 %3292  ;;  %v4760_v11 = vld [vmem:[#allocation2 + $0x40] sm:$0xff]   ;;  %v1064_v21 = vsel %vm4835_vm2, %v1062_v62, %v1063_v1  ;;  %v1809_v56 = vrot.slane %v1807_v41, 5 }
 0x1ce   : > { %3371 = vst.msk [vmem:[#allocation2 + $0x48] sm:$0xf] %vm3352_vm15, %v3293_v10  ;;  %2973 = vrot.lane.b32.xlu1 %v2870_v54, %s4792_s11  ;;  %4677 = vmatprep.mubr.bf16.mxu0 %v4760_v11  ;;  %v4232_v10 = vrot.slane %v903_v55, 9  ;;  %v4308_v11 = vld [vmem:[%s4833_s20 + $0xb4] sm:$0xf] }
 0x1cf   : > { %2971 = vrot.lane.b32.xlu0 %v2860_v7, %s4792_s11  ;;  %v1783_v26 = vshll.u32 %v4308_v11, 16 }
 0x1d0   : > { %v779_v63 = vpop.permute.xlu1 %778 }
 0x1d1   : > { %852 = vst.msk [vmem:[#allocation2 + $0x5c] sm:$0xf] %vm828_vm8, %v779_v63  ;;  %v777_v24 = vpop.permute.xlu0 %776  ;;  %v1793_v63 = vshrl.u32 %v4309_v3, 16 }
 0x1d2   : > { %851 = vst.msk [vmem:[#allocation2 + $0x58] sm:$0xf] %vm828_vm8, %v777_v24  ;;  %3306 = vrot.lane.b32.xlu1 %v3234_v12, %s4793_s18  ;;  %v1061_v24 = vsel %vm4835_vm2, %v4232_v10, %v1060_v45 }
 0x1d3   : > { %3304 = vrot.lane.b32.xlu0 %v3231_v19, %s4793_s18  ;;  %v1780_v19 = vshrl.u32 %v4308_v11, 16  ;;  %v1795_v32 = vrot.slane %v1793_v63, 4 }
 0x1d4   : > { %v1115_v33 = vpop.permute.xlu1 %1114 }
 0x1d5   : > { %1190 = vst.msk [vmem:[#allocation2 + $0x54] sm:$0xf] %vm1168_vm9, %v1115_v33  ;;  %v1113_v37 = vpop.permute.xlu0 %1112  ;;  %v4761_v39 = vld [vmem:[#allocation2 + $0x48] sm:$0xff]   ;;  %v1782_v33 = vrot.slane %v1780_v19, 4  ;;  %v1796_v44 = vor.u32 %v1795_v32, %v6239_v31 }
 0x1d6   : > { %1189 = vst.msk [vmem:[#allocation2 + $0x50] sm:$0xf] %vm1168_vm9, %v1113_v37  ;;  %790 = vrot.lane.b32.xlu1 %v707_v29, %s4788_s23  ;;  %v4667_v38 = vpop.f32.mrf.mxu0  ;;  %4678 = vmatmul.mubr.bf16.gmra.mxu0 %v4761_v39  ;;  %v1071_v29 = vsel %vm4835_vm2, %v1069_v14, %v1070_v6  ;;  %v4310_v37 = vld [vmem:[%s4833_s20 + $0xbc] sm:$0x1]  ;;  %v1785_v39 = vrot.slane %v1783_v26, 5 }
 0x1d7   : > { %788 = vrot.lane.b32.xlu0 %v697_v34, %s4788_s23  ;;  %v3643_v47 = vadd.f32 %v4667_v38, %v5990_v50  ;;  %v1799_v45 = vshll.u32 %v4310_v37, 16 }
 0x1d8   : > { %v1119_v51 = vpop.permute.xlu1 %1118  ;;  %v3634_v54 = vpop.f32.mrf.mxu0 }
 0x1d9   : > { %1192 = vst.msk [vmem:[#allocation2 + $0x5c] sm:$0xf] %vm1168_vm9, %v1119_v51  ;;  %v1117_v46 = vpop.permute.xlu0 %1116  ;;  %v3635_v57 = vadd.f32 %v5990_v50, %v3634_v54  ;;  %v3751_v5 = vmax.f32 %v3643_v47, 0.0  ;;  %v4313_v54 = vld [vmem:[%s4833_s20 + $0xc8] sm:$0x1] }
 0x1da   : > { %1191 = vst.msk [vmem:[#allocation2 + $0x58] sm:$0xf] %vm1168_vm9, %v1117_v46  ;;  %3310 = vrot.lane.b32.xlu1 %v3241_v40, %s4793_s18  ;;  %v4668_v59 = vpop.f32.mrf.mxu0  ;;  %v1804_v40 = vshrl.u32 %v4311_v27, 16  ;;  %v1786_v46 = vor.u32 %v1785_v39, %v1782_v33  ;;  %v1823_v62 = vshll.u32 %v4313_v54, 16 }
 0x1db   : > { %3308 = vrot.lane.b32.xlu0 %v3238_v48, %s4793_s18  ;;  %v3749_v7 = vmax.f32 %v3635_v57, 0.0  ;;  %v3646_v8 = vadd.f32 %v4668_v59, %v5990_v50  ;;  %v1797_v59 = vrot.slane %v1796_v44, 4 }
 0x1dc   : > { %v1309_v9 = vpop.permute.xlu1 %1308  ;;  %v3637_v13 = vpop.f32.mrf.mxu0  ;;  %v1806_v55 = vrot.slane %v1804_v40, 4  ;;  %v1787_v3 = vrot.slane %v1786_v46, 4  ;;  %v1825_v11 = vrot.slane %v1823_v62, 5  ;;  %v4456_v40 = vld [vmem:[%s4833_s20 + $0xd0] sm:$0xf] }
 0x1dd   : > { %1384 = vst.msk [vmem:[#allocation2 + $0x54] sm:$0xf] %vm1362_vm10, %v1309_v9  ;;  %v1307_v12 = vpop.permute.xlu0 %1306  ;;  %v3779_v15 = vmax.f32 %v3749_v7, %v3751_v5  ;;  %v3638_v16 = vadd.f32 %v5990_v50, %v3637_v13  ;;  %v3752_v22 = vmax.f32 %v3646_v8, 0.0  ;;  %v4312_v50 = vld [vmem:[%s4833_s20 + $0xc4] sm:$0xf] }
 0x1de   : > { %1383 = vst.msk [vmem:[#allocation2 + $0x50] sm:$0xf] %vm1362_vm10, %v1307_v12  ;;  %794 = vrot.lane.b32.xlu1 %v731_v60, %s4788_s23  ;;  %v1813_v34 = vshll.u32 %v4312_v50, 16  ;;  %v1817_v35 = vshrl.u32 %v4312_v50, 16  ;;  %v1801_v60 = vrot.slane %v1799_v45, 5  ;;  %v1810_v5 = vor.u32 %v1809_v56, %v1806_v55 }
 0x1df   : > { %792 = vrot.lane.b32.xlu0 %v721_v61, %s4788_s23  ;;  %v3750_v17 = vmax.f32 %v3638_v16, 0.0  ;;  %v4357_v7 = vld [vmem:[%s4833_s20 + $0xb8] sm:$0xf]  ;;  %v4360_v13 = vld [vmem:[%s4833_s20 + $0xc4] sm:$0xf]  ;;  %v1792_v6 = vsel %vm4933_vm6, %v1787_v3, %v6239_v31  ;;  %v4376_v50 = vrot.slane %v4356_v20, 9 }
 0x1e0   : > { %v1313_v23 = vpop.permute.xlu1 %1312  ;;  %v1815_v47 = vrot.slane %v1813_v34, 5  ;;  %v1819_v51 = vrot.slane %v1817_v35, 4  ;;  %v1802_v9 = vsel %vm4933_vm6, %v1797_v59, %v1801_v60  ;;  %v2152_v12 = vrot.slane %v4357_v7, 5  ;;  %v4358_v16 = vld [vmem:[%s4833_s20 + $0xbc] sm:$0x1] }
 0x1e1   : > { %1386 = vst.msk [vmem:[#allocation2 + $0x5c] sm:$0xf] %vm1362_vm10, %v1313_v23  ;;  %v1311_v25 = vpop.permute.xlu0 %1310  ;;  %v3780_v28 = vmax.f32 %v3750_v17, %v3752_v22  ;;  %v2155_v22 = vrot.slane %v4358_v16, 5  ;;  %v4361_v17 = vld [vmem:[%s4833_s20 + $0xc8] sm:$0x1] }
 0x1e2   : > { %1385 = vst.msk [vmem:[#allocation2 + $0x58] sm:$0xf] %vm1362_vm10, %v1311_v25  ;;  %1130 = vrot.lane.b32.xlu1 %v1064_v21, %s4787_s22  ;;  %v1820_v61 = vor.u32 %v1819_v51, %v1815_v47  ;;  %v2159_v21 = vrot.slane %v4360_v13, 5  ;;  %v2154_v19 = vrot.slane %v2152_v12, 4  ;;  %v4359_v23 = vld [vmem:[%s4833_s20 + $0xc0] sm:$0xe] }
 0x1e3   : > { %1128 = vrot.lane.b32.xlu0 %v1061_v24, %s4787_s22  ;;  %v6243_v38 = vpack.c.bf16 %v3780_v28, %v3779_v15  ;;  %v1811_v15 = vrot.slane %v1810_v5, 4  ;;  %v4453_v25 = vld [vmem:[%s4833_s20 + $0xc4] sm:$0xf]  ;;  %v4452_v28 = vld [vmem:[%s4833_s20 + $0xc0] sm:$0xf]  ;;  %v4377_v31 = vrot.slane %v4359_v23, 9 }
 0x1e4   : > { %v1870_v36 = vpop.permute.xlu1 %1869  ;;  %v1821_v10 = vrot.slane %v1820_v61, 4  ;;  %v2156_v32 = vsel %vm4835_vm2, %v2154_v19, %v2155_v22  ;;  %v2881_v33 = vshll.u32 %v4453_v25, 16  ;;  %v2885_v34 = vshrl.u32 %v4453_v25, 16  ;;  %v4454_v46 = vld [vmem:[%s4833_s20 + $0xc8] sm:$0x1] }
 0x1e5   : > { %1945 = vst.msk [vmem:[#allocation2 + $0x54] sm:$0xf] %vm1923_vm11, %v1870_v36  ;;  %v1868_v42 = vpop.permute.xlu0 %1867  ;;  %v1816_v26 = vsel %vm4933_vm6, %v1811_v15, %v1815_v47  ;;  %v2153_v36 = vsel %vm4835_vm2, %v4376_v50, %v2152_v12  ;;  %v2872_v37 = vshrl.u32 %v4452_v28, 16  ;;  %v2875_v39 = vshll.u32 %v4452_v28, 16  ;;  %v4407_v59 = vld [vmem:[%s4833_s20 + $0xc4] sm:$0xf] }
 0x1e6   : > { %1944 = vst.msk [vmem:[#allocation2 + $0x50] sm:$0xf] %vm1923_vm11, %v1868_v42  ;;  %1134 = vrot.lane.b32.xlu1 %v1071_v29, %s4787_s22  ;;  %v1826_v63 = vsel %vm4933_vm6, %v1821_v10, %v1825_v11  ;;  %v2161_v29 = vrot.slane %v2159_v21, 4  ;;  %v4455_v42 = vld [vmem:[%s4833_s20 + $0xcc] sm:$0xf]  ;;  %v2160_v44 = vsel %vm4835_vm2, %v4377_v31, %v2159_v21  ;;  %v2883_v45 = vrot.slane %v2881_v33, 5 }
 0x1e7   : > { %1132 = vrot.lane.b32.xlu0 %v1068_v30, %s4787_s22  ;;  %v2162_v30 = vrot.slane %v4361_v17, 5  ;;  %v2887_v47 = vrot.slane %v2885_v34, 4  ;;  %v2905_v51 = vshll.u32 %v4456_v40, 16  ;;  %v2874_v54 = vrot.slane %v2872_v37, 4  ;;  %v4406_v3 = vld [vmem:[%s4833_s20 + $0xc0] sm:$0xf] }
 0x1e8   : > { %v1874_v48 = vpop.permute.xlu1 %1873  ;;  %v2877_v55 = vrot.slane %v2875_v39, 5  ;;  %v2896_v56 = vshrl.u32 %v4455_v42, 16  ;;  %v2891_v61 = vshll.u32 %v4454_v46, 16  ;;  %v4457_v7 = vld [vmem:[%s4833_s20 + $0xd4] sm:$0x1] }
 0x1e9   : > { %1947 = vst.msk [vmem:[#allocation2 + $0x5c] sm:$0xf] %vm1923_vm11, %v1874_v48  ;;  %v1872_v57 = vpop.permute.xlu0 %1871  ;;  %v2909_v48 = vshrl.u32 %v4456_v40, 16  ;;  %v2888_v60 = vor.u32 %v2887_v47, %v2883_v45  ;;  %v2907_v62 = vrot.slane %v2905_v51, 5  ;;  %v4409_v11 = vld [vmem:[%s4833_s20 + $0xd0] sm:$0xf] }
 0x1ea   : > { %1946 = vst.msk [vmem:[#allocation2 + $0x58] sm:$0xf] %vm1923_vm11, %v1872_v57  ;;  %1324 = vrot.lane.b32.xlu1 %v4263_v43, %s4786_s21  ;;  %v2163_v43 = vsel %vm4835_vm2, %v2161_v29, %v2162_v30  ;;  %v2899_v57 = vshll.u32 %v4455_v42, 16  ;;  %v2878_v5 = vor.u32 %v2877_v55, %v2874_v54  ;;  %v2893_v13 = vrot.slane %v2891_v61, 5  ;;  %v4408_v16 = vld [vmem:[%s4833_s20 + $0xcc] sm:$0xf] }
 0x1eb   : > { %1322 = vrot.lane.b32.xlu0 %v4262_v52, %s4786_s21  ;;  %v2889_v12 = vrot.slane %v2888_v60, 4  ;;  %v4501_v21 = vld [vmem:[%s4833_s20 + $0xc4] sm:$0xf]  ;;  %v4502_v25 = vld [vmem:[%s4833_s20 + $0xc8] sm:$0x1] }
 0x1ec   : > { %v2207_v1 = vpop.permute.xlu1 %2206  ;;  %v3244_v23 = vrot.slane %v4501_v21, 5  ;;  %v4500_v29 = vld [vmem:[%s4833_s20 + $0xc0] sm:$0xe]  ;;  %v4505_v37 = vld [vmem:[%s4833_s20 + $0xd4] sm:$0x1] }
 0x1ed   : > { %2282 = vst.msk [vmem:[#allocation2 + $0x54] sm:$0xf] %vm2260_vm12, %v2207_v1  ;;  %v2205_v8 = vpop.permute.xlu0 %2204  ;;  %v2911_v1 = vrot.slane %v2909_v48, 4  ;;  %v2894_v19 = vsel %vm4933_vm6, %v2889_v12, %v2893_v13  ;;  %v3254_v49 = vrot.slane %v4505_v37, 5 }
 0x1ee   : > { %2281 = vst.msk [vmem:[#allocation2 + $0x50] sm:$0xf] %vm2260_vm12, %v2205_v8  ;;  %1328 = vrot.lane.b32.xlu1 %v4265_v58, %s4786_s21  ;;  %v2898_v8 = vrot.slane %v2896_v56, 4  ;;  %v3246_v31 = vrot.slane %v3244_v23, 4 }
 0x1ef   : > { %1326 = vrot.lane.b32.xlu0 %v4264_v2, %s4786_s21 }
 0x1f0   : > { %v2211_v14 = vpop.permute.xlu1 %2210 }
 0x1f1   : > { %2284 = vst.msk [vmem:[#allocation2 + $0x5c] sm:$0xf] %vm2260_vm12, %v2211_v14  ;;  %v2209_v18 = vpop.permute.xlu0 %2208  ;;  %v2912_v14 = vor.u32 %v2911_v1, %v2907_v62 }
 0x1f2   : > { %2283 = vst.msk [vmem:[#allocation2 + $0x58] sm:$0xf] %vm2260_vm12, %v2209_v18  ;;  %1885 = vrot.lane.b32.xlu1 %v1802_v9, %s4789_s24  ;;  %v2901_v9 = vrot.slane %v2899_v57, 5  ;;  %v2879_v18 = vrot.slane %v2878_v5, 4 }
 0x1f3   : > { %1883 = vrot.lane.b32.xlu0 %v1792_v6, %s4789_s24  ;;  %v2915_v6 = vshll.u32 %v4457_v7, 16  ;;  %v2913_v22 = vrot.slane %v2912_v14, 4 }
 0x1f4   : > { %v2401_v24 = vpop.permute.xlu1 %2400  ;;  %v2902_v20 = vor.u32 %v2901_v9, %v2898_v8 }
 0x1f5   : > { %2476 = vst.msk [vmem:[#allocation2 + $0x54] sm:$0xf] %vm2454_vm13, %v2401_v24  ;;  %v2399_v27 = vpop.permute.xlu0 %2398  ;;  %v2917_v17 = vrot.slane %v2915_v6, 5 }
 0x1f6   : > { %2475 = vst.msk [vmem:[#allocation2 + $0x50] sm:$0xf] %vm2454_vm13, %v2399_v27  ;;  %1889 = vrot.lane.b32.xlu1 %v1826_v63, %s4789_s24  ;;  %v2903_v50 = vrot.slane %v2902_v20, 4  ;;  %v4504_v27 = vld [vmem:[%s4833_s20 + $0xd0] sm:$0xf] }
 0x1f7   : > { %1887 = vrot.lane.b32.xlu0 %v1816_v26, %s4789_s24  ;;  %v2884_v26 = vsel %vm4933_vm6, %v2879_v18, %v2883_v45  ;;  %v2918_v30 = vsel %vm4933_vm6, %v2913_v22, %v2917_v17  ;;  %v3251_v33 = vrot.slane %v4504_v27, 5 }
 0x1f8   : > { %v2405_v35 = vpop.permute.xlu1 %2404 }
 0x1f9   : > { %2478 = vst.msk [vmem:[#allocation2 + $0x5c] sm:$0xf] %vm2454_vm13, %v2405_v35  ;;  %v2403_v41 = vpop.permute.xlu0 %2402  ;;  %v2908_v35 = vsel %vm4933_vm6, %v2903_v50, %v2907_v62 }
 0x1fa   : > { %2477 = vst.msk [vmem:[#allocation2 + $0x58] sm:$0xf] %vm2454_vm13, %v2403_v41  ;;  %2222 = vrot.lane.b32.xlu1 %v2156_v32, %s4790_s27  ;;  %v3247_v32 = vrot.slane %v4502_v25, 5  ;;  %v4503_v41 = vld [vmem:[%s4833_s20 + $0xcc] sm:$0xe] }
 0x1fb   : > { %2220 = vrot.lane.b32.xlu0 %v2153_v36, %s4790_s27  ;;  %v4520_v36 = vrot.slane %v4500_v29, 9  ;;  %v4521_v47 = vrot.slane %v4503_v41, 9 }
 0x1fc   : > { %v2962_v52 = vpop.permute.xlu1 %2961  ;;  %v3248_v42 = vsel %vm4835_vm2, %v3246_v31, %v3247_v32 }
 0x1fd   : > { %3037 = vst.msk [vmem:[#allocation2 + $0x54] sm:$0xf] %vm3015_vm14, %v2962_v52  ;;  %v2960_v58 = vpop.permute.xlu0 %2959  ;;  %v3245_v45 = vsel %vm4835_vm2, %v4520_v36, %v3244_v23  ;;  %v3252_v46 = vsel %vm4835_vm2, %v4521_v47, %v3251_v33 }
 0x1fe   : > { %3036 = vst.msk [vmem:[#allocation2 + $0x50] sm:$0xf] %vm3015_vm14, %v2960_v58  ;;  %2226 = vrot.lane.b32.xlu1 %v2163_v43, %s4790_s27  ;;  %v3253_v43 = vrot.slane %v3251_v33, 4 }
 0x1ff   : > { %2224 = vrot.lane.b32.xlu0 %v2160_v44, %s4790_s27 }
 0x200   : > { %v2966_v2 = vpop.permute.xlu1 %2965  ;;  %v3255_v48 = vsel %vm4835_vm2, %v3253_v43, %v3254_v49  ;;  %vm4014_vm2 = vcmask 1040384  }
 0x201   : > { %3039 = vst.msk [vmem:[#allocation2 + $0x5c] sm:$0xf] %vm3015_vm14, %v2966_v2  ;;  %v2964_v10 = vpop.permute.xlu0 %2963  ;;  %vm6514_vm5 = vmand %vm4014_vm2, %vm4015_vm3 }
 0x202   : > { %3038 = vst.msk [vmem:[#allocation2 + $0x58] sm:$0xf] %vm3015_vm14, %v2964_v10  ;;  %2416 = vrot.lane.b32.xlu1 %v4407_v59, %s4791_s6 }
 0x203   : > { %2414 = vrot.lane.b32.xlu0 %v4406_v3, %s4791_s6 }
 0x204   : > { %v3299_v15 = vpop.permute.xlu1 %3298 }
 0x205   : > { %3374 = vst.msk [vmem:[#allocation2 + $0x54] sm:$0xf] %vm3352_vm15, %v3299_v15  ;;  %v3297_v63 = vpop.permute.xlu0 %3296 }
 0x206   : > { %3373 = vst.msk [vmem:[#allocation2 + $0x50] sm:$0xf] %vm3352_vm15, %v3297_v63  ;;  %2420 = vrot.lane.b32.xlu1 %v4409_v11, %s4791_s6 }
 0x207   : > { %2418 = vrot.lane.b32.xlu0 %v4408_v16, %s4791_s6 }
 0x208   : > { %v783_v24 = vpop.permute.xlu1 %782 }
 0x209   : > { %854 = vst.msk [vmem:[#allocation2 + $0x64] sm:$0xf] %vm828_vm8, %v783_v24  ;;  %v781_v28 = vpop.permute.xlu0 %780 }
 0x20a   : > { %853 = vst.msk [vmem:[#allocation2 + $0x60] sm:$0xf] %vm828_vm8, %v781_v28  ;;  %2977 = vrot.lane.b32.xlu1 %v2894_v19, %s4792_s11 }
 0x20b   : > { %2975 = vrot.lane.b32.xlu0 %v2884_v26, %s4792_s11 }
 0x20c   : > { %v3303_v34 = vpop.permute.xlu1 %3302 }
 0x20d   : > { %3376 = vst.msk [vmem:[#allocation2 + $0x5c] sm:$0xf] %vm3352_vm15, %v3303_v34  ;;  %v3301_v39 = vpop.permute.xlu0 %3300  ;;  %v4762_v40 = vld [vmem:[#allocation2 + $0x50] sm:$0xff]  }
 0x20e   : > { %3375 = vst.msk [vmem:[#allocation2 + $0x58] sm:$0xf] %vm3352_vm15, %v3301_v39  ;;  %2981 = vrot.lane.b32.xlu1 %v2918_v30, %s4792_s11  ;;  %4681 = vmatprep.mubr.bf16.mxu0 %v4762_v40 }
 0x20f   : > { %2979 = vrot.lane.b32.xlu0 %v2908_v35, %s4792_s11 }
 0x210   : > { %v787_v44 = vpop.permute.xlu1 %786 }
 0x211   : > { %856 = vst.msk [vmem:[#allocation2 + $0x6c] sm:$0xf] %vm828_vm8, %v787_v44  ;;  %v785_v51 = vpop.permute.xlu0 %784 }
 0x212   : > { %855 = vst.msk [vmem:[#allocation2 + $0x68] sm:$0xf] %vm828_vm8, %v785_v51  ;;  %3314 = vrot.lane.b32.xlu1 %v3248_v42, %s4793_s18 }
 0x213   : > { %3312 = vrot.lane.b32.xlu0 %v3245_v45, %s4793_s18 }
 0x214   : > { %v1123_v52 = vpop.permute.xlu1 %1122 }
 0x215   : > { %1194 = vst.msk [vmem:[#allocation2 + $0x64] sm:$0xf] %vm1168_vm9, %v1123_v52  ;;  %v1121_v54 = vpop.permute.xlu0 %1120  ;;  %v4763_v55 = vld [vmem:[#allocation2 + $0x58] sm:$0xff]  }
 0x216   : > { %1193 = vst.msk [vmem:[#allocation2 + $0x60] sm:$0xf] %vm1168_vm9, %v1121_v54  ;;  %3318 = vrot.lane.b32.xlu1 %v3255_v48, %s4793_s18  ;;  %4682 = vmatmul.mubr.bf16.gmra.mxu0 %v4763_v55 }
 0x217   : > { %3316 = vrot.lane.b32.xlu0 %v3252_v46, %s4793_s18 }
 0x218   : > { %v1127_v56 = vpop.permute.xlu1 %1126 }
 0x219   : > { %1196 = vst.msk [vmem:[#allocation2 + $0x6c] sm:$0xf] %vm1168_vm9, %v1127_v56  ;;  %v1125_v57 = vpop.permute.xlu0 %1124 }
 0x21a   : > { %1195 = vst.msk [vmem:[#allocation2 + $0x68] sm:$0xf] %vm1168_vm9, %v1125_v57  ;;  %v4768_v57 = vld [vmem:[%s6589_s3] sm:$0xff]  }
 0x21b   : > { %4709 = vmatprep.mubr.bf16.mxu1 %v4768_v57 }
 0x21c   : > { %v1317_v58 = vpop.permute.xlu1 %1316 }
 0x21d   : > { %1388 = vst.msk [vmem:[#allocation2 + $0x64] sm:$0xf] %vm1362_vm10, %v1317_v58  ;;  %v1315_v0 = vpop.permute.xlu0 %1314  ;;  %v6419_v58 = vpop.f32.mrf.mxu0 }
 0x21e   : > { %1387 = vst.msk [vmem:[#allocation2 + $0x60] sm:$0xf] %vm1362_vm10, %v1315_v0 }
 0x21f   : > { %v6421_v0 = vpop.f32.mrf.mxu0 }
 0x220   : > { %v1321_v59 = vpop.permute.xlu1 %1320 }
 0x221   : > { %1390 = vst.msk [vmem:[#allocation2 + $0x6c] sm:$0xf] %vm1362_vm10, %v1321_v59  ;;  %v1319_v60 = vpop.permute.xlu0 %1318  ;;  %v6423_v59 = vpop.f32.mrf.mxu0 }
 0x222   : > { %1389 = vst.msk [vmem:[#allocation2 + $0x68] sm:$0xf] %vm1362_vm10, %v1319_v60 }
 0x223   : > { %v6425_v60 = vpop.f32.mrf.mxu0 }
 0x224   : > { %v1878_v61 = vpop.permute.xlu1 %1877 }
 0x225   : > { %1949 = vst.msk [vmem:[#allocation2 + $0x64] sm:$0xf] %vm1923_vm11, %v1878_v61  ;;  %v1876_v62 = vpop.permute.xlu0 %1875 }
 0x226   : > { %1948 = vst.msk [vmem:[#allocation2 + $0x60] sm:$0xf] %vm1923_vm11, %v1876_v62 }
 0x228   : > { %v1882_v1 = vpop.permute.xlu1 %1881 }
 0x229   : > { %1951 = vst.msk [vmem:[#allocation2 + $0x6c] sm:$0xf] %vm1923_vm11, %v1882_v1  ;;  %v1880_v2 = vpop.permute.xlu0 %1879 }
 0x22a   : > { %1950 = vst.msk [vmem:[#allocation2 + $0x68] sm:$0xf] %vm1923_vm11, %v1880_v2 }
 0x22c   : > { %v2215_v3 = vpop.permute.xlu1 %2214 }
 0x22d   : > { %2286 = vst.msk [vmem:[#allocation2 + $0x64] sm:$0xf] %vm2260_vm12, %v2215_v3  ;;  %v2213_v5 = vpop.permute.xlu0 %2212 }
 0x22e   : > { %2285 = vst.msk [vmem:[#allocation2 + $0x60] sm:$0xf] %vm2260_vm12, %v2213_v5 }
 0x230   : > { %v2219_v7 = vpop.permute.xlu1 %2218 }
 0x231   : > { %2288 = vst.msk [vmem:[#allocation2 + $0x6c] sm:$0xf] %vm2260_vm12, %v2219_v7  ;;  %v2217_v8 = vpop.permute.xlu0 %2216 }
 0x232   : > { %2287 = vst.msk [vmem:[#allocation2 + $0x68] sm:$0xf] %vm2260_vm12, %v2217_v8 }
 0x234   : > { %v2409_v9 = vpop.permute.xlu1 %2408 }
 0x235   : > { %2480 = vst.msk [vmem:[#allocation2 + $0x64] sm:$0xf] %vm2454_vm13, %v2409_v9  ;;  %v2407_v10 = vpop.permute.xlu0 %2406 }
 0x236   : > { %2479 = vst.msk [vmem:[#allocation2 + $0x60] sm:$0xf] %vm2454_vm13, %v2407_v10 }
 0x238   : > { %v2413_v11 = vpop.permute.xlu1 %2412 }
 0x239   : > { %2482 = vst.msk [vmem:[#allocation2 + $0x6c] sm:$0xf] %vm2454_vm13, %v2413_v11  ;;  %v2411_v12 = vpop.permute.xlu0 %2410 }
 0x23a   : > { %2481 = vst.msk [vmem:[#allocation2 + $0x68] sm:$0xf] %vm2454_vm13, %v2411_v12 }
 0x23c   : > { %v2970_v13 = vpop.permute.xlu1 %2969 }
 0x23d   : > { %3041 = vst.msk [vmem:[#allocation2 + $0x64] sm:$0xf] %vm3015_vm14, %v2970_v13  ;;  %v2968_v14 = vpop.permute.xlu0 %2967 }
 0x23e   : > { %3040 = vst.msk [vmem:[#allocation2 + $0x60] sm:$0xf] %vm3015_vm14, %v2968_v14 }
 0x240   : > { %v2974_v6 = vpop.permute.xlu1 %2973 }
 0x241   : > { %3043 = vst.msk [vmem:[#allocation2 + $0x6c] sm:$0xf] %vm3015_vm14, %v2974_v6  ;;  %v2972_v15 = vpop.permute.xlu0 %2971 }
 0x242   : > { %3042 = vst.msk [vmem:[#allocation2 + $0x68] sm:$0xf] %vm3015_vm14, %v2972_v15 }
 0x244   : > { %v3307_v16 = vpop.permute.xlu1 %3306 }
 0x245   : > { %3378 = vst.msk [vmem:[#allocation2 + $0x64] sm:$0xf] %vm3352_vm15, %v3307_v16  ;;  %v3305_v18 = vpop.permute.xlu0 %3304 }
 0x246   : > { %3377 = vst.msk [vmem:[#allocation2 + $0x60] sm:$0xf] %vm3352_vm15, %v3305_v18 }
 0x248   : > { %v791_v20 = vpop.permute.xlu1 %790 }
 0x249   : > { %858 = vst.msk [vmem:[#allocation2 + $0x74] sm:$0xf] %vm828_vm8, %v791_v20  ;;  %v789_v21 = vpop.permute.xlu0 %788  ;;  %v4776_v20 = vld [vmem:[%s6588_s2] ss:$0 sm:$0xff] }
 0x24a   : > { %857 = vst.msk [vmem:[#allocation2 + $0x70] sm:$0xf] %vm828_vm8, %v789_v21 }
 0x24c   : > { %v3311_v63 = vpop.permute.xlu1 %3310 }
 0x24d   : > { %3380 = vst.msk [vmem:[#allocation2 + $0x6c] sm:$0xf] %vm3352_vm15, %v3311_v63  ;;  %v3309_v19 = vpop.permute.xlu0 %3308  ;;  %v4764_v22 = vld [vmem:[#allocation2 + $0x60] sm:$0xff]  }
 0x24e   : > { %3379 = vst.msk [vmem:[#allocation2 + $0x68] sm:$0xf] %vm3352_vm15, %v3309_v19  ;;  %4685 = vmatprep.mubr.bf16.mxu0 %v4764_v22 }
 0x250   : > { %v795_v17 = vpop.permute.xlu1 %794 }
 0x251   : > { %860 = vst.msk [vmem:[#allocation2 + $0x7c] sm:$0xf] %vm828_vm8, %v795_v17  ;;  %v793_v23 = vpop.permute.xlu0 %792 }
 0x252   : > { %859 = vst.msk [vmem:[#allocation2 + $0x78] sm:$0xf] %vm828_vm8, %v793_v23 }
 0x254   : > { %v1131_v24 = vpop.permute.xlu1 %1130 }
 0x255   : > { %1198 = vst.msk [vmem:[#allocation2 + $0x74] sm:$0xf] %vm1168_vm9, %v1131_v24  ;;  %v1129_v26 = vpop.permute.xlu0 %1128  ;;  %v4765_v50 = vld [vmem:[#allocation2 + $0x68] sm:$0xff]  }
 0x256   : > { %1197 = vst.msk [vmem:[#allocation2 + $0x70] sm:$0xf] %vm1168_vm9, %v1129_v26  ;;  %4686 = vmatmul.mubr.bf16.gmra.mxu0 %v4765_v50  ;;  %v6427_v61 = vpop.f32.mrf.mxu0 }
 0x258   : > { %v1135_v25 = vpop.permute.xlu1 %1134  ;;  %v3666_v62 = vpop.f32.mrf.mxu0 }
 0x259   : > { %1200 = vst.msk [vmem:[#allocation2 + $0x7c] sm:$0xf] %vm1168_vm9, %v1135_v25  ;;  %v1133_v27 = vpop.permute.xlu0 %1132 }
 0x25a   : > { %1199 = vst.msk [vmem:[#allocation2 + $0x78] sm:$0xf] %vm1168_vm9, %v1133_v27  ;;  %v4676_v1 = vpop.f32.mrf.mxu0 }
 0x25c   : > { %v1325_v28 = vpop.permute.xlu1 %1324  ;;  %v3669_v2 = vpop.f32.mrf.mxu0 }
 0x25d   : > { %1392 = vst.msk [vmem:[#allocation2 + $0x74] sm:$0xf] %vm1362_vm10, %v1325_v28  ;;  %v1323_v29 = vpop.permute.xlu0 %1322 }
 0x25e   : > { %1391 = vst.msk [vmem:[#allocation2 + $0x70] sm:$0xf] %vm1362_vm10, %v1323_v29 }
 0x260   : > { %v1329_v30 = vpop.permute.xlu1 %1328 }
 0x261   : > { %1394 = vst.msk [vmem:[#allocation2 + $0x7c] sm:$0xf] %vm1362_vm10, %v1329_v30  ;;  %v1327_v31 = vpop.permute.xlu0 %1326 }
 0x262   : > { %1393 = vst.msk [vmem:[#allocation2 + $0x78] sm:$0xf] %vm1362_vm10, %v1327_v31 }
 0x264   : > { %v1886_v32 = vpop.permute.xlu1 %1885 }
 0x265   : > { %1953 = vst.msk [vmem:[#allocation2 + $0x74] sm:$0xf] %vm1923_vm11, %v1886_v32  ;;  %v1884_v33 = vpop.permute.xlu0 %1883 }
 0x266   : > { %1952 = vst.msk [vmem:[#allocation2 + $0x70] sm:$0xf] %vm1923_vm11, %v1884_v33 }
 0x268   : > { %v1890_v34 = vpop.permute.xlu1 %1889 }
 0x269   : > { %1955 = vst.msk [vmem:[#allocation2 + $0x7c] sm:$0xf] %vm1923_vm11, %v1890_v34  ;;  %v1888_v35 = vpop.permute.xlu0 %1887 }
 0x26a   : > { %1954 = vst.msk [vmem:[#allocation2 + $0x78] sm:$0xf] %vm1923_vm11, %v1888_v35 }
 0x26c   : > { %v2223_v36 = vpop.permute.xlu1 %2222 }
 0x26d   : > { %2290 = vst.msk [vmem:[#allocation2 + $0x74] sm:$0xf] %vm2260_vm12, %v2223_v36  ;;  %v2221_v37 = vpop.permute.xlu0 %2220 }
 0x26e   : > { %2289 = vst.msk [vmem:[#allocation2 + $0x70] sm:$0xf] %vm2260_vm12, %v2221_v37 }
 0x270   : > { %v2227_v39 = vpop.permute.xlu1 %2226 }
 0x271   : > { %2292 = vst.msk [vmem:[#allocation2 + $0x7c] sm:$0xf] %vm2260_vm12, %v2227_v39  ;;  %v2225_v40 = vpop.permute.xlu0 %2224 }
 0x272   : > { %2291 = vst.msk [vmem:[#allocation2 + $0x78] sm:$0xf] %vm2260_vm12, %v2225_v40 }
 0x274   : > { %v2417_v41 = vpop.permute.xlu1 %2416 }
 0x275   : > { %2484 = vst.msk [vmem:[#allocation2 + $0x74] sm:$0xf] %vm2454_vm13, %v2417_v41  ;;  %v2415_v42 = vpop.permute.xlu0 %2414 }
 0x276   : > { %2483 = vst.msk [vmem:[#allocation2 + $0x70] sm:$0xf] %vm2454_vm13, %v2415_v42 }
 0x278   : > { %v2421_v43 = vpop.permute.xlu1 %2420 }
 0x279   : > { %2486 = vst.msk [vmem:[#allocation2 + $0x7c] sm:$0xf] %vm2454_vm13, %v2421_v43  ;;  %v2419_v49 = vpop.permute.xlu0 %2418 }
 0x27a   : > { %2485 = vst.msk [vmem:[#allocation2 + $0x78] sm:$0xf] %vm2454_vm13, %v2419_v49 }
 0x27c   : > { %v2978_v44 = vpop.permute.xlu1 %2977 }
 0x27d   : > { %3045 = vst.msk [vmem:[#allocation2 + $0x74] sm:$0xf] %vm3015_vm14, %v2978_v44  ;;  %v2976_v45 = vpop.permute.xlu0 %2975 }
 0x27e   : > { %3044 = vst.msk [vmem:[#allocation2 + $0x70] sm:$0xf] %vm3015_vm14, %v2976_v45 }
 0x280   : > { %v2982_v47 = vpop.permute.xlu1 %2981 }
 0x281   : > { %3047 = vst.msk [vmem:[#allocation2 + $0x7c] sm:$0xf] %vm3015_vm14, %v2982_v47  ;;  %v2980_v51 = vpop.permute.xlu0 %2979 }
 0x282   : > { %3046 = vst.msk [vmem:[#allocation2 + $0x78] sm:$0xf] %vm3015_vm14, %v2980_v51 }
 0x284   : > { %v3315_v48 = vpop.permute.xlu1 %3314 }
 0x285   : > { %3382 = vst.msk [vmem:[#allocation2 + $0x74] sm:$0xf] %vm3352_vm15, %v3315_v48  ;;  %v3313_v52 = vpop.permute.xlu0 %3312 }
 0x286   : > { %3381 = vst.msk [vmem:[#allocation2 + $0x70] sm:$0xf] %vm3352_vm15, %v3313_v52 }
 0x288   : > { %v3319_v46 = vpop.permute.xlu1 %3318 }
 0x289   : > { %3384 = vst.msk [vmem:[#allocation2 + $0x7c] sm:$0xf] %vm3352_vm15, %v3319_v46  ;;  %v3317_v54 = vpop.permute.xlu0 %3316  ;;  %v3670_v46 = vadd.f32 %v4776_v20, %v3669_v2 }
 0x28a   : > { %3383 = vst.msk [vmem:[#allocation2 + $0x78] sm:$0xf] %vm3352_vm15, %v3317_v54 }
 0x28d   : > { %v4766_v55 = vld [vmem:[#allocation2 + $0x70] sm:$0xff]  }
 0x28e   : > { %4689 = vmatprep.mubr.bf16.mxu0 %v4766_v55 }
 0x291   : > { %v4767_v56 = vld [vmem:[#allocation2 + $0x78] sm:$0xff]  }
 0x292   : > { %4690 = vmatmul.mubr.bf16.gmra.mxu0 %v4767_v56 }
 0x296   : > { %v4679_v3 = vpop.f32.mrf.mxu0 }
 0x297   : > { %v3691_v54 = vadd.f32 %v4776_v20, %v4679_v3 }
 0x298   : > { %v3682_v5 = vpop.f32.mrf.mxu0 }
 0x299   : > { %v3683_v44 = vadd.f32 %v4776_v20, %v3682_v5  ;;  %v3654_v5 = vadd.f32 %v4776_v20, %v6425_v60 }
 0x29a   : > { %v4680_v7 = vpop.f32.mrf.mxu0 }
 0x29b   : > { %v3694_v45 = vadd.f32 %v4776_v20, %v4680_v7  ;;  %v3675_v7 = vadd.f32 %v4776_v20, %v6427_v61 }
 0x29c   : > { %v3685_v8 = vpop.f32.mrf.mxu0 }
 0x29d   : > { %v3686_v37 = vadd.f32 %v4776_v20, %v3685_v8  ;;  %v3667_v8 = vadd.f32 %v4776_v20, %v3666_v62 }
 0x29f   : > { %v3762_v55 = vmax.f32 %v3686_v37, 0.0  ;;  %v3757_v62 = vmax.f32 %v3667_v8, 0.0 }
 0x2d6   : > { %v4683_v9 = vpop.f32.mrf.mxu0 }
 0x2d7   : > { %v3707_v39 = vadd.f32 %v4776_v20, %v4683_v9  ;;  %v3678_v9 = vadd.f32 %v4776_v20, %v4676_v1 }
 0x2d8   : > { %v3698_v10 = vpop.f32.mrf.mxu0 }
 0x2d9   : > { %v3699_v30 = vadd.f32 %v4776_v20, %v3698_v10  ;;  %v3767_v56 = vmax.f32 %v3707_v39, 0.0 }
 0x2da   : > { %v4684_v11 = vpop.f32.mrf.mxu0 }
 0x2db   : > { %v3710_v31 = vadd.f32 %v4776_v20, %v4684_v11  ;;  %v3765_v47 = vmax.f32 %v3699_v30, 0.0  ;;  %v3761_v11 = vmax.f32 %v3683_v44, 0.0 }
 0x2dc   : > { %v3701_v12 = vpop.f32.mrf.mxu0 }
 0x2dd   : > { %v3702_v26 = vadd.f32 %v4776_v20, %v3701_v12  ;;  %v3768_v51 = vmax.f32 %v3710_v31, 0.0  ;;  %v3764_v12 = vmax.f32 %v3694_v45, 0.0 }
 0x2df   : > { %v3766_v40 = vmax.f32 %v3702_v26, 0.0  ;;  %v3786_v2 = vmax.f32 %v3762_v55, %v3764_v12  ;;  %v4566_v55 = vld [vmem:[%s6466_s25 + $0x18] sm:$0xf] }
 0x2e1   : > { %v3788_v57 = vmax.f32 %v3766_v40, %v3768_v51 }
 0x316   : > { %v4687_v13 = vpop.f32.mrf.mxu0 }
 0x317   : > { %v3723_v25 = vadd.f32 %v4776_v20, %v4687_v13  ;;  %v3787_v13 = vmax.f32 %v3765_v47, %v3767_v56  ;;  %v4568_v56 = vld [vmem:[%s6466_s25 + $0x1c] sm:$0x1] }
 0x318   : > { %v3714_v14 = vpop.f32.mrf.mxu0 }
 0x319   : > { %v3715_v19 = vadd.f32 %v4776_v20, %v3714_v14  ;;  %v3771_v41 = vmax.f32 %v3723_v25, 0.0  ;;  %v3758_v14 = vmax.f32 %v3670_v46, 0.0  ;;  %v3814_v3 = vpack.c.bf16 %v3788_v57, %v3787_v13  ;;  %v4771_v25 = vld [vmem:[%s6589_s3 + $0x18] sm:$0xff]  }
 0x31a   : > { %v4688_v6 = vpop.f32.mrf.mxu0 }
 0x31b   : > { %v3726_v17 = vadd.f32 %v4776_v20, %v4688_v6  ;;  %v3769_v32 = vmax.f32 %v3715_v19, 0.0  ;;  %v3763_v6 = vmax.f32 %v3691_v54, 0.0  ;;  %v3759_v19 = vmax.f32 %v3675_v7, 0.0  ;;  %v4558_v7 = vld [vmem:[%s6466_s25 + $0xc] sm:$0x1] }
 0x31c   : > { %v3717_v15 = vpop.f32.mrf.mxu0 }
 0x31d   : > { %v3718_v21 = vadd.f32 %v4776_v20, %v3717_v15  ;;  %v3772_v33 = vmax.f32 %v3726_v17, 0.0  ;;  %v3789_v48 = vmax.f32 %v3769_v32, %v3771_v41  ;;  %v3651_v15 = vadd.f32 %v4776_v20, %v6421_v0 }
 0x31e   : > { %v3785_v1 = vmax.f32 %v3761_v11, %v3763_v6 }
 0x31f   : > { %v3770_v27 = vmax.f32 %v3718_v21, 0.0  ;;  %v3659_v21 = vadd.f32 %v4776_v20, %v6419_v58  ;;  %v3753_v61 = vmax.f32 %v3651_v15, 0.0  ;;  %v4769_v58 = vld [vmem:[%s6589_s3 + $0x8] sm:$0xff]  }
 0x321   : > { %v3790_v42 = vmax.f32 %v3770_v27, %v3772_v33  ;;  %v4774_v27 = vld [vmem:[%s6589_s3 + $0x30] sm:$0xff]  }
 0x323   : > { %v3815_v10 = vpack.c.bf16 %v3790_v42, %v3789_v48 }
 0x352   : > { %v4691_v16 = vpop.f32.mrf.mxu0 }
 0x353   : > { %v3739_v23 = vadd.f32 %v4776_v20, %v4691_v16  ;;  %v3662_v16 = vadd.f32 %v4776_v20, %v6423_v59 }
 0x354   : > { %v3730_v18 = vpop.f32.mrf.mxu0 }
 0x355   : > { %v3731_v63 = vadd.f32 %v4776_v20, %v3730_v18  ;;  %v3775_v34 = vmax.f32 %v3739_v23, 0.0  ;;  %v3760_v18 = vmax.f32 %v3678_v9, 0.0  ;;  %v3756_v17 = vmax.f32 %v3662_v16, 0.0 }
 0x356   : > { %v4692_v22 = vpop.f32.mrf.mxu0  ;;  %v3783_v23 = vmax.f32 %v3757_v62, %v3759_v19 }
 0x357   : > { %v3742_v24 = vadd.f32 %v4776_v20, %v4692_v22  ;;  %v3773_v28 = vmax.f32 %v3731_v63, 0.0  ;;  %v3754_v63 = vmax.f32 %v3654_v5, 0.0  ;;  %v3784_v60 = vmax.f32 %v3758_v14, %v3760_v18  ;;  %v4556_v5 = vld [vmem:[%s6466_s25 + $0x8] sm:$0xf] }
 0x358   : > { %v3733_v50 = vpop.f32.mrf.mxu0  ;;  %v3813_v22 = vpack.c.bf16 %v3786_v2, %v3785_v1 }
 0x359   : > { %v3734_v29 = vadd.f32 %v4776_v20, %v3733_v50  ;;  %v3776_v35 = vmax.f32 %v3742_v24, 0.0  ;;  %v3791_v43 = vmax.f32 %v3773_v28, %v3775_v34  ;;  %v3755_v24 = vmax.f32 %v3659_v21, 0.0  ;;  %v4770_v20 = vld [vmem:[%s6589_s3 + $0x10] sm:$0xff]   ;;  %v4775_v28 = vld [vmem:[%s6589_s3 + $0x38] sm:$0xff]  }
 0x35a   : > { %v3782_v0 = vmax.f32 %v3754_v63, %v3756_v17  ;;  %v3812_v26 = vpack.c.bf16 %v3784_v60, %v3783_v23  ;;  %v4571_v17 = vld [vmem:[%s6466_s25 + $0x20] sm:$0xf]  ;;  %v4573_v23 = vld [vmem:[%s6466_s25 + $0x24] sm:$0x1] }
 0x35b   : > { %v3774_v36 = vmax.f32 %v3734_v29, 0.0  ;;  %v3781_v59 = vmax.f32 %v3753_v61, %v3755_v24 }
 0x35d   : > { %v3792_v49 = vmax.f32 %v3774_v36, %v3776_v35  ;;  %v3811_v50 = vpack.c.bf16 %v3782_v0, %v3781_v59 }
 0x35f   : > { %v3816_v52 = vpack.c.bf16 %v3792_v49, %v3791_v43 }
 0x361   : > { %4693 = vmatprep.subr.bf16.mxu1 %v3816_v52 }
 0x362   : > { %4694 = vmatpush3.bf16.msra.mxu1 %v3816_v52 }
 0x363   : > { %4695 = vmatprep.subr.bf16.mxu1 %v3815_v10 }
 0x366   : > { %4696 = vmatpush3.bf16.msra.mxu1 %v3815_v10 }
 0x367   : > { %4697 = vmatprep.subr.bf16.mxu1 %v3814_v3 }
 0x36a   : > { %4698 = vmatpush3.bf16.msra.mxu1 %v3814_v3 }
 0x36b   : > { %4699 = vmatprep.subr.bf16.mxu1 %v3813_v22 }
 0x36e   : > { %4700 = vmatpush3.bf16.msra.mxu1 %v3813_v22 }
 0x36f   : > { %4701 = vmatprep.subr.bf16.mxu1 %v3812_v26 }
 0x372   : > { %4702 = vmatpush3.bf16.msra.mxu1 %v3812_v26 }
 0x373   : > { %4703 = vmatprep.subr.bf16.mxu1 %v3811_v50 }
 0x376   : > { %4704 = vmatpush3.bf16.msra.mxu1 %v3811_v50 }
 0x377   : > { %4705 = vmatprep.subr.bf16.mxu1 %v6243_v38 }
 0x37a   : > { %4706 = vmatpush3.bf16.msra.mxu1 %v6243_v38  ;;  %v4772_v38 = vld [vmem:[%s6589_s3 + $0x20] sm:$0xff]  }
 0x37b   : > { %4707 = vmatprep.subr.bf16.mxu1 %v6044_v53 }
 0x37e   : > { %4708 = vmatpush3.bf16.msra.mxu1 %v6044_v53  ;;  %v4773_v53 = vld [vmem:[%s6589_s3 + $0x28] sm:$0xff]  }
 0x381   : > { %4710 = vmatmul.mubr.bf16.vlgmr.msra.gmra.mxu1 %v4769_v58 }
 0x382   : > { %4713 = vmatprep.mubr.bf16.mxu1 %v4770_v20 }
 0x389   : > { %4714 = vmatmul.mubr.bf16.gmra.mxu1 %v4771_v25  ;;  %v4561_v25 = vld [vmem:[%s6466_s25 + $0x10] sm:$0xf] }
 0x38a   : > { %4717 = vmatprep.mubr.bf16.mxu1 %v4772_v38  ;;  %v4563_v38 = vld [vmem:[%s6466_s25 + $0x14] sm:$0x1] }
 0x391   : > { %4718 = vmatmul.mubr.bf16.gmra.mxu1 %v4773_v53 }
 0x392   : > { %4721 = vmatprep.mubr.bf16.mxu1 %v4774_v27 }
 0x399   : > { %4722 = vmatmul.mubr.bf16.gmra.mxu1 %v4775_v28 }
 0x441   : > { %v4711_v29 = vpop.f32.mrf.mxu1 }
 0x443   : > { %v3899_v30 = vpop.f32.mrf.mxu1 }
 0x445   : > { %v4712_v31 = vpop.f32.mrf.mxu1 }
 0x447   : > { %v3902_v32 = vpop.f32.mrf.mxu1 }
 0x449   : > { %v4715_v33 = vpop.f32.mrf.mxu1 }
 0x44b   : > { %v3915_v34 = vpop.f32.mrf.mxu1 }
 0x44d   : > { %v4716_v35 = vpop.f32.mrf.mxu1 }
 0x44f   : > { %v6508_v36 = vpop.f32.mrf.mxu1 }
 0x451   : > { %v4719_v37 = vpop.f32.mrf.mxu1 }
 0x452   : > { %v3964_v39 = vmax.f32 %v4711_v29, %v4719_v37 }
 0x453   : > { %v3931_v40 = vpop.f32.mrf.mxu1 }
 0x454   : > { %v4599_v41 = vpack.c.bf16 %v3964_v39, %v3964_v39  ;;  %v3962_v42 = vmax.f32 %v3899_v30, %v3931_v40  ;;  %v4586_v40 = vld [vmem:[%s6466_s25 + $0x38] sm:$0xf] }
 0x455   : > { %v4720_v4 = vpop.f32.mrf.mxu1 }
 0x456   : > { %v4043_v43 = vshrl.u32 %v4599_v41, 16  ;;  %v4597_v49 = vpack.c.bf16 %v3962_v42, %v3962_v42  ;;  %v3965_v44 = vmax.f32 %v4712_v31, %v4720_v4  ;;  %v4046_v48 = vshll.u32 %v4599_v41, 16  ;;  %v4588_v41 = vld [vmem:[%s6466_s25 + $0x3c] sm:$0x1] }
 0x457   : > { %v3934_v45 = vpop.f32.mrf.mxu1 }
 0x458   : > { %v4045_v51 = vrot.slane %v4043_v43, 7  ;;  %v3998_v52 = vshrl.u32 %v4597_v49, 16  ;;  %v4600_v46 = vpack.c.bf16 %v3965_v44, %v3965_v44  ;;  %v4001_v57 = vshll.u32 %v4597_v49, 16 }
 0x459   : > { %v3963_v10 = vmax.f32 %v3902_v32, %v3934_v45  ;;  %v4723_v8 = vpop.f32.mrf.mxu1 }
 0x45a   : > { %v4048_v9 = vor.u32 %v4046_v48, %v4045_v51  ;;  %v4049_v11 = vrot.slane %v4045_v51, 4  ;;  %v4000_v12 = vrot.slane %v3998_v52, 7  ;;  %v4062_v13 = vshrl.u32 %v4600_v46, 16  ;;  %v4576_v51 = vld [vmem:[%s6466_s25 + $0x28] sm:$0xf] }
 0x45b   : > { %v4065_v14 = vshll.u32 %v4600_v46, 16  ;;  %v4598_v6 = vpack.c.bf16 %v3963_v10, %v3963_v10  ;;  %v3968_v2 = vmax.f32 %v4715_v33, %v4723_v8  ;;  %v3947_v3 = vpop.f32.mrf.mxu1  ;;  %v4578_v48 = vld [vmem:[%s6466_s25 + $0x2c] sm:$0x1]  ;;  %v4591_v8 = vld [vmem:[%s6466_s25 + $0x40] sm:$0xf] }
 0x45c   : > { %v4054_v15 = vsel %vm6510_vm4, %v4048_v9, %v4566_v55  ;;  %v4057_v16 = vsel %vm6514_vm5, %v4049_v11, %v4568_v56  ;;  %v4003_v62 = vor.u32 %v4001_v57, %v4000_v12  ;;  %v4004_v18 = vrot.slane %v4000_v12, 4  ;;  %v4593_v9 = vld [vmem:[%s6466_s25 + $0x44] sm:$0x1] }
 0x45d   : > { %4567 = vst [vmem:[%s6466_s25 + $0x18] sm:$0xf] %v4054_v15  ;;  %4569 = vst [vmem:[%s6466_s25 + $0x1c] sm:$0x1] %v4057_v16  ;;  %v4064_v1 = vrot.slane %v4062_v13, 7  ;;  %v4023_v21 = vshrl.u32 %v4598_v6, 16  ;;  %v4603_v19 = vpack.c.bf16 %v3968_v2, %v3968_v2  ;;  %v4724_v60 = vpop.f32.mrf.mxu1  ;;  %v3966_v24 = vmax.f32 %v3915_v34, %v3947_v3 }
 0x45e   : > { %v4026_v63 = vshll.u32 %v4598_v6, 16  ;;  %v4012_v22 = vsel %vm6510_vm4, %v4003_v62, %v4556_v5  ;;  %v4018_v61 = vsel %vm6514_vm5, %v4004_v18, %v4558_v7  ;;  %v3969_v0 = vmax.f32 %v4716_v35, %v4724_v60  ;;  %v4581_v6 = vld [vmem:[%s6466_s25 + $0x30] sm:$0xf]  ;;  %v4583_v2 = vld [vmem:[%s6466_s25 + $0x34] sm:$0x1] }
 0x45f   : > { %4557 = vst [vmem:[%s6466_s25 + $0x8] sm:$0xf] %v4012_v22  ;;  %4559 = vst [vmem:[%s6466_s25 + $0xc] sm:$0x1] %v4018_v61  ;;  %v4067_v26 = vor.u32 %v4065_v14, %v4064_v1  ;;  %v4068_v59 = vrot.slane %v4064_v1, 4  ;;  %v4025_v50 = vrot.slane %v4023_v21, 7  ;;  %v3950_v20 = vpop.f32.mrf.mxu1  ;;  %v4601_v53 = vpack.c.bf16 %v3966_v24, %v3966_v24 }
 0x460   : > { %v4121_v58 = vshrl.u32 %v4603_v19, 16  ;;  %v4604_v27 = vpack.c.bf16 %v3969_v0, %v3969_v0  ;;  %v3967_v28 = vmax.f32 %v6508_v36, %v3950_v20  ;;  %v4124_v34 = vshll.u32 %v4603_v19, 16 }
 0x461   : > { %v4073_v29 = vsel %vm6510_vm4, %v4067_v26, %v4571_v17  ;;  %v4076_v30 = vsel %vm6514_vm5, %v4068_v59, %v4573_v23  ;;  %v4028_v31 = vor.u32 %v4026_v63, %v4025_v50  ;;  %v4029_v32 = vrot.slane %v4025_v50, 4 }
 0x462   : > { %4572 = vst [vmem:[%s6466_s25 + $0x20] sm:$0xf] %v4073_v29  ;;  %4574 = vst [vmem:[%s6466_s25 + $0x24] sm:$0x1] %v4076_v30  ;;  %v4123_v33 = vrot.slane %v4121_v58, 7  ;;  %v4082_v35 = vshrl.u32 %v4601_v53, 16  ;;  %v4602_v4 = vpack.c.bf16 %v3967_v28, %v3967_v28 }
 0x463   : > { %v4140_v37 = vshrl.u32 %v4604_v27, 16  ;;  %v4034_v36 = vsel %vm6510_vm4, %v4028_v31, %v4561_v25  ;;  %v4037_v39 = vsel %vm6514_vm5, %v4029_v32, %v4563_v38  ;;  %v4085_v42 = vshll.u32 %v4601_v53, 16 }
 0x464   : > { %4562 = vst [vmem:[%s6466_s25 + $0x10] sm:$0xf] %v4034_v36  ;;  %4564 = vst [vmem:[%s6466_s25 + $0x14] sm:$0x1] %v4037_v39  ;;  %v4126_v43 = vor.u32 %v4124_v34, %v4123_v33  ;;  %v4127_v49 = vrot.slane %v4123_v33, 4  ;;  %v4084_v44 = vrot.slane %v4082_v35, 7 }
 0x465   : > { %v4142_v45 = vrot.slane %v4140_v37, 7  ;;  %v4143_v52 = vshll.u32 %v4604_v27, 16  ;;  %v4101_v46 = vshrl.u32 %v4602_v4, 16  ;;  %v4104_v5 = vshll.u32 %v4602_v4, 16 }
 0x466   : > { %v4132_v55 = vsel %vm6510_vm4, %v4126_v43, %v4586_v40  ;;  %v4135_v56 = vsel %vm6514_vm5, %v4127_v49, %v4588_v41  ;;  %v4087_v57 = vor.u32 %v4085_v42, %v4084_v44  ;;  %v4088_v10 = vrot.slane %v4084_v44, 4 }
 0x467   : > { %4587 = vst [vmem:[%s6466_s25 + $0x38] sm:$0xf] %v4132_v55  ;;  %4589 = vst [vmem:[%s6466_s25 + $0x3c] sm:$0x1] %v4135_v56  ;;  %v4145_v11 = vor.u32 %v4143_v52, %v4142_v45  ;;  %v4146_v12 = vrot.slane %v4142_v45, 4  ;;  %v4103_v13 = vrot.slane %v4101_v46, 7 }
 0x468   : > { %v4093_v7 = vsel %vm6510_vm4, %v4087_v57, %v4576_v51  ;;  %v4096_v14 = vsel %vm6514_vm5, %v4088_v10, %v4578_v48 }
 0x469   : > { %4577 = vst [vmem:[%s6466_s25 + $0x28] sm:$0xf] %v4093_v7  ;;  %4579 = vst [vmem:[%s6466_s25 + $0x2c] sm:$0x1] %v4096_v14  ;;  %v4151_v3 = vsel %vm6510_vm4, %v4145_v11, %v4591_v8  ;;  %v4154_v15 = vsel %vm6514_vm5, %v4146_v12, %v4593_v9  ;;  %v4106_v16 = vor.u32 %v4104_v5, %v4103_v13  ;;  %v4107_v62 = vrot.slane %v4103_v13, 4 }
 0x46a   : > { %4592 = vst [vmem:[%s6466_s25 + $0x40] sm:$0xf] %v4151_v3  ;;  %4594 = vst [vmem:[%s6466_s25 + $0x44] sm:$0x1] %v4154_v15 }
 0x46b   : > { %v4112_v18 = vsel %vm6510_vm4, %v4106_v16, %v4581_v6  ;;  %v4115_v1 = vsel %vm6514_vm5, %v4107_v62, %v4583_v2 }
 0x46c   : > { %4582 = vst [vmem:[%s6466_s25 + $0x30] sm:$0xf] %v4112_v18  ;;  %4584 = vst [vmem:[%s6466_s25 + $0x34] sm:$0x1] %v4115_v1 }
 0x46d PF: > { %s14_s15 = sadd.s32 1, %s4783_s15  }
 0x46e   : > { %p11_p4 = scmp.ge.s32.totalorder %s14_s15, 4  }
 0x470   :  { %13 = sbr.rel (!%p11_p4) target bundleno = 1 (0x1), region = 76 }

</bundles_post_ra>
